<compile_context>
chip_gen: v5e
topology: v5e:2x2
jax: 0.10.0
libtpu: 0.0.40
codegen_flags: <defaults>
</compile_context>

<pallas_src>
import jax
import jax.numpy as jnp
from jax import lax
from jax.experimental import pallas as pl
from jax.experimental.pallas import tpu as pltpu

TILE_P = 2048   # pixels per grid step, lane axis (multiple of 128)
TILE_F = 512    # faces per grid step (multiple of 128)


def _interp_kernel(fmin_ref, fmax_ref, p2f_ref, bary_ref, fdepth_ref,
                   out_ref, acc_ref, iota_ref):
    # fmin_ref/fmax_ref: (n_pixel_tiles,) int32 SMEM  per-pixel-tile face id range (prefetch)
    # p2f_ref   : (1, TILE_P)  int32  pix_to_face for k=0 (-1 = background)
    # bary_ref  : (3, TILE_P)  f32    barycentric weights for k=0 (vertex index on sublanes)
    # fdepth_ref: (n_face_tiles, 9, TILE_F) bf16  resident hi/mid/lo split of vertex depths
    # out_ref   : (1, TILE_P)  f32    written only at the last face tile
    # acc_ref   : (3, TILE_P)  f32    scratch accumulator of gathered vertex depths
    # iota_ref  : (TILE_F, TILE_P) i32 scratch cache of the face-local row iota
    i = pl.program_id(0)
    j = pl.program_id(1)
    tile_f = iota_ref.shape[0]

    @pl.when(j == 0)
    def _init():
        acc_ref[...] = jnp.zeros_like(acc_ref)
        iota_ref[...] = lax.broadcasted_iota(jnp.int32, iota_ref.shape, 0)

    f_lo = j * tile_f
    overlap = jnp.logical_and(fmin_ref[i] < f_lo + tile_f, fmax_ref[i] >= f_lo)

    @pl.when(overlap)
    def _compute():
        # one-hot[f, p] = 1 iff pixel p hits global face (j*TILE_F + f); bf16 0/1 is exact
        local_idx = p2f_ref[...] - f_lo                                    # (1, TILE_P)
        onehot = (iota_ref[...] == local_idx).astype(jnp.bfloat16)         # (TILE_F, TILE_P)

        # single bf16 MXU pass; rows 0:3 / 3:6 / 6:9 are the hi/mid/lo pieces of the
        # 3 vertex depths -> recombining in f32 restores full f32 precision
        fd_tile = fdepth_ref[j]                                            # (9, TILE_F) bf16
        g = jnp.dot(fd_tile, onehot, preferred_element_type=jnp.float32)   # (9, TILE_P) f32
        acc_ref[...] += g[0:3] + g[3:6] + g[6:9]

    @pl.when(j == pl.num_programs(1) - 1)
    def _finalize():
        # barycentric interpolation epilogue: 3-sublane reduce, lane-dense unmasked store
        out_ref[...] = jnp.sum(bary_ref[...] * acc_ref[...], axis=0, keepdims=True)


def interpolate_depth_pallas(pix_to_face0, bary0, faces_depth):
    """pix_to_face0: (P,) int32, bary0: (P, 3) f32, faces_depth: (F, 3) f32 -> (P,) f32."""
    P, = pix_to_face0.shape
    F_total = faces_depth.shape[0]

    P_pad = ((P + TILE_P - 1) // TILE_P) * TILE_P
    F_pad = ((F_total + TILE_F - 1) // TILE_F) * TILE_F
    n_pt = P_pad // TILE_P
    n_ft = F_pad // TILE_F

    # lane-dense layouts: pixels / faces on the last (lane) axis
    p2f = jnp.full((1, P_pad), -1, jnp.int32).at[0, :P].set(pix_to_face0.astype(jnp.int32))
    bary = jnp.zeros((3, P_pad), jnp.float32).at[:, :P].set(bary0.T.astype(jnp.float32))

    # hi/mid/lo bf16 split of the face-vertex depth table (f32-accurate after recombination)
    fd = jnp.zeros((3, F_pad), jnp.float32).at[:, :F_total].set(
        faces_depth.T.astype(jnp.float32))
    fd_hi = fd.astype(jnp.bfloat16)
    r1 = fd - fd_hi.astype(jnp.float32)
    fd_mid = r1.astype(jnp.bfloat16)
    r2 = r1 - fd_mid.astype(jnp.float32)
    fd_lo = r2.astype(jnp.bfloat16)
    fd_tiles = (jnp.concatenate([fd_hi, fd_mid, fd_lo], axis=0)       # (9, F_pad)
                .reshape(9, n_ft, TILE_F).transpose(1, 0, 2))         # (n_ft, 9, TILE_F)

    # per-pixel-tile face id range for face-tile skipping (scalar prefetch -> SMEM)
    p2f_t = p2f.reshape(n_pt, TILE_P)
    valid = p2f_t >= 0
    fmin = jnp.min(jnp.where(valid, p2f_t, jnp.int32(2 ** 30)), axis=1).astype(jnp.int32)
    fmax = jnp.max(jnp.where(valid, p2f_t, jnp.int32(-1)), axis=1).astype(jnp.int32)

    out = pl.pallas_call(
        _interp_kernel,
        out_shape=jax.ShapeDtypeStruct((1, P_pad), jnp.float32),
        grid_spec=pltpu.PrefetchScalarGridSpec(
            num_scalar_prefetch=2,
            grid=(n_pt, n_ft),
            in_specs=[
                # invariant along j -> DMA'd once per pixel tile
                pl.BlockSpec((1, TILE_P), lambda i, j, fmin, fmax: (0, i)),
                pl.BlockSpec((3, TILE_P), lambda i, j, fmin, fmax: (0, i)),
                # full depth table, invariant -> loaded into VMEM exactly once
                pl.BlockSpec((n_ft, 9, TILE_F), lambda i, j, fmin, fmax: (0, 0, 0)),
            ],
            out_specs=pl.BlockSpec((1, TILE_P), lambda i, j, fmin, fmax: (0, i)),
            scratch_shapes=[
                pltpu.VMEM((3, TILE_P), jnp.float32),        # gathered-depth accumulator
                pltpu.VMEM((TILE_F, TILE_P), jnp.int32),     # cached face-row iota
            ],
        ),
        compiler_params=pltpu.CompilerParams(
            dimension_semantics=("parallel", "arbitrary"),
            vmem_limit_bytes=48 * 1024 * 1024),
    )(fmin, fmax, p2f, bary, fd_tiles)
    return out[0, :P]


def depth_shader_forward(verts_padded, faces_mesh, R, T, pix_to_face, bary_coords):
    """DepthShader.forward.

    verts_padded: (N, V, 3) f32        meshes.verts_padded() (equal V per mesh, no padding)
    faces_mesh:   (F_mesh, 3) int32    per-mesh face topology (packed with per-mesh offsets)
    R:            (N, 3, 3) f32, T: (N, 3) f32   world->view camera transform (row-vector conv.)
    pix_to_face:  (N, H, W, K) int32   fragments.pix_to_face (indexes packed faces, -1 = empty)
    bary_coords:  (N, H, W, K, 3) f32  fragments.bary_coords
    returns:      (N, H, W, 1) f32
    """
    N, V, _ = verts_padded.shape
    H, W, K = pix_to_face.shape[1:]
    F_mesh = faces_mesh.shape[0]

    # cameras.compute_depth_of_points: z of (verts @ R + T)  -- tiny glue, plain JAX
    verts_depth = jnp.einsum("nvi,ni->nv", verts_padded, R[:, :, 2]) + T[:, 2:3]      # (N, V)
    verts_depth_packed = verts_depth.reshape(N * V)                                   # padded_to_packed
    faces_packed = (faces_mesh[None, :, :]
                    + (jnp.arange(N, dtype=jnp.int32) * V)[:, None, None]).reshape(N * F_mesh, 3)
    faces_depth = verts_depth_packed[faces_packed].astype(jnp.float32)                # (F_total, 3)

    P = N * H * W
    # the module returns depth_map[..., 0, :] -> only sample k=0 is needed
    p2f0 = pix_to_face[..., 0].reshape(P).astype(jnp.int32)
    bary0 = bary_coords[..., 0, :].reshape(P, 3).astype(jnp.float32)

    interp = interpolate_depth_pallas(p2f0, bary0, faces_depth)                       # (P,)
    return interp.reshape(N, H, W, 1)                                                 # (N,H,W,1)


def _reference(verts_padded, faces_mesh, R, T, pix_to_face, bary_coords):
    N, V, _ = verts_padded.shape
    verts_depth = jnp.einsum("nvi,ni->nv", verts_padded, R[:, :, 2]) + T[:, 2:3]
    verts_depth_packed = verts_depth.reshape(-1)
    faces_packed = (faces_mesh[None] + (jnp.arange(N) * V)[:, None, None]).reshape(-1, 3)
    faces_depth = verts_depth_packed[faces_packed]                   # (F_total, 3)
    mask = pix_to_face < 0
    idx = jnp.where(mask, 0, pix_to_face)
    pix_face_vals = faces_depth[idx]                                 # (N,H,W,K,3)
    vals = (bary_coords * pix_face_vals).sum(-1)
    vals = jnp.where(mask, 0.0, vals)
    return vals[..., 0][..., None]


if __name__ == "__main__":
    key = jax.random.PRNGKey(0)
    # small but multi-tile: 2 pixel tiles (P=2592 -> P_pad=4096) and 2 face tiles (F=600 -> 1024)
    N, V, F_mesh, H, W, K = 2, 64, 300, 36, 36, 4
    k1, k2, k3, k4, k5 = jax.random.split(key, 5)

    verts = jax.random.normal(k1, (N, V, 3), jnp.float32)
    faces_mesh = jax.random.randint(k2, (F_mesh, 3), 0, V, jnp.int32)

    # deterministic camera: rotation about y per batch element + translation
    ang = jnp.array([0.3, -0.7], jnp.float32)
    c, s = jnp.cos(ang), jnp.sin(ang)
    z = jnp.zeros_like(c)
    o = jnp.ones_like(c)
    R = jnp.stack([jnp.stack([c, z, s], -1),
                   jnp.stack([z, o, z], -1),
                   jnp.stack([-s, z, c], -1)], axis=1)               # (N, 3, 3)
    T = jax.random.normal(k3, (N, 3), jnp.float32) + jnp.array([0.0, 0.0, 3.0], jnp.float32)

    F_total = N * F_mesh
    pix_to_face = jax.random.randint(k4, (N, H, W, K), -1, F_total, jnp.int32)
    bary_raw = jax.random.uniform(k5, (N, H, W, K, 3), jnp.float32, minval=1e-3, maxval=1.0)
    bary = bary_raw / bary_raw.sum(-1, keepdims=True)

    out = depth_shader_forward(verts, faces_mesh, R, T, pix_to_face, bary)
    out = jax.block_until_ready(out)

    ref = _reference(verts, faces_mesh, R, T, pix_to_face, bary)
    assert out.shape == (N, H, W, 1), out.shape
    assert jnp.allclose(out, ref, atol=1e-5, rtol=1e-5), float(jnp.abs(out - ref).max())
    print("KERNEL_OK")
</pallas_src>

<mosaic_0001>
module attributes {stable_mosaic.version = 11 : i64} {
  func.func @_interp_kernel(%arg0: i32, %arg1: i32, %arg2: memref<2xi32, #tpu.memory_space<smem>>, %arg3: memref<2xi32, #tpu.memory_space<smem>>, %arg4: memref<1x2048xi32, #tpu.memory_space<vmem>>, %arg5: memref<3x2048xf32, #tpu.memory_space<vmem>>, %arg6: memref<2x9x512xbf16, #tpu.memory_space<vmem>>, %arg7: memref<1x2048xf32, #tpu.memory_space<vmem>>, %arg8: memref<3x2048xf32, #tpu.memory_space<vmem>>, %arg9: memref<512x2048xi32, #tpu.memory_space<vmem>>) attributes {dimension_semantics = [#tpu.dimension_semantics<parallel>, #tpu.dimension_semantics<arbitrary>], iteration_bounds = array<i64: 2, 2>, scalar_prefetch = 2 : i64, scratch_operands = 2 : i64, tpu.core_type = #tpu.core_type<tc>, window_params = [{transform_indices = @transform_0, window_bounds = array<i64: 1, 2048>}, {transform_indices = @transform_1, window_bounds = array<i64: 3, 2048>}, {pipeline_mode = #tpu.pipeline_mode<synchronous>, transform_indices = @transform_2, window_bounds = array<i64: 2, 9, 512>}, {transform_indices = @transform_3, window_bounds = array<i64: 1, 2048>}]} {
    %c0_i32 = arith.constant 0 : i32
    %0 = arith.cmpi eq, %arg1, %c0_i32 : i32
    %1 = arith.extui %0 : i1 to i32
    %c0_i32_0 = arith.constant 0 : i32
    %2 = arith.cmpi ne, %1, %c0_i32_0 : i32
    scf.if %2 {
      %cst = arith.constant 0.000000e+00 : f32
      %17 = vector.broadcast %cst : f32 to vector<3x2048xf32>
      %c0 = arith.constant 0 : index
      %c0_4 = arith.constant 0 : index
      %18 = vector.load %arg8[%c0, %c0_4] : memref<3x2048xf32, #tpu.memory_space<vmem>>, vector<3x2048xf32>
      tpu.vector_store %arg8[%c0, %c0_4], %17 {strides = array<i32>} : memref<3x2048xf32, #tpu.memory_space<vmem>>, vector<3x2048xf32>,
      %19 = tpu.iota {dimensions = array<i32: 0>} : vector<512x2048xi32>
      %c0_5 = arith.constant 0 : index
      %c0_6 = arith.constant 0 : index
      %20 = vector.load %arg9[%c0_5, %c0_6] : memref<512x2048xi32, #tpu.memory_space<vmem>>, vector<512x2048xi32>
      tpu.vector_store %arg9[%c0_5, %c0_6], %19 {strides = array<i32>} : memref<512x2048xi32, #tpu.memory_space<vmem>>, vector<512x2048xi32>,
    } else {
    }
    %c512_i32 = arith.constant 512 : i32
    %3 = arith.muli %arg1, %c512_i32 : i32
    %4 = arith.index_cast %arg0 : i32 to index
    %5 = memref.load %arg2[%4] : memref<2xi32, #tpu.memory_space<smem>>
    %c512_i32_1 = arith.constant 512 : i32
    %6 = arith.addi %3, %c512_i32_1 : i32
    %7 = arith.cmpi slt, %5, %6 : i32
    %8 = arith.index_cast %arg0 : i32 to index
    %9 = memref.load %arg3[%8] : memref<2xi32, #tpu.memory_space<smem>>
    %10 = arith.cmpi sge, %9, %3 : i32
    %11 = arith.andi %7, %10 : i1
    %12 = arith.extui %11 : i1 to i32
    %c0_i32_2 = arith.constant 0 : i32
    %13 = arith.cmpi ne, %12, %c0_i32_2 : i32
    scf.if %13 {
      %c0 = arith.constant 0 : index
      %c0_4 = arith.constant 0 : index
      %17 = vector.load %arg4[%c0, %c0_4] : memref<1x2048xi32, #tpu.memory_space<vmem>>, vector<1x2048xi32>
      %18 = vector.broadcast %3 : i32 to vector<1x2048xi32>
      %19 = arith.subi %17, %18 : vector<1x2048xi32>
      %c0_5 = arith.constant 0 : index
      %c0_6 = arith.constant 0 : index
      %20 = vector.load %arg9[%c0_5, %c0_6] : memref<512x2048xi32, #tpu.memory_space<vmem>>, vector<512x2048xi32>
      %21 = vector.broadcast %19 : vector<1x2048xi32> to vector<512x2048xi32>
      %22 = arith.cmpi eq, %20, %21 : vector<512x2048xi32>
      %23 = arith.extui %22 : vector<512x2048xi1> to vector<512x2048xi32>
      %24 = arith.sitofp %23 : vector<512x2048xi32> to vector<512x2048xf32>
      %25 = arith.truncf %24 : vector<512x2048xf32> to vector<512x2048xbf16>
      %26 = arith.index_cast %arg1 : i32 to index
      %c0_7 = arith.constant 0 : index
      %c0_8 = arith.constant 0 : index
      %27 = vector.load %arg6[%26, %c0_7, %c0_8] : memref<2x9x512xbf16, #tpu.memory_space<vmem>>, vector<1x9x512xbf16>
      %28 = vector.shape_cast %27 : vector<1x9x512xbf16> to vector<9x512xbf16>
      %cst = arith.constant dense<0.000000e+00> : vector<9x2048xf32>
      %29 = tpu.matmul %28, %25, %cst {dimension_numbers = #tpu.dot_dimension_numbers<[1], [0], [0], [1], [0, 0, 1, 1], [], []>} : vector<9x512xbf16>, vector<512x2048xbf16>, vector<9x2048xf32> -> vector<9x2048xf32>
      %c0_9 = arith.constant 0 : index
      %c0_10 = arith.constant 0 : index
      %30 = vector.load %arg8[%c0_9, %c0_10] : memref<3x2048xf32, #tpu.memory_space<vmem>>, vector<3x2048xf32>
      %31 = vector.extract_strided_slice %29 {offsets = [0, 0], sizes = [3, 2048], strides = [1, 1]} : vector<9x2048xf32> to vector<3x2048xf32>
      %32 = vector.extract_strided_slice %29 {offsets = [3, 0], sizes = [3, 2048], strides = [1, 1]} : vector<9x2048xf32> to vector<3x2048xf32>
      %33 = arith.addf %31, %32 : vector<3x2048xf32>
      %34 = vector.extract_strided_slice %29 {offsets = [6, 0], sizes = [3, 2048], strides = [1, 1]} : vector<9x2048xf32> to vector<3x2048xf32>
      %35 = arith.addf %33, %34 : vector<3x2048xf32>
      %36 = arith.addf %30, %35 : vector<3x2048xf32>
      %c0_11 = arith.constant 0 : index
      %c0_12 = arith.constant 0 : index
      %37 = vector.load %arg8[%c0_11, %c0_12] : memref<3x2048xf32, #tpu.memory_space<vmem>>, vector<3x2048xf32>
      tpu.vector_store %arg8[%c0_11, %c0_12], %36 {strides = array<i32>} : memref<3x2048xf32, #tpu.memory_space<vmem>>, vector<3x2048xf32>,
    } else {
    }
    %c1_i32 = arith.constant 1 : i32
    %14 = arith.cmpi eq, %arg1, %c1_i32 : i32
    %15 = arith.extui %14 : i1 to i32
    %c0_i32_3 = arith.constant 0 : i32
    %16 = arith.cmpi ne, %15, %c0_i32_3 : i32
    scf.if %16 {
      %c0 = arith.constant 0 : index
      %c0_4 = arith.constant 0 : index
      %17 = vector.load %arg5[%c0, %c0_4] : memref<3x2048xf32, #tpu.memory_space<vmem>>, vector<3x2048xf32>
      %c0_5 = arith.constant 0 : index
      %c0_6 = arith.constant 0 : index
      %18 = vector.load %arg8[%c0_5, %c0_6] : memref<3x2048xf32, #tpu.memory_space<vmem>>, vector<3x2048xf32>
      %19 = arith.mulf %17, %18 : vector<3x2048xf32>
      %cst = arith.constant dense<0.000000e+00> : vector<2048xf32>
      %20 = vector.multi_reduction <add>, %19, %cst [0] : vector<3x2048xf32> to vector<2048xf32>
      %21 = vector.shape_cast %20 : vector<2048xf32> to vector<1x2048xf32>
      %c0_7 = arith.constant 0 : index
      %c0_8 = arith.constant 0 : index
      %22 = vector.load %arg7[%c0_7, %c0_8] : memref<1x2048xf32, #tpu.memory_space<vmem>>, vector<1x2048xf32>
      tpu.vector_store %arg7[%c0_7, %c0_8], %21 {strides = array<i32>} : memref<1x2048xf32, #tpu.memory_space<vmem>>, vector<1x2048xf32>,
    } else {
    }
    return
  }
  func.func @transform_0(%arg0: i32, %arg1: i32, %arg2: memref<2xi32, #tpu.memory_space<smem>>, %arg3: memref<2xi32, #tpu.memory_space<smem>>) -> (i32, i32) {
    %c0_i32 = arith.constant 0 : i32
    %c0_i32_0 = arith.constant 0 : i32
    return %c0_i32, %arg0 : i32, i32
  }
  func.func @transform_1(%arg0: i32, %arg1: i32, %arg2: memref<2xi32, #tpu.memory_space<smem>>, %arg3: memref<2xi32, #tpu.memory_space<smem>>) -> (i32, i32) {
    %c0_i32 = arith.constant 0 : i32
    %c0_i32_0 = arith.constant 0 : i32
    return %c0_i32, %arg0 : i32, i32
  }
  func.func @transform_2(%arg0: i32, %arg1: i32, %arg2: memref<2xi32, #tpu.memory_space<smem>>, %arg3: memref<2xi32, #tpu.memory_space<smem>>) -> (i32, i32, i32) {
    %c0_i32 = arith.constant 0 : i32
    %c0_i32_0 = arith.constant 0 : i32
    %c0_i32_1 = arith.constant 0 : i32
    %c0_i32_2 = arith.constant 0 : i32
    return %c0_i32, %c0_i32_0, %c0_i32_1 : i32, i32, i32
  }
  func.func @transform_3(%arg0: i32, %arg1: i32, %arg2: memref<2xi32, #tpu.memory_space<smem>>, %arg3: memref<2xi32, #tpu.memory_space<smem>>) -> (i32, i32) {
    %c0_i32 = arith.constant 0 : i32
    %c0_i32_0 = arith.constant 0 : i32
    return %c0_i32, %arg0 : i32, i32
  }
}

</mosaic_0001>

<bundles_post_ra>
// kernel: tpu_custom_call.1
= control target key start
LH: loop header
LB: loop body
LE: loop exit
PB: predicated region body
PF: predicated region fallthrough
CT: control target
= control target key end

     0   :  { %s9811_s24 = smov [#allocation5]   ;;  %s9812_s25 = smov [#allocation6]   ;;  %s13061_s0 = inlined_call_operand.vmem [shape: s32[2], index: 0, kind: input, shape index: {}]   ;;  %s13062_s2 = inlined_call_operand.vmem [shape: s32[1,4096], index: 2, kind: input, shape index: {}]   ;;  %s13063_s3 = inlined_call_operand.hbm [shape: f32[3,4096], index: 3, kind: input, shape index: {}]   ;;  %s13064_s4 = inlined_call_operand.vmem [shape: bf16[2,9,512], index: 4, kind: input, shape index: {}]   ;;  %s13065_s5 = inlined_call_operand.hbm [shape: f32[1,4096], index: 5, kind: output, shape index: {}]   ;;  %s13066_s1 = inlined_call_operand.vmem [shape: s32[2], index: 1, kind: input, shape index: {}]  }
   0x1   :  { %s11_s20 = sshll.u32 %s13061_s0, 4  ;;  %s16_s23 = sshll.u32 %s13066_s1, 4  ;;  %s12_s20 = int_to_ptr.vmem [resolvable:$true] %s11_s20  ;;  %s17_s23 = int_to_ptr.vmem [resolvable:$true] %s16_s23 }
   0x2   :  { %14 = dma.vmem_to_smem %s12_s20, 16, %s9811_s24, [#allocation4] }
   0x3   :  { %19 = dma.vmem_to_smem %s17_s23, 16, %s9812_s25, [#allocation4] }
   0x4   :  { %9769 = dma.done.wait [#allocation4], 32 }
   0x5   :  { %9770 = vsyncadd [#allocation4], 4294967264 }
   0x6   :  { %22 = sfence }
   0x7   :  { %23 = vsyncpa [#allocation8], 0 }
   0x8   :  { %25 = vsyncpa [#allocation8 + $0x1], 0 }
   0x9   :  { %26 = vsyncpa [#allocation9], 0 }
   0xa   :  { %28 = vsyncpa [#allocation9 + $0x1], 0  ;;  %s9851_s26 = smov 0   ;;  %s9853_s0 = smov 0  }
   0xb   :  { %s9855_s27 = smov 0   ;;  %s9857_s1 = smov 0  }
   0xc   :  { %s9859_s28 = smov 0   ;;  %s9861_s29 = smov 0  }
   0xd   :  { %s9863_s30 = smov 0   ;;  %s9865_s6 = smov 0  }
   0xe LB: > { %s7481_s7 = sadd.s32 4294967295, %s9809_s6   ;;  %s7482_s8 = sadd.s32 4294967294, %s9809_s6   ;;  %s9809_s6 = sphi %s9865_s6, %s34_s6   ;;  %s9805_s30 = sphi %s9863_s30, %s13077_s30   ;;  %s9801_s29 = sphi %s9861_s29, %s13076_s29   ;;  %s9797_s28 = sphi %s9859_s28, %s13075_s28   ;;  %s9793_s1 = sphi %s9857_s1, %s13074_s1   ;;  %s9789_s27 = sphi %s9855_s27, %s13073_s27   ;;  %s9785_s0 = sphi %s9853_s0, %s13072_s0   ;;  %s9781_s26 = sphi %s9851_s26, %s13071_s26  }
   0xf   : > { %s43_s9 = sadd.s32 1, %s9801_s29  ;;  %s46_s10 = sadd.s32 1, %s9805_s30 }
  0x10   : > { %p44_p0 = scmp.ge.s32.totalorder %s43_s9, 2  ;;  %s79_s11 = sadd.s32 1, %s9789_s27 }
  0x11   : > { %p86_p1 = scmp.ne.s32.totalorder %s9789_s27, %s9785_s0  ;;  %p87_p2 = scmp.eq.s32.totalorder %s9809_s6, 0 }
  0x12   : > { %s13079_s9 = smov (%p44_p0, %s43_s9), 0  ;;  %s13081_s10 = smov (!%p44_p0, %s46_s10), %s9805_s30 }
  0x13   : > { %p9902_p3 = por %p87_p2, %p86_p1  ;;  %p92_p4 = scmp.ne.s32.totalorder %s9785_s0, %s9781_s26 }
  0x14   : > { %p48_p5 = scmp.ge.s32.totalorder %s13081_s10, 2  ;;  %p93_p6 = scmp.eq.s32.totalorder %s7481_s7, 0 }
  0x15   : > { %p137_p7 = scmp.eq.s32.totalorder %s7481_s7, 3  ;;  %p143_p8 = scmp.eq.s32.totalorder %s7482_s8, 3 }
  0x16   : > { %s13083_s10 = smov (%p48_p5, %s13081_s10), 0  ;;  %p9910_p9 = por %p93_p6, %p92_p4 }
  0x17   : > { %p9914_p10 = por %p137_p7, %p86_p1  ;;  %s76_s15 = ssub.s32 %s9805_s30, %s13083_s10 }
  0x18   : > { %p9920_p11 = por %p143_p8, %p92_p4  ;;  %p77_p12 = scmp.eq.s32.totalorder %s76_s15, 0 }
  0x19   : > { %p9583_p13 = scmp.lt.s32.totalorder %s9809_s6, 4  ;;  %s174_s17 = sand.u32 1, %s9789_s27  }
  0x1a   : > { %s9927_s18 = scalar_select %p77_p12, %s9789_s27, %s79_s11  }
  0x1b   : > { %s7485_s19 = sshll.u32 %s174_s17, 6  ;;  %s9565_s20 = sshll.u32 %s9805_s30, 6 }
  0x1c   : > { %s183_s23 = scalar_lea.hbm %s13063_s3, %s9565_s20  ;;  %s178_s24 = scalar_lea.vmem [#allocation7], %s7485_s19 }
  0x1d   : > { %s187_s25 = sshll.u32 %s178_s24, 4  ;;  %s185_s7 = sshll.u32 %s183_s23, 4  ;;  %s188_s25 = int_to_ptr.vmem [resolvable:$true] %s187_s25  ;;  %s186_s7 = int_to_ptr.hbm [resolvable:$true] %s185_s7 }
  0x1e   : > { %p9576_p0 = pnand %p9583_p13, %p9902_p3  ;;  %p7488_p1 = scmp.ge.s32.totalorder %s9809_s6, 1 }
  0x1f   : > { %p192_p2 = scmp.lt.s32.totalorder %s9809_s6, 5  ;;  %s175_s8 = scalar_lea.sflag [#allocation8], %s174_s17 }
  0x20   : > { %9578 = dma.hbm_to_vmem [thread:$0]  (!%p9576_p0), %s186_s7, 1024, %s188_s25, %s175_s8  }
  0x21   : > { %p193_p4 = pnand %p7488_p1, %p192_p2 }
  0x22   : > { %s9938_s11 = sand.u32 (!%p193_p4), 1, %s9785_s0  }
  0x23   : > { %196 = sbr.rel (%p193_p4) target bundleno = 1855 (0x73f), region = 32  ;;  %s7489_s15 = sshll.u32 (!%p193_p4), %s9938_s11, 6 }
  0x24   : > { %s199_s19 = scalar_lea.sflag (!%p193_p4), [#allocation8], %s9938_s11  ;;  %s9942_s20 = scalar_lea.vmem (!%p193_p4), [#allocation7], %s7489_s15 }
  0x28   : > { %9772 = dma.done.wait (%p9910_p9), %s199_s19, 1024  }
  0x29   : > { %9774 = vsyncadd (%p9910_p9), %s199_s19, 4294966272  ;;  %s7490_s12 = sshll.u32 %s9938_s11, 4  ;;  %s9950_s17 = sshll.u32 %s9797_s28, 4 }
  0x2a   : > { %p231_p3 = scmp.lt.s32.totalorder %s9950_s17, 31  ;;  %s9959_s25 = scalar_lea.vmem [#allocation10], %s7490_s12 }
  0x2b   : > { %p7492_p5 = scmp.ne.s32.totalorder %s9793_s1, 0 }
  0x2c   : > { %s232_s21 = scalar_select %p231_p3, %s9950_s17, 31 }
  0x2d   : > { %240 = sbr.rel (%p7492_p5) target bundleno = 1083 (0x43b), region = 40 }
  0x2e   : > { %s9957_s24 = scalar_lea.vmem %s13062_s2, %s232_s21 }
  0x32   : > { %v9813_v0 = vmov 0.0   ;;  %v249_v1 = vlaneseq }
  0x33   : > { %241 = vst [vmem:[#allocation2 + $0x30] sm:$0x77] %v9813_v0 }
  0x34   : > { %242 = vst [vmem:[#allocation2] sm:$0x77] %v9813_v0  ;;  %v9962_v2 = vshrl.u32 %v249_v1, 7 }
  0x35   : > { %243 = vst [vmem:[#allocation2 + $0x18] sm:$0x77] %v9813_v0 }
  0x36   : > { %244 = vst [vmem:[#allocation2 + $0x10] sm:$0x77] %v9813_v0  ;;  %v251_v3 = vadd.s32 8, %v9962_v2  ;;  %v252_v4 = vadd.s32 16, %v9962_v2  ;;  %v253_v5 = vadd.s32 24, %v9962_v2  ;;  %v254_v6 = vadd.s32 32, %v9962_v2 }
  0x37   : > { %245 = vst [vmem:[#allocation2 + $0x8] sm:$0x77] %v9813_v0  ;;  %v255_v7 = vadd.s32 40, %v9962_v2  ;;  %v256_v8 = vadd.s32 48, %v9962_v2  ;;  %v257_v9 = vadd.s32 56, %v9962_v2  ;;  %v258_v10 = vadd.s32 64, %v9962_v2 }
  0x38   : > { %246 = vst [vmem:[#allocation2 + $0x20] sm:$0x77] %v9813_v0  ;;  %v259_v11 = vadd.s32 72, %v9962_v2  ;;  %v260_v12 = vadd.s32 80, %v9962_v2  ;;  %v261_v13 = vadd.s32 88, %v9962_v2  ;;  %v262_v14 = vadd.s32 96, %v9962_v2 }
  0x39   : > { %247 = vst [vmem:[#allocation2 + $0x28] sm:$0x77] %v9813_v0  ;;  %v263_v15 = vadd.s32 104, %v9962_v2  ;;  %v264_v16 = vadd.s32 112, %v9962_v2  ;;  %v265_v17 = vadd.s32 120, %v9962_v2  ;;  %v266_v18 = vadd.s32 128, %v9962_v2 }
  0x3a   : > { %248 = vst [vmem:[#allocation2 + $0x38] sm:$0x77] %v9813_v0  ;;  %v267_v19 = vadd.s32 136, %v9962_v2  ;;  %v268_v20 = vadd.s32 144, %v9962_v2  ;;  %v269_v21 = vadd.s32 152, %v9962_v2  ;;  %v270_v22 = vadd.s32 160, %v9962_v2 }
  0x3b   : > { %314 = vst [vmem:[#allocation3 + $0x300] sm:$0xff] %v9962_v2  ;;  %v271_v23 = vadd.s32 168, %v9962_v2  ;;  %v272_v24 = vadd.s32 176, %v9962_v2  ;;  %v273_v25 = vadd.s32 184, %v9962_v2  ;;  %v274_v26 = vadd.s32 192, %v9962_v2 }
  0x3c   : > { %315 = vst [vmem:[#allocation3 + $0x1418] sm:$0xff] %v9962_v2  ;;  %v275_v27 = vadd.s32 200, %v9962_v2  ;;  %v276_v28 = vadd.s32 208, %v9962_v2  ;;  %v277_v29 = vadd.s32 216, %v9962_v2  ;;  %v278_v30 = vadd.s32 224, %v9962_v2 }
  0x3d   : > { %316 = vst [vmem:[#allocation3 + $0x1b50] sm:$0xff] %v9962_v2  ;;  %v279_v31 = vadd.s32 232, %v9962_v2  ;;  %v280_v32 = vadd.s32 240, %v9962_v2 }
  0x3e   : > { %317 = vst [vmem:[#allocation3 + $0x8e0] sm:$0xff] %v9962_v2 }
  0x3f   : > { %318 = vst [vmem:[#allocation3 + $0xce8] sm:$0xff] %v9962_v2 }
  0x40   : > { %319 = vst [vmem:[#allocation3 + $0xc68] sm:$0xff] %v9962_v2 }
  0x41   : > { %320 = vst [vmem:[#allocation3 + $0xaf0] sm:$0xff] %v9962_v2 }
  0x42   : > { %321 = vst [vmem:[#allocation3 + $0xd20] sm:$0xff] %v9962_v2  ;;  %v10010_v33 = vld [vmem:[#allocation3 + $0x300] sm:$0xff] }
  0x43   : > { %322 = vst [vmem:[#allocation3 + $0x4d8] sm:$0xff] %v9962_v2  ;;  %v281_v34 = vadd.s32 248, %v10010_v33  ;;  %v282_v35 = vadd.s32 256, %v10010_v33  ;;  %v283_v36 = vadd.s32 264, %v10010_v33  ;;  %v284_v37 = vadd.s32 272, %v10010_v33  ;;  %v9654_v1 = vld [vmem:[#allocation3 + $0x300] sm:$0xff] }
  0x44   : > { %323 = vst [vmem:[#allocation3 + $0x6f0] sm:$0xff] %v9962_v2  ;;  %v285_v38 = vadd.s32 280, %v10010_v33  ;;  %v286_v39 = vadd.s32 288, %v10010_v33  ;;  %v287_v40 = vadd.s32 296, %v10010_v33  ;;  %v288_v41 = vadd.s32 304, %v10010_v33 }
  0x45   : > { %324 = vst [vmem:[#allocation3 + $0x6b0] sm:$0xff] %v9962_v2  ;;  %v289_v42 = vadd.s32 312, %v10010_v33  ;;  %v290_v43 = vadd.s32 320, %v10010_v33  ;;  %v291_v44 = vadd.s32 328, %v10010_v33  ;;  %v292_v45 = vadd.s32 336, %v10010_v33 }
  0x46   : > { %325 = vst [vmem:[#allocation3 + $0x758] sm:$0xff] %v9962_v2  ;;  %v293_v46 = vadd.s32 344, %v10010_v33  ;;  %v294_v47 = vadd.s32 352, %v10010_v33  ;;  %v295_v48 = vadd.s32 360, %v10010_v33  ;;  %v296_v49 = vadd.s32 368, %v10010_v33 }
  0x47   : > { %326 = vst [vmem:[#allocation3 + $0x308] sm:$0xff] %v9962_v2  ;;  %v297_v50 = vadd.s32 376, %v10010_v33  ;;  %v298_v51 = vadd.s32 384, %v10010_v33  ;;  %v299_v52 = vadd.s32 392, %v10010_v33  ;;  %v300_v53 = vadd.s32 400, %v10010_v33 }
  0x48   : > { %327 = vst [vmem:[#allocation3 + $0x710] sm:$0xff] %v9962_v2  ;;  %v301_v54 = vadd.s32 408, %v10010_v33  ;;  %v302_v55 = vadd.s32 416, %v10010_v33  ;;  %v303_v56 = vadd.s32 424, %v10010_v33  ;;  %v304_v57 = vadd.s32 432, %v10010_v33 }
  0x49   : > { %328 = vst [vmem:[#allocation3 + $0x17f8] sm:$0xff] %v9962_v2  ;;  %v305_v58 = vadd.s32 440, %v10010_v33  ;;  %v306_v59 = vadd.s32 448, %v10010_v33  ;;  %v307_v60 = vadd.s32 456, %v10010_v33  ;;  %v308_v61 = vadd.s32 464, %v10010_v33 }
  0x4a   : > { %329 = vst [vmem:[#allocation3 + $0xab8] sm:$0xff] %v9962_v2  ;;  %v309_v62 = vadd.s32 472, %v10010_v33  ;;  %v310_v63 = vadd.s32 480, %v10010_v33  ;;  %v311_v0 = vadd.s32 488, %v10010_v33  ;;  %v312_v2 = vadd.s32 496, %v9654_v1 }
  0x4b   : > { %330 = vst [vmem:[#allocation3 + $0x1580] sm:$0xff] %v251_v3 }
  0x4c   : > { %331 = vst [vmem:[#allocation3 + $0x590] sm:$0xff] %v251_v3 }
  0x4d   : > { %332 = vst [vmem:[#allocation3 + $0x1d40] sm:$0xff] %v251_v3 }
  0x4e   : > { %333 = vst [vmem:[#allocation3 + $0x13c0] sm:$0xff] %v251_v3 }
  0x4f   : > { %334 = vst [vmem:[#allocation3 + $0x1ed0] sm:$0xff] %v251_v3 }
  0x50   : > { %335 = vst [vmem:[#allocation3 + $0x1e68] sm:$0xff] %v251_v3 }
  0x51   : > { %336 = vst [vmem:[#allocation3 + $0x1b40] sm:$0xff] %v251_v3 }
  0x52   : > { %337 = vst [vmem:[#allocation3 + $0x910] sm:$0xff] %v251_v3 }
  0x53   : > { %338 = vst [vmem:[#allocation3 + $0xbc0] sm:$0xff] %v251_v3 }
  0x54   : > { %339 = vst [vmem:[#allocation3 + $0x1998] sm:$0xff] %v251_v3 }
  0x55   : > { %340 = vst [vmem:[#allocation3 + $0xa58] sm:$0xff] %v251_v3 }
  0x56   : > { %341 = vst [vmem:[#allocation3 + $0x18d8] sm:$0xff] %v251_v3 }
  0x57   : > { %342 = vst [vmem:[#allocation3 + $0xb98] sm:$0xff] %v251_v3 }
  0x58   : > { %343 = vst [vmem:[#allocation3 + $0xd30] sm:$0xff] %v251_v3 }
  0x59   : > { %344 = vst [vmem:[#allocation3 + $0xbb8] sm:$0xff] %v251_v3 }
  0x5a   : > { %345 = vst [vmem:[#allocation3 + $0x1830] sm:$0xff] %v251_v3  ;;  %v313_v3 = vadd.s32 504, %v9654_v1 }
  0x5b   : > { %346 = vst [vmem:[#allocation3 + $0x1df8] sm:$0xff] %v252_v4 }
  0x5c   : > { %347 = vst [vmem:[#allocation3 + $0xca0] sm:$0xff] %v252_v4 }
  0x5d   : > { %348 = vst [vmem:[#allocation3 + $0x7e0] sm:$0xff] %v252_v4 }
  0x5e   : > { %349 = vst [vmem:[#allocation3 + $0x14f0] sm:$0xff] %v252_v4 }
  0x5f   : > { %350 = vst [vmem:[#allocation3 + $0xfa0] sm:$0xff] %v252_v4 }
  0x60   : > { %351 = vst [vmem:[#allocation3 + $0x13e8] sm:$0xff] %v252_v4 }
  0x61   : > { %352 = vst [vmem:[#allocation3 + $0x1908] sm:$0xff] %v252_v4 }
  0x62   : > { %353 = vst [vmem:[#allocation3 + $0x1e98] sm:$0xff] %v252_v4 }
  0x63   : > { %354 = vst [vmem:[#allocation3 + $0x128] sm:$0xff] %v252_v4 }
  0x64   : > { %355 = vst [vmem:[#allocation3 + $0x8b0] sm:$0xff] %v252_v4 }
  0x65   : > { %356 = vst [vmem:[#allocation3 + $0x878] sm:$0xff] %v252_v4 }
  0x66   : > { %357 = vst [vmem:[#allocation3 + $0x10c8] sm:$0xff] %v252_v4 }
  0x67   : > { %358 = vst [vmem:[#allocation3 + $0x12f0] sm:$0xff] %v252_v4 }
  0x68   : > { %359 = vst [vmem:[#allocation3 + $0x16d0] sm:$0xff] %v252_v4 }
  0x69   : > { %360 = vst [vmem:[#allocation3 + $0x5c8] sm:$0xff] %v252_v4 }
  0x6a   : > { %361 = vst [vmem:[#allocation3 + $0x15f0] sm:$0xff] %v252_v4 }
  0x6b   : > { %362 = vst [vmem:[#allocation3 + $0x600] sm:$0xff] %v253_v5 }
  0x6c   : > { %363 = vst [vmem:[#allocation3 + $0x1778] sm:$0xff] %v253_v5 }
  0x6d   : > { %364 = vst [vmem:[#allocation3 + $0xd28] sm:$0xff] %v253_v5 }
  0x6e   : > { %365 = vst [vmem:[#allocation3 + $0x1648] sm:$0xff] %v253_v5 }
  0x6f   : > { %366 = vst [vmem:[#allocation3 + $0x1a58] sm:$0xff] %v253_v5 }
  0x70   : > { %367 = vst [vmem:[#allocation3 + $0x10] sm:$0xff] %v253_v5 }
  0x71   : > { %368 = vst [vmem:[#allocation3 + $0xc28] sm:$0xff] %v253_v5 }
  0x72   : > { %369 = vst [vmem:[#allocation3 + $0x18a8] sm:$0xff] %v253_v5 }
  0x73   : > { %370 = vst [vmem:[#allocation3 + $0x19a8] sm:$0xff] %v253_v5 }
  0x74   : > { %371 = vst [vmem:[#allocation3 + $0x7d0] sm:$0xff] %v253_v5 }
  0x75   : > { %372 = vst [vmem:[#allocation3 + $0x1e38] sm:$0xff] %v253_v5 }
  0x76   : > { %373 = vst [vmem:[#allocation3 + $0x16c0] sm:$0xff] %v253_v5 }
  0x77   : > { %374 = vst [vmem:[#allocation3 + $0xf0] sm:$0xff] %v253_v5 }
  0x78   : > { %375 = vst [vmem:[#allocation3 + $0xd00] sm:$0xff] %v253_v5 }
  0x79   : > { %376 = vst [vmem:[#allocation3 + $0x328] sm:$0xff] %v253_v5 }
  0x7a   : > { %377 = vst [vmem:[#allocation3 + $0x1460] sm:$0xff] %v253_v5 }
  0x7b   : > { %378 = vst [vmem:[#allocation3 + $0x1458] sm:$0xff] %v254_v6 }
  0x7c   : > { %379 = vst [vmem:[#allocation3 + $0x1d30] sm:$0xff] %v254_v6 }
  0x7d   : > { %380 = vst [vmem:[#allocation3 + $0x1ba8] sm:$0xff] %v254_v6 }
  0x7e   : > { %381 = vst [vmem:[#allocation3 + $0x550] sm:$0xff] %v254_v6 }
  0x7f   : > { %382 = vst [vmem:[#allocation3 + $0x1d8] sm:$0xff] %v254_v6 }
  0x80   : > { %383 = vst [vmem:[#allocation3 + $0xfa8] sm:$0xff] %v254_v6 }
  0x81   : > { %384 = vst [vmem:[#allocation3 + $0xe98] sm:$0xff] %v254_v6 }
  0x82   : > { %385 = vst [vmem:[#allocation3 + $0x1d80] sm:$0xff] %v254_v6 }
  0x83   : > { %386 = vst [vmem:[#allocation3 + $0x630] sm:$0xff] %v254_v6 }
  0x84   : > { %387 = vst [vmem:[#allocation3 + $0x16a8] sm:$0xff] %v254_v6 }
  0x85   : > { %388 = vst [vmem:[#allocation3 + $0x1b98] sm:$0xff] %v254_v6 }
  0x86   : > { %389 = vst [vmem:[#allocation3 + $0xf08] sm:$0xff] %v254_v6 }
  0x87   : > { %390 = vst [vmem:[#allocation3 + $0x310] sm:$0xff] %v254_v6 }
  0x88   : > { %391 = vst [vmem:[#allocation3 + $0xa18] sm:$0xff] %v254_v6 }
  0x89   : > { %392 = vst [vmem:[#allocation3 + $0x188] sm:$0xff] %v254_v6 }
  0x8a   : > { %393 = vst [vmem:[#allocation3 + $0x880] sm:$0xff] %v254_v6 }
  0x8b   : > { %394 = vst [vmem:[#allocation3 + $0x620] sm:$0xff] %v255_v7 }
  0x8c   : > { %395 = vst [vmem:[#allocation3 + $0x1760] sm:$0xff] %v255_v7 }
  0x8d   : > { %396 = vst [vmem:[#allocation3 + $0x1058] sm:$0xff] %v255_v7 }
  0x8e   : > { %397 = vst [vmem:[#allocation3 + $0xdc8] sm:$0xff] %v255_v7 }
  0x8f   : > { %398 = vst [vmem:[#allocation3 + $0x988] sm:$0xff] %v255_v7 }
  0x90   : > { %399 = vst [vmem:[#allocation3 + $0x18c0] sm:$0xff] %v255_v7 }
  0x91   : > { %400 = vst [vmem:[#allocation3 + $0x1018] sm:$0xff] %v255_v7 }
  0x92   : > { %401 = vst [vmem:[#allocation3 + $0x1f18] sm:$0xff] %v255_v7 }
  0x93   : > { %402 = vst [vmem:[#allocation3 + $0x8c0] sm:$0xff] %v255_v7 }
  0x94   : > { %403 = vst [vmem:[#allocation3 + $0xbe0] sm:$0xff] %v255_v7 }
  0x95   : > { %404 = vst [vmem:[#allocation3 + $0x468] sm:$0xff] %v255_v7 }
  0x96   : > { %405 = vst [vmem:[#allocation3 + $0x1048] sm:$0xff] %v255_v7 }
  0x97   : > { %406 = vst [vmem:[#allocation3 + $0x18c8] sm:$0xff] %v255_v7 }
  0x98   : > { %407 = vst [vmem:[#allocation3 + $0x48] sm:$0xff] %v255_v7 }
  0x99   : > { %408 = vst [vmem:[#allocation3 + $0x1410] sm:$0xff] %v255_v7 }
  0x9a   : > { %409 = vst [vmem:[#allocation3 + $0x1e30] sm:$0xff] %v255_v7 }
  0x9b   : > { %410 = vst [vmem:[#allocation3 + $0xa8] sm:$0xff] %v256_v8 }
  0x9c   : > { %411 = vst [vmem:[#allocation3 + $0x16d8] sm:$0xff] %v256_v8 }
  0x9d   : > { %412 = vst [vmem:[#allocation3 + $0x368] sm:$0xff] %v256_v8 }
  0x9e   : > { %413 = vst [vmem:[#allocation3 + $0xa40] sm:$0xff] %v256_v8 }
  0x9f   : > { %414 = vst [vmem:[#allocation3 + $0xac8] sm:$0xff] %v256_v8 }
  0xa0   : > { %415 = vst [vmem:[#allocation3 + $0xe90] sm:$0xff] %v256_v8 }
  0xa1   : > { %416 = vst [vmem:[#allocation3 + $0x1c0] sm:$0xff] %v256_v8 }
  0xa2   : > { %417 = vst [vmem:[#allocation3 + $0x400] sm:$0xff] %v256_v8 }
  0xa3   : > { %418 = vst [vmem:[#allocation3 + $0x3f8] sm:$0xff] %v256_v8 }
  0xa4   : > { %419 = vst [vmem:[#allocation3 + $0x748] sm:$0xff] %v256_v8 }
  0xa5   : > { %420 = vst [vmem:[#allocation3 + $0x19c8] sm:$0xff] %v256_v8 }
  0xa6   : > { %421 = vst [vmem:[#allocation3 + $0x19b8] sm:$0xff] %v256_v8 }
  0xa7   : > { %422 = vst [vmem:[#allocation3 + $0x4f8] sm:$0xff] %v256_v8 }
  0xa8   : > { %423 = vst [vmem:[#allocation3 + $0xea8] sm:$0xff] %v256_v8 }
  0xa9   : > { %424 = vst [vmem:[#allocation3 + $0x420] sm:$0xff] %v256_v8 }
  0xaa   : > { %425 = vst [vmem:[#allocation3 + $0x1040] sm:$0xff] %v256_v8 }
  0xab   : > { %426 = vst [vmem:[#allocation3 + $0xc98] sm:$0xff] %v257_v9 }
  0xac   : > { %427 = vst [vmem:[#allocation3 + $0xae8] sm:$0xff] %v257_v9 }
  0xad   : > { %428 = vst [vmem:[#allocation3 + $0x268] sm:$0xff] %v257_v9 }
  0xae   : > { %429 = vst [vmem:[#allocation3 + $0x1a10] sm:$0xff] %v257_v9 }
  0xaf   : > { %430 = vst [vmem:[#allocation3 + $0x1088] sm:$0xff] %v257_v9 }
  0xb0   : > { %431 = vst [vmem:[#allocation3 + $0x1d48] sm:$0xff] %v257_v9 }
  0xb1   : > { %432 = vst [vmem:[#allocation3 + $0xbb0] sm:$0xff] %v257_v9 }
  0xb2   : > { %433 = vst [vmem:[#allocation3 + $0x3d0] sm:$0xff] %v257_v9 }
  0xb3   : > { %434 = vst [vmem:[#allocation3 + $0x15d8] sm:$0xff] %v257_v9 }
  0xb4   : > { %435 = vst [vmem:[#allocation3 + $0x978] sm:$0xff] %v257_v9 }
  0xb5   : > { %436 = vst [vmem:[#allocation3 + $0x2a0] sm:$0xff] %v257_v9 }
  0xb6   : > { %437 = vst [vmem:[#allocation3 + $0x1b08] sm:$0xff] %v257_v9 }
  0xb7   : > { %438 = vst [vmem:[#allocation3 + $0x1958] sm:$0xff] %v257_v9 }
  0xb8   : > { %439 = vst [vmem:[#allocation3 + $0x1e40] sm:$0xff] %v257_v9 }
  0xb9   : > { %440 = vst [vmem:[#allocation3 + $0xf00] sm:$0xff] %v257_v9 }
  0xba   : > { %441 = vst [vmem:[#allocation3 + $0x1d50] sm:$0xff] %v257_v9 }
  0xbb   : > { %442 = vst [vmem:[#allocation3 + $0x1190] sm:$0xff] %v258_v10 }
  0xbc   : > { %443 = vst [vmem:[#allocation3 + $0x10f8] sm:$0xff] %v258_v10 }
  0xbd   : > { %444 = vst [vmem:[#allocation3 + $0xad0] sm:$0xff] %v258_v10 }
  0xbe   : > { %445 = vst [vmem:[#allocation3 + $0x12d8] sm:$0xff] %v258_v10 }
  0xbf   : > { %446 = vst [vmem:[#allocation3 + $0xf8] sm:$0xff] %v258_v10 }
  0xc0   : > { %447 = vst [vmem:[#allocation3 + $0x8d8] sm:$0xff] %v258_v10 }
  0xc1   : > { %448 = vst [vmem:[#allocation3 + $0x2f8] sm:$0xff] %v258_v10 }
  0xc2   : > { %449 = vst [vmem:[#allocation3 + $0xb70] sm:$0xff] %v258_v10 }
  0xc3   : > { %450 = vst [vmem:[#allocation3 + $0xee8] sm:$0xff] %v258_v10 }
  0xc4   : > { %451 = vst [vmem:[#allocation3 + $0xc90] sm:$0xff] %v258_v10 }
  0xc5   : > { %452 = vst [vmem:[#allocation3 + $0x960] sm:$0xff] %v258_v10 }
  0xc6   : > { %453 = vst [vmem:[#allocation3 + $0x248] sm:$0xff] %v258_v10 }
  0xc7   : > { %454 = vst [vmem:[#allocation3 + $0x8f8] sm:$0xff] %v258_v10 }
  0xc8   : > { %455 = vst [vmem:[#allocation3 + $0xf28] sm:$0xff] %v258_v10 }
  0xc9   : > { %456 = vst [vmem:[#allocation3 + $0xba0] sm:$0xff] %v258_v10 }
  0xca   : > { %457 = vst [vmem:[#allocation3 + $0x2d0] sm:$0xff] %v258_v10 }
  0xcb   : > { %458 = vst [vmem:[#allocation3 + $0x1f30] sm:$0xff] %v259_v11 }
  0xcc   : > { %459 = vst [vmem:[#allocation3 + $0x1238] sm:$0xff] %v259_v11 }
  0xcd   : > { %460 = vst [vmem:[#allocation3 + $0x1bc8] sm:$0xff] %v259_v11 }
  0xce   : > { %461 = vst [vmem:[#allocation3 + $0x1c58] sm:$0xff] %v259_v11 }
  0xcf   : > { %462 = vst [vmem:[#allocation3 + $0x1d60] sm:$0xff] %v259_v11 }
  0xd0   : > { %463 = vst [vmem:[#allocation3 + $0x158] sm:$0xff] %v259_v11 }
  0xd1   : > { %464 = vst [vmem:[#allocation3 + $0x11c0] sm:$0xff] %v259_v11 }
  0xd2   : > { %465 = vst [vmem:[#allocation3 + $0x17e0] sm:$0xff] %v259_v11 }
  0xd3   : > { %466 = vst [vmem:[#allocation3 + $0x60] sm:$0xff] %v259_v11 }
  0xd4   : > { %467 = vst [vmem:[#allocation3 + $0x9a8] sm:$0xff] %v259_v11 }
  0xd5   : > { %468 = vst [vmem:[#allocation3 + $0x110] sm:$0xff] %v259_v11 }
  0xd6   : > { %469 = vst [vmem:[#allocation3 + $0x190] sm:$0xff] %v259_v11 }
  0xd7   : > { %470 = vst [vmem:[#allocation3 + $0x6d8] sm:$0xff] %v259_v11 }
  0xd8   : > { %471 = vst [vmem:[#allocation3 + $0x50] sm:$0xff] %v259_v11 }
  0xd9   : > { %472 = vst [vmem:[#allocation3 + $0x15e8] sm:$0xff] %v259_v11 }
  0xda   : > { %473 = vst [vmem:[#allocation3 + $0x13b0] sm:$0xff] %v259_v11 }
  0xdb   : > { %474 = vst [vmem:[#allocation3 + $0x1888] sm:$0xff] %v260_v12 }
  0xdc   : > { %475 = vst [vmem:[#allocation3 + $0x1be0] sm:$0xff] %v260_v12 }
  0xdd   : > { %476 = vst [vmem:[#allocation3 + $0x1728] sm:$0xff] %v260_v12 }
  0xde   : > { %477 = vst [vmem:[#allocation3 + $0x1ca0] sm:$0xff] %v260_v12 }
  0xdf   : > { %478 = vst [vmem:[#allocation3 + $0x17b0] sm:$0xff] %v260_v12 }
  0xe0   : > { %479 = vst [vmem:[#allocation3 + $0x830] sm:$0xff] %v260_v12 }
  0xe1   : > { %480 = vst [vmem:[#allocation3 + $0x1bf0] sm:$0xff] %v260_v12 }
  0xe2   : > { %481 = vst [vmem:[#allocation3 + $0x7b8] sm:$0xff] %v260_v12 }
  0xe3   : > { %482 = vst [vmem:[#allocation3 + $0x6e0] sm:$0xff] %v260_v12 }
  0xe4   : > { %483 = vst [vmem:[#allocation3 + $0x5f0] sm:$0xff] %v260_v12 }
  0xe5   : > { %484 = vst [vmem:[#allocation3 + $0xb10] sm:$0xff] %v260_v12 }
  0xe6   : > { %485 = vst [vmem:[#allocation3 + $0x238] sm:$0xff] %v260_v12 }
  0xe7   : > { %486 = vst [vmem:[#allocation3 + $0x1298] sm:$0xff] %v260_v12 }
  0xe8   : > { %487 = vst [vmem:[#allocation3 + $0x800] sm:$0xff] %v260_v12 }
  0xe9   : > { %488 = vst [vmem:[#allocation3 + $0x1dc8] sm:$0xff] %v260_v12 }
  0xea   : > { %489 = vst [vmem:[#allocation3 + $0x2c8] sm:$0xff] %v260_v12 }
  0xeb   : > { %490 = vst [vmem:[#allocation3 + $0xa00] sm:$0xff] %v261_v13 }
  0xec   : > { %491 = vst [vmem:[#allocation3 + $0x558] sm:$0xff] %v261_v13 }
  0xed   : > { %492 = vst [vmem:[#allocation3 + $0x1608] sm:$0xff] %v261_v13 }
  0xee   : > { %493 = vst [vmem:[#allocation3 + $0xbc8] sm:$0xff] %v261_v13 }
  0xef   : > { %494 = vst [vmem:[#allocation3 + $0x870] sm:$0xff] %v261_v13 }
  0xf0   : > { %495 = vst [vmem:[#allocation3 + $0x1798] sm:$0xff] %v261_v13 }
  0xf1   : > { %496 = vst [vmem:[#allocation3 + $0x490] sm:$0xff] %v261_v13 }
  0xf2   : > { %497 = vst [vmem:[#allocation3 + $0xb60] sm:$0xff] %v261_v13 }
  0xf3   : > { %498 = vst [vmem:[#allocation3 + $0xa28] sm:$0xff] %v261_v13 }
  0xf4   : > { %499 = vst [vmem:[#allocation3 + $0xe60] sm:$0xff] %v261_v13 }
  0xf5   : > { %500 = vst [vmem:[#allocation3 + $0xf30] sm:$0xff] %v261_v13 }
  0xf6   : > { %501 = vst [vmem:[#allocation3 + $0x1d38] sm:$0xff] %v261_v13 }
  0xf7   : > { %502 = vst [vmem:[#allocation3 + $0x1210] sm:$0xff] %v261_v13 }
  0xf8   : > { %503 = vst [vmem:[#allocation3 + $0x1d0] sm:$0xff] %v261_v13 }
  0xf9   : > { %504 = vst [vmem:[#allocation3 + $0xc60] sm:$0xff] %v261_v13 }
  0xfa   : > { %505 = vst [vmem:[#allocation3 + $0x1718] sm:$0xff] %v261_v13 }
  0xfb   : > { %506 = vst [vmem:[#allocation3 + $0x10d8] sm:$0xff] %v262_v14 }
  0xfc   : > { %507 = vst [vmem:[#allocation3 + $0x9b0] sm:$0xff] %v262_v14 }
  0xfd   : > { %508 = vst [vmem:[#allocation3 + $0x668] sm:$0xff] %v262_v14 }
  0xfe   : > { %509 = vst [vmem:[#allocation3 + $0x12c8] sm:$0xff] %v262_v14 }
  0xff   : > { %510 = vst [vmem:[#allocation3 + $0xe0] sm:$0xff] %v262_v14 }
 0x100   : > { %511 = vst [vmem:[#allocation3 + $0x1968] sm:$0xff] %v262_v14 }
 0x101   : > { %512 = vst [vmem:[#allocation3 + $0x1f40] sm:$0xff] %v262_v14 }
 0x102   : > { %513 = vst [vmem:[#allocation3 + $0x390] sm:$0xff] %v262_v14 }
 0x103   : > { %514 = vst [vmem:[#allocation3 + $0x1c48] sm:$0xff] %v262_v14 }
 0x104   : > { %515 = vst [vmem:[#allocation3 + $0xb40] sm:$0xff] %v262_v14 }
 0x105   : > { %516 = vst [vmem:[#allocation3 + $0x1ee8] sm:$0xff] %v262_v14 }
 0x106   : > { %517 = vst [vmem:[#allocation3 + $0x1250] sm:$0xff] %v262_v14 }
 0x107   : > { %518 = vst [vmem:[#allocation3 + $0x1ca8] sm:$0xff] %v262_v14 }
 0x108   : > { %519 = vst [vmem:[#allocation3 + $0x1fe0] sm:$0xff] %v262_v14 }
 0x109   : > { %520 = vst [vmem:[#allocation3 + $0x4e8] sm:$0xff] %v262_v14 }
 0x10a   : > { %521 = vst [vmem:[#allocation3 + $0x1948] sm:$0xff] %v262_v14 }
 0x10b   : > { %522 = vst [vmem:[#allocation3 + $0x12e0] sm:$0xff] %v263_v15 }
 0x10c   : > { %523 = vst [vmem:[#allocation3 + $0x1e88] sm:$0xff] %v263_v15 }
 0x10d   : > { %524 = vst [vmem:[#allocation3 + $0x7a8] sm:$0xff] %v263_v15 }
 0x10e   : > { %525 = vst [vmem:[#allocation3 + $0x1b60] sm:$0xff] %v263_v15 }
 0x10f   : > { %526 = vst [vmem:[#allocation3 + $0xe40] sm:$0xff] %v263_v15 }
 0x110   : > { %527 = vst [vmem:[#allocation3 + $0x1bb8] sm:$0xff] %v263_v15 }
 0x111   : > { %528 = vst [vmem:[#allocation3 + $0x10b0] sm:$0xff] %v263_v15 }
 0x112   : > { %529 = vst [vmem:[#allocation3 + $0x1a08] sm:$0xff] %v263_v15 }
 0x113   : > { %530 = vst [vmem:[#allocation3 + $0xef8] sm:$0xff] %v263_v15 }
 0x114   : > { %531 = vst [vmem:[#allocation3 + $0x14c0] sm:$0xff] %v263_v15 }
 0x115   : > { %532 = vst [vmem:[#allocation3 + $0x1e18] sm:$0xff] %v263_v15 }
 0x116   : > { %533 = vst [vmem:[#allocation3 + $0x1cc0] sm:$0xff] %v263_v15 }
 0x117   : > { %534 = vst [vmem:[#allocation3 + $0x1980] sm:$0xff] %v263_v15 }
 0x118   : > { %535 = vst [vmem:[#allocation3 + $0x1258] sm:$0xff] %v263_v15 }
 0x119   : > { %536 = vst [vmem:[#allocation3 + $0x1740] sm:$0xff] %v263_v15 }
 0x11a   : > { %537 = vst [vmem:[#allocation3 + $0x410] sm:$0xff] %v263_v15 }
 0x11b   : > { %538 = vst [vmem:[#allocation3 + $0x1f90] sm:$0xff] %v264_v16 }
 0x11c   : > { %539 = vst [vmem:[#allocation3 + $0x1420] sm:$0xff] %v264_v16 }
 0x11d   : > { %540 = vst [vmem:[#allocation3 + $0x9a0] sm:$0xff] %v264_v16 }
 0x11e   : > { %541 = vst [vmem:[#allocation3 + $0x1918] sm:$0xff] %v264_v16 }
 0x11f   : > { %542 = vst [vmem:[#allocation3 + $0x11d0] sm:$0xff] %v264_v16 }
 0x120   : > { %543 = vst [vmem:[#allocation3 + $0x1f08] sm:$0xff] %v264_v16 }
 0x121   : > { %544 = vst [vmem:[#allocation3 + $0x1be8] sm:$0xff] %v264_v16 }
 0x122   : > { %545 = vst [vmem:[#allocation3 + $0x258] sm:$0xff] %v264_v16 }
 0x123   : > { %546 = vst [vmem:[#allocation3 + $0xa0] sm:$0xff] %v264_v16 }
 0x124   : > { %547 = vst [vmem:[#allocation3 + $0x13a8] sm:$0xff] %v264_v16 }
 0x125   : > { %548 = vst [vmem:[#allocation3 + $0x178] sm:$0xff] %v264_v16 }
 0x126   : > { %549 = vst [vmem:[#allocation3 + $0x850] sm:$0xff] %v264_v16 }
 0x127   : > { %550 = vst [vmem:[#allocation3 + $0xf20] sm:$0xff] %v264_v16 }
 0x128   : > { %551 = vst [vmem:[#allocation3 + $0x1cc8] sm:$0xff] %v264_v16 }
 0x129   : > { %552 = vst [vmem:[#allocation3 + $0xcb8] sm:$0xff] %v264_v16 }
 0x12a   : > { %553 = vst [vmem:[#allocation3 + $0xcd8] sm:$0xff] %v264_v16 }
 0x12b   : > { %554 = vst [vmem:[#allocation3 + $0x3b0] sm:$0xff] %v265_v17 }
 0x12c   : > { %555 = vst [vmem:[#allocation3 + $0x1800] sm:$0xff] %v265_v17 }
 0x12d   : > { %556 = vst [vmem:[#allocation3 + $0x618] sm:$0xff] %v265_v17 }
 0x12e   : > { %557 = vst [vmem:[#allocation3 + $0x1e10] sm:$0xff] %v265_v17 }
 0x12f   : > { %558 = vst [vmem:[#allocation3 + $0x828] sm:$0xff] %v265_v17 }
 0x130   : > { %559 = vst [vmem:[#allocation3 + $0x948] sm:$0xff] %v265_v17 }
 0x131   : > { %560 = vst [vmem:[#allocation3 + $0x1720] sm:$0xff] %v265_v17 }
 0x132   : > { %561 = vst [vmem:[#allocation3 + $0x1c80] sm:$0xff] %v265_v17 }
 0x133   : > { %562 = vst [vmem:[#allocation3 + $0xa30] sm:$0xff] %v265_v17 }
 0x134   : > { %563 = vst [vmem:[#allocation3 + $0x1d20] sm:$0xff] %v265_v17 }
 0x135   : > { %564 = vst [vmem:[#allocation3 + $0xb50] sm:$0xff] %v265_v17 }
 0x136   : > { %565 = vst [vmem:[#allocation3 + $0x1440] sm:$0xff] %v265_v17 }
 0x137   : > { %566 = vst [vmem:[#allocation3 + $0x1160] sm:$0xff] %v265_v17 }
 0x138   : > { %567 = vst [vmem:[#allocation3 + $0x17a8] sm:$0xff] %v265_v17 }
 0x139   : > { %568 = vst [vmem:[#allocation3 + $0x11a0] sm:$0xff] %v265_v17 }
 0x13a   : > { %569 = vst [vmem:[#allocation3 + $0xdc0] sm:$0xff] %v265_v17 }
 0x13b   : > { %570 = vst [vmem:[#allocation3 + $0x1510] sm:$0xff] %v266_v18 }
 0x13c   : > { %571 = vst [vmem:[#allocation3 + $0xe70] sm:$0xff] %v266_v18 }
 0x13d   : > { %572 = vst [vmem:[#allocation3 + $0x1bd8] sm:$0xff] %v266_v18 }
 0x13e   : > { %573 = vst [vmem:[#allocation3 + $0x17a0] sm:$0xff] %v266_v18 }
 0x13f   : > { %574 = vst [vmem:[#allocation3 + $0x610] sm:$0xff] %v266_v18 }
 0x140   : > { %575 = vst [vmem:[#allocation3 + $0x1178] sm:$0xff] %v266_v18 }
 0x141   : > { %576 = vst [vmem:[#allocation3 + $0x838] sm:$0xff] %v266_v18 }
 0x142   : > { %577 = vst [vmem:[#allocation3 + $0x5b0] sm:$0xff] %v266_v18 }
 0x143   : > { %578 = vst [vmem:[#allocation3 + $0x15b8] sm:$0xff] %v266_v18 }
 0x144   : > { %579 = vst [vmem:[#allocation3 + $0x718] sm:$0xff] %v266_v18 }
 0x145   : > { %580 = vst [vmem:[#allocation3 + $0x1c18] sm:$0xff] %v266_v18 }
 0x146   : > { %581 = vst [vmem:[#allocation3 + $0x228] sm:$0xff] %v266_v18 }
 0x147   : > { %582 = vst [vmem:[#allocation3 + $0x1910] sm:$0xff] %v266_v18 }
 0x148   : > { %583 = vst [vmem:[#allocation3 + $0x1498] sm:$0xff] %v266_v18 }
 0x149   : > { %584 = vst [vmem:[#allocation3 + $0x1d98] sm:$0xff] %v266_v18 }
 0x14a   : > { %585 = vst [vmem:[#allocation3 + $0x1790] sm:$0xff] %v266_v18 }
 0x14b   : > { %586 = vst [vmem:[#allocation3 + $0xf10] sm:$0xff] %v267_v19 }
 0x14c   : > { %587 = vst [vmem:[#allocation3 + $0x660] sm:$0xff] %v267_v19 }
 0x14d   : > { %588 = vst [vmem:[#allocation3 + $0x1538] sm:$0xff] %v267_v19 }
 0x14e   : > { %589 = vst [vmem:[#allocation3 + $0xf50] sm:$0xff] %v267_v19 }
 0x14f   : > { %590 = vst [vmem:[#allocation3 + $0x1268] sm:$0xff] %v267_v19 }
 0x150   : > { %591 = vst [vmem:[#allocation3 + $0x9b8] sm:$0xff] %v267_v19 }
 0x151   : > { %592 = vst [vmem:[#allocation3 + $0x3f0] sm:$0xff] %v267_v19 }
 0x152   : > { %593 = vst [vmem:[#allocation3 + $0x1c50] sm:$0xff] %v267_v19 }
 0x153   : > { %594 = vst [vmem:[#allocation3 + $0x3a0] sm:$0xff] %v267_v19 }
 0x154   : > { %595 = vst [vmem:[#allocation3 + $0x840] sm:$0xff] %v267_v19 }
 0x155   : > { %596 = vst [vmem:[#allocation3 + $0x1f68] sm:$0xff] %v267_v19 }
 0x156   : > { %597 = vst [vmem:[#allocation3 + $0x148] sm:$0xff] %v267_v19 }
 0x157   : > { %598 = vst [vmem:[#allocation3 + $0xdd8] sm:$0xff] %v267_v19 }
 0x158   : > { %599 = vst [vmem:[#allocation3 + $0xa70] sm:$0xff] %v267_v19 }
 0x159   : > { %600 = vst [vmem:[#allocation3 + $0x1530] sm:$0xff] %v267_v19 }
 0x15a   : > { %601 = vst [vmem:[#allocation3 + $0xca8] sm:$0xff] %v267_v19 }
 0x15b   : > { %602 = vst [vmem:[#allocation3 + $0x1010] sm:$0xff] %v268_v20 }
 0x15c   : > { %603 = vst [vmem:[#allocation3 + $0xe78] sm:$0xff] %v268_v20 }
 0x15d   : > { %604 = vst [vmem:[#allocation3 + $0x788] sm:$0xff] %v268_v20 }
 0x15e   : > { %605 = vst [vmem:[#allocation3 + $0xd60] sm:$0xff] %v268_v20 }
 0x15f   : > { %606 = vst [vmem:[#allocation3 + $0xbf8] sm:$0xff] %v268_v20 }
 0x160   : > { %607 = vst [vmem:[#allocation3 + $0xee0] sm:$0xff] %v268_v20 }
 0x161   : > { %608 = vst [vmem:[#allocation3 + $0x1cd0] sm:$0xff] %v268_v20 }
 0x162   : > { %609 = vst [vmem:[#allocation3 + $0x1fa0] sm:$0xff] %v268_v20 }
 0x163   : > { %610 = vst [vmem:[#allocation3 + $0x1db0] sm:$0xff] %v268_v20 }
 0x164   : > { %611 = vst [vmem:[#allocation3 + $0x18e0] sm:$0xff] %v268_v20 }
 0x165   : > { %612 = vst [vmem:[#allocation3 + $0x1ad8] sm:$0xff] %v268_v20 }
 0x166   : > { %613 = vst [vmem:[#allocation3 + $0x578] sm:$0xff] %v268_v20 }
 0x167   : > { %614 = vst [vmem:[#allocation3 + $0x1f80] sm:$0xff] %v268_v20 }
 0x168   : > { %615 = vst [vmem:[#allocation3 + $0x1bd0] sm:$0xff] %v268_v20 }
 0x169   : > { %616 = vst [vmem:[#allocation3 + $0x1af8] sm:$0xff] %v268_v20 }
 0x16a   : > { %617 = vst [vmem:[#allocation3 + $0x10a8] sm:$0xff] %v268_v20 }
 0x16b   : > { %618 = vst [vmem:[#allocation3 + $0x1020] sm:$0xff] %v269_v21 }
 0x16c   : > { %619 = vst [vmem:[#allocation3 + $0xa10] sm:$0xff] %v269_v21 }
 0x16d   : > { %620 = vst [vmem:[#allocation3 + $0x1988] sm:$0xff] %v269_v21 }
 0x16e   : > { %621 = vst [vmem:[#allocation3 + $0xc50] sm:$0xff] %v269_v21 }
 0x16f   : > { %622 = vst [vmem:[#allocation3 + $0x638] sm:$0xff] %v269_v21 }
 0x170   : > { %623 = vst [vmem:[#allocation3 + $0x1358] sm:$0xff] %v269_v21 }
 0x171   : > { %624 = vst [vmem:[#allocation3 + $0x1c20] sm:$0xff] %v269_v21 }
 0x172   : > { %625 = vst [vmem:[#allocation3 + $0x1078] sm:$0xff] %v269_v21 }
 0x173   : > { %626 = vst [vmem:[#allocation3 + $0x3c8] sm:$0xff] %v269_v21 }
 0x174   : > { %627 = vst [vmem:[#allocation3 + $0x1b80] sm:$0xff] %v269_v21 }
 0x175   : > { %628 = vst [vmem:[#allocation3 + $0xa38] sm:$0xff] %v269_v21 }
 0x176   : > { %629 = vst [vmem:[#allocation3 + $0xe48] sm:$0xff] %v269_v21 }
 0x177   : > { %630 = vst [vmem:[#allocation3 + $0xcf8] sm:$0xff] %v269_v21 }
 0x178   : > { %631 = vst [vmem:[#allocation3 + $0x1828] sm:$0xff] %v269_v21 }
 0x179   : > { %632 = vst [vmem:[#allocation3 + $0x1000] sm:$0xff] %v269_v21 }
 0x17a   : > { %633 = vst [vmem:[#allocation3 + $0x10a0] sm:$0xff] %v269_v21 }
 0x17b   : > { %634 = vst [vmem:[#allocation3 + $0x1f50] sm:$0xff] %v270_v22 }
 0x17c   : > { %635 = vst [vmem:[#allocation3 + $0x11b0] sm:$0xff] %v270_v22 }
 0x17d   : > { %636 = vst [vmem:[#allocation3 + $0x2b8] sm:$0xff] %v270_v22 }
 0x17e   : > { %637 = vst [vmem:[#allocation3 + $0xf68] sm:$0xff] %v270_v22 }
 0x17f   : > { %638 = vst [vmem:[#allocation3 + $0xcc8] sm:$0xff] %v270_v22 }
 0x180   : > { %639 = vst [vmem:[#allocation3 + $0xac0] sm:$0xff] %v270_v22 }
 0x181   : > { %640 = vst [vmem:[#allocation3 + $0x13b8] sm:$0xff] %v270_v22 }
 0x182   : > { %641 = vst [vmem:[#allocation3 + $0xe08] sm:$0xff] %v270_v22 }
 0x183   : > { %642 = vst [vmem:[#allocation3 + $0x5e8] sm:$0xff] %v270_v22 }
 0x184   : > { %643 = vst [vmem:[#allocation3 + $0x340] sm:$0xff] %v270_v22 }
 0x185   : > { %644 = vst [vmem:[#allocation3 + $0x1038] sm:$0xff] %v270_v22 }
 0x186   : > { %645 = vst [vmem:[#allocation3 + $0xfb8] sm:$0xff] %v270_v22 }
 0x187   : > { %646 = vst [vmem:[#allocation3 + $0xe50] sm:$0xff] %v270_v22 }
 0x188   : > { %647 = vst [vmem:[#allocation3 + $0x16b0] sm:$0xff] %v270_v22 }
 0x189   : > { %648 = vst [vmem:[#allocation3 + $0x16f0] sm:$0xff] %v270_v22 }
 0x18a   : > { %649 = vst [vmem:[#allocation3 + $0x860] sm:$0xff] %v270_v22 }
 0x18b   : > { %650 = vst [vmem:[#allocation3 + $0x1b88] sm:$0xff] %v271_v23 }
 0x18c   : > { %651 = vst [vmem:[#allocation3 + $0x70] sm:$0xff] %v271_v23 }
 0x18d   : > { %652 = vst [vmem:[#allocation3 + $0xfc8] sm:$0xff] %v271_v23 }
 0x18e   : > { %653 = vst [vmem:[#allocation3 + $0x1990] sm:$0xff] %v271_v23 }
 0x18f   : > { %654 = vst [vmem:[#allocation3 + $0xeb0] sm:$0xff] %v271_v23 }
 0x190   : > { %655 = vst [vmem:[#allocation3 + $0x3e8] sm:$0xff] %v271_v23 }
 0x191   : > { %656 = vst [vmem:[#allocation3 + $0x1208] sm:$0xff] %v271_v23 }
 0x192   : > { %657 = vst [vmem:[#allocation3 + $0xde0] sm:$0xff] %v271_v23 }
 0x193   : > { %658 = vst [vmem:[#allocation3 + $0x9e0] sm:$0xff] %v271_v23 }
 0x194   : > { %659 = vst [vmem:[#allocation3 + $0x160] sm:$0xff] %v271_v23 }
 0x195   : > { %660 = vst [vmem:[#allocation3 + $0xfb0] sm:$0xff] %v271_v23 }
 0x196   : > { %661 = vst [vmem:[#allocation3 + $0x2a8] sm:$0xff] %v271_v23 }
 0x197   : > { %662 = vst [vmem:[#allocation3 + $0x1480] sm:$0xff] %v271_v23 }
 0x198   : > { %663 = vst [vmem:[#allocation3 + $0x1c70] sm:$0xff] %v271_v23 }
 0x199   : > { %664 = vst [vmem:[#allocation3 + $0xd38] sm:$0xff] %v271_v23 }
 0x19a   : > { %665 = vst [vmem:[#allocation3 + $0x900] sm:$0xff] %v271_v23 }
 0x19b   : > { %666 = vst [vmem:[#allocation3 + $0x1520] sm:$0xff] %v272_v24 }
 0x19c   : > { %667 = vst [vmem:[#allocation3 + $0x150] sm:$0xff] %v272_v24 }
 0x19d   : > { %668 = vst [vmem:[#allocation3 + $0x1ff0] sm:$0xff] %v272_v24 }
 0x19e   : > { %669 = vst [vmem:[#allocation3 + $0x970] sm:$0xff] %v272_v24 }
 0x19f   : > { %670 = vst [vmem:[#allocation3 + $0x1158] sm:$0xff] %v272_v24 }
 0x1a0   : > { %671 = vst [vmem:[#allocation3 + $0x898] sm:$0xff] %v272_v24 }
 0x1a1   : > { %672 = vst [vmem:[#allocation3 + $0x1450] sm:$0xff] %v272_v24 }
 0x1a2   : > { %673 = vst [vmem:[#allocation3 + $0x1e80] sm:$0xff] %v272_v24 }
 0x1a3   : > { %674 = vst [vmem:[#allocation3 + $0xd18] sm:$0xff] %v272_v24 }
 0x1a4   : > { %675 = vst [vmem:[#allocation3 + $0xf70] sm:$0xff] %v272_v24 }
 0x1a5   : > { %676 = vst [vmem:[#allocation3 + $0x1950] sm:$0xff] %v272_v24 }
 0x1a6   : > { %677 = vst [vmem:[#allocation3 + $0x810] sm:$0xff] %v272_v24 }
 0x1a7   : > { %678 = vst [vmem:[#allocation3 + $0x1b18] sm:$0xff] %v272_v24 }
 0x1a8   : > { %679 = vst [vmem:[#allocation3 + $0xeb8] sm:$0xff] %v272_v24 }
 0x1a9   : > { %680 = vst [vmem:[#allocation3 + $0x1378] sm:$0xff] %v272_v24 }
 0x1aa   : > { %681 = vst [vmem:[#allocation3 + $0x9f8] sm:$0xff] %v272_v24 }
 0x1ab   : > { %682 = vst [vmem:[#allocation3 + $0x458] sm:$0xff] %v273_v25 }
 0x1ac   : > { %683 = vst [vmem:[#allocation3 + $0x1218] sm:$0xff] %v273_v25 }
 0x1ad   : > { %684 = vst [vmem:[#allocation3 + $0x1dd8] sm:$0xff] %v273_v25 }
 0x1ae   : > { %685 = vst [vmem:[#allocation3 + $0x4a8] sm:$0xff] %v273_v25 }
 0x1af   : > { %686 = vst [vmem:[#allocation3 + $0x768] sm:$0xff] %v273_v25 }
 0x1b0   : > { %687 = vst [vmem:[#allocation3 + $0x498] sm:$0xff] %v273_v25 }
 0x1b1   : > { %688 = vst [vmem:[#allocation3 + $0x1c68] sm:$0xff] %v273_v25 }
 0x1b2   : > { %689 = vst [vmem:[#allocation3 + $0xa90] sm:$0xff] %v273_v25 }
 0x1b3   : > { %690 = vst [vmem:[#allocation3 + $0x17f0] sm:$0xff] %v273_v25 }
 0x1b4   : > { %691 = vst [vmem:[#allocation3 + $0x14a8] sm:$0xff] %v273_v25 }
 0x1b5   : > { %692 = vst [vmem:[#allocation3 + $0x1308] sm:$0xff] %v273_v25 }
 0x1b6   : > { %693 = vst [vmem:[#allocation3 + $0x1558] sm:$0xff] %v273_v25 }
 0x1b7   : > { %694 = vst [vmem:[#allocation3 + $0x13f0] sm:$0xff] %v273_v25 }
 0x1b8   : > { %695 = vst [vmem:[#allocation3 + $0x1708] sm:$0xff] %v273_v25 }
 0x1b9   : > { %696 = vst [vmem:[#allocation3 + $0x1fc0] sm:$0xff] %v273_v25 }
 0x1ba   : > { %697 = vst [vmem:[#allocation3 + $0x170] sm:$0xff] %v273_v25 }
 0x1bb   : > { %698 = vst [vmem:[#allocation3 + $0xc08] sm:$0xff] %v274_v26 }
 0x1bc   : > { %699 = vst [vmem:[#allocation3 + $0x230] sm:$0xff] %v274_v26 }
 0x1bd   : > { %700 = vst [vmem:[#allocation3 + $0x808] sm:$0xff] %v274_v26 }
 0x1be   : > { %701 = vst [vmem:[#allocation3 + $0x20] sm:$0xff] %v274_v26 }
 0x1bf   : > { %702 = vst [vmem:[#allocation3 + $0x1a28] sm:$0xff] %v274_v26 }
 0x1c0   : > { %703 = vst [vmem:[#allocation3 + $0x118] sm:$0xff] %v274_v26 }
 0x1c1   : > { %704 = vst [vmem:[#allocation3 + $0x12a0] sm:$0xff] %v274_v26 }
 0x1c2   : > { %705 = vst [vmem:[#allocation3 + $0x398] sm:$0xff] %v274_v26 }
 0x1c3   : > { %706 = vst [vmem:[#allocation3 + $0x1ea8] sm:$0xff] %v274_v26 }
 0x1c4   : > { %707 = vst [vmem:[#allocation3 + $0x1e78] sm:$0xff] %v274_v26 }
 0x1c5   : > { %708 = vst [vmem:[#allocation3 + $0xb80] sm:$0xff] %v274_v26 }
 0x1c6   : > { %709 = vst [vmem:[#allocation3 + $0x8a8] sm:$0xff] %v274_v26 }
 0x1c7   : > { %710 = vst [vmem:[#allocation3 + $0x1970] sm:$0xff] %v274_v26 }
 0x1c8   : > { %711 = vst [vmem:[#allocation3 + $0x6c8] sm:$0xff] %v274_v26 }
 0x1c9   : > { %712 = vst [vmem:[#allocation3 + $0xdd0] sm:$0xff] %v274_v26 }
 0x1ca   : > { %713 = vst [vmem:[#allocation3 + $0x1c00] sm:$0xff] %v274_v26 }
 0x1cb   : > { %714 = vst [vmem:[#allocation3 + $0xfe0] sm:$0xff] %v275_v27 }
 0x1cc   : > { %715 = vst [vmem:[#allocation3 + $0x14b0] sm:$0xff] %v275_v27 }
 0x1cd   : > { %716 = vst [vmem:[#allocation3 + $0x13a0] sm:$0xff] %v275_v27 }
 0x1ce   : > { %717 = vst [vmem:[#allocation3 + $0x5d0] sm:$0xff] %v275_v27 }
 0x1cf   : > { %718 = vst [vmem:[#allocation3 + $0x818] sm:$0xff] %v275_v27 }
 0x1d0   : > { %719 = vst [vmem:[#allocation3 + $0x568] sm:$0xff] %v275_v27 }
 0x1d1   : > { %720 = vst [vmem:[#allocation3 + $0x1da0] sm:$0xff] %v275_v27 }
 0x1d2   : > { %721 = vst [vmem:[#allocation3 + $0x14a0] sm:$0xff] %v275_v27 }
 0x1d3   : > { %722 = vst [vmem:[#allocation3 + $0x2f0] sm:$0xff] %v275_v27 }
 0x1d4   : > { %723 = vst [vmem:[#allocation3 + $0x868] sm:$0xff] %v275_v27 }
 0x1d5   : > { %724 = vst [vmem:[#allocation3 + $0x8] sm:$0xff] %v275_v27 }
 0x1d6   : > { %725 = vst [vmem:[#allocation3 + $0x1328] sm:$0xff] %v275_v27 }
 0x1d7   : > { %726 = vst [vmem:[#allocation3 + $0x1c10] sm:$0xff] %v275_v27 }
 0x1d8   : > { %727 = vst [vmem:[#allocation3 + $0x19f0] sm:$0xff] %v275_v27 }
 0x1d9   : > { %728 = vst [vmem:[#allocation3 + $0x19d8] sm:$0xff] %v275_v27 }
 0x1da   : > { %729 = vst [vmem:[#allocation3 + $0x930] sm:$0xff] %v275_v27 }
 0x1db   : > { %730 = vst [vmem:[#allocation3 + $0x358] sm:$0xff] %v276_v28 }
 0x1dc   : > { %731 = vst [vmem:[#allocation3 + $0x80] sm:$0xff] %v276_v28 }
 0x1dd   : > { %732 = vst [vmem:[#allocation3 + $0x11e0] sm:$0xff] %v276_v28 }
 0x1de   : > { %733 = vst [vmem:[#allocation3 + $0xd78] sm:$0xff] %v276_v28 }
 0x1df   : > { %734 = vst [vmem:[#allocation3 + $0x1050] sm:$0xff] %v276_v28 }
 0x1e0   : > { %735 = vst [vmem:[#allocation3 + $0xe30] sm:$0xff] %v276_v28 }
 0x1e1   : > { %736 = vst [vmem:[#allocation3 + $0x670] sm:$0xff] %v276_v28 }
 0x1e2   : > { %737 = vst [vmem:[#allocation3 + $0xa78] sm:$0xff] %v276_v28 }
 0x1e3   : > { %738 = vst [vmem:[#allocation3 + $0xcb0] sm:$0xff] %v276_v28 }
 0x1e4   : > { %739 = vst [vmem:[#allocation3 + $0x728] sm:$0xff] %v276_v28 }
 0x1e5   : > { %740 = vst [vmem:[#allocation3 + $0x1f10] sm:$0xff] %v276_v28 }
 0x1e6   : > { %741 = vst [vmem:[#allocation3 + $0x18f8] sm:$0xff] %v276_v28 }
 0x1e7   : > { %742 = vst [vmem:[#allocation3 + $0x1aa8] sm:$0xff] %v276_v28 }
 0x1e8   : > { %743 = vst [vmem:[#allocation3 + $0x1fb0] sm:$0xff] %v276_v28 }
 0x1e9   : > { %744 = vst [vmem:[#allocation3 + $0x1688] sm:$0xff] %v276_v28 }
 0x1ea   : > { %745 = vst [vmem:[#allocation3 + $0x1228] sm:$0xff] %v276_v28 }
 0x1eb   : > { %746 = vst [vmem:[#allocation3 + $0x1a70] sm:$0xff] %v277_v29 }
 0x1ec   : > { %747 = vst [vmem:[#allocation3 + $0x750] sm:$0xff] %v277_v29 }
 0x1ed   : > { %748 = vst [vmem:[#allocation3 + $0xda8] sm:$0xff] %v277_v29 }
 0x1ee   : > { %749 = vst [vmem:[#allocation3 + $0x12f8] sm:$0xff] %v277_v29 }
 0x1ef   : > { %750 = vst [vmem:[#allocation3 + $0x1b00] sm:$0xff] %v277_v29 }
 0x1f0   : > { %751 = vst [vmem:[#allocation3 + $0x1b78] sm:$0xff] %v277_v29 }
 0x1f1   : > { %752 = vst [vmem:[#allocation3 + $0x388] sm:$0xff] %v277_v29 }
 0x1f2   : > { %753 = vst [vmem:[#allocation3 + $0xd0] sm:$0xff] %v277_v29 }
 0x1f3   : > { %754 = vst [vmem:[#allocation3 + $0x1248] sm:$0xff] %v277_v29 }
 0x1f4   : > { %755 = vst [vmem:[#allocation3 + $0x508] sm:$0xff] %v277_v29 }
 0x1f5   : > { %756 = vst [vmem:[#allocation3 + $0x1b30] sm:$0xff] %v277_v29 }
 0x1f6   : > { %757 = vst [vmem:[#allocation3 + $0x1e90] sm:$0xff] %v277_v29 }
 0x1f7   : > { %758 = vst [vmem:[#allocation3 + $0x1880] sm:$0xff] %v277_v29 }
 0x1f8   : > { %759 = vst [vmem:[#allocation3 + $0x58] sm:$0xff] %v277_v29 }
 0x1f9   : > { %760 = vst [vmem:[#allocation3 + $0x4d0] sm:$0xff] %v277_v29 }
 0x1fa   : > { %761 = vst [vmem:[#allocation3 + $0x19d0] sm:$0xff] %v277_v29 }
 0x1fb   : > { %762 = vst [vmem:[#allocation3 + $0xfd8] sm:$0xff] %v278_v30 }
 0x1fc   : > { %763 = vst [vmem:[#allocation3 + $0x928] sm:$0xff] %v278_v30 }
 0x1fd   : > { %764 = vst [vmem:[#allocation3 + $0x1428] sm:$0xff] %v278_v30 }
 0x1fe   : > { %765 = vst [vmem:[#allocation3 + $0x100] sm:$0xff] %v278_v30 }
 0x1ff   : > { %766 = vst [vmem:[#allocation3 + $0x28] sm:$0xff] %v278_v30 }
 0x200   : > { %767 = vst [vmem:[#allocation3 + $0x1448] sm:$0xff] %v278_v30 }
 0x201   : > { %768 = vst [vmem:[#allocation3 + $0x180] sm:$0xff] %v278_v30 }
 0x202   : > { %769 = vst [vmem:[#allocation3 + $0xb30] sm:$0xff] %v278_v30 }
 0x203   : > { %770 = vst [vmem:[#allocation3 + $0x5e0] sm:$0xff] %v278_v30 }
 0x204   : > { %771 = vst [vmem:[#allocation3 + $0x1b38] sm:$0xff] %v278_v30 }
 0x205   : > { %772 = vst [vmem:[#allocation3 + $0x8c8] sm:$0xff] %v278_v30 }
 0x206   : > { %773 = vst [vmem:[#allocation3 + $0x1a50] sm:$0xff] %v278_v30 }
 0x207   : > { %774 = vst [vmem:[#allocation3 + $0x1a38] sm:$0xff] %v278_v30 }
 0x208   : > { %775 = vst [vmem:[#allocation3 + $0x1ae8] sm:$0xff] %v278_v30 }
 0x209   : > { %776 = vst [vmem:[#allocation3 + $0x1cb8] sm:$0xff] %v278_v30 }
 0x20a   : > { %777 = vst [vmem:[#allocation3 + $0x1200] sm:$0xff] %v278_v30 }
 0x20b   : > { %778 = vst [vmem:[#allocation3 + $0x6a8] sm:$0xff] %v279_v31 }
 0x20c   : > { %779 = vst [vmem:[#allocation3 + $0x570] sm:$0xff] %v279_v31 }
 0x20d   : > { %780 = vst [vmem:[#allocation3 + $0x1a60] sm:$0xff] %v279_v31 }
 0x20e   : > { %781 = vst [vmem:[#allocation3 + $0x1c8] sm:$0xff] %v279_v31 }
 0x20f   : > { %782 = vst [vmem:[#allocation3 + $0xe8] sm:$0xff] %v279_v31 }
 0x210   : > { %783 = vst [vmem:[#allocation3 + $0x1de8] sm:$0xff] %v279_v31 }
 0x211   : > { %784 = vst [vmem:[#allocation3 + $0xd48] sm:$0xff] %v279_v31 }
 0x212   : > { %785 = vst [vmem:[#allocation3 + $0x1388] sm:$0xff] %v279_v31 }
 0x213   : > { %786 = vst [vmem:[#allocation3 + $0x1670] sm:$0xff] %v279_v31 }
 0x214   : > { %787 = vst [vmem:[#allocation3 + $0x98] sm:$0xff] %v279_v31 }
 0x215   : > { %788 = vst [vmem:[#allocation3 + $0x1960] sm:$0xff] %v279_v31 }
 0x216   : > { %789 = vst [vmem:[#allocation3 + $0x1590] sm:$0xff] %v279_v31 }
 0x217   : > { %790 = vst [vmem:[#allocation3 + $0x1260] sm:$0xff] %v279_v31 }
 0x218   : > { %791 = vst [vmem:[#allocation3 + $0x330] sm:$0xff] %v279_v31 }
 0x219   : > { %792 = vst [vmem:[#allocation3 + $0x5b8] sm:$0xff] %v279_v31 }
 0x21a   : > { %793 = vst [vmem:[#allocation3 + $0x1890] sm:$0xff] %v279_v31 }
 0x21b   : > { %794 = vst [vmem:[#allocation3 + $0xc10] sm:$0xff] %v280_v32 }
 0x21c   : > { %795 = vst [vmem:[#allocation3 + $0x10b8] sm:$0xff] %v280_v32 }
 0x21d   : > { %796 = vst [vmem:[#allocation3 + $0x18b8] sm:$0xff] %v280_v32 }
 0x21e   : > { %797 = vst [vmem:[#allocation3 + $0xf90] sm:$0xff] %v280_v32 }
 0x21f   : > { %798 = vst [vmem:[#allocation3 + $0x1f70] sm:$0xff] %v280_v32 }
 0x220   : > { %799 = vst [vmem:[#allocation3 + $0x7d8] sm:$0xff] %v280_v32 }
 0x221   : > { %800 = vst [vmem:[#allocation3 + $0xcc0] sm:$0xff] %v280_v32 }
 0x222   : > { %801 = vst [vmem:[#allocation3 + $0x1368] sm:$0xff] %v280_v32 }
 0x223   : > { %802 = vst [vmem:[#allocation3 + $0x798] sm:$0xff] %v280_v32 }
 0x224   : > { %803 = vst [vmem:[#allocation3 + $0xa20] sm:$0xff] %v280_v32 }
 0x225   : > { %804 = vst [vmem:[#allocation3 + $0x1680] sm:$0xff] %v280_v32 }
 0x226   : > { %805 = vst [vmem:[#allocation3 + $0x13c8] sm:$0xff] %v280_v32 }
 0x227   : > { %806 = vst [vmem:[#allocation3 + $0x1a80] sm:$0xff] %v280_v32 }
 0x228   : > { %807 = vst [vmem:[#allocation3 + $0x1c08] sm:$0xff] %v280_v32 }
 0x229   : > { %808 = vst [vmem:[#allocation3 + $0x16b8] sm:$0xff] %v280_v32 }
 0x22a   : > { %809 = vst [vmem:[#allocation3 + $0x1fd0] sm:$0xff] %v280_v32 }
 0x22b   : > { %810 = vst [vmem:[#allocation3 + $0x430] sm:$0xff] %v281_v34 }
 0x22c   : > { %811 = vst [vmem:[#allocation3 + $0x1940] sm:$0xff] %v281_v34 }
 0x22d   : > { %812 = vst [vmem:[#allocation3 + $0x6f8] sm:$0xff] %v281_v34 }
 0x22e   : > { %813 = vst [vmem:[#allocation3 + $0xd80] sm:$0xff] %v281_v34 }
 0x22f   : > { %814 = vst [vmem:[#allocation3 + $0xd40] sm:$0xff] %v281_v34 }
 0x230   : > { %815 = vst [vmem:[#allocation3 + $0x1700] sm:$0xff] %v281_v34 }
 0x231   : > { %816 = vst [vmem:[#allocation3 + $0xd68] sm:$0xff] %v281_v34 }
 0x232   : > { %817 = vst [vmem:[#allocation3 + $0x1120] sm:$0xff] %v281_v34 }
 0x233   : > { %818 = vst [vmem:[#allocation3 + $0x1b48] sm:$0xff] %v281_v34 }
 0x234   : > { %819 = vst [vmem:[#allocation3 + $0x1f88] sm:$0xff] %v281_v34 }
 0x235   : > { %820 = vst [vmem:[#allocation3 + $0xff8] sm:$0xff] %v281_v34 }
 0x236   : > { %821 = vst [vmem:[#allocation3 + $0x1750] sm:$0xff] %v281_v34 }
 0x237   : > { %822 = vst [vmem:[#allocation3 + $0x1188] sm:$0xff] %v281_v34 }
 0x238   : > { %823 = vst [vmem:[#allocation3 + $0x1560] sm:$0xff] %v281_v34 }
 0x239   : > { %824 = vst [vmem:[#allocation3 + $0x1098] sm:$0xff] %v281_v34 }
 0x23a   : > { %825 = vst [vmem:[#allocation3 + $0x1eb0] sm:$0xff] %v281_v34 }
 0x23b   : > { %826 = vst [vmem:[#allocation3 + $0x1fa8] sm:$0xff] %v282_v35 }
 0x23c   : > { %827 = vst [vmem:[#allocation3 + $0x5c0] sm:$0xff] %v282_v35 }
 0x23d   : > { %828 = vst [vmem:[#allocation3 + $0x1840] sm:$0xff] %v282_v35 }
 0x23e   : > { %829 = vst [vmem:[#allocation3 + $0xa68] sm:$0xff] %v282_v35 }
 0x23f   : > { %830 = vst [vmem:[#allocation3 + $0x1628] sm:$0xff] %v282_v35 }
 0x240   : > { %831 = vst [vmem:[#allocation3 + $0x1e50] sm:$0xff] %v282_v35 }
 0x241   : > { %832 = vst [vmem:[#allocation3 + $0x1ad0] sm:$0xff] %v282_v35 }
 0x242   : > { %833 = vst [vmem:[#allocation3 + $0x1180] sm:$0xff] %v282_v35 }
 0x243   : > { %834 = vst [vmem:[#allocation3 + $0x14f8] sm:$0xff] %v282_v35 }
 0x244   : > { %835 = vst [vmem:[#allocation3 + $0x30] sm:$0xff] %v282_v35 }
 0x245   : > { %836 = vst [vmem:[#allocation3 + $0x1c98] sm:$0xff] %v282_v35 }
 0x246   : > { %837 = vst [vmem:[#allocation3 + $0x700] sm:$0xff] %v282_v35 }
 0x247   : > { %838 = vst [vmem:[#allocation3 + $0x678] sm:$0xff] %v282_v35 }
 0x248   : > { %839 = vst [vmem:[#allocation3 + $0x3a8] sm:$0xff] %v282_v35 }
 0x249   : > { %840 = vst [vmem:[#allocation3 + $0x510] sm:$0xff] %v282_v35 }
 0x24a   : > { %841 = vst [vmem:[#allocation3 + $0x1d70] sm:$0xff] %v282_v35 }
 0x24b   : > { %842 = vst [vmem:[#allocation3 + $0x918] sm:$0xff] %v283_v36 }
 0x24c   : > { %843 = vst [vmem:[#allocation3 + $0xf38] sm:$0xff] %v283_v36 }
 0x24d   : > { %844 = vst [vmem:[#allocation3 + $0x1b0] sm:$0xff] %v283_v36 }
 0x24e   : > { %845 = vst [vmem:[#allocation3 + $0x1860] sm:$0xff] %v283_v36 }
 0x24f   : > { %846 = vst [vmem:[#allocation3 + $0x980] sm:$0xff] %v283_v36 }
 0x250   : > { %847 = vst [vmem:[#allocation3 + $0x1758] sm:$0xff] %v283_v36 }
 0x251   : > { %848 = vst [vmem:[#allocation3 + $0x1168] sm:$0xff] %v283_v36 }
 0x252   : > { %849 = vst [vmem:[#allocation3 + $0x16e8] sm:$0xff] %v283_v36 }
 0x253   : > { %850 = vst [vmem:[#allocation3 + $0x5a0] sm:$0xff] %v283_v36 }
 0x254   : > { %851 = vst [vmem:[#allocation3 + $0x18b0] sm:$0xff] %v283_v36 }
 0x255   : > { %852 = vst [vmem:[#allocation3 + $0x18f0] sm:$0xff] %v283_v36 }
 0x256   : > { %853 = vst [vmem:[#allocation3 + $0xf58] sm:$0xff] %v283_v36 }
 0x257   : > { %854 = vst [vmem:[#allocation3 + $0x13e0] sm:$0xff] %v283_v36 }
 0x258   : > { %855 = vst [vmem:[#allocation3 + $0xaa0] sm:$0xff] %v283_v36 }
 0x259   : > { %856 = vst [vmem:[#allocation3 + $0x68] sm:$0xff] %v283_v36 }
 0x25a   : > { %857 = vst [vmem:[#allocation3 + $0x1a48] sm:$0xff] %v283_v36 }
 0x25b   : > { %858 = vst [vmem:[#allocation3 + $0xad8] sm:$0xff] %v284_v37 }
 0x25c   : > { %859 = vst [vmem:[#allocation3 + $0x14d8] sm:$0xff] %v284_v37 }
 0x25d   : > { %860 = vst [vmem:[#allocation3 + $0x1468] sm:$0xff] %v284_v37 }
 0x25e   : > { %861 = vst [vmem:[#allocation3 + $0x6e8] sm:$0xff] %v284_v37 }
 0x25f   : > { %862 = vst [vmem:[#allocation3 + $0x12c0] sm:$0xff] %v284_v37 }
 0x260   : > { %863 = vst [vmem:[#allocation3 + $0xaf8] sm:$0xff] %v284_v37 }
 0x261   : > { %864 = vst [vmem:[#allocation3 + $0x16e0] sm:$0xff] %v284_v37 }
 0x262   : > { %865 = vst [vmem:[#allocation3 + $0x1cd8] sm:$0xff] %v284_v37 }
 0x263   : > { %866 = vst [vmem:[#allocation3 + $0x1650] sm:$0xff] %v284_v37 }
 0x264   : > { %867 = vst [vmem:[#allocation3 + $0x19b0] sm:$0xff] %v284_v37 }
 0x265   : > { %868 = vst [vmem:[#allocation3 + $0x6d0] sm:$0xff] %v284_v37 }
 0x266   : > { %869 = vst [vmem:[#allocation3 + $0x1338] sm:$0xff] %v284_v37 }
 0x267   : > { %870 = vst [vmem:[#allocation3 + $0x720] sm:$0xff] %v284_v37 }
 0x268   : > { %871 = vst [vmem:[#allocation3 + $0x10c0] sm:$0xff] %v284_v37 }
 0x269   : > { %872 = vst [vmem:[#allocation3 + $0xb68] sm:$0xff] %v284_v37 }
 0x26a   : > { %873 = vst [vmem:[#allocation3 + $0xec0] sm:$0xff] %v284_v37 }
 0x26b   : > { %874 = vst [vmem:[#allocation3 + $0x1d00] sm:$0xff] %v285_v38 }
 0x26c   : > { %875 = vst [vmem:[#allocation3 + $0xbd8] sm:$0xff] %v285_v38 }
 0x26d   : > { %876 = vst [vmem:[#allocation3 + $0x1b8] sm:$0xff] %v285_v38 }
 0x26e   : > { %877 = vst [vmem:[#allocation3 + $0xb90] sm:$0xff] %v285_v38 }
 0x26f   : > { %878 = vst [vmem:[#allocation3 + $0x348] sm:$0xff] %v285_v38 }
 0x270   : > { %879 = vst [vmem:[#allocation3 + $0xcd0] sm:$0xff] %v285_v38 }
 0x271   : > { %880 = vst [vmem:[#allocation3 + $0x290] sm:$0xff] %v285_v38 }
 0x272   : > { %881 = vst [vmem:[#allocation3 + $0x908] sm:$0xff] %v285_v38 }
 0x273   : > { %882 = vst [vmem:[#allocation3 + $0x15a0] sm:$0xff] %v285_v38 }
 0x274   : > { %883 = vst [vmem:[#allocation3 + $0xfc0] sm:$0xff] %v285_v38 }
 0x275   : > { %884 = vst [vmem:[#allocation3 + $0x1640] sm:$0xff] %v285_v38 }
 0x276   : > { %885 = vst [vmem:[#allocation3 + $0xc30] sm:$0xff] %v285_v38 }
 0x277   : > { %886 = vst [vmem:[#allocation3 + $0x7c0] sm:$0xff] %v285_v38 }
 0x278   : > { %887 = vst [vmem:[#allocation3 + $0x11f0] sm:$0xff] %v285_v38 }
 0x279   : > { %888 = vst [vmem:[#allocation3 + $0x17d8] sm:$0xff] %v285_v38 }
 0x27a   : > { %889 = vst [vmem:[#allocation3 + $0x5d8] sm:$0xff] %v285_v38 }
 0x27b   : > { %890 = vst [vmem:[#allocation3 + $0x1870] sm:$0xff] %v286_v39 }
 0x27c   : > { %891 = vst [vmem:[#allocation3 + $0x1350] sm:$0xff] %v286_v39 }
 0x27d   : > { %892 = vst [vmem:[#allocation3 + $0x7f8] sm:$0xff] %v286_v39 }
 0x27e   : > { %893 = vst [vmem:[#allocation3 + $0x1110] sm:$0xff] %v286_v39 }
 0x27f   : > { %894 = vst [vmem:[#allocation3 + $0x1660] sm:$0xff] %v286_v39 }
 0x280   : > { %895 = vst [vmem:[#allocation3 + $0x1ac0] sm:$0xff] %v286_v39 }
 0x281   : > { %896 = vst [vmem:[#allocation3 + $0x1d90] sm:$0xff] %v286_v39 }
 0x282   : > { %897 = vst [vmem:[#allocation3 + $0x1b10] sm:$0xff] %v286_v39 }
 0x283   : > { %898 = vst [vmem:[#allocation3 + $0x13d0] sm:$0xff] %v286_v39 }
 0x284   : > { %899 = vst [vmem:[#allocation3 + $0x990] sm:$0xff] %v286_v39 }
 0x285   : > { %900 = vst [vmem:[#allocation3 + $0xce0] sm:$0xff] %v286_v39 }
 0x286   : > { %901 = vst [vmem:[#allocation3 + $0x9c8] sm:$0xff] %v286_v39 }
 0x287   : > { %902 = vst [vmem:[#allocation3 + $0x1ef8] sm:$0xff] %v286_v39 }
 0x288   : > { %903 = vst [vmem:[#allocation3 + $0x1108] sm:$0xff] %v286_v39 }
 0x289   : > { %904 = vst [vmem:[#allocation3 + $0xa98] sm:$0xff] %v286_v39 }
 0x28a   : > { %905 = vst [vmem:[#allocation3 + $0x1438] sm:$0xff] %v286_v39 }
 0x28b   : > { %906 = vst [vmem:[#allocation3 + $0x1490] sm:$0xff] %v287_v40 }
 0x28c   : > { %907 = vst [vmem:[#allocation3 + $0x1508] sm:$0xff] %v287_v40 }
 0x28d   : > { %908 = vst [vmem:[#allocation3 + $0x650] sm:$0xff] %v287_v40 }
 0x28e   : > { %909 = vst [vmem:[#allocation3 + $0x380] sm:$0xff] %v287_v40 }
 0x28f   : > { %910 = vst [vmem:[#allocation3 + $0x1570] sm:$0xff] %v287_v40 }
 0x290   : > { %911 = vst [vmem:[#allocation3 + $0x1b20] sm:$0xff] %v287_v40 }
 0x291   : > { %912 = vst [vmem:[#allocation3 + $0x1478] sm:$0xff] %v287_v40 }
 0x292   : > { %913 = vst [vmem:[#allocation3 + $0x1518] sm:$0xff] %v287_v40 }
 0x293   : > { %914 = vst [vmem:[#allocation3 + $0x740] sm:$0xff] %v287_v40 }
 0x294   : > { %915 = vst [vmem:[#allocation3 + $0x11f8] sm:$0xff] %v287_v40 }
 0x295   : > { %916 = vst [vmem:[#allocation3 + $0x1eb8] sm:$0xff] %v287_v40 }
 0x296   : > { %917 = vst [vmem:[#allocation3 + $0x450] sm:$0xff] %v287_v40 }
 0x297   : > { %918 = vst [vmem:[#allocation3 + $0xef0] sm:$0xff] %v287_v40 }
 0x298   : > { %919 = vst [vmem:[#allocation3 + $0x1e60] sm:$0xff] %v287_v40 }
 0x299   : > { %920 = vst [vmem:[#allocation3 + $0xc88] sm:$0xff] %v287_v40 }
 0x29a   : > { %921 = vst [vmem:[#allocation3 + $0x540] sm:$0xff] %v287_v40 }
 0x29b   : > { %922 = vst [vmem:[#allocation3 + $0x1d78] sm:$0xff] %v288_v41 }
 0x29c   : > { %923 = vst [vmem:[#allocation3 + $0x7a0] sm:$0xff] %v288_v41 }
 0x29d   : > { %924 = vst [vmem:[#allocation3 + $0x1610] sm:$0xff] %v288_v41 }
 0x29e   : > { %925 = vst [vmem:[#allocation3 + $0xc38] sm:$0xff] %v288_v41 }
 0x29f   : > { %926 = vst [vmem:[#allocation3 + $0x16c8] sm:$0xff] %v288_v41 }
 0x2a0   : > { %927 = vst [vmem:[#allocation3 + $0x1af0] sm:$0xff] %v288_v41 }
 0x2a1   : > { %928 = vst [vmem:[#allocation3 + $0x1ea0] sm:$0xff] %v288_v41 }
 0x2a2   : > { %929 = vst [vmem:[#allocation3 + $0xe18] sm:$0xff] %v288_v41 }
 0x2a3   : > { %930 = vst [vmem:[#allocation3 + $0x1770] sm:$0xff] %v288_v41 }
 0x2a4   : > { %931 = vst [vmem:[#allocation3 + $0x1ee0] sm:$0xff] %v288_v41 }
 0x2a5   : > { %932 = vst [vmem:[#allocation3 + $0xd70] sm:$0xff] %v288_v41 }
 0x2a6   : > { %933 = vst [vmem:[#allocation3 + $0x2b0] sm:$0xff] %v288_v41 }
 0x2a7   : > { %934 = vst [vmem:[#allocation3 + $0xc78] sm:$0xff] %v288_v41 }
 0x2a8   : > { %935 = vst [vmem:[#allocation3 + $0x1138] sm:$0xff] %v288_v41 }
 0x2a9   : > { %936 = vst [vmem:[#allocation3 + $0x1578] sm:$0xff] %v288_v41 }
 0x2aa   : > { %937 = vst [vmem:[#allocation3 + $0x1a40] sm:$0xff] %v288_v41 }
 0x2ab   : > { %938 = vst [vmem:[#allocation3 + $0x1e48] sm:$0xff] %v289_v42 }
 0x2ac   : > { %939 = vst [vmem:[#allocation3 + $0x1d88] sm:$0xff] %v289_v42 }
 0x2ad   : > { %940 = vst [vmem:[#allocation3 + $0xe28] sm:$0xff] %v289_v42 }
 0x2ae   : > { %941 = vst [vmem:[#allocation3 + $0x1080] sm:$0xff] %v289_v42 }
 0x2af   : > { %942 = vst [vmem:[#allocation3 + $0x318] sm:$0xff] %v289_v42 }
 0x2b0   : > { %943 = vst [vmem:[#allocation3 + $0xa08] sm:$0xff] %v289_v42 }
 0x2b1   : > { %944 = vst [vmem:[#allocation3 + $0x1978] sm:$0xff] %v289_v42 }
 0x2b2   : > { %945 = vst [vmem:[#allocation3 + $0x940] sm:$0xff] %v289_v42 }
 0x2b3   : > { %946 = vst [vmem:[#allocation3 + $0x1070] sm:$0xff] %v289_v42 }
 0x2b4   : > { %947 = vst [vmem:[#allocation3 + $0x1360] sm:$0xff] %v289_v42 }
 0x2b5   : > { %948 = vst [vmem:[#allocation3 + $0x770] sm:$0xff] %v289_v42 }
 0x2b6   : > { %949 = vst [vmem:[#allocation3 + $0x518] sm:$0xff] %v289_v42 }
 0x2b7   : > { %950 = vst [vmem:[#allocation3 + $0x4b8] sm:$0xff] %v289_v42 }
 0x2b8   : > { %951 = vst [vmem:[#allocation3 + $0xc80] sm:$0xff] %v289_v42 }
 0x2b9   : > { %952 = vst [vmem:[#allocation3 + $0x1430] sm:$0xff] %v289_v42 }
 0x2ba   : > { %953 = vst [vmem:[#allocation3 + $0xb58] sm:$0xff] %v289_v42 }
 0x2bb   : > { %954 = vst [vmem:[#allocation3 + $0xb78] sm:$0xff] %v290_v43 }
 0x2bc   : > { %955 = vst [vmem:[#allocation3 + $0x1d68] sm:$0xff] %v290_v43 }
 0x2bd   : > { %956 = vst [vmem:[#allocation3 + $0x138] sm:$0xff] %v290_v43 }
 0x2be   : > { %957 = vst [vmem:[#allocation3 + $0x1ef0] sm:$0xff] %v290_v43 }
 0x2bf   : > { %958 = vst [vmem:[#allocation3 + $0x5f8] sm:$0xff] %v290_v43 }
 0x2c0   : > { %959 = vst [vmem:[#allocation3 + $0x1cb0] sm:$0xff] %v290_v43 }
 0x2c1   : > { %960 = vst [vmem:[#allocation3 + $0x1868] sm:$0xff] %v290_v43 }
 0x2c2   : > { %961 = vst [vmem:[#allocation3 + $0x198] sm:$0xff] %v290_v43 }
 0x2c3   : > { %962 = vst [vmem:[#allocation3 + $0x6c0] sm:$0xff] %v290_v43 }
 0x2c4   : > { %963 = vst [vmem:[#allocation3 + $0x460] sm:$0xff] %v290_v43 }
 0x2c5   : > { %964 = vst [vmem:[#allocation3 + $0xc8] sm:$0xff] %v290_v43 }
 0x2c6   : > { %965 = vst [vmem:[#allocation3 + $0xe20] sm:$0xff] %v290_v43 }
 0x2c7   : > { %966 = vst [vmem:[#allocation3 + $0x10d0] sm:$0xff] %v290_v43 }
 0x2c8   : > { %967 = vst [vmem:[#allocation3 + $0x288] sm:$0xff] %v290_v43 }
 0x2c9   : > { %968 = vst [vmem:[#allocation3 + $0xd50] sm:$0xff] %v290_v43 }
 0x2ca   : > { %969 = vst [vmem:[#allocation3 + $0x1320] sm:$0xff] %v290_v43 }
 0x2cb   : > { %970 = vst [vmem:[#allocation3 + $0x1a68] sm:$0xff] %v291_v44 }
 0x2cc   : > { %971 = vst [vmem:[#allocation3 + $0x1fb8] sm:$0xff] %v291_v44 }
 0x2cd   : > { %972 = vst [vmem:[#allocation3 + $0x14d0] sm:$0xff] %v291_v44 }
 0x2ce   : > { %973 = vst [vmem:[#allocation3 + $0x280] sm:$0xff] %v291_v44 }
 0x2cf   : > { %974 = vst [vmem:[#allocation3 + $0x690] sm:$0xff] %v291_v44 }
 0x2d0   : > { %975 = vst [vmem:[#allocation3 + $0x1bf8] sm:$0xff] %v291_v44 }
 0x2d1   : > { %976 = vst [vmem:[#allocation3 + $0x10e0] sm:$0xff] %v291_v44 }
 0x2d2   : > { %977 = vst [vmem:[#allocation3 + $0x560] sm:$0xff] %v291_v44 }
 0x2d3   : > { %978 = vst [vmem:[#allocation3 + $0x1638] sm:$0xff] %v291_v44 }
 0x2d4   : > { %979 = vst [vmem:[#allocation3 + $0x1630] sm:$0xff] %v291_v44 }
 0x2d5   : > { %980 = vst [vmem:[#allocation3 + $0x6a0] sm:$0xff] %v291_v44 }
 0x2d6   : > { %981 = vst [vmem:[#allocation3 + $0x500] sm:$0xff] %v291_v44 }
 0x2d7   : > { %982 = vst [vmem:[#allocation3 + $0x488] sm:$0xff] %v291_v44 }
 0x2d8   : > { %983 = vst [vmem:[#allocation3 + $0x1f58] sm:$0xff] %v291_v44 }
 0x2d9   : > { %984 = vst [vmem:[#allocation3 + $0xfe8] sm:$0xff] %v291_v44 }
 0x2da   : > { %985 = vst [vmem:[#allocation3 + $0x1008] sm:$0xff] %v291_v44 }
 0x2db   : > { %986 = vst [vmem:[#allocation3 + $0x40] sm:$0xff] %v292_v45 }
 0x2dc   : > { %987 = vst [vmem:[#allocation3 + $0x1548] sm:$0xff] %v292_v45 }
 0x2dd   : > { %988 = vst [vmem:[#allocation3 + $0xc40] sm:$0xff] %v292_v45 }
 0x2de   : > { %989 = vst [vmem:[#allocation3 + $0x478] sm:$0xff] %v292_v45 }
 0x2df   : > { %990 = vst [vmem:[#allocation3 + $0xf18] sm:$0xff] %v292_v45 }
 0x2e0   : > { %991 = vst [vmem:[#allocation3 + $0x1408] sm:$0xff] %v292_v45 }
 0x2e1   : > { %992 = vst [vmem:[#allocation3 + $0xec8] sm:$0xff] %v292_v45 }
 0x2e2   : > { %993 = vst [vmem:[#allocation3 + $0xb20] sm:$0xff] %v292_v45 }
 0x2e3   : > { %994 = vst [vmem:[#allocation3 + $0x19f8] sm:$0xff] %v292_v45 }
 0x2e4   : > { %995 = vst [vmem:[#allocation3 + $0x1fe8] sm:$0xff] %v292_v45 }
 0x2e5   : > { %996 = vst [vmem:[#allocation3 + $0x218] sm:$0xff] %v292_v45 }
 0x2e6   : > { %997 = vst [vmem:[#allocation3 + $0xb38] sm:$0xff] %v292_v45 }
 0x2e7   : > { %998 = vst [vmem:[#allocation3 + $0x9e8] sm:$0xff] %v292_v45 }
 0x2e8   : > { %999 = vst [vmem:[#allocation3 + $0x1d08] sm:$0xff] %v292_v45 }
 0x2e9   : > { %1000 = vst [vmem:[#allocation3 + $0x6b8] sm:$0xff] %v292_v45 }
 0x2ea   : > { %1001 = vst [vmem:[#allocation3 + $0x440] sm:$0xff] %v292_v45 }
 0x2eb   : > { %1002 = vst [vmem:[#allocation3 + $0x1e20] sm:$0xff] %v293_v46 }
 0x2ec   : > { %1003 = vst [vmem:[#allocation3 + $0x1568] sm:$0xff] %v293_v46 }
 0x2ed   : > { %1004 = vst [vmem:[#allocation3 + $0x1de0] sm:$0xff] %v293_v46 }
 0x2ee   : > { %1005 = vst [vmem:[#allocation3 + $0x19e0] sm:$0xff] %v293_v46 }
 0x2ef   : > { %1006 = vst [vmem:[#allocation3 + $0x19e8] sm:$0xff] %v293_v46 }
 0x2f0   : > { %1007 = vst [vmem:[#allocation3 + $0x15c8] sm:$0xff] %v293_v46 }
 0x2f1   : > { %1008 = vst [vmem:[#allocation3 + $0xd98] sm:$0xff] %v293_v46 }
 0x2f2   : > { %1009 = vst [vmem:[#allocation3 + $0x4b0] sm:$0xff] %v293_v46 }
 0x2f3   : > { %1010 = vst [vmem:[#allocation3 + $0x270] sm:$0xff] %v293_v46 }
 0x2f4   : > { %1011 = vst [vmem:[#allocation3 + $0x428] sm:$0xff] %v293_v46 }
 0x2f5   : > { %1012 = vst [vmem:[#allocation3 + $0x18e8] sm:$0xff] %v293_v46 }
 0x2f6   : > { %1013 = vst [vmem:[#allocation3 + $0x1370] sm:$0xff] %v293_v46 }
 0x2f7   : > { %1014 = vst [vmem:[#allocation3 + $0x1318] sm:$0xff] %v293_v46 }
 0x2f8   : > { %1015 = vst [vmem:[#allocation3 + $0x1d58] sm:$0xff] %v293_v46 }
 0x2f9   : > { %1016 = vst [vmem:[#allocation3 + $0x1550] sm:$0xff] %v293_v46 }
 0x2fa   : > { %1017 = vst [vmem:[#allocation3 + $0x120] sm:$0xff] %v293_v46 }
 0x2fb   : > { %1018 = vst [vmem:[#allocation3 + $0xba8] sm:$0xff] %v294_v47 }
 0x2fc   : > { %1019 = vst [vmem:[#allocation3 + $0xbf0] sm:$0xff] %v294_v47 }
 0x2fd   : > { %1020 = vst [vmem:[#allocation3 + $0x520] sm:$0xff] %v294_v47 }
 0x2fe   : > { %1021 = vst [vmem:[#allocation3 + $0x1380] sm:$0xff] %v294_v47 }
 0x2ff   : > { %1022 = vst [vmem:[#allocation3 + $0x1278] sm:$0xff] %v294_v47 }
 0x300   : > { %1023 = vst [vmem:[#allocation3 + $0xc20] sm:$0xff] %v294_v47 }
 0x301   : > { %1024 = vst [vmem:[#allocation3 + $0x1620] sm:$0xff] %v294_v47 }
 0x302   : > { %1025 = vst [vmem:[#allocation3 + $0xdf0] sm:$0xff] %v294_v47 }
 0x303   : > { %1026 = vst [vmem:[#allocation3 + $0x320] sm:$0xff] %v294_v47 }
 0x304   : > { %1027 = vst [vmem:[#allocation3 + $0x1340] sm:$0xff] %v294_v47 }
 0x305   : > { %1028 = vst [vmem:[#allocation3 + $0x8d0] sm:$0xff] %v294_v47 }
 0x306   : > { %1029 = vst [vmem:[#allocation3 + $0x640] sm:$0xff] %v294_v47 }
 0x307   : > { %1030 = vst [vmem:[#allocation3 + $0x938] sm:$0xff] %v294_v47 }
 0x308   : > { %1031 = vst [vmem:[#allocation3 + $0x88] sm:$0xff] %v294_v47 }
 0x309   : > { %1032 = vst [vmem:[#allocation3 + $0x1600] sm:$0xff] %v294_v47 }
 0x30a   : > { %1033 = vst [vmem:[#allocation3 + $0xff0] sm:$0xff] %v294_v47 }
 0x30b   : > { %1034 = vst [vmem:[#allocation3 + $0x1ed8] sm:$0xff] %v295_v48 }
 0x30c   : > { %1035 = vst [vmem:[#allocation3 + $0x538] sm:$0xff] %v295_v48 }
 0x30d   : > { %1036 = vst [vmem:[#allocation3 + $0xe80] sm:$0xff] %v295_v48 }
 0x30e   : > { %1037 = vst [vmem:[#allocation3 + $0xdb0] sm:$0xff] %v295_v48 }
 0x30f   : > { %1038 = vst [vmem:[#allocation3 + $0x580] sm:$0xff] %v295_v48 }
 0x310   : > { %1039 = vst [vmem:[#allocation3 + $0x858] sm:$0xff] %v295_v48 }
 0x311   : > { %1040 = vst [vmem:[#allocation3 + $0x1c78] sm:$0xff] %v295_v48 }
 0x312   : > { %1041 = vst [vmem:[#allocation3 + $0x470] sm:$0xff] %v295_v48 }
 0x313   : > { %1042 = vst [vmem:[#allocation3 + $0x1270] sm:$0xff] %v295_v48 }
 0x314   : > { %1043 = vst [vmem:[#allocation3 + $0xc00] sm:$0xff] %v295_v48 }
 0x315   : > { %1044 = vst [vmem:[#allocation3 + $0x11b8] sm:$0xff] %v295_v48 }
 0x316   : > { %1045 = vst [vmem:[#allocation3 + $0x1090] sm:$0xff] %v295_v48 }
 0x317   : > { %1046 = vst [vmem:[#allocation3 + $0x1df0] sm:$0xff] %v295_v48 }
 0x318   : > { %1047 = vst [vmem:[#allocation3 + $0x1030] sm:$0xff] %v295_v48 }
 0x319   : > { %1048 = vst [vmem:[#allocation3 + $0x1748] sm:$0xff] %v295_v48 }
 0x31a   : > { %1049 = vst [vmem:[#allocation3 + $0x1d10] sm:$0xff] %v295_v48 }
 0x31b   : > { %1050 = vst [vmem:[#allocation3 + $0x680] sm:$0xff] %v296_v49 }
 0x31c   : > { %1051 = vst [vmem:[#allocation3 + $0xb00] sm:$0xff] %v296_v49 }
 0x31d   : > { %1052 = vst [vmem:[#allocation3 + $0x140] sm:$0xff] %v296_v49 }
 0x31e   : > { %1053 = vst [vmem:[#allocation3 + $0x1c90] sm:$0xff] %v296_v49 }
 0x31f   : > { %1054 = vst [vmem:[#allocation3 + $0xf88] sm:$0xff] %v296_v49 }
 0x320   : > { %1055 = vst [vmem:[#allocation3 + $0xc70] sm:$0xff] %v296_v49 }
 0x321   : > { %1056 = vst [vmem:[#allocation3 + $0x11e8] sm:$0xff] %v296_v49 }
 0x322   : > { %1057 = vst [vmem:[#allocation3 + $0x628] sm:$0xff] %v296_v49 }
 0x323   : > { %1058 = vst [vmem:[#allocation3 + $0xc18] sm:$0xff] %v296_v49 }
 0x324   : > { %1059 = vst [vmem:[#allocation3 + $0x1230] sm:$0xff] %v296_v49 }
 0x325   : > { %1060 = vst [vmem:[#allocation3 + $0x1938] sm:$0xff] %v296_v49 }
 0x326   : > { %1061 = vst [vmem:[#allocation3 + $0x1668] sm:$0xff] %v296_v49 }
 0x327   : > { %1062 = vst [vmem:[#allocation3 + $0x250] sm:$0xff] %v296_v49 }
 0x328   : > { %1063 = vst [vmem:[#allocation3 + $0xcf0] sm:$0xff] %v296_v49 }
 0x329   : > { %1064 = vst [vmem:[#allocation3 + $0x1170] sm:$0xff] %v296_v49 }
 0x32a   : > { %1065 = vst [vmem:[#allocation3 + $0x1588] sm:$0xff] %v296_v49 }
 0x32b   : > { %1066 = vst [vmem:[#allocation3 + $0xe58] sm:$0xff] %v297_v50 }
 0x32c   : > { %1067 = vst [vmem:[#allocation3 + $0x2c0] sm:$0xff] %v297_v50 }
 0x32d   : > { %1068 = vst [vmem:[#allocation3 + $0x1400] sm:$0xff] %v297_v50 }
 0x32e   : > { %1069 = vst [vmem:[#allocation3 + $0x1ce8] sm:$0xff] %v297_v50 }
 0x32f   : > { %1070 = vst [vmem:[#allocation3 + $0x1850] sm:$0xff] %v297_v50 }
 0x330   : > { %1071 = vst [vmem:[#allocation3 + $0xdb8] sm:$0xff] %v297_v50 }
 0x331   : > { %1072 = vst [vmem:[#allocation3 + $0xd8] sm:$0xff] %v297_v50 }
 0x332   : > { %1073 = vst [vmem:[#allocation3 + $0xb08] sm:$0xff] %v297_v50 }
 0x333   : > { %1074 = vst [vmem:[#allocation3 + $0x1280] sm:$0xff] %v297_v50 }
 0x334   : > { %1075 = vst [vmem:[#allocation3 + $0x1dd0] sm:$0xff] %v297_v50 }
 0x335   : > { %1076 = vst [vmem:[#allocation3 + $0x820] sm:$0xff] %v297_v50 }
 0x336   : > { %1077 = vst [vmem:[#allocation3 + $0x298] sm:$0xff] %v297_v50 }
 0x337   : > { %1078 = vst [vmem:[#allocation3 + $0x1128] sm:$0xff] %v297_v50 }
 0x338   : > { %1079 = vst [vmem:[#allocation3 + $0x338] sm:$0xff] %v297_v50 }
 0x339   : > { %1080 = vst [vmem:[#allocation3 + $0x1e0] sm:$0xff] %v297_v50 }
 0x33a   : > { %1081 = vst [vmem:[#allocation3 + $0x738] sm:$0xff] %v297_v50 }
 0x33b   : > { %1082 = vst [vmem:[#allocation3 + $0x648] sm:$0xff] %v298_v51 }
 0x33c   : > { %1083 = vst [vmem:[#allocation3 + $0x1858] sm:$0xff] %v298_v51 }
 0x33d   : > { %1084 = vst [vmem:[#allocation3 + $0x888] sm:$0xff] %v298_v51 }
 0x33e   : > { %1085 = vst [vmem:[#allocation3 + $0x1148] sm:$0xff] %v298_v51 }
 0x33f   : > { %1086 = vst [vmem:[#allocation3 + $0xa88] sm:$0xff] %v298_v51 }
 0x340   : > { %1087 = vst [vmem:[#allocation3 + $0x1310] sm:$0xff] %v298_v51 }
 0x341   : > { %1088 = vst [vmem:[#allocation3 + $0x90] sm:$0xff] %v298_v51 }
 0x342   : > { %1089 = vst [vmem:[#allocation3 + $0xc48] sm:$0xff] %v298_v51 }
 0x343   : > { %1090 = vst [vmem:[#allocation3 + $0x890] sm:$0xff] %v298_v51 }
 0x344   : > { %1091 = vst [vmem:[#allocation3 + $0x2d8] sm:$0xff] %v298_v51 }
 0x345   : > { %1092 = vst [vmem:[#allocation3 + $0x968] sm:$0xff] %v298_v51 }
 0x346   : > { %1093 = vst [vmem:[#allocation3 + $0x1b28] sm:$0xff] %v298_v51 }
 0x347   : > { %1094 = vst [vmem:[#allocation3 + $0xed8] sm:$0xff] %v298_v51 }
 0x348   : > { %1095 = vst [vmem:[#allocation3 + $0xae0] sm:$0xff] %v298_v51 }
 0x349   : > { %1096 = vst [vmem:[#allocation3 + $0x598] sm:$0xff] %v298_v51 }
 0x34a   : > { %1097 = vst [vmem:[#allocation3 + $0x4c8] sm:$0xff] %v298_v51 }
 0x34b   : > { %1098 = vst [vmem:[#allocation3 + $0x18d0] sm:$0xff] %v299_v52 }
 0x34c   : > { %1099 = vst [vmem:[#allocation3 + $0x608] sm:$0xff] %v299_v52 }
 0x34d   : > { %1100 = vst [vmem:[#allocation3 + $0xf60] sm:$0xff] %v299_v52 }
 0x34e   : > { %1101 = vst [vmem:[#allocation3 + $0x4c0] sm:$0xff] %v299_v52 }
 0x34f   : > { %1102 = vst [vmem:[#allocation3 + $0xb48] sm:$0xff] %v299_v52 }
 0x350   : > { %1103 = vst [vmem:[#allocation3 + $0x1c40] sm:$0xff] %v299_v52 }
 0x351   : > { %1104 = vst [vmem:[#allocation3 + $0x7c8] sm:$0xff] %v299_v52 }
 0x352   : > { %1105 = vst [vmem:[#allocation3 + $0x1a30] sm:$0xff] %v299_v52 }
 0x353   : > { %1106 = vst [vmem:[#allocation3 + $0x1f38] sm:$0xff] %v299_v52 }
 0x354   : > { %1107 = vst [vmem:[#allocation3 + $0xf40] sm:$0xff] %v299_v52 }
 0x355   : > { %1108 = vst [vmem:[#allocation3 + $0x78] sm:$0xff] %v299_v52 }
 0x356   : > { %1109 = vst [vmem:[#allocation3 + $0x12b0] sm:$0xff] %v299_v52 }
 0x357   : > { %1110 = vst [vmem:[#allocation3 + $0x15f8] sm:$0xff] %v299_v52 }
 0x358   : > { %1111 = vst [vmem:[#allocation3 + $0x1348] sm:$0xff] %v299_v52 }
 0x359   : > { %1112 = vst [vmem:[#allocation3 + $0x1ec8] sm:$0xff] %v299_v52 }
 0x35a   : > { %1113 = vst [vmem:[#allocation3 + $0x658] sm:$0xff] %v299_v52 }
 0x35b   : > { %1114 = vst [vmem:[#allocation3 + $0x3c0] sm:$0xff] %v300_v53 }
 0x35c   : > { %1115 = vst [vmem:[#allocation3 + $0x1028] sm:$0xff] %v300_v53 }
 0x35d   : > { %1116 = vst [vmem:[#allocation3 + $0x1f20] sm:$0xff] %v300_v53 }
 0x35e   : > { %1117 = vst [vmem:[#allocation3 + $0x438] sm:$0xff] %v300_v53 }
 0x35f   : > { %1118 = vst [vmem:[#allocation3 + $0x848] sm:$0xff] %v300_v53 }
 0x360   : > { %1119 = vst [vmem:[#allocation3 + $0x1ab8] sm:$0xff] %v300_v53 }
 0x361   : > { %1120 = vst [vmem:[#allocation3 + $0x1a0] sm:$0xff] %v300_v53 }
 0x362   : > { %1121 = vst [vmem:[#allocation3 + $0xd10] sm:$0xff] %v300_v53 }
 0x363   : > { %1122 = vst [vmem:[#allocation3 + $0x1780] sm:$0xff] %v300_v53 }
 0x364   : > { %1123 = vst [vmem:[#allocation3 + $0xf48] sm:$0xff] %v300_v53 }
 0x365   : > { %1124 = vst [vmem:[#allocation3 + $0x11d8] sm:$0xff] %v300_v53 }
 0x366   : > { %1125 = vst [vmem:[#allocation3 + $0x1930] sm:$0xff] %v300_v53 }
 0x367   : > { %1126 = vst [vmem:[#allocation3 + $0x1738] sm:$0xff] %v300_v53 }
 0x368   : > { %1127 = vst [vmem:[#allocation3 + $0xf78] sm:$0xff] %v300_v53 }
 0x369   : > { %1128 = vst [vmem:[#allocation3 + $0x1ec0] sm:$0xff] %v300_v53 }
 0x36a   : > { %1129 = vst [vmem:[#allocation3 + $0x1b90] sm:$0xff] %v300_v53 }
 0x36b   : > { %1130 = vst [vmem:[#allocation3 + $0x698] sm:$0xff] %v301_v54 }
 0x36c   : > { %1131 = vst [vmem:[#allocation3 + $0x1ae0] sm:$0xff] %v301_v54 }
 0x36d   : > { %1132 = vst [vmem:[#allocation3 + $0x1e58] sm:$0xff] %v301_v54 }
 0x36e   : > { %1133 = vst [vmem:[#allocation3 + $0x12d0] sm:$0xff] %v301_v54 }
 0x36f   : > { %1134 = vst [vmem:[#allocation3 + $0x14e8] sm:$0xff] %v301_v54 }
 0x370   : > { %1135 = vst [vmem:[#allocation3 + $0x1a18] sm:$0xff] %v301_v54 }
 0x371   : > { %1136 = vst [vmem:[#allocation3 + $0x350] sm:$0xff] %v301_v54 }
 0x372   : > { %1137 = vst [vmem:[#allocation3 + $0x1198] sm:$0xff] %v301_v54 }
 0x373   : > { %1138 = vst [vmem:[#allocation3 + $0x1878] sm:$0xff] %v301_v54 }
 0x374   : > { %1139 = vst [vmem:[#allocation3 + $0x1710] sm:$0xff] %v301_v54 }
 0x375   : > { %1140 = vst [vmem:[#allocation3 + $0x1da8] sm:$0xff] %v301_v54 }
 0x376   : > { %1141 = vst [vmem:[#allocation3 + $0x1c30] sm:$0xff] %v301_v54 }
 0x377   : > { %1142 = vst [vmem:[#allocation3 + $0x1c60] sm:$0xff] %v301_v54 }
 0x378   : > { %1143 = vst [vmem:[#allocation3 + $0x1a98] sm:$0xff] %v301_v54 }
 0x379   : > { %1144 = vst [vmem:[#allocation3 + $0x17e8] sm:$0xff] %v301_v54 }
 0x37a   : > { %1145 = vst [vmem:[#allocation3 + $0x1fc8] sm:$0xff] %v301_v54 }
 0x37b   : > { %1146 = vst [vmem:[#allocation3 + $0xed0] sm:$0xff] %v302_v55 }
 0x37c   : > { %1147 = vst [vmem:[#allocation3 + $0x1598] sm:$0xff] %v302_v55 }
 0x37d   : > { %1148 = vst [vmem:[#allocation3 + $0xde8] sm:$0xff] %v302_v55 }
 0x37e   : > { %1149 = vst [vmem:[#allocation3 + $0xf80] sm:$0xff] %v302_v55 }
 0x37f   : > { %1150 = vst [vmem:[#allocation3 + $0x16a0] sm:$0xff] %v302_v55 }
 0x380   : > { %1151 = vst [vmem:[#allocation3 + $0x1e08] sm:$0xff] %v302_v55 }
 0x381   : > { %1152 = vst [vmem:[#allocation3 + $0xbd0] sm:$0xff] %v302_v55 }
 0x382   : > { %1153 = vst [vmem:[#allocation3 + $0x1500] sm:$0xff] %v302_v55 }
 0x383   : > { %1154 = vst [vmem:[#allocation3 + $0x278] sm:$0xff] %v302_v55 }
 0x384   : > { %1155 = vst [vmem:[#allocation3 + $0x7e8] sm:$0xff] %v302_v55 }
 0x385   : > { %1156 = vst [vmem:[#allocation3 + $0x1848] sm:$0xff] %v302_v55 }
 0x386   : > { %1157 = vst [vmem:[#allocation3 + $0x208] sm:$0xff] %v302_v55 }
 0x387   : > { %1158 = vst [vmem:[#allocation3 + $0x1928] sm:$0xff] %v302_v55 }
 0x388   : > { %1159 = vst [vmem:[#allocation3 + $0x1bc0] sm:$0xff] %v302_v55 }
 0x389   : > { %1160 = vst [vmem:[#allocation3 + $0x11a8] sm:$0xff] %v302_v55 }
 0x38a   : > { %1161 = vst [vmem:[#allocation3 + $0x15b0] sm:$0xff] %v302_v55 }
 0x38b   : > { %1162 = vst [vmem:[#allocation3 + $0x210] sm:$0xff] %v303_v56 }
 0x38c   : > { %1163 = vst [vmem:[#allocation3 + $0x1a90] sm:$0xff] %v303_v56 }
 0x38d   : > { %1164 = vst [vmem:[#allocation3 + $0x1c38] sm:$0xff] %v303_v56 }
 0x38e   : > { %1165 = vst [vmem:[#allocation3 + $0x1f48] sm:$0xff] %v303_v56 }
 0x38f   : > { %1166 = vst [vmem:[#allocation3 + $0x528] sm:$0xff] %v303_v56 }
 0x390   : > { %1167 = vst [vmem:[#allocation3 + $0x1140] sm:$0xff] %v303_v56 }
 0x391   : > { %1168 = vst [vmem:[#allocation3 + $0x8e8] sm:$0xff] %v303_v56 }
 0x392   : > { %1169 = vst [vmem:[#allocation3 + $0xb28] sm:$0xff] %v303_v56 }
 0x393   : > { %1170 = vst [vmem:[#allocation3 + $0x13f8] sm:$0xff] %v303_v56 }
 0x394   : > { %1171 = vst [vmem:[#allocation3 + $0x1060] sm:$0xff] %v303_v56 }
 0x395   : > { %1172 = vst [vmem:[#allocation3 + $0x708] sm:$0xff] %v303_v56 }
 0x396   : > { %1173 = vst [vmem:[#allocation3 + $0x12e8] sm:$0xff] %v303_v56 }
 0x397   : > { %1174 = vst [vmem:[#allocation3 + $0xb0] sm:$0xff] %v303_v56 }
 0x398   : > { %1175 = vst [vmem:[#allocation3 + $0x1330] sm:$0xff] %v303_v56 }
 0x399   : > { %1176 = vst [vmem:[#allocation3 + $0x360] sm:$0xff] %v303_v56 }
 0x39a   : > { %1177 = vst [vmem:[#allocation3 + $0x1ba0] sm:$0xff] %v303_v56 }
 0x39b   : > { %1178 = vst [vmem:[#allocation3 + $0x1a78] sm:$0xff] %v304_v57 }
 0x39c   : > { %1179 = vst [vmem:[#allocation3 + $0x18] sm:$0xff] %v304_v57 }
 0x39d   : > { %1180 = vst [vmem:[#allocation3 + $0x780] sm:$0xff] %v304_v57 }
 0x39e   : > { %1181 = vst [vmem:[#allocation3 + $0x1698] sm:$0xff] %v304_v57 }
 0x39f   : > { %1182 = vst [vmem:[#allocation3 + $0x1fd8] sm:$0xff] %v304_v57 }
 0x3a0   : > { %1183 = vst [vmem:[#allocation3 + $0xd88] sm:$0xff] %v304_v57 }
 0x3a1   : > { %1184 = vst [vmem:[#allocation3 + $0x1e8] sm:$0xff] %v304_v57 }
 0x3a2   : > { %1185 = vst [vmem:[#allocation3 + $0x15a8] sm:$0xff] %v304_v57 }
 0x3a3   : > { %1186 = vst [vmem:[#allocation3 + $0x1488] sm:$0xff] %v304_v57 }
 0x3a4   : > { %1187 = vst [vmem:[#allocation3 + $0x13d8] sm:$0xff] %v304_v57 }
 0x3a5   : > { %1188 = vst [vmem:[#allocation3 + $0x9d8] sm:$0xff] %v304_v57 }
 0x3a6   : > { %1189 = vst [vmem:[#allocation3 + $0x1240] sm:$0xff] %v304_v57 }
 0x3a7   : > { %1190 = vst [vmem:[#allocation3 + $0x1788] sm:$0xff] %v304_v57 }
 0x3a8   : > { %1191 = vst [vmem:[#allocation3 + $0x1658] sm:$0xff] %v304_v57 }
 0x3a9   : > { %1192 = vst [vmem:[#allocation3 + $0x1f00] sm:$0xff] %v304_v57 }
 0x3aa   : > { %1193 = vst [vmem:[#allocation3 + $0xe10] sm:$0xff] %v304_v57 }
 0x3ab   : > { %1194 = vst [vmem:[#allocation3 + $0x3b8] sm:$0xff] %v305_v58 }
 0x3ac   : > { %1195 = vst [vmem:[#allocation3 + $0x1390] sm:$0xff] %v305_v58 }
 0x3ad   : > { %1196 = vst [vmem:[#allocation3 + $0xf98] sm:$0xff] %v305_v58 }
 0x3ae   : > { %1197 = vst [vmem:[#allocation3 + $0xa50] sm:$0xff] %v305_v58 }
 0x3af   : > { %1198 = vst [vmem:[#allocation3 + $0xb88] sm:$0xff] %v305_v58 }
 0x3b0   : > { %1199 = vst [vmem:[#allocation3 + $0x19c0] sm:$0xff] %v305_v58 }
 0x3b1   : > { %1200 = vst [vmem:[#allocation3 + $0xa60] sm:$0xff] %v305_v58 }
 0x3b2   : > { %1201 = vst [vmem:[#allocation3 + $0x1a20] sm:$0xff] %v305_v58 }
 0x3b3   : > { %1202 = vst [vmem:[#allocation3 + $0x2e8] sm:$0xff] %v305_v58 }
 0x3b4   : > { %1203 = vst [vmem:[#allocation3 + $0xd58] sm:$0xff] %v305_v58 }
 0x3b5   : > { %1204 = vst [vmem:[#allocation3 + $0x1100] sm:$0xff] %v305_v58 }
 0x3b6   : > { %1205 = vst [vmem:[#allocation3 + $0x998] sm:$0xff] %v305_v58 }
 0x3b7   : > { %1206 = vst [vmem:[#allocation3 + $0x1ce0] sm:$0xff] %v305_v58 }
 0x3b8   : > { %1207 = vst [vmem:[#allocation3 + $0x1900] sm:$0xff] %v305_v58 }
 0x3b9   : > { %1208 = vst [vmem:[#allocation3 + $0x1ac8] sm:$0xff] %v305_v58 }
 0x3ba   : > { %1209 = vst [vmem:[#allocation3 + $0x8b8] sm:$0xff] %v305_v58 }
 0x3bb   : > { %1210 = vst [vmem:[#allocation3 + $0x1528] sm:$0xff] %v306_v59 }
 0x3bc   : > { %1211 = vst [vmem:[#allocation3 + $0x14c8] sm:$0xff] %v306_v59 }
 0x3bd   : > { %1212 = vst [vmem:[#allocation3 + $0xab0] sm:$0xff] %v306_v59 }
 0x3be   : > { %1213 = vst [vmem:[#allocation3 + $0x5a8] sm:$0xff] %v306_v59 }
 0x3bf   : > { %1214 = vst [vmem:[#allocation3 + $0x12a8] sm:$0xff] %v306_v59 }
 0x3c0   : > { %1215 = vst [vmem:[#allocation3 + $0x1898] sm:$0xff] %v306_v59 }
 0x3c1   : > { %1216 = vst [vmem:[#allocation3 + $0xfd0] sm:$0xff] %v306_v59 }
 0x3c2   : > { %1217 = vst [vmem:[#allocation3 + $0x730] sm:$0xff] %v306_v59 }
 0x3c3   : > { %1218 = vst [vmem:[#allocation3 + $0x4a0] sm:$0xff] %v306_v59 }
 0x3c4   : > { %1219 = vst [vmem:[#allocation3 + $0x220] sm:$0xff] %v306_v59 }
 0x3c5   : > { %1220 = vst [vmem:[#allocation3 + $0x408] sm:$0xff] %v306_v59 }
 0x3c6   : > { %1221 = vst [vmem:[#allocation3 + $0x15d0] sm:$0xff] %v306_v59 }
 0x3c7   : > { %1222 = vst [vmem:[#allocation3 + $0x1f8] sm:$0xff] %v306_v59 }
 0x3c8   : > { %1223 = vst [vmem:[#allocation3 + $0x19a0] sm:$0xff] %v306_v59 }
 0x3c9   : > { %1224 = vst [vmem:[#allocation3 + $0x108] sm:$0xff] %v306_v59 }
 0x3ca   : > { %1225 = vst [vmem:[#allocation3 + $0x9f0] sm:$0xff] %v306_v59 }
 0x3cb   : > { %1226 = vst [vmem:[#allocation3 + $0x200] sm:$0xff] %v307_v60 }
 0x3cc   : > { %1227 = vst [vmem:[#allocation3 + $0x1f60] sm:$0xff] %v307_v60 }
 0x3cd   : > { %1228 = vst [vmem:[#allocation3 + $0x10f0] sm:$0xff] %v307_v60 }
 0x3ce   : > { %1229 = vst [vmem:[#allocation3 + $0x2e0] sm:$0xff] %v307_v60 }
 0x3cf   : > { %1230 = vst [vmem:[#allocation3 + $0xaa8] sm:$0xff] %v307_v60 }
 0x3d0   : > { %1231 = vst [vmem:[#allocation3 + $0x1d28] sm:$0xff] %v307_v60 }
 0x3d1   : > { %1232 = vst [vmem:[#allocation3 + $0x15c0] sm:$0xff] %v307_v60 }
 0x3d2   : > { %1233 = vst [vmem:[#allocation3 + $0x370] sm:$0xff] %v307_v60 }
 0x3d3   : > { %1234 = vst [vmem:[#allocation3 + $0x1838] sm:$0xff] %v307_v60 }
 0x3d4   : > { %1235 = vst [vmem:[#allocation3 + $0x1690] sm:$0xff] %v307_v60 }
 0x3d5   : > { %1236 = vst [vmem:[#allocation3 + $0x760] sm:$0xff] %v307_v60 }
 0x3d6   : > { %1237 = vst [vmem:[#allocation3 + $0x1ab0] sm:$0xff] %v307_v60 }
 0x3d7   : > { %1238 = vst [vmem:[#allocation3 + $0x1300] sm:$0xff] %v307_v60 }
 0x3d8   : > { %1239 = vst [vmem:[#allocation3 + $0x1cf8] sm:$0xff] %v307_v60 }
 0x3d9   : > { %1240 = vst [vmem:[#allocation3 + $0x168] sm:$0xff] %v307_v60 }
 0x3da   : > { %1241 = vst [vmem:[#allocation3 + $0x4e0] sm:$0xff] %v307_v60 }
 0x3db   : > { %1242 = vst [vmem:[#allocation3 + $0x12b8] sm:$0xff] %v308_v61 }
 0x3dc   : > { %1243 = vst [vmem:[#allocation3 + $0x1e00] sm:$0xff] %v308_v61 }
 0x3dd   : > { %1244 = vst [vmem:[#allocation3 + $0x15e0] sm:$0xff] %v308_v61 }
 0x3de   : > { %1245 = vst [vmem:[#allocation3 + $0x1f98] sm:$0xff] %v308_v61 }
 0x3df   : > { %1246 = vst [vmem:[#allocation3 + $0x1c88] sm:$0xff] %v308_v61 }
 0x3e0   : > { %1247 = vst [vmem:[#allocation3 + $0x1920] sm:$0xff] %v308_v61 }
 0x3e1   : > { %1248 = vst [vmem:[#allocation3 + $0x14b8] sm:$0xff] %v308_v61 }
 0x3e2   : > { %1249 = vst [vmem:[#allocation3 + $0xc0] sm:$0xff] %v308_v61 }
 0x3e3   : > { %1250 = vst [vmem:[#allocation3 + $0x1068] sm:$0xff] %v308_v61 }
 0x3e4   : > { %1251 = vst [vmem:[#allocation3 + $0x1768] sm:$0xff] %v308_v61 }
 0x3e5   : > { %1252 = vst [vmem:[#allocation3 + $0x530] sm:$0xff] %v308_v61 }
 0x3e6   : > { %1253 = vst [vmem:[#allocation3 + $0x8f0] sm:$0xff] %v308_v61 }
 0x3e7   : > { %1254 = vst [vmem:[#allocation3 + $0x1e28] sm:$0xff] %v308_v61 }
 0x3e8   : > { %1255 = vst [vmem:[#allocation3 + $0x548] sm:$0xff] %v308_v61 }
 0x3e9   : > { %1256 = vst [vmem:[#allocation3 + $0x950] sm:$0xff] %v308_v61 }
 0x3ea   : > { %1257 = vst [vmem:[#allocation3 + $0x790] sm:$0xff] %v308_v61 }
 0x3eb   : > { %1258 = vst [vmem:[#allocation3 + $0x38] sm:$0xff] %v309_v62 }
 0x3ec   : > { %1259 = vst [vmem:[#allocation3 + $0x1f28] sm:$0xff] %v309_v62 }
 0x3ed   : > { %1260 = vst [vmem:[#allocation3 + $0x260] sm:$0xff] %v309_v62 }
 0x3ee   : > { %1261 = vst [vmem:[#allocation3 + $0x1808] sm:$0xff] %v309_v62 }
 0x3ef   : > { %1262 = vst [vmem:[#allocation3 + $0x1130] sm:$0xff] %v309_v62 }
 0x3f0   : > { %1263 = vst [vmem:[#allocation3 + $0xe00] sm:$0xff] %v309_v62 }
 0x3f1   : > { %1264 = vst [vmem:[#allocation3 + $0x9c0] sm:$0xff] %v309_v62 }
 0x3f2   : > { %1265 = vst [vmem:[#allocation3 + $0xa80] sm:$0xff] %v309_v62 }
 0x3f3   : > { %1266 = vst [vmem:[#allocation3 + $0xdf8] sm:$0xff] %v309_v62 }
 0x3f4   : > { %1267 = vst [vmem:[#allocation3 + $0x688] sm:$0xff] %v309_v62 }
 0x3f5   : > { %1268 = vst [vmem:[#allocation3 + $0xbe8] sm:$0xff] %v309_v62 }
 0x3f6   : > { %1269 = vst [vmem:[#allocation3 + $0x1290] sm:$0xff] %v309_v62 }
 0x3f7   : > { %1270 = vst [vmem:[#allocation3 + $0x17b8] sm:$0xff] %v309_v62 }
 0x3f8   : > { %1271 = vst [vmem:[#allocation3 + $0x1678] sm:$0xff] %v309_v62 }
 0x3f9   : > { %1272 = vst [vmem:[#allocation3 + $0x7f0] sm:$0xff] %v309_v62 }
 0x3fa   : > { %1273 = vst [vmem:[#allocation3 + $0xda0] sm:$0xff] %v309_v62 }
 0x3fb   : > { %1274 = vst [vmem:[#allocation3 + $0x1a88] sm:$0xff] %v310_v63 }
 0x3fc   : > { %1275 = vst [vmem:[#allocation3 + $0x17d0] sm:$0xff] %v310_v63 }
 0x3fd   : > { %1276 = vst [vmem:[#allocation3 + $0x17c8] sm:$0xff] %v310_v63 }
 0x3fe   : > { %1277 = vst [vmem:[#allocation3 + $0xea0] sm:$0xff] %v310_v63 }
 0x3ff   : > { %1278 = vst [vmem:[#allocation3 + $0x1470] sm:$0xff] %v310_v63 }
 0x400   : > { %1279 = vst [vmem:[#allocation3 + $0x1f0] sm:$0xff] %v310_v63 }
 0x401   : > { %1280 = vst [vmem:[#allocation3 + $0x1a8] sm:$0xff] %v310_v63 }
 0x402   : > { %1281 = vst [vmem:[#allocation3 + $0x17c0] sm:$0xff] %v310_v63 }
 0x403   : > { %1282 = vst [vmem:[#allocation3 + $0x1d18] sm:$0xff] %v310_v63 }
 0x404   : > { %1283 = vst [vmem:[#allocation3 + $0x3d8] sm:$0xff] %v310_v63 }
 0x405   : > { %1284 = vst [vmem:[#allocation3 + $0x1b70] sm:$0xff] %v310_v63 }
 0x406   : > { %1285 = vst [vmem:[#allocation3 + $0xe38] sm:$0xff] %v310_v63 }
 0x407   : > { %1286 = vst [vmem:[#allocation3 + $0x480] sm:$0xff] %v310_v63 }
 0x408   : > { %1287 = vst [vmem:[#allocation3 + $0xb18] sm:$0xff] %v310_v63 }
 0x409   : > { %1288 = vst [vmem:[#allocation3 + $0x1288] sm:$0xff] %v310_v63 }
 0x40a   : > { %1289 = vst [vmem:[#allocation3 + $0x1c28] sm:$0xff] %v310_v63 }
 0x40b   : > { %1290 = vst [vmem:[#allocation3 + $0x1540] sm:$0xff] %v311_v0 }
 0x40c   : > { %1291 = vst [vmem:[#allocation3 + $0x588] sm:$0xff] %v311_v0 }
 0x40d   : > { %1292 = vst [vmem:[#allocation3 + $0x958] sm:$0xff] %v311_v0 }
 0x40e   : > { %1293 = vst [vmem:[#allocation3 + $0x7b0] sm:$0xff] %v311_v0 }
 0x40f   : > { %1294 = vst [vmem:[#allocation3 + $0x3e0] sm:$0xff] %v311_v0 }
 0x410   : > { %1295 = vst [vmem:[#allocation3 + $0x1730] sm:$0xff] %v311_v0 }
 0x411   : > { %1296 = vst [vmem:[#allocation3 + $0x378] sm:$0xff] %v311_v0 }
 0x412   : > { %1297 = vst [vmem:[#allocation3 + $0x11c8] sm:$0xff] %v311_v0 }
 0x413   : > { %1298 = vst [vmem:[#allocation3 + $0x8a0] sm:$0xff] %v311_v0 }
 0x414   : > { %1299 = vst [vmem:[#allocation3 + $0x1bb0] sm:$0xff] %v311_v0 }
 0x415   : > { %1300 = vst [vmem:[#allocation3 + $0x1220] sm:$0xff] %v311_v0 }
 0x416   : > { %1301 = vst [vmem:[#allocation3 + $0x778] sm:$0xff] %v311_v0 }
 0x417   : > { %1302 = vst [vmem:[#allocation3 + $0x240] sm:$0xff] %v311_v0 }
 0x418   : > { %1303 = vst [vmem:[#allocation3 + $0xe88] sm:$0xff] %v311_v0 }
 0x419   : > { %1304 = vst [vmem:[#allocation3 + $0xa48] sm:$0xff] %v311_v0 }
 0x41a   : > { %1305 = vst [vmem:[#allocation3 + $0x1a00] sm:$0xff] %v311_v0 }
 0x41b   : > { %1306 = vst [vmem:[#allocation3 + $0x4f0] sm:$0xff] %v312_v2 }
 0x41c   : > { %1307 = vst [vmem:[#allocation3 + $0x1cf0] sm:$0xff] %v312_v2 }
 0x41d   : > { %1308 = vst [vmem:[#allocation3] sm:$0xff] %v312_v2 }
 0x41e   : > { %1309 = vst [vmem:[#allocation3 + $0x1e70] sm:$0xff] %v312_v2 }
 0x41f   : > { %1310 = vst [vmem:[#allocation3 + $0x1150] sm:$0xff] %v312_v2 }
 0x420   : > { %1311 = vst [vmem:[#allocation3 + $0x448] sm:$0xff] %v312_v2 }
 0x421   : > { %1312 = vst [vmem:[#allocation3 + $0x16f8] sm:$0xff] %v312_v2 }
 0x422   : > { %1313 = vst [vmem:[#allocation3 + $0x10e8] sm:$0xff] %v312_v2 }
 0x423   : > { %1314 = vst [vmem:[#allocation3 + $0xb8] sm:$0xff] %v312_v2 }
 0x424   : > { %1315 = vst [vmem:[#allocation3 + $0x1f78] sm:$0xff] %v312_v2 }
 0x425   : > { %1316 = vst [vmem:[#allocation3 + $0x1ff8] sm:$0xff] %v312_v2 }
 0x426   : > { %1317 = vst [vmem:[#allocation3 + $0x130] sm:$0xff] %v312_v2 }
 0x427   : > { %1318 = vst [vmem:[#allocation3 + $0x1dc0] sm:$0xff] %v312_v2 }
 0x428   : > { %1319 = vst [vmem:[#allocation3 + $0x920] sm:$0xff] %v312_v2 }
 0x429   : > { %1320 = vst [vmem:[#allocation3 + $0xd90] sm:$0xff] %v312_v2 }
 0x42a   : > { %1321 = vst [vmem:[#allocation3 + $0x1118] sm:$0xff] %v312_v2 }
 0x42b   : > { %1322 = vst [vmem:[#allocation3 + $0x14e0] sm:$0xff] %v313_v3 }
 0x42c   : > { %1323 = vst [vmem:[#allocation3 + $0x418] sm:$0xff] %v313_v3 }
 0x42d   : > { %1324 = vst [vmem:[#allocation3 + $0x1820] sm:$0xff] %v313_v3 }
 0x42e   : > { %1325 = vst [vmem:[#allocation3 + $0x1618] sm:$0xff] %v313_v3 }
 0x42f   : > { %1326 = vst [vmem:[#allocation3 + $0x1b68] sm:$0xff] %v313_v3 }
 0x430   : > { %1327 = vst [vmem:[#allocation3 + $0x1810] sm:$0xff] %v313_v3 }
 0x431   : > { %1328 = vst [vmem:[#allocation3 + $0x1aa0] sm:$0xff] %v313_v3 }
 0x432   : > { %1329 = vst [vmem:[#allocation3 + $0x1b58] sm:$0xff] %v313_v3 }
 0x433   : > { %1330 = vst [vmem:[#allocation3 + $0x9d0] sm:$0xff] %v313_v3 }
 0x434   : > { %1331 = vst [vmem:[#allocation3 + $0x1398] sm:$0xff] %v313_v3 }
 0x435   : > { %1332 = vst [vmem:[#allocation3 + $0xe68] sm:$0xff] %v313_v3 }
 0x436   : > { %1333 = vst [vmem:[#allocation3 + $0xd08] sm:$0xff] %v313_v3 }
 0x437   : > { %1334 = vst [vmem:[#allocation3 + $0x1818] sm:$0xff] %v313_v3 }
 0x438   : > { %1335 = vst [vmem:[#allocation3 + $0xc58] sm:$0xff] %v313_v3 }
 0x439   : > { %1336 = vst [vmem:[#allocation3 + $0x1db8] sm:$0xff] %v313_v3 }
 0x43a   : > { %1337 = vst [vmem:[#allocation3 + $0x18a0] sm:$0xff] %v313_v3 }
 0x43b PF: > { %s10044_s13 = sshll.u32 %s9793_s1, 9  ;;  %s1339_s7 = sld [smem:[#allocation5 + %s9797_s28]] }
 0x43c   : > { %s1342_s8 = sld [smem:[#allocation6 + %s9797_s28]]  ;;  %s1340_s15 = sadd.s32 512, %s10044_s13 }
 0x441   : > { %p1341_p6 = scmp.lt.s32.totalorder %s1339_s7, %s1340_s15 }
 0x442   : > { %p1343_p7 = scmp.ge.s32.totalorder %s1342_s8, %s10044_s13 }
 0x444   : > { %p1344_p8 = pnand %p1343_p7, %p1341_p6 }
 0x445   : > { %s9566_s28 = sshll.u32 (!%p1344_p8), %s9793_s1, 5 }
 0x446   : > { %1347 = sbr.rel (%p1344_p8) target bundleno = 1776 (0x6f0), region = 44  ;;  %s10325_s21 = scalar_lea.vmem (!%p1344_p8), %s13064_s4, %s9566_s28 }
 0x44b   : > { %v1348_v4 = vld [vmem:[%s9957_s24] sm:$0xff]  ;;  %v1350_v5 = vstv %s10044_s13  ;;  %v1577_v6 = vld [vmem:[#allocation3 + $0x1f90] sm:$0xff]  ;;  %v2089_v11 = vld [vmem:[#allocation3 + $0x680] sm:$0xff]  ;;  %v9814_v26 = vmov 1.0|1.0  }
 0x44c   : > { %v10054_v7 = vsub.s32 %v1348_v4, %v1350_v5  ;;  %v1593_v8 = vld [vmem:[#allocation3 + $0x3b0] sm:$0xff]  ;;  %v2105_v12 = vld [vmem:[#allocation3 + $0xe58] sm:$0xff]  ;;  %v2361_v15 = vld [vmem:[#allocation3 + $0x14e0] sm:$0xff] }
 0x44d   : > { %v1833_v9 = vld [vmem:[#allocation3 + $0xc10] sm:$0xff]  ;;  %v1545_v16 = vld [vmem:[#allocation3 + $0x10d8] sm:$0xff]  ;;  %v1561_v17 = vld [vmem:[#allocation3 + $0x12e0] sm:$0xff] }
 0x44e   : > { %v1849_v10 = vld [vmem:[#allocation3 + $0x430] sm:$0xff]  ;;  %v10057_v14 = vperm.slane %v10054_v7, 0  ;;  %v1801_v18 = vld [vmem:[#allocation3 + $0xfd8] sm:$0xff]  ;;  %v1817_v19 = vld [vmem:[#allocation3 + $0x6a8] sm:$0xff] }
 0x44f   : > { %v2345_v13 = vld [vmem:[#allocation3 + $0x4f0] sm:$0xff]  ;;  %v2057_v20 = vld [vmem:[#allocation3 + $0xba8] sm:$0xff]  ;;  %v2073_v21 = vld [vmem:[#allocation3 + $0x1ed8] sm:$0xff] }
 0x450   : > { %vm2617_vm0 = vcmp.eq.s32.totalorder %v1577_v6, %v10057_v14  ;;  %vm2633_vm1 = vcmp.eq.s32.totalorder %v1593_v8, %v10057_v14  ;;  %vm2873_vm2 = vcmp.eq.s32.totalorder %v1833_v9, %v10057_v14  ;;  %vm2889_vm3 = vcmp.eq.s32.totalorder %v1849_v10, %v10057_v14  ;;  %v2313_v22 = vld [vmem:[#allocation3 + $0x1a88] sm:$0xff]  ;;  %v2329_v23 = vld [vmem:[#allocation3 + $0x1540] sm:$0xff]  ;;  %v1769_v27 = vld [vmem:[#allocation3 + $0x358] sm:$0xff] }
 0x451   : > { %vm8536_vm4 = vmpackc.low %vm2633_vm1, %vm2617_vm0  ;;  %vm3129_vm5 = vcmp.eq.s32.totalorder %v2089_v11, %v10057_v14  ;;  %vm3145_vm6 = vcmp.eq.s32.totalorder %v2105_v12, %v10057_v14  ;;  %vm3385_vm7 = vcmp.eq.s32.totalorder %v2345_v13, %v10057_v14  ;;  %vm3401_vm8 = vcmp.eq.s32.totalorder %v2361_v15, %v10057_v14  ;;  %v1513_v24 = vld [vmem:[#allocation3 + $0x1888] sm:$0xff]  ;;  %v1529_v25 = vld [vmem:[#allocation3 + $0xa00] sm:$0xff] }
 0x452   : > { %8537 = vmatpush.bf16.msk.msra.mxu0 %vm8536_vm4, %v9814_v26  ;;  %vm8552_vm9 = vmpackc.low %vm2889_vm3, %vm2873_vm2  ;;  %vm2585_vm10 = vcmp.eq.s32.totalorder %v1545_v16, %v10057_v14  ;;  %vm2601_vm11 = vcmp.eq.s32.totalorder %v1561_v17, %v10057_v14  ;;  %v1785_v28 = vld [vmem:[#allocation3 + $0x1a70] sm:$0xff]  ;;  %vm2841_vm13 = vcmp.eq.s32.totalorder %v1801_v18, %v10057_v14  ;;  %vm2857_vm14 = vcmp.eq.s32.totalorder %v1817_v19, %v10057_v14  ;;  %v2025_v29 = vld [vmem:[#allocation3 + $0x40] sm:$0xff] }
 0x453   : > { %8553 = vmatpush.bf16.msk.msra.mxu1 %vm8552_vm9, %v9814_v26  ;;  %vm8568_vm12 = vmpackc.low %vm3145_vm6, %vm3129_vm5  ;;  %v2041_v30 = vld [vmem:[#allocation3 + $0x1e20] sm:$0xff]  ;;  %vm3097_vm0 = vcmp.eq.s32.totalorder %v2057_v20, %v10057_v14  ;;  %vm3113_vm1 = vcmp.eq.s32.totalorder %v2073_v21, %v10057_v14  ;;  %v2281_v31 = vld [vmem:[#allocation3 + $0x12b8] sm:$0xff]  ;;  %vm3353_vm3 = vcmp.eq.s32.totalorder %v2313_v22, %v10057_v14  ;;  %vm3369_vm4 = vcmp.eq.s32.totalorder %v2329_v23, %v10057_v14 }
 0x454   : > { %8569 = vmatpush.bf16.msk.msra.mxu2 %vm8568_vm12, %v9814_v26  ;;  %vm8584_vm15 = vmpackc.low %vm3401_vm8, %vm3385_vm7  ;;  %v2297_v32 = vld [vmem:[#allocation3 + $0x38] sm:$0xff]  ;;  %v1481_v33 = vld [vmem:[#allocation3 + $0x1190] sm:$0xff]  ;;  %vm2553_vm6 = vcmp.eq.s32.totalorder %v1513_v24, %v10057_v14  ;;  %vm2569_vm7 = vcmp.eq.s32.totalorder %v1529_v25, %v10057_v14  ;;  %vm2809_vm9 = vcmp.eq.s32.totalorder %v1769_v27, %v10057_v14  ;;  %vm3065_vm12 = vcmp.eq.s32.totalorder %v2025_v29, %v10057_v14 }
 0x455   : > { %8585 = vmatpush.bf16.msk.msra.mxu3 %vm8584_vm15, %v9814_v26  ;;  %vm8538_vm2 = vmpackc.low %vm2601_vm11, %vm2585_vm10  ;;  %v1497_v34 = vld [vmem:[#allocation3 + $0x1f30] sm:$0xff]  ;;  %v1737_v35 = vld [vmem:[#allocation3 + $0xc08] sm:$0xff]  ;;  %vm2825_vm10 = vcmp.eq.s32.totalorder %v1785_v28, %v10057_v14  ;;  %vm3321_vm15 = vcmp.eq.s32.totalorder %v2281_v31, %v10057_v14  ;;  %v10235_v13 = vperm.slane %v10054_v7, 1 }
 0x456   : > { %8539 = vmatpush.bf16.msk.msra.mxu0 %vm8538_vm2, %v9814_v26  ;;  %vm8554_vm5 = vmpackc.low %vm2857_vm14, %vm2841_vm13  ;;  %v1753_v36 = vld [vmem:[#allocation3 + $0xfe0] sm:$0xff]  ;;  %v1993_v37 = vld [vmem:[#allocation3 + $0xb78] sm:$0xff]  ;;  %vm3081_vm13 = vcmp.eq.s32.totalorder %v2041_v30, %v10057_v14  ;;  %vm2521_vm2 = vcmp.eq.s32.totalorder %v1481_v33, %v10057_v14 }
 0x457   : > { %8555 = vmatpush.bf16.msk.msra.mxu1 %vm8554_vm5, %v9814_v26  ;;  %vm8570_vm8 = vmpackc.low %vm3113_vm1, %vm3097_vm0  ;;  %v2009_v38 = vld [vmem:[#allocation3 + $0x1a68] sm:$0xff]  ;;  %v2265_v40 = vld [vmem:[#allocation3 + $0x200] sm:$0xff]  ;;  %vm3337_vm0 = vcmp.eq.s32.totalorder %v2297_v32, %v10057_v14  ;;  %vm2777_vm5 = vcmp.eq.s32.totalorder %v1737_v35, %v10057_v14 }
 0x458   : > { %8571 = vmatpush.bf16.msk.msra.mxu2 %vm8570_vm8, %v9814_v26  ;;  %vm8586_vm11 = vmpackc.low %vm3369_vm4, %vm3353_vm3  ;;  %v2249_v39 = vld [vmem:[#allocation3 + $0x1528] sm:$0xff]  ;;  %v1465_v42 = vld [vmem:[#allocation3 + $0xc98] sm:$0xff]  ;;  %vm2537_vm3 = vcmp.eq.s32.totalorder %v1497_v34, %v10057_v14  ;;  %vm3033_vm8 = vcmp.eq.s32.totalorder %v1993_v37, %v10057_v14 }
 0x459   : > { %8587 = vmatpush.bf16.msk.msra.mxu3 %vm8586_vm11, %v9814_v26  ;;  %vm8540_vm14 = vmpackc.low %vm2569_vm7, %vm2553_vm6  ;;  %v1449_v41 = vld [vmem:[#allocation3 + $0xa8] sm:$0xff]  ;;  %v1705_v43 = vld [vmem:[#allocation3 + $0x1520] sm:$0xff]  ;;  %vm2793_vm6 = vcmp.eq.s32.totalorder %v1753_v36, %v10057_v14  ;;  %vm3289_vm11 = vcmp.eq.s32.totalorder %v2249_v39, %v10057_v14 }
 0x45a   : > { %8541 = vmatpush.bf16.msk.msra.mxu0 %vm8540_vm14, %v9814_v26  ;;  %vm8556_vm1 = vmpackc.low %vm2825_vm10, %vm2809_vm9  ;;  %v1721_v44 = vld [vmem:[#allocation3 + $0x458] sm:$0xff]  ;;  %v1977_v46 = vld [vmem:[#allocation3 + $0x1e48] sm:$0xff]  ;;  %vm3049_vm9 = vcmp.eq.s32.totalorder %v2009_v38, %v10057_v14  ;;  %vm2489_vm14 = vcmp.eq.s32.totalorder %v1449_v41, %v10057_v14 }
 0x45b   : > { %8557 = vmatpush.bf16.msk.msra.mxu1 %vm8556_vm1, %v9814_v26  ;;  %vm8572_vm4 = vmpackc.low %vm3081_vm13, %vm3065_vm12  ;;  %v1961_v45 = vld [vmem:[#allocation3 + $0x1d78] sm:$0xff]  ;;  %vm3305_vm12 = vcmp.eq.s32.totalorder %v2265_v40, %v10057_v14  ;;  %v1433_v50 = vld [vmem:[#allocation3 + $0x620] sm:$0xff]  ;;  %vm2745_vm1 = vcmp.eq.s32.totalorder %v1705_v43, %v10057_v14 }
 0x45c   : > { %8573 = vmatpush.bf16.msk.msra.mxu2 %vm8572_vm4, %v9814_v26  ;;  %vm8588_vm7 = vmpackc.low %vm3337_vm0, %vm3321_vm15  ;;  %v2217_v47 = vld [vmem:[#allocation3 + $0x1a78] sm:$0xff]  ;;  %vm2505_vm15 = vcmp.eq.s32.totalorder %v1465_v42, %v10057_v14  ;;  %v1673_v51 = vld [vmem:[#allocation3 + $0x1f50] sm:$0xff]  ;;  %vm3001_vm4 = vcmp.eq.s32.totalorder %v1961_v45, %v10057_v14 }
 0x45d   : > { %v2233_v48 = vld [vmem:[#allocation3 + $0x3b8] sm:$0xff]  ;;  %8589 = vmatpush.bf16.msk.msra.mxu3 %vm8588_vm7, %v9814_v26  ;;  %vm8542_vm10 = vmpackc.low %vm2537_vm3, %vm2521_vm2  ;;  %v1689_v52 = vld [vmem:[#allocation3 + $0x1b88] sm:$0xff]  ;;  %vm2761_vm2 = vcmp.eq.s32.totalorder %v1721_v44, %v10057_v14  ;;  %vm3257_vm7 = vcmp.eq.s32.totalorder %v2217_v47, %v10057_v14 }
 0x45e   : > { %v1417_v49 = vld [vmem:[#allocation3 + $0x1458] sm:$0xff]  ;;  %8543 = vmatpush.bf16.msk.msra.mxu0 %vm8542_vm10, %v9814_v26  ;;  %vm8558_vm13 = vmpackc.low %vm2793_vm6, %vm2777_vm5  ;;  %v1929_v53 = vld [vmem:[#allocation3 + $0x1870] sm:$0xff]  ;;  %vm3017_vm5 = vcmp.eq.s32.totalorder %v1977_v46, %v10057_v14 }
 0x45f   : > { %8559 = vmatpush.bf16.msk.msra.mxu1 %vm8558_vm13, %v9814_v26  ;;  %vm8574_vm0 = vmpackc.low %vm3049_vm9, %vm3033_vm8  ;;  %v1945_v54 = vld [vmem:[#allocation3 + $0x1490] sm:$0xff]  ;;  %vm3273_vm8 = vcmp.eq.s32.totalorder %v2233_v48, %v10057_v14  ;;  %v1385_v57 = vld [vmem:[#allocation3 + $0x1df8] sm:$0xff]  ;;  %vm2457_vm10 = vcmp.eq.s32.totalorder %v1417_v49, %v10057_v14  ;;  %vm2713_vm13 = vcmp.eq.s32.totalorder %v1673_v51, %v10057_v14 }
 0x460   : > { %8575 = vmatpush.bf16.msk.msra.mxu2 %vm8574_vm0, %v9814_v26  ;;  %vm8590_vm3 = vmpackc.low %vm3305_vm12, %vm3289_vm11  ;;  %v2185_v55 = vld [vmem:[#allocation3 + $0xed0] sm:$0xff]  ;;  %v1401_v58 = vld [vmem:[#allocation3 + $0x600] sm:$0xff]  ;;  %vm2473_vm11 = vcmp.eq.s32.totalorder %v1433_v50, %v10057_v14  ;;  %vm2969_vm0 = vcmp.eq.s32.totalorder %v1929_v53, %v10057_v14 }
 0x461   : > { %v2201_v56 = vld [vmem:[#allocation3 + $0x210] sm:$0xff]  ;;  %8591 = vmatpush.bf16.msk.msra.mxu3 %vm8590_vm3, %v9814_v26  ;;  %vm8544_vm6 = vmpackc.low %vm2505_vm15, %vm2489_vm14  ;;  %v1657_v60 = vld [vmem:[#allocation3 + $0x1020] sm:$0xff]  ;;  %vm2729_vm14 = vcmp.eq.s32.totalorder %v1689_v52, %v10057_v14  ;;  %vm3225_vm3 = vcmp.eq.s32.totalorder %v2185_v55, %v10057_v14 }
 0x462   : > { %8545 = vmatpush.bf16.msk.msra.mxu0 %vm8544_vm6, %v9814_v26  ;;  %vm8560_vm9 = vmpackc.low %vm2761_vm2, %vm2745_vm1  ;;  %v1641_v59 = vld [vmem:[#allocation3 + $0x1010] sm:$0xff]  ;;  %v1897_v61 = vld [vmem:[#allocation3 + $0xad8] sm:$0xff]  ;;  %vm2985_vm1 = vcmp.eq.s32.totalorder %v1945_v54, %v10057_v14  ;;  %vm2425_vm6 = vcmp.eq.s32.totalorder %v1385_v57, %v10057_v14 }
 0x463   : > { %8561 = vmatpush.bf16.msk.msra.mxu1 %vm8560_vm9, %v9814_v26  ;;  %vm8576_vm12 = vmpackc.low %vm3017_vm5, %vm3001_vm4  ;;  %v1913_v62 = vld [vmem:[#allocation3 + $0x1d00] sm:$0xff]  ;;  %v2169_v0 = vld [vmem:[#allocation3 + $0x698] sm:$0xff]  ;;  %vm3241_vm4 = vcmp.eq.s32.totalorder %v2201_v56, %v10057_v14  ;;  %vm2681_vm9 = vcmp.eq.s32.totalorder %v1641_v59, %v10057_v14 }
 0x464   : > { %8577 = vmatpush.bf16.msk.msra.mxu2 %vm8576_vm12, %v9814_v26  ;;  %vm8592_vm15 = vmpackc.low %vm3273_vm8, %vm3257_vm7  ;;  %v2153_v63 = vld [vmem:[#allocation3 + $0x3c0] sm:$0xff]  ;;  %vm2441_vm7 = vcmp.eq.s32.totalorder %v1401_v58, %v10057_v14  ;;  %v1609_v3 = vld [vmem:[#allocation3 + $0x1510] sm:$0xff]  ;;  %vm2937_vm12 = vcmp.eq.s32.totalorder %v1897_v61, %v10057_v14 }
 0x465   : > { %8593 = vmatpush.bf16.msk.msra.mxu3 %vm8592_vm15, %v9814_v26  ;;  %vm8546_vm2 = vmpackc.low %vm2473_vm11, %vm2457_vm10  ;;  %v1353_v1 = vld [vmem:[#allocation3 + $0x300] sm:$0xff]  ;;  %v1625_v4 = vld [vmem:[#allocation3 + $0xf10] sm:$0xff]  ;;  %vm2697_vm10 = vcmp.eq.s32.totalorder %v1657_v60, %v10057_v14  ;;  %vm3193_vm15 = vcmp.eq.s32.totalorder %v2153_v63, %v10057_v14 }
 0x466   : > { %v1369_v2 = vld [vmem:[#allocation3 + $0x1580] sm:$0xff]  ;;  %8547 = vmatpush.bf16.msk.msra.mxu0 %vm8546_vm2, %v9814_v26  ;;  %vm8562_vm5 = vmpackc.low %vm2729_vm14, %vm2713_vm13  ;;  %v1865_v6 = vld [vmem:[#allocation3 + $0x1fa8] sm:$0xff]  ;;  %vm2953_vm13 = vcmp.eq.s32.totalorder %v1913_v62, %v10057_v14  ;;  %vm2393_vm2 = vcmp.eq.s32.totalorder %v1353_v1, %v10057_v14 }
 0x467   : > { %8563 = vmatpush.bf16.msk.msra.mxu1 %vm8562_vm5, %v9814_v26  ;;  %vm8578_vm8 = vmpackc.low %vm2985_vm1, %vm2969_vm0  ;;  %v1881_v8 = vld [vmem:[#allocation3 + $0x918] sm:$0xff]  ;;  %v2121_v9 = vld [vmem:[#allocation3 + $0x648] sm:$0xff]  ;;  %vm3209_vm0 = vcmp.eq.s32.totalorder %v2169_v0, %v10057_v14  ;;  %vm2649_vm5 = vcmp.eq.s32.totalorder %v1609_v3, %v10057_v14 }
 0x468   : > { %8579 = vmatpush.bf16.msk.msra.mxu2 %vm8578_vm8, %v9814_v26  ;;  %vm8594_vm11 = vmpackc.low %vm3241_vm4, %vm3225_vm3  ;;  %v2137_v10 = vld [vmem:[#allocation3 + $0x18d0] sm:$0xff]  ;;  %v1578_v11 = vld [vmem:[#allocation3 + $0x1420] sm:$0xff]  ;;  %vm2409_vm3 = vcmp.eq.s32.totalorder %v1369_v2, %v10057_v14  ;;  %vm2905_vm8 = vcmp.eq.s32.totalorder %v1865_v6, %v10057_v14 }
 0x469   : > { %8595 = vmatpush.bf16.msk.msra.mxu3 %vm8594_vm11, %v9814_v26  ;;  %vm8548_vm14 = vmpackc.low %vm2441_vm7, %vm2425_vm6  ;;  %v1594_v12 = vld [vmem:[#allocation3 + $0x1800] sm:$0xff]  ;;  %v1834_v15 = vld [vmem:[#allocation3 + $0x10b8] sm:$0xff]  ;;  %vm2665_vm6 = vcmp.eq.s32.totalorder %v1625_v4, %v10057_v14  ;;  %vm3161_vm11 = vcmp.eq.s32.totalorder %v2121_v9, %v10057_v14 }
 0x46a   : > { %8549 = vmatpush.bf16.msk.msra.mxu0 %vm8548_vm14, %v9814_v26  ;;  %vm8564_vm1 = vmpackc.low %vm2697_vm10, %vm2681_vm9  ;;  %v1850_v16 = vld [vmem:[#allocation3 + $0x1940] sm:$0xff]  ;;  %vm2921_vm9 = vcmp.eq.s32.totalorder %v1881_v8, %v10057_v14  ;;  %v2346_v19 = vld [vmem:[#allocation3 + $0x1cf0] sm:$0xff]  ;;  %vm2618_vm14 = vcmp.eq.s32.totalorder %v1578_v11, %v10235_v13 }
 0x46b   : > { %8565 = vmatpush.bf16.msk.msra.mxu1 %vm8564_vm1, %v9814_v26  ;;  %vm8580_vm4 = vmpackc.low %vm2953_vm13, %vm2937_vm12  ;;  %v2090_v17 = vld [vmem:[#allocation3 + $0xb00] sm:$0xff]  ;;  %v2362_v20 = vld [vmem:[#allocation3 + $0x418] sm:$0xff]  ;;  %vm3177_vm12 = vcmp.eq.s32.totalorder %v2137_v10, %v10057_v14  ;;  %vm2874_vm1 = vcmp.eq.s32.totalorder %v1834_v15, %v10235_v13 }
 0x46c   : > { %v2106_v18 = vld [vmem:[#allocation3 + $0x2c0] sm:$0xff]  ;;  %8581 = vmatpush.bf16.msk.msra.mxu2 %vm8580_vm4, %v9814_v26  ;;  %vm8596_vm7 = vmpackc.low %vm3209_vm0, %vm3193_vm15  ;;  %v1546_v21 = vld [vmem:[#allocation3 + $0x9b0] sm:$0xff]  ;;  %vm2634_vm15 = vcmp.eq.s32.totalorder %v1594_v12, %v10235_v13  ;;  %vm3130_vm4 = vcmp.eq.s32.totalorder %v2090_v17, %v10235_v13 }
 0x46d   : > { %8597 = vmatpush.bf16.msk.msra.mxu3 %vm8596_vm7, %v9814_v26  ;;  %vm8550_vm10 = vmpackc.low %vm2409_vm3, %vm2393_vm2  ;;  %v1562_v22 = vld [vmem:[#allocation3 + $0x1e88] sm:$0xff]  ;;  %v1818_v24 = vld [vmem:[#allocation3 + $0x570] sm:$0xff]  ;;  %vm2890_vm2 = vcmp.eq.s32.totalorder %v1850_v16, %v10235_v13  ;;  %vm3386_vm7 = vcmp.eq.s32.totalorder %v2346_v19, %v10235_v13 }
 0x46e   : > { %8551 = vmatpush.bf16.msk.msra.mxu0 %vm8550_vm10, %v9814_v26  ;;  %vm8566_vm13 = vmpackc.low %vm2665_vm6, %vm2649_vm5  ;;  %v1802_v23 = vld [vmem:[#allocation3 + $0x928] sm:$0xff]  ;;  %v2058_v25 = vld [vmem:[#allocation3 + $0xbf0] sm:$0xff]  ;;  %vm3146_vm5 = vcmp.eq.s32.totalorder %v2106_v18, %v10235_v13  ;;  %vm2586_vm10 = vcmp.eq.s32.totalorder %v1546_v21, %v10235_v13 }
 0x46f   : > { %8567 = vmatpush.bf16.msk.msra.mxu1 %vm8566_vm13, %v9814_v26  ;;  %vm8582_vm0 = vmpackc.low %vm2921_vm9, %vm2905_vm8  ;;  %v2074_v27 = vld [vmem:[#allocation3 + $0x538] sm:$0xff]  ;;  %v2314_v28 = vld [vmem:[#allocation3 + $0x17d0] sm:$0xff]  ;;  %vm3402_vm8 = vcmp.eq.s32.totalorder %v2362_v20, %v10235_v13  ;;  %vm2842_vm13 = vcmp.eq.s32.totalorder %v1802_v23, %v10235_v13 }
 0x470   : > { %8583 = vmatpush.bf16.msk.msra.mxu2 %vm8582_vm0, %v9814_v26  ;;  %vm8598_vm3 = vmpackc.low %vm3177_vm12, %vm3161_vm11  ;;  %v2330_v29 = vld [vmem:[#allocation3 + $0x588] sm:$0xff]  ;;  %v1514_v14 = vld [vmem:[#allocation3 + $0x1be0] sm:$0xff]  ;;  %vm2602_vm11 = vcmp.eq.s32.totalorder %v1562_v22, %v10235_v13  ;;  %vm3098_vm0 = vcmp.eq.s32.totalorder %v2058_v25, %v10235_v13  ;;  %v10488_v25 = vperm.slane %v10054_v7, 2 }
 0x471   : > { %8599 = vmatpush.bf16.msk.msra.mxu3 %vm8598_vm3, %v9814_v26  ;;  %vm8600_vm6 = vmpackc.low %vm2634_vm15, %vm2618_vm14  ;;  %v1530_v30 = vld [vmem:[#allocation3 + $0x558] sm:$0xff]  ;;  %v1770_v31 = vld [vmem:[#allocation3 + $0x80] sm:$0xff]  ;;  %vm2858_vm14 = vcmp.eq.s32.totalorder %v1818_v24, %v10235_v13  ;;  %vm3354_vm3 = vcmp.eq.s32.totalorder %v2314_v28, %v10235_v13 }
 0x472   : > { %8601 = vmatpush.bf16.msk.msrb.mxu0 %vm8600_vm6, %v9814_v26  ;;  %vm8616_vm9 = vmpackc.low %vm2890_vm2, %vm2874_vm1  ;;  %v1786_v32 = vld [vmem:[#allocation3 + $0x750] sm:$0xff]  ;;  %v2026_v33 = vld [vmem:[#allocation3 + $0x1548] sm:$0xff]  ;;  %vm3114_vm1 = vcmp.eq.s32.totalorder %v2074_v27, %v10235_v13  ;;  %vm2554_vm6 = vcmp.eq.s32.totalorder %v1514_v14, %v10235_v13 }
 0x473   : > { %8617 = vmatpush.bf16.msk.msrb.mxu1 %vm8616_vm9, %v9814_v26  ;;  %vm8632_vm12 = vmpackc.low %vm3146_vm5, %vm3130_vm4  ;;  %v2042_v34 = vld [vmem:[#allocation3 + $0x1568] sm:$0xff]  ;;  %v2282_v35 = vld [vmem:[#allocation3 + $0x1e00] sm:$0xff]  ;;  %vm3370_vm4 = vcmp.eq.s32.totalorder %v2330_v29, %v10235_v13  ;;  %vm2810_vm9 = vcmp.eq.s32.totalorder %v1770_v31, %v10235_v13 }
 0x474   : > { %8633 = vmatpush.bf16.msk.msrb.mxu2 %vm8632_vm12, %v9814_v26  ;;  %vm8648_vm15 = vmpackc.low %vm3402_vm8, %vm3386_vm7  ;;  %v2298_v36 = vld [vmem:[#allocation3 + $0x1f28] sm:$0xff]  ;;  %v1482_v37 = vld [vmem:[#allocation3 + $0x10f8] sm:$0xff]  ;;  %vm2570_vm7 = vcmp.eq.s32.totalorder %v1530_v30, %v10235_v13  ;;  %vm3066_vm12 = vcmp.eq.s32.totalorder %v2026_v33, %v10235_v13 }
 0x475   : > { %8649 = vmatpush.bf16.msk.msrb.mxu3 %vm8648_vm15, %v9814_v26  ;;  %vm8602_vm2 = vmpackc.low %vm2602_vm11, %vm2586_vm10  ;;  %v1498_v38 = vld [vmem:[#allocation3 + $0x1238] sm:$0xff]  ;;  %v1738_v39 = vld [vmem:[#allocation3 + $0x230] sm:$0xff]  ;;  %vm2826_vm10 = vcmp.eq.s32.totalorder %v1786_v32, %v10235_v13  ;;  %vm3322_vm15 = vcmp.eq.s32.totalorder %v2282_v35, %v10235_v13 }
 0x476   : > { %8603 = vmatpush.bf16.msk.msrb.mxu0 %vm8602_vm2, %v9814_v26  ;;  %vm8618_vm5 = vmpackc.low %vm2858_vm14, %vm2842_vm13  ;;  %v1754_v40 = vld [vmem:[#allocation3 + $0x14b0] sm:$0xff]  ;;  %v1994_v41 = vld [vmem:[#allocation3 + $0x1d68] sm:$0xff]  ;;  %vm3082_vm13 = vcmp.eq.s32.totalorder %v2042_v34, %v10235_v13  ;;  %vm2522_vm2 = vcmp.eq.s32.totalorder %v1482_v37, %v10235_v13 }
 0x477   : > { %8619 = vmatpush.bf16.msk.msrb.mxu1 %vm8618_vm5, %v9814_v26  ;;  %vm8634_vm8 = vmpackc.low %vm3114_vm1, %vm3098_vm0  ;;  %v2010_v42 = vld [vmem:[#allocation3 + $0x1fb8] sm:$0xff]  ;;  %v2250_v43 = vld [vmem:[#allocation3 + $0x14c8] sm:$0xff]  ;;  %vm3338_vm0 = vcmp.eq.s32.totalorder %v2298_v36, %v10235_v13  ;;  %vm2778_vm5 = vcmp.eq.s32.totalorder %v1738_v39, %v10235_v13 }
 0x478   : > { %8635 = vmatpush.bf16.msk.msrb.mxu2 %vm8634_vm8, %v9814_v26  ;;  %vm8650_vm11 = vmpackc.low %vm3370_vm4, %vm3354_vm3  ;;  %v2266_v44 = vld [vmem:[#allocation3 + $0x1f60] sm:$0xff]  ;;  %v9570_v46 = vld [vmem:[%s10325_s21 + $0x14] sm:$0x10]  ;;  %vm2538_vm3 = vcmp.eq.s32.totalorder %v1498_v38, %v10235_v13  ;;  %vm3034_vm8 = vcmp.eq.s32.totalorder %v1994_v41, %v10235_v13 }
 0x479   : > { %8651 = vmatpush.bf16.msk.msrb.mxu3 %vm8650_vm11, %v9814_v26  ;;  %vm8604_vm14 = vmpackc.low %vm2570_vm7, %vm2554_vm6  ;;  %v8530_v45 = vld [vmem:[%s10325_s21 + $0x8] sm:$0xf]  ;;  %v1450_v48 = vld [vmem:[#allocation3 + $0x16d8] sm:$0xff]  ;;  %vm2794_vm6 = vcmp.eq.s32.totalorder %v1754_v40, %v10235_v13  ;;  %vm3290_vm11 = vcmp.eq.s32.totalorder %v2250_v43, %v10235_v13 }
 0x47a   : > { %8605 = vmatpush.bf16.msk.msrb.mxu0 %vm8604_vm14, %v9814_v26  ;;  %vm8620_vm1 = vmpackc.low %vm2826_vm10, %vm2810_vm9  ;;  %v10357_v47 = vor.u32 %v9570_v46, %v8530_v45  ;;  %v1466_v49 = vld [vmem:[#allocation3 + $0xae8] sm:$0xff]  ;;  %v1706_v50 = vld [vmem:[#allocation3 + $0x150] sm:$0xff]  ;;  %vm3050_vm9 = vcmp.eq.s32.totalorder %v2010_v42, %v10235_v13  ;;  %vm2490_vm14 = vcmp.eq.s32.totalorder %v1450_v48, %v10235_v13 }
 0x47b   : > { %8621 = vmatpush.bf16.msk.msrb.mxu1 %vm8620_vm1, %v9814_v26  ;;  %vm8636_vm4 = vmpackc.low %vm3082_vm13, %vm3066_vm12  ;;  %v1722_v51 = vld [vmem:[#allocation3 + $0x1218] sm:$0xff]  ;;  %v1962_v52 = vld [vmem:[#allocation3 + $0x7a0] sm:$0xff]  ;;  %vm3306_vm12 = vcmp.eq.s32.totalorder %v2266_v44, %v10235_v13  ;;  %vm2746_vm1 = vcmp.eq.s32.totalorder %v1706_v50, %v10235_v13 }
 0x47c   : > { %8637 = vmatpush.bf16.msk.msrb.mxu2 %vm8636_vm4, %v9814_v26  ;;  %vm8652_vm7 = vmpackc.low %vm3338_vm0, %vm3322_vm15  ;;  %v1978_v53 = vld [vmem:[#allocation3 + $0x1d88] sm:$0xff]  ;;  %v2218_v54 = vld [vmem:[#allocation3 + $0x18] sm:$0xff]  ;;  %vm2506_vm15 = vcmp.eq.s32.totalorder %v1466_v49, %v10235_v13  ;;  %vm3002_vm4 = vcmp.eq.s32.totalorder %v1962_v52, %v10235_v13 }
 0x47d   : > { %8653 = vmatpush.bf16.msk.msrb.mxu3 %vm8652_vm7, %v9814_v26  ;;  %vm8606_vm10 = vmpackc.low %vm2538_vm3, %vm2522_vm2  ;;  %6040 = vmatmul.bf16.vlgmr.msra.gmra.mxu2 %v10357_v47  ;;  %v2234_v55 = vld [vmem:[#allocation3 + $0x1390] sm:$0xff]  ;;  %v9568_v56 = vld [vmem:[%s10325_s21 + $0xc] sm:$0xf]  ;;  %vm2762_vm2 = vcmp.eq.s32.totalorder %v1722_v51, %v10235_v13  ;;  %vm3258_vm7 = vcmp.eq.s32.totalorder %v2218_v54, %v10235_v13 }
 0x47e   : > { %8607 = vmatpush.bf16.msk.msrb.mxu0 %vm8606_vm10, %v9814_v26  ;;  %vm8622_vm13 = vmpackc.low %vm2794_vm6, %vm2778_vm5  ;;  %v8532_v57 = vld [vmem:[%s10325_s21 + $0x18] sm:$0x10]  ;;  %v8522_v59 = vld [vmem:[%s10325_s21] sm:$0xf]  ;;  %vm3018_vm5 = vcmp.eq.s32.totalorder %v1978_v53, %v10235_v13 }
 0x47f   : > { %8623 = vmatpush.bf16.msk.msrb.mxu1 %vm8622_vm13, %v9814_v26  ;;  %vm8638_vm0 = vmpackc.low %vm3050_vm9, %vm3034_vm8  ;;  %v10397_v58 = vor.u32 %v9568_v56, %v8532_v57  ;;  %v9569_v60 = vld [vmem:[%s10325_s21 + $0xc] sm:$0x10]  ;;  %v9567_v62 = vld [vmem:[%s10325_s21 + $0x4] sm:$0xf]  ;;  %vm3274_vm8 = vcmp.eq.s32.totalorder %v2234_v55, %v10235_v13 }
 0x480   : > { %8639 = vmatpush.bf16.msk.msrb.mxu2 %vm8638_vm0, %v9814_v26  ;;  %vm8654_vm3 = vmpackc.low %vm3306_vm12, %vm3290_vm11  ;;  %v10408_v61 = vor.u32 %v9569_v60, %v8522_v59  ;;  %v8524_v63 = vld [vmem:[%s10325_s21 + $0x10] sm:$0x10]  ;;  %v1418_v1 = vld [vmem:[#allocation3 + $0x1d30] sm:$0xff] }
 0x481   : > { %8655 = vmatpush.bf16.msk.msrb.mxu3 %vm8654_vm3, %v9814_v26  ;;  %vm8608_vm6 = vmpackc.low %vm2506_vm15, %vm2490_vm14  ;;  %v10419_v0 = vor.u32 %v9567_v62, %v8524_v63  ;;  %v1434_v2 = vld [vmem:[#allocation3 + $0x1760] sm:$0xff]  ;;  %vm2458_vm10 = vcmp.eq.s32.totalorder %v1418_v1, %v10235_v13  ;;  %v1674_v3 = vld [vmem:[#allocation3 + $0x11b0] sm:$0xff] }
 0x482   : > { %8609 = vmatpush.bf16.msk.msrb.mxu0 %vm8608_vm6, %v9814_v26  ;;  %vm8624_vm9 = vmpackc.low %vm2762_vm2, %vm2746_vm1  ;;  %6054 = vmatmul.bf16.vlgmr.msra.gmra.mxu3 %v10397_v58  ;;  %vm2474_vm11 = vcmp.eq.s32.totalorder %v1434_v2, %v10235_v13  ;;  %v1690_v4 = vld [vmem:[#allocation3 + $0x70] sm:$0xff]  ;;  %vm2714_vm13 = vcmp.eq.s32.totalorder %v1674_v3, %v10235_v13  ;;  %v1946_v8 = vld [vmem:[#allocation3 + $0x1508] sm:$0xff] }
 0x483   : > { %8625 = vmatpush.bf16.msk.msrb.mxu1 %vm8624_vm9, %v9814_v26  ;;  %vm8640_vm12 = vmpackc.low %vm3018_vm5, %vm3002_vm4  ;;  %6012 = vmatmul.bf16.vlgmr.msra.gmra.mxu0 %v10408_v61  ;;  %vm2730_vm14 = vcmp.eq.s32.totalorder %v1690_v4, %v10235_v13  ;;  %v1930_v6 = vld [vmem:[#allocation3 + $0x1350] sm:$0xff]  ;;  %vm2986_vm1 = vcmp.eq.s32.totalorder %v1946_v8, %v10235_v13  ;;  %v2186_v9 = vld [vmem:[#allocation3 + $0x1598] sm:$0xff] }
 0x484   : > { %8641 = vmatpush.bf16.msk.msrb.mxu2 %vm8640_vm12, %v9814_v26  ;;  %vm8656_vm15 = vmpackc.low %vm3274_vm8, %vm3258_vm7  ;;  %6026 = vmatmul.bf16.vlgmr.msra.gmra.mxu1 %v10419_v0  ;;  %vm2970_vm0 = vcmp.eq.s32.totalorder %v1930_v6, %v10235_v13  ;;  %v2202_v10 = vld [vmem:[#allocation3 + $0x1a90] sm:$0xff]  ;;  %vm3226_vm3 = vcmp.eq.s32.totalorder %v2186_v9, %v10235_v13  ;;  %v1386_v11 = vld [vmem:[#allocation3 + $0xca0] sm:$0xff] }
 0x485   : > { %8657 = vmatpush.bf16.msk.msrb.mxu3 %vm8656_vm15, %v9814_v26  ;;  %vm8610_vm2 = vmpackc.low %vm2474_vm11, %vm2458_vm10  ;;  %vm3242_vm4 = vcmp.eq.s32.totalorder %v2202_v10, %v10235_v13  ;;  %v1402_v12 = vld [vmem:[#allocation3 + $0x1778] sm:$0xff]  ;;  %vm2426_vm6 = vcmp.eq.s32.totalorder %v1386_v11, %v10235_v13  ;;  %v1658_v16 = vld [vmem:[#allocation3 + $0xa10] sm:$0xff] }
 0x486   : > { %8611 = vmatpush.bf16.msk.msrb.mxu0 %vm8610_vm2, %v9814_v26  ;;  %vm8626_vm5 = vmpackc.low %vm2730_vm14, %vm2714_vm13  ;;  %vm2442_vm7 = vcmp.eq.s32.totalorder %v1402_v12, %v10235_v13  ;;  %v1642_v15 = vld [vmem:[#allocation3 + $0xe78] sm:$0xff]  ;;  %vm2698_vm10 = vcmp.eq.s32.totalorder %v1658_v16, %v10235_v13  ;;  %v2154_v19 = vld [vmem:[#allocation3 + $0x1028] sm:$0xff] }
 0x487   : > { %8627 = vmatpush.bf16.msk.msrb.mxu1 %vm8626_vm5, %v9814_v26  ;;  %vm8642_vm8 = vmpackc.low %vm2986_vm1, %vm2970_vm0  ;;  %vm2682_vm9 = vcmp.eq.s32.totalorder %v1642_v15, %v10235_v13  ;;  %v1898_v17 = vld [vmem:[#allocation3 + $0x14d8] sm:$0xff]  ;;  %v2170_v20 = vld [vmem:[#allocation3 + $0x1ae0] sm:$0xff]  ;;  %vm3194_vm15 = vcmp.eq.s32.totalorder %v2154_v19, %v10235_v13 }
 0x488   : > { %v1914_v18 = vld [vmem:[#allocation3 + $0xbd8] sm:$0xff]  ;;  %8643 = vmatpush.bf16.msk.msrb.mxu2 %vm8642_vm8, %v9814_v26  ;;  %vm8658_vm11 = vmpackc.low %vm3242_vm4, %vm3226_vm3  ;;  %vm2938_vm12 = vcmp.eq.s32.totalorder %v1898_v17, %v10235_v13  ;;  %vm3210_vm0 = vcmp.eq.s32.totalorder %v2170_v20, %v10235_v13  ;;  %v1370_v22 = vld [vmem:[#allocation3 + $0x590] sm:$0xff] }
 0x489   : > { %vm2954_vm13 = vcmp.eq.s32.totalorder %v1914_v18, %v10235_v13  ;;  %8659 = vmatpush.bf16.msk.msrb.mxu3 %vm8658_vm11, %v9814_v26  ;;  %vm8612_vm14 = vmpackc.low %vm2442_vm7, %vm2426_vm6  ;;  %v1354_v21 = vld [vmem:[#allocation3 + $0x1418] sm:$0xff]  ;;  %vm2410_vm3 = vcmp.eq.s32.totalorder %v1370_v22, %v10235_v13  ;;  %v1610_v23 = vld [vmem:[#allocation3 + $0xe70] sm:$0xff] }
 0x48a   : > { %8613 = vmatpush.bf16.msk.msrb.mxu0 %vm8612_vm14, %v9814_v26  ;;  %vm8628_vm1 = vmpackc.low %vm2698_vm10, %vm2682_vm9  ;;  %vm2394_vm2 = vcmp.eq.s32.totalorder %v1354_v21, %v10235_v13  ;;  %v1626_v24 = vld [vmem:[#allocation3 + $0x660] sm:$0xff]  ;;  %vm2650_vm5 = vcmp.eq.s32.totalorder %v1610_v23, %v10235_v13  ;;  %v1882_v28 = vld [vmem:[#allocation3 + $0xf38] sm:$0xff] }
 0x48b   : > { %8629 = vmatpush.bf16.msk.msrb.mxu1 %vm8628_vm1, %v9814_v26  ;;  %vm8644_vm4 = vmpackc.low %vm2954_vm13, %vm2938_vm12  ;;  %vm2666_vm6 = vcmp.eq.s32.totalorder %v1626_v24, %v10235_v13  ;;  %v1866_v27 = vld [vmem:[#allocation3 + $0x5c0] sm:$0xff]  ;;  %vm2922_vm9 = vcmp.eq.s32.totalorder %v1882_v28, %v10235_v13  ;;  %v2122_v29 = vld [vmem:[#allocation3 + $0x1858] sm:$0xff] }
 0x48c   : > { %8645 = vmatpush.bf16.msk.msrb.mxu2 %vm8644_vm4, %v9814_v26  ;;  %vm8660_vm7 = vmpackc.low %vm3210_vm0, %vm3194_vm15  ;;  %vm2906_vm8 = vcmp.eq.s32.totalorder %v1866_v27, %v10235_v13  ;;  %v2138_v14 = vld [vmem:[#allocation3 + $0x608] sm:$0xff]  ;;  %vm3162_vm11 = vcmp.eq.s32.totalorder %v2122_v29, %v10235_v13  ;;  %v1579_v30 = vld [vmem:[#allocation3 + $0x9a0] sm:$0xff] }
 0x48d   : > { %8661 = vmatpush.bf16.msk.msrb.mxu3 %vm8660_vm7, %v9814_v26  ;;  %vm8614_vm10 = vmpackc.low %vm2410_vm3, %vm2394_vm2  ;;  %vm3178_vm12 = vcmp.eq.s32.totalorder %v2138_v14, %v10235_v13  ;;  %v1595_v31 = vld [vmem:[#allocation3 + $0x618] sm:$0xff]  ;;  %vm2619_vm14 = vcmp.eq.s32.totalorder %v1579_v30, %v10488_v25  ;;  %v2091_v34 = vld [vmem:[#allocation3 + $0x140] sm:$0xff] }
 0x48e   : > { %8615 = vmatpush.bf16.msk.msrb.mxu0 %vm8614_vm10, %v9814_v26  ;;  %vm8630_vm13 = vmpackc.low %vm2666_vm6, %vm2650_vm5  ;;  %vm2635_vm15 = vcmp.eq.s32.totalorder %v1595_v31, %v10488_v25  ;;  %v1835_v32 = vld [vmem:[#allocation3 + $0x18b8] sm:$0xff]  ;;  %v2107_v35 = vld [vmem:[#allocation3 + $0x1400] sm:$0xff]  ;;  %vm3131_vm4 = vcmp.eq.s32.totalorder %v2091_v34, %v10488_v25  ;;  %v10719_v34 = vperm.slane %v10054_v7, 3 }
 0x48f   : > { %v1851_v33 = vld [vmem:[#allocation3 + $0x6f8] sm:$0xff]  ;;  %8631 = vmatpush.bf16.msk.msrb.mxu1 %vm8630_vm13, %v9814_v26  ;;  %vm8646_vm0 = vmpackc.low %vm2922_vm9, %vm2906_vm8  ;;  %vm2875_vm1 = vcmp.eq.s32.totalorder %v1835_v32, %v10488_v25  ;;  %vm3147_vm5 = vcmp.eq.s32.totalorder %v2107_v35, %v10488_v25  ;;  %v2347_v36 = vld [vmem:[#allocation3] sm:$0xff] }
 0x490   : > { %vm2891_vm2 = vcmp.eq.s32.totalorder %v1851_v33, %v10488_v25  ;;  %8647 = vmatpush.bf16.msk.msrb.mxu2 %vm8646_vm0, %v9814_v26  ;;  %vm8662_vm3 = vmpackc.low %vm3178_vm12, %vm3162_vm11  ;;  %v2363_v37 = vld [vmem:[#allocation3 + $0x1820] sm:$0xff]  ;;  %vm3387_vm7 = vcmp.eq.s32.totalorder %v2347_v36, %v10488_v25  ;;  %v1547_v38 = vld [vmem:[#allocation3 + $0x668] sm:$0xff] }
 0x491   : > { %8663 = vmatpush.bf16.msk.msrb.mxu3 %vm8662_vm3, %v9814_v26  ;;  %vm8664_vm6 = vmpackc.low %vm2635_vm15, %vm2619_vm14  ;;  %vm3403_vm8 = vcmp.eq.s32.totalorder %v2363_v37, %v10488_v25  ;;  %v1563_v13 = vld [vmem:[#allocation3 + $0x7a8] sm:$0xff]  ;;  %vm2587_vm10 = vcmp.eq.s32.totalorder %v1547_v38, %v10488_v25  ;;  %v1819_v40 = vld [vmem:[#allocation3 + $0x1a60] sm:$0xff] }
 0x492   : > { %8665 = vmatpush.bf16.msk.msra.mxu0 %vm8664_vm6, %v9814_v26  ;;  %vm8680_vm9 = vmpackc.low %vm2891_vm2, %vm2875_vm1  ;;  %vm2603_vm11 = vcmp.eq.s32.totalorder %v1563_v13, %v10488_v25  ;;  %v1803_v39 = vld [vmem:[#allocation3 + $0x1428] sm:$0xff]  ;;  %vm2859_vm14 = vcmp.eq.s32.totalorder %v1819_v40, %v10488_v25  ;;  %v2059_v41 = vld [vmem:[#allocation3 + $0x520] sm:$0xff] }
 0x493   : > { %8681 = vmatpush.bf16.msk.msra.mxu1 %vm8680_vm9, %v9814_v26  ;;  %vm8696_vm12 = vmpackc.low %vm3147_vm5, %vm3131_vm4  ;;  %6096 = vmatmul.bf16.vlgmr.msrb.gmra.mxu2 %v10357_v47  ;;  %vm2843_vm13 = vcmp.eq.s32.totalorder %v1803_v39, %v10488_v25  ;;  %v2075_v42 = vld [vmem:[#allocation3 + $0xe80] sm:$0xff]  ;;  %vm3099_vm0 = vcmp.eq.s32.totalorder %v2059_v41, %v10488_v25  ;;  %v2315_v43 = vld [vmem:[#allocation3 + $0x17c8] sm:$0xff] }
 0x494   : > { %8697 = vmatpush.bf16.msk.msra.mxu2 %vm8696_vm12, %v9814_v26  ;;  %vm8712_vm15 = vmpackc.low %vm3403_vm8, %vm3387_vm7  ;;  %6110 = vmatmul.bf16.vlgmr.msrb.gmra.mxu3 %v10397_v58  ;;  %vm3115_vm1 = vcmp.eq.s32.totalorder %v2075_v42, %v10488_v25  ;;  %v2331_v44 = vld [vmem:[#allocation3 + $0x958] sm:$0xff]  ;;  %vm3355_vm3 = vcmp.eq.s32.totalorder %v2315_v43, %v10488_v25  ;;  %v1515_v45 = vld [vmem:[#allocation3 + $0x1728] sm:$0xff] }
 0x495   : > { %8713 = vmatpush.bf16.msk.msra.mxu3 %vm8712_vm15, %v9814_v26  ;;  %vm8666_vm2 = vmpackc.low %vm2603_vm11, %vm2587_vm10  ;;  %vm3371_vm4 = vcmp.eq.s32.totalorder %v2331_v44, %v10488_v25  ;;  %6068 = vmatmul.bf16.vlgmr.msrb.gmra.mxu0 %v10408_v61  ;;  %v1531_v46 = vld [vmem:[#allocation3 + $0x1608] sm:$0xff]  ;;  %vm2555_vm6 = vcmp.eq.s32.totalorder %v1515_v45, %v10488_v25  ;;  %v1771_v48 = vld [vmem:[#allocation3 + $0x11e0] sm:$0xff] }
 0x496   : > { %8667 = vmatpush.bf16.msk.msra.mxu0 %vm8666_vm2, %v9814_v26  ;;  %vm8682_vm5 = vmpackc.low %vm2859_vm14, %vm2843_vm13  ;;  %6082 = vmatmul.bf16.vlgmr.msrb.gmra.mxu1 %v10419_v0  ;;  %vm2571_vm7 = vcmp.eq.s32.totalorder %v1531_v46, %v10488_v25  ;;  %v1787_v49 = vld [vmem:[#allocation3 + $0xda8] sm:$0xff]  ;;  %vm2811_vm9 = vcmp.eq.s32.totalorder %v1771_v48, %v10488_v25  ;;  %v2027_v50 = vld [vmem:[#allocation3 + $0xc40] sm:$0xff] }
 0x497   : > { %8683 = vmatpush.bf16.msk.msra.mxu1 %vm8682_vm5, %v9814_v26  ;;  %vm8698_vm8 = vmpackc.low %vm3115_vm1, %vm3099_vm0  ;;  %vm2827_vm10 = vcmp.eq.s32.totalorder %v1787_v49, %v10488_v25  ;;  %v2043_v51 = vld [vmem:[#allocation3 + $0x1de0] sm:$0xff]  ;;  %vm3067_vm12 = vcmp.eq.s32.totalorder %v2027_v50, %v10488_v25  ;;  %v1483_v54 = vld [vmem:[#allocation3 + $0xad0] sm:$0xff] }
 0x498   : > { %8699 = vmatpush.bf16.msk.msra.mxu2 %vm8698_vm8, %v9814_v26  ;;  %vm8714_vm11 = vmpackc.low %vm3371_vm4, %vm3355_vm3  ;;  %vm3083_vm13 = vcmp.eq.s32.totalorder %v2043_v51, %v10488_v25  ;;  %v2283_v52 = vld [vmem:[#allocation3 + $0x15e0] sm:$0xff]  ;;  %v1499_v55 = vld [vmem:[#allocation3 + $0x1bc8] sm:$0xff]  ;;  %vm2523_vm2 = vcmp.eq.s32.totalorder %v1483_v54, %v10488_v25 }
 0x499   : > { %v2299_v53 = vld [vmem:[#allocation3 + $0x260] sm:$0xff]  ;;  %8715 = vmatpush.bf16.msk.msra.mxu3 %vm8714_vm11, %v9814_v26  ;;  %vm8668_vm14 = vmpackc.low %vm2571_vm7, %vm2555_vm6  ;;  %vm3323_vm15 = vcmp.eq.s32.totalorder %v2283_v52, %v10488_v25  ;;  %vm2539_vm3 = vcmp.eq.s32.totalorder %v1499_v55, %v10488_v25  ;;  %v1739_v56 = vld [vmem:[#allocation3 + $0x808] sm:$0xff] }
 0x49a   : > { %vm3339_vm0 = vcmp.eq.s32.totalorder %v2299_v53, %v10488_v25  ;;  %8669 = vmatpush.bf16.msk.msra.mxu0 %vm8668_vm14, %v9814_v26  ;;  %vm8684_vm1 = vmpackc.low %vm2827_vm10, %vm2811_vm9  ;;  %v1755_v57 = vld [vmem:[#allocation3 + $0x13a0] sm:$0xff]  ;;  %vm2779_vm5 = vcmp.eq.s32.totalorder %v1739_v56, %v10488_v25  ;;  %v1995_v59 = vld [vmem:[#allocation3 + $0x138] sm:$0xff] }
 0x49b   : > { %8685 = vmatpush.bf16.msk.msra.mxu1 %vm8684_vm1, %v9814_v26  ;;  %vm8700_vm4 = vmpackc.low %vm3083_vm13, %vm3067_vm12  ;;  %vm2795_vm6 = vcmp.eq.s32.totalorder %v1755_v57, %v10488_v25  ;;  %v2011_v60 = vld [vmem:[#allocation3 + $0x14d0] sm:$0xff]  ;;  %vm3035_vm8 = vcmp.eq.s32.totalorder %v1995_v59, %v10488_v25  ;;  %v1451_v1 = vld [vmem:[#allocation3 + $0x368] sm:$0xff] }
 0x49c   : > { %8701 = vmatpush.bf16.msk.msra.mxu2 %vm8700_vm4, %v9814_v26  ;;  %vm8716_vm7 = vmpackc.low %vm3339_vm0, %vm3323_vm15  ;;  %vm3051_vm9 = vcmp.eq.s32.totalorder %v2011_v60, %v10488_v25  ;;  %v2251_v62 = vld [vmem:[#allocation3 + $0xab0] sm:$0xff]  ;;  %v1467_v2 = vld [vmem:[#allocation3 + $0x268] sm:$0xff]  ;;  %vm2491_vm14 = vcmp.eq.s32.totalorder %v1451_v1, %v10488_v25 }
 0x49d   : > { %v2267_v63 = vld [vmem:[#allocation3 + $0x10f0] sm:$0xff]  ;;  %8717 = vmatpush.bf16.msk.msra.mxu3 %vm8716_vm7, %v9814_v26  ;;  %vm8670_vm10 = vmpackc.low %vm2539_vm3, %vm2523_vm2  ;;  %vm3291_vm11 = vcmp.eq.s32.totalorder %v2251_v62, %v10488_v25  ;;  %vm2507_vm15 = vcmp.eq.s32.totalorder %v1467_v2, %v10488_v25  ;;  %v1723_v4 = vld [vmem:[#allocation3 + $0x1dd8] sm:$0xff] }
 0x49e   : > { %vm3307_vm12 = vcmp.eq.s32.totalorder %v2267_v63, %v10488_v25  ;;  %8671 = vmatpush.bf16.msk.msra.mxu0 %vm8670_vm10, %v9814_v26  ;;  %vm8686_vm13 = vmpackc.low %vm2795_vm6, %vm2779_vm5  ;;  %v1707_v3 = vld [vmem:[#allocation3 + $0x1ff0] sm:$0xff]  ;;  %vm2763_vm2 = vcmp.eq.s32.totalorder %v1723_v4, %v10488_v25  ;;  %v1979_v8 = vld [vmem:[#allocation3 + $0xe28] sm:$0xff] }
 0x49f   : > { %8687 = vmatpush.bf16.msk.msra.mxu1 %vm8686_vm13, %v9814_v26  ;;  %vm8702_vm0 = vmpackc.low %vm3051_vm9, %vm3035_vm8  ;;  %vm2747_vm1 = vcmp.eq.s32.totalorder %v1707_v3, %v10488_v25  ;;  %v1963_v6 = vld [vmem:[#allocation3 + $0x1610] sm:$0xff]  ;;  %vm3019_vm5 = vcmp.eq.s32.totalorder %v1979_v8, %v10488_v25  ;;  %v2219_v9 = vld [vmem:[#allocation3 + $0x780] sm:$0xff] }
 0x4a0   : > { %8703 = vmatpush.bf16.msk.msra.mxu2 %vm8702_vm0, %v9814_v26  ;;  %vm8718_vm3 = vmpackc.low %vm3307_vm12, %vm3291_vm11  ;;  %vm3003_vm4 = vcmp.eq.s32.totalorder %v1963_v6, %v10488_v25  ;;  %v2235_v10 = vld [vmem:[#allocation3 + $0xf98] sm:$0xff]  ;;  %vm3259_vm7 = vcmp.eq.s32.totalorder %v2219_v9, %v10488_v25  ;;  %v1419_v11 = vld [vmem:[#allocation3 + $0x1ba8] sm:$0xff] }
 0x4a1   : > { %8719 = vmatpush.bf16.msk.msra.mxu3 %vm8718_vm3, %v9814_v26  ;;  %vm8672_vm6 = vmpackc.low %vm2507_vm15, %vm2491_vm14  ;;  %vm3275_vm8 = vcmp.eq.s32.totalorder %v2235_v10, %v10488_v25  ;;  %v1435_v12 = vld [vmem:[#allocation3 + $0x1058] sm:$0xff]  ;;  %vm2459_vm10 = vcmp.eq.s32.totalorder %v1419_v11, %v10488_v25  ;;  %v1691_v16 = vld [vmem:[#allocation3 + $0xfc8] sm:$0xff] }
 0x4a2   : > { %8673 = vmatpush.bf16.msk.msra.mxu0 %vm8672_vm6, %v9814_v26  ;;  %vm8688_vm9 = vmpackc.low %vm2763_vm2, %vm2747_vm1  ;;  %vm2475_vm11 = vcmp.eq.s32.totalorder %v1435_v12, %v10488_v25  ;;  %v1675_v15 = vld [vmem:[#allocation3 + $0x2b8] sm:$0xff]  ;;  %vm2731_vm14 = vcmp.eq.s32.totalorder %v1691_v16, %v10488_v25  ;;  %v1947_v18 = vld [vmem:[#allocation3 + $0x650] sm:$0xff] }
 0x4a3   : > { %8689 = vmatpush.bf16.msk.msra.mxu1 %vm8688_vm9, %v9814_v26  ;;  %vm8704_vm12 = vmpackc.low %vm3019_vm5, %vm3003_vm4  ;;  %vm2715_vm13 = vcmp.eq.s32.totalorder %v1675_v15, %v10488_v25  ;;  %v1931_v17 = vld [vmem:[#allocation3 + $0x7f8] sm:$0xff]  ;;  %vm2987_vm1 = vcmp.eq.s32.totalorder %v1947_v18, %v10488_v25  ;;  %v2187_v19 = vld [vmem:[#allocation3 + $0xde8] sm:$0xff] }
 0x4a4   : > { %8705 = vmatpush.bf16.msk.msra.mxu2 %vm8704_vm12, %v9814_v26  ;;  %vm8720_vm15 = vmpackc.low %vm3275_vm8, %vm3259_vm7  ;;  %vm2971_vm0 = vcmp.eq.s32.totalorder %v1931_v17, %v10488_v25  ;;  %v2203_v20 = vld [vmem:[#allocation3 + $0x1c38] sm:$0xff]  ;;  %vm3227_vm3 = vcmp.eq.s32.totalorder %v2187_v19, %v10488_v25  ;;  %v1387_v21 = vld [vmem:[#allocation3 + $0x7e0] sm:$0xff] }
 0x4a5   : > { %8721 = vmatpush.bf16.msk.msra.mxu3 %vm8720_vm15, %v9814_v26  ;;  %vm8674_vm2 = vmpackc.low %vm2475_vm11, %vm2459_vm10  ;;  %vm3243_vm4 = vcmp.eq.s32.totalorder %v2203_v20, %v10488_v25  ;;  %v1403_v22 = vld [vmem:[#allocation3 + $0xd28] sm:$0xff]  ;;  %vm2427_vm6 = vcmp.eq.s32.totalorder %v1387_v21, %v10488_v25  ;;  %v1915_v28 = vld [vmem:[#allocation3 + $0x1b8] sm:$0xff] }
 0x4a6   : > { %8675 = vmatpush.bf16.msk.msra.mxu0 %vm8674_vm2, %v9814_v26  ;;  %vm8690_vm5 = vmpackc.low %vm2731_vm14, %vm2715_vm13  ;;  %vm2443_vm7 = vcmp.eq.s32.totalorder %v1403_v22, %v10488_v25  ;;  %v1643_v23 = vld [vmem:[#allocation3 + $0x788] sm:$0xff]  ;;  %vm2955_vm13 = vcmp.eq.s32.totalorder %v1915_v28, %v10488_v25  ;;  %v2155_v29 = vld [vmem:[#allocation3 + $0x1f20] sm:$0xff] }
 0x4a7   : > { %v1659_v24 = vld [vmem:[#allocation3 + $0x1988] sm:$0xff]  ;;  %8691 = vmatpush.bf16.msk.msra.mxu1 %vm8690_vm5, %v9814_v26  ;;  %vm8706_vm8 = vmpackc.low %vm2987_vm1, %vm2971_vm0  ;;  %vm2683_vm9 = vcmp.eq.s32.totalorder %v1643_v23, %v10488_v25  ;;  %v2171_v14 = vld [vmem:[#allocation3 + $0x1e58] sm:$0xff]  ;;  %vm3195_vm15 = vcmp.eq.s32.totalorder %v2155_v29, %v10488_v25 }
 0x4a8   : > { %vm2699_vm10 = vcmp.eq.s32.totalorder %v1659_v24, %v10488_v25  ;;  %v1899_v27 = vld [vmem:[#allocation3 + $0x1468] sm:$0xff]  ;;  %8707 = vmatpush.bf16.msk.msra.mxu2 %vm8706_vm8, %v9814_v26  ;;  %vm8722_vm11 = vmpackc.low %vm3243_vm4, %vm3227_vm3  ;;  %vm3211_vm0 = vcmp.eq.s32.totalorder %v2171_v14, %v10488_v25  ;;  %v1355_v30 = vld [vmem:[#allocation3 + $0x1b50] sm:$0xff] }
 0x4a9   : > { %vm2939_vm12 = vcmp.eq.s32.totalorder %v1899_v27, %v10488_v25  ;;  %8723 = vmatpush.bf16.msk.msra.mxu3 %vm8722_vm11, %v9814_v26  ;;  %vm8676_vm14 = vmpackc.low %vm2443_vm7, %vm2427_vm6  ;;  %v1371_v31 = vld [vmem:[#allocation3 + $0x1d40] sm:$0xff]  ;;  %vm2395_vm2 = vcmp.eq.s32.totalorder %v1355_v30, %v10488_v25  ;;  %v1611_v32 = vld [vmem:[#allocation3 + $0x1bd8] sm:$0xff] }
 0x4aa   : > { %8677 = vmatpush.bf16.msk.msra.mxu0 %vm8676_vm14, %v9814_v26  ;;  %vm8692_vm1 = vmpackc.low %vm2699_vm10, %vm2683_vm9  ;;  %vm2411_vm3 = vcmp.eq.s32.totalorder %v1371_v31, %v10488_v25  ;;  %v1627_v33 = vld [vmem:[#allocation3 + $0x1538] sm:$0xff]  ;;  %vm2651_vm5 = vcmp.eq.s32.totalorder %v1611_v32, %v10488_v25  ;;  %v1867_v35 = vld [vmem:[#allocation3 + $0x1840] sm:$0xff] }
 0x4ab   : > { %8693 = vmatpush.bf16.msk.msra.mxu1 %vm8692_vm1, %v9814_v26  ;;  %vm8708_vm4 = vmpackc.low %vm2955_vm13, %vm2939_vm12  ;;  %vm2667_vm6 = vcmp.eq.s32.totalorder %v1627_v33, %v10488_v25  ;;  %v1883_v36 = vld [vmem:[#allocation3 + $0x1b0] sm:$0xff]  ;;  %vm2907_vm8 = vcmp.eq.s32.totalorder %v1867_v35, %v10488_v25  ;;  %v2123_v37 = vld [vmem:[#allocation3 + $0x888] sm:$0xff] }
 0x4ac   : > { %8709 = vmatpush.bf16.msk.msra.mxu2 %vm8708_vm4, %v9814_v26  ;;  %vm8724_vm7 = vmpackc.low %vm3211_vm0, %vm3195_vm15  ;;  %vm2923_vm9 = vcmp.eq.s32.totalorder %v1883_v36, %v10488_v25  ;;  %v2139_v38 = vld [vmem:[#allocation3 + $0xf60] sm:$0xff]  ;;  %vm3163_vm11 = vcmp.eq.s32.totalorder %v2123_v37, %v10488_v25  ;;  %v1580_v13 = vld [vmem:[#allocation3 + $0x1918] sm:$0xff] }
 0x4ad   : > { %8725 = vmatpush.bf16.msk.msra.mxu3 %vm8724_vm7, %v9814_v26  ;;  %vm8678_vm10 = vmpackc.low %vm2411_vm3, %vm2395_vm2  ;;  %vm3179_vm12 = vcmp.eq.s32.totalorder %v2139_v38, %v10488_v25  ;;  %v1596_v39 = vld [vmem:[#allocation3 + $0x1e10] sm:$0xff]  ;;  %vm2620_vm14 = vcmp.eq.s32.totalorder %v1580_v13, %v10719_v34  ;;  %v1852_v41 = vld [vmem:[#allocation3 + $0xd80] sm:$0xff] }
 0x4ae   : > { %8679 = vmatpush.bf16.msk.msra.mxu0 %vm8678_vm10, %v9814_v26  ;;  %vm8694_vm13 = vmpackc.low %vm2667_vm6, %vm2651_vm5  ;;  %vm2636_vm15 = vcmp.eq.s32.totalorder %v1596_v39, %v10719_v34  ;;  %v1836_v40 = vld [vmem:[#allocation3 + $0xf90] sm:$0xff]  ;;  %vm2892_vm2 = vcmp.eq.s32.totalorder %v1852_v41, %v10719_v34  ;;  %v2108_v43 = vld [vmem:[#allocation3 + $0x1ce8] sm:$0xff] }
 0x4af   : > { %8695 = vmatpush.bf16.msk.msra.mxu1 %vm8694_vm13, %v9814_v26  ;;  %vm8710_vm0 = vmpackc.low %vm2923_vm9, %vm2907_vm8  ;;  %vm2876_vm1 = vcmp.eq.s32.totalorder %v1836_v40, %v10719_v34  ;;  %v2092_v42 = vld [vmem:[#allocation3 + $0x1c90] sm:$0xff]  ;;  %vm3148_vm5 = vcmp.eq.s32.totalorder %v2108_v43, %v10719_v34  ;;  %v2364_v45 = vld [vmem:[#allocation3 + $0x1618] sm:$0xff] }
 0x4b0   : > { %8711 = vmatpush.bf16.msk.msra.mxu2 %vm8710_vm0, %v9814_v26  ;;  %vm8726_vm3 = vmpackc.low %vm3179_vm12, %vm3163_vm11  ;;  %vm3132_vm4 = vcmp.eq.s32.totalorder %v2092_v42, %v10719_v34  ;;  %v2348_v44 = vld [vmem:[#allocation3 + $0x1e70] sm:$0xff]  ;;  %vm3404_vm8 = vcmp.eq.s32.totalorder %v2364_v45, %v10719_v34  ;;  %v1548_v46 = vld [vmem:[#allocation3 + $0x12c8] sm:$0xff]  ;;  %v10950_v42 = vperm.slane %v10054_v7, 4 }
 0x4b1   : > { %8727 = vmatpush.bf16.msk.msra.mxu3 %vm8726_vm3, %v9814_v26  ;;  %vm8728_vm6 = vmpackc.low %vm2636_vm15, %vm2620_vm14  ;;  %vm3388_vm7 = vcmp.eq.s32.totalorder %v2348_v44, %v10719_v34  ;;  %v1564_v25 = vld [vmem:[#allocation3 + $0x1b60] sm:$0xff]  ;;  %6124 = vmatmul.bf16.vlgmr.msra.gmra.mxu0 %v10408_v61  ;;  %vm2588_vm10 = vcmp.eq.s32.totalorder %v1548_v46, %v10719_v34  ;;  %v1820_v49 = vld [vmem:[#allocation3 + $0x1c8] sm:$0xff] }
 0x4b2   : > { %8729 = vmatpush.bf16.msk.msrb.mxu0 %vm8728_vm6, %v9814_v26  ;;  %vm8744_vm9 = vmpackc.low %vm2892_vm2, %vm2876_vm1  ;;  %vm2604_vm11 = vcmp.eq.s32.totalorder %v1564_v25, %v10719_v34  ;;  %v1804_v48 = vld [vmem:[#allocation3 + $0x100] sm:$0xff]  ;;  %6138 = vmatmul.bf16.vlgmr.msra.gmra.mxu1 %v10419_v0  ;;  %vm2860_vm14 = vcmp.eq.s32.totalorder %v1820_v49, %v10719_v34  ;;  %v2076_v51 = vld [vmem:[#allocation3 + $0xdb0] sm:$0xff] }
 0x4b3   : > { %8745 = vmatpush.bf16.msk.msrb.mxu1 %vm8744_vm9, %v9814_v26  ;;  %vm8760_vm12 = vmpackc.low %vm3148_vm5, %vm3132_vm4  ;;  %vm2844_vm13 = vcmp.eq.s32.totalorder %v1804_v48, %v10719_v34  ;;  %v2060_v50 = vld [vmem:[#allocation3 + $0x1380] sm:$0xff]  ;;  %6152 = vmatmul.bf16.vlgmr.msra.gmra.mxu2 %v10357_v47  ;;  %vm3116_vm1 = vcmp.eq.s32.totalorder %v2076_v51, %v10719_v34  ;;  %v2332_v53 = vld [vmem:[#allocation3 + $0x7b0] sm:$0xff] }
 0x4b4   : > { %8761 = vmatpush.bf16.msk.msrb.mxu2 %vm8760_vm12, %v9814_v26  ;;  %vm8776_vm15 = vmpackc.low %vm3404_vm8, %vm3388_vm7  ;;  %vm3100_vm0 = vcmp.eq.s32.totalorder %v2060_v50, %v10719_v34  ;;  %v2316_v52 = vld [vmem:[#allocation3 + $0xea0] sm:$0xff]  ;;  %6166 = vmatmul.bf16.vlgmr.msra.gmra.mxu3 %v10397_v58  ;;  %vm3372_vm4 = vcmp.eq.s32.totalorder %v2332_v53, %v10719_v34  ;;  %v1532_v55 = vld [vmem:[#allocation3 + $0xbc8] sm:$0xff] }
 0x4b5   : > { %8777 = vmatpush.bf16.msk.msrb.mxu3 %vm8776_vm15, %v9814_v26  ;;  %vm8730_vm2 = vmpackc.low %vm2604_vm11, %vm2588_vm10  ;;  %vm3356_vm3 = vcmp.eq.s32.totalorder %v2316_v52, %v10719_v34  ;;  %v1516_v54 = vld [vmem:[#allocation3 + $0x1ca0] sm:$0xff]  ;;  %vm2572_vm7 = vcmp.eq.s32.totalorder %v1532_v55, %v10719_v34  ;;  %v1772_v56 = vld [vmem:[#allocation3 + $0xd78] sm:$0xff] }
 0x4b6   : > { %8731 = vmatpush.bf16.msk.msrb.mxu0 %vm8730_vm2, %v9814_v26  ;;  %vm8746_vm5 = vmpackc.low %vm2860_vm14, %vm2844_vm13  ;;  %vm2556_vm6 = vcmp.eq.s32.totalorder %v1516_v54, %v10719_v34  ;;  %v1788_v57 = vld [vmem:[#allocation3 + $0x12f8] sm:$0xff]  ;;  %vm2812_vm9 = vcmp.eq.s32.totalorder %v1772_v56, %v10719_v34  ;;  %v2044_v60 = vld [vmem:[#allocation3 + $0x19e0] sm:$0xff] }
 0x4b7   : > { %8747 = vmatpush.bf16.msk.msrb.mxu1 %vm8746_vm5, %v9814_v26  ;;  %vm8762_vm8 = vmpackc.low %vm3116_vm1, %vm3100_vm0  ;;  %vm2828_vm10 = vcmp.eq.s32.totalorder %v1788_v57, %v10719_v34  ;;  %v2028_v59 = vld [vmem:[#allocation3 + $0x478] sm:$0xff]  ;;  %vm3084_vm13 = vcmp.eq.s32.totalorder %v2044_v60, %v10719_v34  ;;  %v2300_v63 = vld [vmem:[#allocation3 + $0x1808] sm:$0xff] }
 0x4b8   : > { %8763 = vmatpush.bf16.msk.msrb.mxu2 %vm8762_vm8, %v9814_v26  ;;  %vm8778_vm11 = vmpackc.low %vm3372_vm4, %vm3356_vm3  ;;  %vm3068_vm12 = vcmp.eq.s32.totalorder %v2028_v59, %v10719_v34  ;;  %v2284_v62 = vld [vmem:[#allocation3 + $0x1f98] sm:$0xff]  ;;  %vm3340_vm0 = vcmp.eq.s32.totalorder %v2300_v63, %v10719_v34  ;;  %v1740_v3 = vld [vmem:[#allocation3 + $0x20] sm:$0xff] }
 0x4b9   : > { %8779 = vmatpush.bf16.msk.msrb.mxu3 %vm8778_vm11, %v9814_v26  ;;  %vm8732_vm14 = vmpackc.low %vm2572_vm7, %vm2556_vm6  ;;  %vm3324_vm15 = vcmp.eq.s32.totalorder %v2284_v62, %v10719_v34  ;;  %v1484_v1 = vld [vmem:[#allocation3 + $0x12d8] sm:$0xff]  ;;  %v1756_v4 = vld [vmem:[#allocation3 + $0x5d0] sm:$0xff]  ;;  %vm2780_vm5 = vcmp.eq.s32.totalorder %v1740_v3, %v10719_v34 }
 0x4ba   : > { %v1500_v2 = vld [vmem:[#allocation3 + $0x1c58] sm:$0xff]  ;;  %8733 = vmatpush.bf16.msk.msrb.mxu0 %vm8732_vm14, %v9814_v26  ;;  %vm8748_vm1 = vmpackc.low %vm2828_vm10, %vm2812_vm9  ;;  %vm2524_vm2 = vcmp.eq.s32.totalorder %v1484_v1, %v10719_v34  ;;  %vm2796_vm6 = vcmp.eq.s32.totalorder %v1756_v4, %v10719_v34  ;;  %v1996_v6 = vld [vmem:[#allocation3 + $0x1ef0] sm:$0xff] }
 0x4bb   : > { %vm2540_vm3 = vcmp.eq.s32.totalorder %v1500_v2, %v10719_v34  ;;  %8749 = vmatpush.bf16.msk.msrb.mxu1 %vm8748_vm1, %v9814_v26  ;;  %vm8764_vm4 = vmpackc.low %vm3084_vm13, %vm3068_vm12  ;;  %v2012_v8 = vld [vmem:[#allocation3 + $0x280] sm:$0xff]  ;;  %vm3036_vm8 = vcmp.eq.s32.totalorder %v1996_v6, %v10719_v34  ;;  %v2252_v9 = vld [vmem:[#allocation3 + $0x5a8] sm:$0xff] }
 0x4bc   : > { %8765 = vmatpush.bf16.msk.msrb.mxu2 %vm8764_vm4, %v9814_v26  ;;  %vm8780_vm7 = vmpackc.low %vm3340_vm0, %vm3324_vm15  ;;  %vm3052_vm9 = vcmp.eq.s32.totalorder %v2012_v8, %v10719_v34  ;;  %v2268_v10 = vld [vmem:[#allocation3 + $0x2e0] sm:$0xff]  ;;  %vm3292_vm11 = vcmp.eq.s32.totalorder %v2252_v9, %v10719_v34  ;;  %v1468_v12 = vld [vmem:[#allocation3 + $0x1a10] sm:$0xff] }
 0x4bd   : > { %8781 = vmatpush.bf16.msk.msrb.mxu3 %vm8780_vm7, %v9814_v26  ;;  %vm8734_vm10 = vmpackc.low %vm2540_vm3, %vm2524_vm2  ;;  %vm3308_vm12 = vcmp.eq.s32.totalorder %v2268_v10, %v10719_v34  ;;  %v1452_v11 = vld [vmem:[#allocation3 + $0xa40] sm:$0xff]  ;;  %vm2508_vm15 = vcmp.eq.s32.totalorder %v1468_v12, %v10719_v34  ;;  %v1708_v15 = vld [vmem:[#allocation3 + $0x970] sm:$0xff] }
 0x4be   : > { %8735 = vmatpush.bf16.msk.msrb.mxu0 %vm8734_vm10, %v9814_v26  ;;  %vm8750_vm13 = vmpackc.low %vm2796_vm6, %vm2780_vm5  ;;  %vm2492_vm14 = vcmp.eq.s32.totalorder %v1452_v11, %v10719_v34  ;;  %v1724_v16 = vld [vmem:[#allocation3 + $0x4a8] sm:$0xff]  ;;  %vm2748_vm1 = vcmp.eq.s32.totalorder %v1708_v15, %v10719_v34  ;;  %v1964_v17 = vld [vmem:[#allocation3 + $0xc38] sm:$0xff] }
 0x4bf   : > { %8751 = vmatpush.bf16.msk.msrb.mxu1 %vm8750_vm13, %v9814_v26  ;;  %vm8766_vm0 = vmpackc.low %vm3052_vm9, %vm3036_vm8  ;;  %vm2764_vm2 = vcmp.eq.s32.totalorder %v1724_v16, %v10719_v34  ;;  %v1980_v18 = vld [vmem:[#allocation3 + $0x1080] sm:$0xff]  ;;  %vm3004_vm4 = vcmp.eq.s32.totalorder %v1964_v17, %v10719_v34  ;;  %v2220_v19 = vld [vmem:[#allocation3 + $0x1698] sm:$0xff] }
 0x4c0   : > { %8767 = vmatpush.bf16.msk.msrb.mxu2 %vm8766_vm0, %v9814_v26  ;;  %vm8782_vm3 = vmpackc.low %vm3308_vm12, %vm3292_vm11  ;;  %vm3020_vm5 = vcmp.eq.s32.totalorder %v1980_v18, %v10719_v34  ;;  %v2236_v20 = vld [vmem:[#allocation3 + $0xa50] sm:$0xff]  ;;  %vm3260_vm7 = vcmp.eq.s32.totalorder %v2220_v19, %v10719_v34  ;;  %v1436_v22 = vld [vmem:[#allocation3 + $0xdc8] sm:$0xff] }
 0x4c1   : > { %8783 = vmatpush.bf16.msk.msrb.mxu3 %vm8782_vm3, %v9814_v26  ;;  %vm8736_vm6 = vmpackc.low %vm2508_vm15, %vm2492_vm14  ;;  %vm3276_vm8 = vcmp.eq.s32.totalorder %v2236_v20, %v10719_v34  ;;  %v1420_v21 = vld [vmem:[#allocation3 + $0x550] sm:$0xff]  ;;  %vm2476_vm11 = vcmp.eq.s32.totalorder %v1436_v22, %v10719_v34  ;;  %v1676_v23 = vld [vmem:[#allocation3 + $0xf68] sm:$0xff] }
 0x4c2   : > { %8737 = vmatpush.bf16.msk.msrb.mxu0 %vm8736_vm6, %v9814_v26  ;;  %vm8752_vm9 = vmpackc.low %vm2764_vm2, %vm2748_vm1  ;;  %vm2460_vm10 = vcmp.eq.s32.totalorder %v1420_v21, %v10719_v34  ;;  %v1692_v24 = vld [vmem:[#allocation3 + $0x1990] sm:$0xff]  ;;  %vm2716_vm13 = vcmp.eq.s32.totalorder %v1676_v23, %v10719_v34  ;;  %v1948_v28 = vld [vmem:[#allocation3 + $0x380] sm:$0xff] }
 0x4c3   : > { %8753 = vmatpush.bf16.msk.msrb.mxu1 %vm8752_vm9, %v9814_v26  ;;  %vm8768_vm12 = vmpackc.low %vm3020_vm5, %vm3004_vm4  ;;  %vm2732_vm14 = vcmp.eq.s32.totalorder %v1692_v24, %v10719_v34  ;;  %v1932_v27 = vld [vmem:[#allocation3 + $0x1110] sm:$0xff]  ;;  %vm2988_vm1 = vcmp.eq.s32.totalorder %v1948_v28, %v10719_v34  ;;  %v2188_v29 = vld [vmem:[#allocation3 + $0xf80] sm:$0xff] }
 0x4c4   : > { %8769 = vmatpush.bf16.msk.msrb.mxu2 %vm8768_vm12, %v9814_v26  ;;  %vm8784_vm15 = vmpackc.low %vm3276_vm8, %vm3260_vm7  ;;  %vm2972_vm0 = vcmp.eq.s32.totalorder %v1932_v27, %v10719_v34  ;;  %v2204_v14 = vld [vmem:[#allocation3 + $0x1f48] sm:$0xff]  ;;  %vm3228_vm3 = vcmp.eq.s32.totalorder %v2188_v29, %v10719_v34  ;;  %v1388_v30 = vld [vmem:[#allocation3 + $0x14f0] sm:$0xff] }
 0x4c5   : > { %8785 = vmatpush.bf16.msk.msrb.mxu3 %vm8784_vm15, %v9814_v26  ;;  %vm8738_vm2 = vmpackc.low %vm2476_vm11, %vm2460_vm10  ;;  %vm3244_vm4 = vcmp.eq.s32.totalorder %v2204_v14, %v10719_v34  ;;  %v1404_v31 = vld [vmem:[#allocation3 + $0x1648] sm:$0xff]  ;;  %vm2428_vm6 = vcmp.eq.s32.totalorder %v1388_v30, %v10719_v34  ;;  %v1644_v32 = vld [vmem:[#allocation3 + $0xd60] sm:$0xff] }
 0x4c6   : > { %8739 = vmatpush.bf16.msk.msrb.mxu0 %vm8738_vm2, %v9814_v26  ;;  %vm8754_vm5 = vmpackc.low %vm2732_vm14, %vm2716_vm13  ;;  %vm2444_vm7 = vcmp.eq.s32.totalorder %v1404_v31, %v10719_v34  ;;  %v1660_v33 = vld [vmem:[#allocation3 + $0xc50] sm:$0xff]  ;;  %vm2684_vm9 = vcmp.eq.s32.totalorder %v1644_v32, %v10719_v34  ;;  %v1900_v35 = vld [vmem:[#allocation3 + $0x6e8] sm:$0xff] }
 0x4c7   : > { %8755 = vmatpush.bf16.msk.msrb.mxu1 %vm8754_vm5, %v9814_v26  ;;  %vm8770_vm8 = vmpackc.low %vm2988_vm1, %vm2972_vm0  ;;  %vm2700_vm10 = vcmp.eq.s32.totalorder %v1660_v33, %v10719_v34  ;;  %v1916_v36 = vld [vmem:[#allocation3 + $0xb90] sm:$0xff]  ;;  %vm2940_vm12 = vcmp.eq.s32.totalorder %v1900_v35, %v10719_v34  ;;  %v2156_v37 = vld [vmem:[#allocation3 + $0x438] sm:$0xff] }
 0x4c8   : > { %8771 = vmatpush.bf16.msk.msrb.mxu2 %vm8770_vm8, %v9814_v26  ;;  %vm8786_vm11 = vmpackc.low %vm3244_vm4, %vm3228_vm3  ;;  %vm2956_vm13 = vcmp.eq.s32.totalorder %v1916_v36, %v10719_v34  ;;  %v2172_v38 = vld [vmem:[#allocation3 + $0x12d0] sm:$0xff]  ;;  %vm3196_vm15 = vcmp.eq.s32.totalorder %v2156_v37, %v10719_v34  ;;  %v1356_v13 = vld [vmem:[#allocation3 + $0x8e0] sm:$0xff] }
 0x4c9   : > { %8787 = vmatpush.bf16.msk.msrb.mxu3 %vm8786_vm11, %v9814_v26  ;;  %vm8740_vm14 = vmpackc.low %vm2444_vm7, %vm2428_vm6  ;;  %vm3212_vm0 = vcmp.eq.s32.totalorder %v2172_v38, %v10719_v34  ;;  %v1372_v39 = vld [vmem:[#allocation3 + $0x13c0] sm:$0xff]  ;;  %vm2396_vm2 = vcmp.eq.s32.totalorder %v1356_v13, %v10719_v34  ;;  %v1628_v41 = vld [vmem:[#allocation3 + $0xf50] sm:$0xff] }
 0x4ca   : > { %8741 = vmatpush.bf16.msk.msrb.mxu0 %vm8740_vm14, %v9814_v26  ;;  %vm8756_vm1 = vmpackc.low %vm2700_vm10, %vm2684_vm9  ;;  %vm2412_vm3 = vcmp.eq.s32.totalorder %v1372_v39, %v10719_v34  ;;  %v1612_v40 = vld [vmem:[#allocation3 + $0x17a0] sm:$0xff]  ;;  %vm2668_vm6 = vcmp.eq.s32.totalorder %v1628_v41, %v10719_v34  ;;  %v1868_v43 = vld [vmem:[#allocation3 + $0xa68] sm:$0xff] }
 0x4cb   : > { %8757 = vmatpush.bf16.msk.msrb.mxu1 %vm8756_vm1, %v9814_v26  ;;  %vm8772_vm4 = vmpackc.low %vm2956_vm13, %vm2940_vm12  ;;  %vm2652_vm5 = vcmp.eq.s32.totalorder %v1612_v40, %v10719_v34  ;;  %v1884_v44 = vld [vmem:[#allocation3 + $0x1860] sm:$0xff]  ;;  %vm2908_vm8 = vcmp.eq.s32.totalorder %v1868_v43, %v10719_v34  ;;  %v2124_v45 = vld [vmem:[#allocation3 + $0x1148] sm:$0xff] }
 0x4cc   : > { %8773 = vmatpush.bf16.msk.msrb.mxu2 %vm8772_vm4, %v9814_v26  ;;  %vm8788_vm7 = vmpackc.low %vm3212_vm0, %vm3196_vm15  ;;  %vm2924_vm9 = vcmp.eq.s32.totalorder %v1884_v44, %v10719_v34  ;;  %v2140_v46 = vld [vmem:[#allocation3 + $0x4c0] sm:$0xff]  ;;  %vm3164_vm11 = vcmp.eq.s32.totalorder %v2124_v45, %v10719_v34  ;;  %v1581_v25 = vld [vmem:[#allocation3 + $0x11d0] sm:$0xff] }
 0x4cd   : > { %8789 = vmatpush.bf16.msk.msrb.mxu3 %vm8788_vm7, %v9814_v26  ;;  %vm8742_vm10 = vmpackc.low %vm2412_vm3, %vm2396_vm2  ;;  %vm3180_vm12 = vcmp.eq.s32.totalorder %v2140_v46, %v10719_v34  ;;  %v1597_v48 = vld [vmem:[#allocation3 + $0x828] sm:$0xff]  ;;  %vm2621_vm14 = vcmp.eq.s32.totalorder %v1581_v25, %v10950_v42  ;;  %v1837_v49 = vld [vmem:[#allocation3 + $0x1f70] sm:$0xff] }
 0x4ce   : > { %8743 = vmatpush.bf16.msk.msrb.mxu0 %vm8742_vm10, %v9814_v26  ;;  %vm8758_vm13 = vmpackc.low %vm2668_vm6, %vm2652_vm5  ;;  %vm2637_vm15 = vcmp.eq.s32.totalorder %v1597_v48, %v10950_v42  ;;  %v1853_v50 = vld [vmem:[#allocation3 + $0xd40] sm:$0xff]  ;;  %vm2877_vm1 = vcmp.eq.s32.totalorder %v1837_v49, %v10950_v42  ;;  %v2093_v51 = vld [vmem:[#allocation3 + $0xf88] sm:$0xff] }
 0x4cf   : > { %8759 = vmatpush.bf16.msk.msrb.mxu1 %vm8758_vm13, %v9814_v26  ;;  %vm8774_vm0 = vmpackc.low %vm2924_vm9, %vm2908_vm8  ;;  %vm2893_vm2 = vcmp.eq.s32.totalorder %v1853_v50, %v10950_v42  ;;  %v2109_v52 = vld [vmem:[#allocation3 + $0x1850] sm:$0xff]  ;;  %vm3133_vm4 = vcmp.eq.s32.totalorder %v2093_v51, %v10950_v42  ;;  %v2365_v54 = vld [vmem:[#allocation3 + $0x1b68] sm:$0xff]  ;;  %v11181_v51 = vperm.slane %v10054_v7, 5 }
 0x4d0   : > { %8775 = vmatpush.bf16.msk.msrb.mxu2 %vm8774_vm0, %v9814_v26  ;;  %vm8790_vm3 = vmpackc.low %vm3180_vm12, %vm3164_vm11  ;;  %vm3149_vm5 = vcmp.eq.s32.totalorder %v2109_v52, %v10950_v42  ;;  %v2349_v53 = vld [vmem:[#allocation3 + $0x1150] sm:$0xff]  ;;  %vm3405_vm8 = vcmp.eq.s32.totalorder %v2365_v54, %v10950_v42  ;;  %v1549_v55 = vld [vmem:[#allocation3 + $0xe0] sm:$0xff] }
 0x4d1   : > { %8791 = vmatpush.bf16.msk.msrb.mxu3 %vm8790_vm3, %v9814_v26  ;;  %vm8792_vm6 = vmpackc.low %vm2637_vm15, %vm2621_vm14  ;;  %vm3389_vm7 = vcmp.eq.s32.totalorder %v2349_v53, %v10950_v42  ;;  %v1565_v34 = vld [vmem:[#allocation3 + $0xe40] sm:$0xff]  ;;  %6180 = vmatmul.bf16.vlgmr.msrb.gmra.mxu0 %v10408_v61  ;;  %vm2589_vm10 = vcmp.eq.s32.totalorder %v1549_v55, %v10950_v42  ;;  %v1805_v56 = vld [vmem:[#allocation3 + $0x28] sm:$0xff] }
 0x4d2   : > { %8793 = vmatpush.bf16.msk.msra.mxu0 %vm8792_vm6, %v9814_v26  ;;  %vm8808_vm9 = vmpackc.low %vm2893_vm2, %vm2877_vm1  ;;  %vm2605_vm11 = vcmp.eq.s32.totalorder %v1565_v34, %v10950_v42  ;;  %v1821_v57 = vld [vmem:[#allocation3 + $0xe8] sm:$0xff]  ;;  %6194 = vmatmul.bf16.vlgmr.msrb.gmra.mxu1 %v10419_v0  ;;  %vm2845_vm13 = vcmp.eq.s32.totalorder %v1805_v56, %v10950_v42  ;;  %v2061_v59 = vld [vmem:[#allocation3 + $0x1278] sm:$0xff] }
 0x4d3   : > { %8809 = vmatpush.bf16.msk.msra.mxu1 %vm8808_vm9, %v9814_v26  ;;  %vm8824_vm12 = vmpackc.low %vm3149_vm5, %vm3133_vm4  ;;  %6208 = vmatmul.bf16.vlgmr.msrb.gmra.mxu2 %v10357_v47  ;;  %vm2861_vm14 = vcmp.eq.s32.totalorder %v1821_v57, %v10950_v42  ;;  %v2077_v60 = vld [vmem:[#allocation3 + $0x580] sm:$0xff]  ;;  %vm3101_vm0 = vcmp.eq.s32.totalorder %v2061_v59, %v10950_v42  ;;  %v2317_v62 = vld [vmem:[#allocation3 + $0x1470] sm:$0xff] }
 0x4d4   : > { %8825 = vmatpush.bf16.msk.msra.mxu2 %vm8824_vm12, %v9814_v26  ;;  %vm8840_vm15 = vmpackc.low %vm3405_vm8, %vm3389_vm7  ;;  %6222 = vmatmul.bf16.vlgmr.msrb.gmra.mxu3 %v10397_v58  ;;  %vm3117_vm1 = vcmp.eq.s32.totalorder %v2077_v60, %v10950_v42  ;;  %v2333_v63 = vld [vmem:[#allocation3 + $0x3e0] sm:$0xff]  ;;  %vm3357_vm3 = vcmp.eq.s32.totalorder %v2317_v62, %v10950_v42  ;;  %v1517_v1 = vld [vmem:[#allocation3 + $0x17b0] sm:$0xff] }
 0x4d5   : > { %8841 = vmatpush.bf16.msk.msra.mxu3 %vm8840_vm15, %v9814_v26  ;;  %vm8794_vm2 = vmpackc.low %vm2605_vm11, %vm2589_vm10  ;;  %vm3373_vm4 = vcmp.eq.s32.totalorder %v2333_v63, %v10950_v42  ;;  %v1533_v2 = vld [vmem:[#allocation3 + $0x870] sm:$0xff]  ;;  %vm2557_vm6 = vcmp.eq.s32.totalorder %v1517_v1, %v10950_v42  ;;  %v1789_v4 = vld [vmem:[#allocation3 + $0x1b00] sm:$0xff] }
 0x4d6   : > { %8795 = vmatpush.bf16.msk.msra.mxu0 %vm8794_vm2, %v9814_v26  ;;  %vm8810_vm5 = vmpackc.low %vm2861_vm14, %vm2845_vm13  ;;  %vm2573_vm7 = vcmp.eq.s32.totalorder %v1533_v2, %v10950_v42  ;;  %v1773_v3 = vld [vmem:[#allocation3 + $0x1050] sm:$0xff]  ;;  %vm2829_vm10 = vcmp.eq.s32.totalorder %v1789_v4, %v10950_v42  ;;  %v2029_v6 = vld [vmem:[#allocation3 + $0xf18] sm:$0xff] }
 0x4d7   : > { %8811 = vmatpush.bf16.msk.msra.mxu1 %vm8810_vm5, %v9814_v26  ;;  %vm8826_vm8 = vmpackc.low %vm3117_vm1, %vm3101_vm0  ;;  %vm2813_vm9 = vcmp.eq.s32.totalorder %v1773_v3, %v10950_v42  ;;  %v2045_v8 = vld [vmem:[#allocation3 + $0x19e8] sm:$0xff]  ;;  %vm3069_vm12 = vcmp.eq.s32.totalorder %v2029_v6, %v10950_v42  ;;  %v2301_v10 = vld [vmem:[#allocation3 + $0x1130] sm:$0xff] }
 0x4d8   : > { %8827 = vmatpush.bf16.msk.msra.mxu2 %vm8826_vm8, %v9814_v26  ;;  %vm8842_vm11 = vmpackc.low %vm3373_vm4, %vm3357_vm3  ;;  %vm3085_vm13 = vcmp.eq.s32.totalorder %v2045_v8, %v10950_v42  ;;  %v2285_v9 = vld [vmem:[#allocation3 + $0x1c88] sm:$0xff]  ;;  %vm3341_vm0 = vcmp.eq.s32.totalorder %v2301_v10, %v10950_v42  ;;  %v1485_v11 = vld [vmem:[#allocation3 + $0xf8] sm:$0xff] }
 0x4d9   : > { %8843 = vmatpush.bf16.msk.msra.mxu3 %vm8842_vm11, %v9814_v26  ;;  %vm8796_vm14 = vmpackc.low %vm2573_vm7, %vm2557_vm6  ;;  %vm3325_vm15 = vcmp.eq.s32.totalorder %v2285_v9, %v10950_v42  ;;  %v1501_v12 = vld [vmem:[#allocation3 + $0x1d60] sm:$0xff]  ;;  %vm2525_vm2 = vcmp.eq.s32.totalorder %v1485_v11, %v10950_v42  ;;  %v1741_v15 = vld [vmem:[#allocation3 + $0x1a28] sm:$0xff] }
 0x4da   : > { %8797 = vmatpush.bf16.msk.msra.mxu0 %vm8796_vm14, %v9814_v26  ;;  %vm8812_vm1 = vmpackc.low %vm2829_vm10, %vm2813_vm9  ;;  %vm2541_vm3 = vcmp.eq.s32.totalorder %v1501_v12, %v10950_v42  ;;  %v1757_v16 = vld [vmem:[#allocation3 + $0x818] sm:$0xff]  ;;  %vm2781_vm5 = vcmp.eq.s32.totalorder %v1741_v15, %v10950_v42  ;;  %v2013_v18 = vld [vmem:[#allocation3 + $0x690] sm:$0xff] }
 0x4db   : > { %8813 = vmatpush.bf16.msk.msra.mxu1 %vm8812_vm1, %v9814_v26  ;;  %vm8828_vm4 = vmpackc.low %vm3085_vm13, %vm3069_vm12  ;;  %vm2797_vm6 = vcmp.eq.s32.totalorder %v1757_v16, %v10950_v42  ;;  %v1997_v17 = vld [vmem:[#allocation3 + $0x5f8] sm:$0xff]  ;;  %vm3053_vm9 = vcmp.eq.s32.totalorder %v2013_v18, %v10950_v42  ;;  %v2253_v19 = vld [vmem:[#allocation3 + $0x12a8] sm:$0xff] }
 0x4dc   : > { %8829 = vmatpush.bf16.msk.msra.mxu2 %vm8828_vm4, %v9814_v26  ;;  %vm8844_vm7 = vmpackc.low %vm3341_vm0, %vm3325_vm15  ;;  %vm3037_vm8 = vcmp.eq.s32.totalorder %v1997_v17, %v10950_v42  ;;  %v2269_v20 = vld [vmem:[#allocation3 + $0xaa8] sm:$0xff]  ;;  %vm3293_vm11 = vcmp.eq.s32.totalorder %v2253_v19, %v10950_v42  ;;  %v1709_v23 = vld [vmem:[#allocation3 + $0x1158] sm:$0xff] }
 0x4dd   : > { %8845 = vmatpush.bf16.msk.msra.mxu3 %vm8844_vm7, %v9814_v26  ;;  %vm8798_vm10 = vmpackc.low %vm2541_vm3, %vm2525_vm2  ;;  %vm3309_vm12 = vcmp.eq.s32.totalorder %v2269_v20, %v10950_v42  ;;  %v1453_v21 = vld [vmem:[#allocation3 + $0xac8] sm:$0xff]  ;;  %vm2749_vm1 = vcmp.eq.s32.totalorder %v1709_v23, %v10950_v42  ;;  %v1981_v28 = vld [vmem:[#allocation3 + $0x318] sm:$0xff] }
 0x4de   : > { %v1469_v22 = vld [vmem:[#allocation3 + $0x1088] sm:$0xff]  ;;  %8799 = vmatpush.bf16.msk.msra.mxu0 %vm8798_vm10, %v9814_v26  ;;  %vm8814_vm13 = vmpackc.low %vm2797_vm6, %vm2781_vm5  ;;  %vm2493_vm14 = vcmp.eq.s32.totalorder %v1453_v21, %v10950_v42  ;;  %vm3021_vm5 = vcmp.eq.s32.totalorder %v1981_v28, %v10950_v42  ;;  %v2221_v29 = vld [vmem:[#allocation3 + $0x1fd8] sm:$0xff] }
 0x4df   : > { %vm2509_vm15 = vcmp.eq.s32.totalorder %v1469_v22, %v10950_v42  ;;  %v1725_v24 = vld [vmem:[#allocation3 + $0x768] sm:$0xff]  ;;  %8815 = vmatpush.bf16.msk.msra.mxu1 %vm8814_vm13, %v9814_v26  ;;  %vm8830_vm0 = vmpackc.low %vm3053_vm9, %vm3037_vm8  ;;  %vm3261_vm7 = vcmp.eq.s32.totalorder %v2221_v29, %v10950_v42  ;;  %v1421_v30 = vld [vmem:[#allocation3 + $0x1d8] sm:$0xff] }
 0x4e0   : > { %vm2765_vm2 = vcmp.eq.s32.totalorder %v1725_v24, %v10950_v42  ;;  %v1965_v27 = vld [vmem:[#allocation3 + $0x16c8] sm:$0xff]  ;;  %8831 = vmatpush.bf16.msk.msra.mxu2 %vm8830_vm0, %v9814_v26  ;;  %vm8846_vm3 = vmpackc.low %vm3309_vm12, %vm3293_vm11  ;;  %vm2461_vm10 = vcmp.eq.s32.totalorder %v1421_v30, %v10950_v42  ;;  %v1693_v33 = vld [vmem:[#allocation3 + $0xeb0] sm:$0xff] }
 0x4e1   : > { %vm3005_vm4 = vcmp.eq.s32.totalorder %v1965_v27, %v10950_v42  ;;  %v2237_v14 = vld [vmem:[#allocation3 + $0xb88] sm:$0xff]  ;;  %8847 = vmatpush.bf16.msk.msra.mxu3 %vm8846_vm3, %v9814_v26  ;;  %vm8800_vm6 = vmpackc.low %vm2509_vm15, %vm2493_vm14  ;;  %vm2733_vm14 = vcmp.eq.s32.totalorder %v1693_v33, %v10950_v42  ;;  %v1933_v35 = vld [vmem:[#allocation3 + $0x1660] sm:$0xff] }
 0x4e2   : > { %vm3277_vm8 = vcmp.eq.s32.totalorder %v2237_v14, %v10950_v42  ;;  %v1437_v31 = vld [vmem:[#allocation3 + $0x988] sm:$0xff]  ;;  %8801 = vmatpush.bf16.msk.msra.mxu0 %vm8800_vm6, %v9814_v26  ;;  %vm8816_vm9 = vmpackc.low %vm2765_vm2, %vm2749_vm1  ;;  %v1949_v36 = vld [vmem:[#allocation3 + $0x1570] sm:$0xff]  ;;  %vm2973_vm0 = vcmp.eq.s32.totalorder %v1933_v35, %v10950_v42 }
 0x4e3   : > { %vm2477_vm11 = vcmp.eq.s32.totalorder %v1437_v31, %v10950_v42  ;;  %v1677_v32 = vld [vmem:[#allocation3 + $0xcc8] sm:$0xff]  ;;  %8817 = vmatpush.bf16.msk.msra.mxu1 %vm8816_vm9, %v9814_v26  ;;  %vm8832_vm12 = vmpackc.low %vm3021_vm5, %vm3005_vm4  ;;  %vm2989_vm1 = vcmp.eq.s32.totalorder %v1949_v36, %v10950_v42  ;;  %v2189_v37 = vld [vmem:[#allocation3 + $0x16a0] sm:$0xff] }
 0x4e4   : > { %vm2717_vm13 = vcmp.eq.s32.totalorder %v1677_v32, %v10950_v42  ;;  %8833 = vmatpush.bf16.msk.msra.mxu2 %vm8832_vm12, %v9814_v26  ;;  %vm8848_vm15 = vmpackc.low %vm3277_vm8, %vm3261_vm7  ;;  %v2205_v38 = vld [vmem:[#allocation3 + $0x528] sm:$0xff]  ;;  %vm3229_vm3 = vcmp.eq.s32.totalorder %v2189_v37, %v10950_v42  ;;  %v1389_v13 = vld [vmem:[#allocation3 + $0xfa0] sm:$0xff] }
 0x4e5   : > { %8849 = vmatpush.bf16.msk.msra.mxu3 %vm8848_vm15, %v9814_v26  ;;  %vm8802_vm2 = vmpackc.low %vm2477_vm11, %vm2461_vm10  ;;  %vm3245_vm4 = vcmp.eq.s32.totalorder %v2205_v38, %v10950_v42  ;;  %v1405_v39 = vld [vmem:[#allocation3 + $0x1a58] sm:$0xff]  ;;  %vm2429_vm6 = vcmp.eq.s32.totalorder %v1389_v13, %v10950_v42  ;;  %v1901_v43 = vld [vmem:[#allocation3 + $0x12c0] sm:$0xff] }
 0x4e6   : > { %8803 = vmatpush.bf16.msk.msra.mxu0 %vm8802_vm2, %v9814_v26  ;;  %vm8818_vm5 = vmpackc.low %vm2733_vm14, %vm2717_vm13  ;;  %vm2445_vm7 = vcmp.eq.s32.totalorder %v1405_v39, %v10950_v42  ;;  %v1645_v40 = vld [vmem:[#allocation3 + $0xbf8] sm:$0xff]  ;;  %v1917_v44 = vld [vmem:[#allocation3 + $0x348] sm:$0xff]  ;;  %vm2941_vm12 = vcmp.eq.s32.totalorder %v1901_v43, %v10950_v42 }
 0x4e7   : > { %v1661_v41 = vld [vmem:[#allocation3 + $0x638] sm:$0xff]  ;;  %8819 = vmatpush.bf16.msk.msra.mxu1 %vm8818_vm5, %v9814_v26  ;;  %vm8834_vm8 = vmpackc.low %vm2989_vm1, %vm2973_vm0  ;;  %vm2685_vm9 = vcmp.eq.s32.totalorder %v1645_v40, %v10950_v42  ;;  %vm2957_vm13 = vcmp.eq.s32.totalorder %v1917_v44, %v10950_v42  ;;  %v2157_v45 = vld [vmem:[#allocation3 + $0x848] sm:$0xff] }
 0x4e8   : > { %vm2701_vm10 = vcmp.eq.s32.totalorder %v1661_v41, %v10950_v42  ;;  %8835 = vmatpush.bf16.msk.msra.mxu2 %vm8834_vm8, %v9814_v26  ;;  %vm8850_vm11 = vmpackc.low %vm3245_vm4, %vm3229_vm3  ;;  %v2173_v46 = vld [vmem:[#allocation3 + $0x14e8] sm:$0xff]  ;;  %vm3197_vm15 = vcmp.eq.s32.totalorder %v2157_v45, %v10950_v42  ;;  %v1373_v48 = vld [vmem:[#allocation3 + $0x1ed0] sm:$0xff] }
 0x4e9   : > { %8851 = vmatpush.bf16.msk.msra.mxu3 %vm8850_vm11, %v9814_v26  ;;  %vm8804_vm14 = vmpackc.low %vm2445_vm7, %vm2429_vm6  ;;  %vm3213_vm0 = vcmp.eq.s32.totalorder %v2173_v46, %v10950_v42  ;;  %v1357_v25 = vld [vmem:[#allocation3 + $0xce8] sm:$0xff]  ;;  %vm2413_vm3 = vcmp.eq.s32.totalorder %v1373_v48, %v10950_v42  ;;  %v1613_v49 = vld [vmem:[#allocation3 + $0x610] sm:$0xff] }
 0x4ea   : > { %8805 = vmatpush.bf16.msk.msra.mxu0 %vm8804_vm14, %v9814_v26  ;;  %vm8820_vm1 = vmpackc.low %vm2701_vm10, %vm2685_vm9  ;;  %vm2397_vm2 = vcmp.eq.s32.totalorder %v1357_v25, %v10950_v42  ;;  %v1629_v50 = vld [vmem:[#allocation3 + $0x1268] sm:$0xff]  ;;  %vm2653_vm5 = vcmp.eq.s32.totalorder %v1613_v49, %v10950_v42  ;;  %v1885_v53 = vld [vmem:[#allocation3 + $0x980] sm:$0xff] }
 0x4eb   : > { %8821 = vmatpush.bf16.msk.msra.mxu1 %vm8820_vm1, %v9814_v26  ;;  %vm8836_vm4 = vmpackc.low %vm2957_vm13, %vm2941_vm12  ;;  %vm2669_vm6 = vcmp.eq.s32.totalorder %v1629_v50, %v10950_v42  ;;  %v1869_v52 = vld [vmem:[#allocation3 + $0x1628] sm:$0xff]  ;;  %vm2925_vm9 = vcmp.eq.s32.totalorder %v1885_v53, %v10950_v42  ;;  %v1838_v57 = vld [vmem:[#allocation3 + $0x7d8] sm:$0xff] }
 0x4ec   : > { %8837 = vmatpush.bf16.msk.msra.mxu2 %vm8836_vm4, %v9814_v26  ;;  %vm8852_vm7 = vmpackc.low %vm3213_vm0, %vm3197_vm15  ;;  %vm2909_vm8 = vcmp.eq.s32.totalorder %v1869_v52, %v10950_v42  ;;  %v2125_v54 = vld [vmem:[#allocation3 + $0xa88] sm:$0xff]  ;;  %v1854_v59 = vld [vmem:[#allocation3 + $0x1700] sm:$0xff]  ;;  %vm2878_vm1 = vcmp.eq.s32.totalorder %v1838_v57, %v11181_v51 }
 0x4ed   : > { %v2141_v55 = vld [vmem:[#allocation3 + $0xb48] sm:$0xff]  ;;  %8853 = vmatpush.bf16.msk.msra.mxu3 %vm8852_vm7, %v9814_v26  ;;  %vm8806_vm10 = vmpackc.low %vm2413_vm3, %vm2397_vm2  ;;  %vm3165_vm11 = vcmp.eq.s32.totalorder %v2125_v54, %v10950_v42  ;;  %vm2894_vm2 = vcmp.eq.s32.totalorder %v1854_v59, %v11181_v51  ;;  %v2094_v60 = vld [vmem:[#allocation3 + $0xc70] sm:$0xff] }
 0x4ee   : > { %vm3181_vm12 = vcmp.eq.s32.totalorder %v2141_v55, %v10950_v42  ;;  %v1582_v34 = vld [vmem:[#allocation3 + $0x1f08] sm:$0xff]  ;;  %8807 = vmatpush.bf16.msk.msra.mxu0 %vm8806_vm10, %v9814_v26  ;;  %vm8822_vm13 = vmpackc.low %vm2669_vm6, %vm2653_vm5  ;;  %v2110_v62 = vld [vmem:[#allocation3 + $0xdb8] sm:$0xff]  ;;  %vm3134_vm4 = vcmp.eq.s32.totalorder %v2094_v60, %v11181_v51 }
 0x4ef   : > { %v1598_v56 = vld [vmem:[#allocation3 + $0x948] sm:$0xff]  ;;  %vm2622_vm14 = vcmp.eq.s32.totalorder %v1582_v34, %v11181_v51  ;;  %8823 = vmatpush.bf16.msk.msra.mxu1 %vm8822_vm13, %v9814_v26  ;;  %vm8838_vm0 = vmpackc.low %vm2925_vm9, %vm2909_vm8  ;;  %vm3150_vm5 = vcmp.eq.s32.totalorder %v2110_v62, %v11181_v51  ;;  %v2366_v1 = vld [vmem:[#allocation3 + $0x1810] sm:$0xff] }
 0x4f0   : > { %vm2638_vm15 = vcmp.eq.s32.totalorder %v1598_v56, %v11181_v51  ;;  %8839 = vmatpush.bf16.msk.msra.mxu2 %vm8838_vm0, %v9814_v26  ;;  %vm8854_vm3 = vmpackc.low %vm3181_vm12, %vm3165_vm11  ;;  %v2350_v63 = vld [vmem:[#allocation3 + $0x448] sm:$0xff]  ;;  %vm3406_vm8 = vcmp.eq.s32.totalorder %v2366_v1, %v11181_v51  ;;  %v1566_v42 = vld [vmem:[#allocation3 + $0x1bb8] sm:$0xff] }
 0x4f1   : > { %8855 = vmatpush.bf16.msk.msra.mxu3 %vm8854_vm3, %v9814_v26  ;;  %vm8856_vm6 = vmpackc.low %vm2638_vm15, %vm2622_vm14  ;;  %vm3390_vm7 = vcmp.eq.s32.totalorder %v2350_v63, %v11181_v51  ;;  %v1550_v2 = vld [vmem:[#allocation3 + $0x1968] sm:$0xff]  ;;  %6236 = vmatmul.bf16.vlgmr.msra.gmra.mxu0 %v10408_v61  ;;  %vm2606_vm11 = vcmp.eq.s32.totalorder %v1566_v42, %v11181_v51  ;;  %v2062_v6 = vld [vmem:[#allocation3 + $0xc20] sm:$0xff] }
 0x4f2   : > { %8857 = vmatpush.bf16.msk.msrb.mxu0 %vm8856_vm6, %v9814_v26  ;;  %vm8872_vm9 = vmpackc.low %vm2894_vm2, %vm2878_vm1  ;;  %vm2590_vm10 = vcmp.eq.s32.totalorder %v1550_v2, %v11181_v51  ;;  %v1806_v3 = vld [vmem:[#allocation3 + $0x1448] sm:$0xff]  ;;  %6250 = vmatmul.bf16.vlgmr.msra.gmra.mxu1 %v10419_v0  ;;  %v2078_v8 = vld [vmem:[#allocation3 + $0x858] sm:$0xff]  ;;  %vm3102_vm0 = vcmp.eq.s32.totalorder %v2062_v6, %v11181_v51 }
 0x4f3   : > { %v1822_v4 = vld [vmem:[#allocation3 + $0x1de8] sm:$0xff]  ;;  %8873 = vmatpush.bf16.msk.msrb.mxu1 %vm8872_vm9, %v9814_v26  ;;  %vm8888_vm12 = vmpackc.low %vm3150_vm5, %vm3134_vm4  ;;  %vm2846_vm13 = vcmp.eq.s32.totalorder %v1806_v3, %v11181_v51  ;;  %6264 = vmatmul.bf16.vlgmr.msra.gmra.mxu2 %v10357_v47  ;;  %vm3118_vm1 = vcmp.eq.s32.totalorder %v2078_v8, %v11181_v51  ;;  %v2318_v9 = vld [vmem:[#allocation3 + $0x1f0] sm:$0xff]  ;;  %v11424_v3 = vperm.slane %v10054_v7, 6 }
 0x4f4   : > { %vm2862_vm14 = vcmp.eq.s32.totalorder %v1822_v4, %v11181_v51  ;;  %8889 = vmatpush.bf16.msk.msrb.mxu2 %vm8888_vm12, %v9814_v26  ;;  %vm8904_vm15 = vmpackc.low %vm3406_vm8, %vm3390_vm7  ;;  %v2334_v10 = vld [vmem:[#allocation3 + $0x1730] sm:$0xff]  ;;  %6278 = vmatmul.bf16.vlgmr.msra.gmra.mxu3 %v10397_v58  ;;  %vm3358_vm3 = vcmp.eq.s32.totalorder %v2318_v9, %v11181_v51  ;;  %v1534_v12 = vld [vmem:[#allocation3 + $0x1798] sm:$0xff] }
 0x4f5   : > { %8905 = vmatpush.bf16.msk.msrb.mxu3 %vm8904_vm15, %v9814_v26  ;;  %vm8858_vm2 = vmpackc.low %vm2606_vm11, %vm2590_vm10  ;;  %vm3374_vm4 = vcmp.eq.s32.totalorder %v2334_v10, %v11181_v51  ;;  %v1518_v11 = vld [vmem:[#allocation3 + $0x830] sm:$0xff]  ;;  %vm2574_vm7 = vcmp.eq.s32.totalorder %v1534_v12, %v11181_v51  ;;  %v1790_v16 = vld [vmem:[#allocation3 + $0x1b78] sm:$0xff] }
 0x4f6   : > { %8859 = vmatpush.bf16.msk.msrb.mxu0 %vm8858_vm2, %v9814_v26  ;;  %vm8874_vm5 = vmpackc.low %vm2862_vm14, %vm2846_vm13  ;;  %vm2558_vm6 = vcmp.eq.s32.totalorder %v1518_v11, %v11181_v51  ;;  %v1774_v15 = vld [vmem:[#allocation3 + $0xe30] sm:$0xff]  ;;  %vm2830_vm10 = vcmp.eq.s32.totalorder %v1790_v16, %v11181_v51  ;;  %v2030_v17 = vld [vmem:[#allocation3 + $0x1408] sm:$0xff] }
 0x4f7   : > { %8875 = vmatpush.bf16.msk.msrb.mxu1 %vm8874_vm5, %v9814_v26  ;;  %vm8890_vm8 = vmpackc.low %vm3118_vm1, %vm3102_vm0  ;;  %vm2814_vm9 = vcmp.eq.s32.totalorder %v1774_v15, %v11181_v51  ;;  %v2046_v18 = vld [vmem:[#allocation3 + $0x15c8] sm:$0xff]  ;;  %vm3070_vm12 = vcmp.eq.s32.totalorder %v2030_v17, %v11181_v51  ;;  %v2286_v19 = vld [vmem:[#allocation3 + $0x1920] sm:$0xff] }
 0x4f8   : > { %8891 = vmatpush.bf16.msk.msrb.mxu2 %vm8890_vm8, %v9814_v26  ;;  %vm8906_vm11 = vmpackc.low %vm3374_vm4, %vm3358_vm3  ;;  %vm3086_vm13 = vcmp.eq.s32.totalorder %v2046_v18, %v11181_v51  ;;  %v2302_v20 = vld [vmem:[#allocation3 + $0xe00] sm:$0xff]  ;;  %vm3326_vm15 = vcmp.eq.s32.totalorder %v2286_v19, %v11181_v51  ;;  %v1486_v21 = vld [vmem:[#allocation3 + $0x8d8] sm:$0xff] }
 0x4f9   : > { %8907 = vmatpush.bf16.msk.msrb.mxu3 %vm8906_vm11, %v9814_v26  ;;  %vm8860_vm14 = vmpackc.low %vm2574_vm7, %vm2558_vm6  ;;  %vm3342_vm0 = vcmp.eq.s32.totalorder %v2302_v20, %v11181_v51  ;;  %v1502_v22 = vld [vmem:[#allocation3 + $0x158] sm:$0xff]  ;;  %vm2526_vm2 = vcmp.eq.s32.totalorder %v1486_v21, %v11181_v51  ;;  %v1758_v24 = vld [vmem:[#allocation3 + $0x568] sm:$0xff] }
 0x4fa   : > { %8861 = vmatpush.bf16.msk.msrb.mxu0 %vm8860_vm14, %v9814_v26  ;;  %vm8876_vm1 = vmpackc.low %vm2830_vm10, %vm2814_vm9  ;;  %vm2542_vm3 = vcmp.eq.s32.totalorder %v1502_v22, %v11181_v51  ;;  %v1742_v23 = vld [vmem:[#allocation3 + $0x118] sm:$0xff]  ;;  %vm2798_vm6 = vcmp.eq.s32.totalorder %v1758_v24, %v11181_v51  ;;  %v1998_v27 = vld [vmem:[#allocation3 + $0x1cb0] sm:$0xff] }
 0x4fb   : > { %8877 = vmatpush.bf16.msk.msrb.mxu1 %vm8876_vm1, %v9814_v26  ;;  %vm8892_vm4 = vmpackc.low %vm3086_vm13, %vm3070_vm12  ;;  %vm2782_vm5 = vcmp.eq.s32.totalorder %v1742_v23, %v11181_v51  ;;  %v2014_v28 = vld [vmem:[#allocation3 + $0x1bf8] sm:$0xff]  ;;  %vm3038_vm8 = vcmp.eq.s32.totalorder %v1998_v27, %v11181_v51  ;;  %v2270_v14 = vld [vmem:[#allocation3 + $0x1d28] sm:$0xff] }
 0x4fc   : > { %8893 = vmatpush.bf16.msk.msrb.mxu2 %vm8892_vm4, %v9814_v26  ;;  %vm8908_vm7 = vmpackc.low %vm3342_vm0, %vm3326_vm15  ;;  %vm3054_vm9 = vcmp.eq.s32.totalorder %v2014_v28, %v11181_v51  ;;  %v2254_v29 = vld [vmem:[#allocation3 + $0x1898] sm:$0xff]  ;;  %vm3310_vm12 = vcmp.eq.s32.totalorder %v2270_v14, %v11181_v51  ;;  %v1454_v30 = vld [vmem:[#allocation3 + $0xe90] sm:$0xff] }
 0x4fd   : > { %8909 = vmatpush.bf16.msk.msrb.mxu3 %vm8908_vm7, %v9814_v26  ;;  %vm8862_vm10 = vmpackc.low %vm2542_vm3, %vm2526_vm2  ;;  %vm3294_vm11 = vcmp.eq.s32.totalorder %v2254_v29, %v11181_v51  ;;  %v1470_v31 = vld [vmem:[#allocation3 + $0x1d48] sm:$0xff]  ;;  %vm2494_vm14 = vcmp.eq.s32.totalorder %v1454_v30, %v11181_v51  ;;  %v1710_v32 = vld [vmem:[#allocation3 + $0x898] sm:$0xff] }
 0x4fe   : > { %8863 = vmatpush.bf16.msk.msrb.mxu0 %vm8862_vm10, %v9814_v26  ;;  %vm8878_vm13 = vmpackc.low %vm2798_vm6, %vm2782_vm5  ;;  %vm2510_vm15 = vcmp.eq.s32.totalorder %v1470_v31, %v11181_v51  ;;  %v1726_v33 = vld [vmem:[#allocation3 + $0x498] sm:$0xff]  ;;  %vm2750_vm1 = vcmp.eq.s32.totalorder %v1710_v32, %v11181_v51  ;;  %v1966_v35 = vld [vmem:[#allocation3 + $0x1af0] sm:$0xff] }
 0x4ff   : > { %8879 = vmatpush.bf16.msk.msrb.mxu1 %vm8878_vm13, %v9814_v26  ;;  %vm8894_vm0 = vmpackc.low %vm3054_vm9, %vm3038_vm8  ;;  %vm2766_vm2 = vcmp.eq.s32.totalorder %v1726_v33, %v11181_v51  ;;  %v1982_v36 = vld [vmem:[#allocation3 + $0xa08] sm:$0xff]  ;;  %vm3006_vm4 = vcmp.eq.s32.totalorder %v1966_v35, %v11181_v51  ;;  %v2238_v38 = vld [vmem:[#allocation3 + $0x19c0] sm:$0xff] }
 0x500   : > { %8895 = vmatpush.bf16.msk.msrb.mxu2 %vm8894_vm0, %v9814_v26  ;;  %vm8910_vm3 = vmpackc.low %vm3310_vm12, %vm3294_vm11  ;;  %vm3022_vm5 = vcmp.eq.s32.totalorder %v1982_v36, %v11181_v51  ;;  %v2222_v37 = vld [vmem:[#allocation3 + $0xd88] sm:$0xff]  ;;  %v11341_v13 = vpop.f32.mrf.mxu0  ;;  %vm3278_vm8 = vcmp.eq.s32.totalorder %v2238_v38, %v11181_v51  ;;  %v1438_v40 = vld [vmem:[#allocation3 + $0x18c0] sm:$0xff]  ;;  %v11359_v45 = vpop.f32.mrf.mxu2 }
 0x501   : > { %8911 = vmatpush.bf16.msk.msrb.mxu3 %vm8910_vm3, %v9814_v26  ;;  %vm8864_vm6 = vmpackc.low %vm2510_vm15, %vm2494_vm14  ;;  %vm3262_vm7 = vcmp.eq.s32.totalorder %v2222_v37, %v11181_v51  ;;  %v1422_v39 = vld [vmem:[#allocation3 + $0xfa8] sm:$0xff]  ;;  %v11350_v41 = vpop.f32.mrf.mxu1  ;;  %vm2478_vm11 = vcmp.eq.s32.totalorder %v1438_v40, %v11181_v51  ;;  %v1678_v43 = vld [vmem:[#allocation3 + $0xac0] sm:$0xff] }
 0x502   : > { %8865 = vmatpush.bf16.msk.msrb.mxu0 %vm8864_vm6, %v9814_v26  ;;  %vm8880_vm9 = vmpackc.low %vm2766_vm2, %vm2750_vm1  ;;  %vm2462_vm10 = vcmp.eq.s32.totalorder %v1422_v39, %v11181_v51  ;;  %v1694_v44 = vld [vmem:[#allocation3 + $0x3e8] sm:$0xff]  ;;  %vm2718_vm13 = vcmp.eq.s32.totalorder %v1678_v43, %v11181_v51  ;;  %v1934_v46 = vld [vmem:[#allocation3 + $0x1ac0] sm:$0xff]  ;;  %v6028_v23 = vadd.f32 %v11350_v41, %v11341_v13 }
 0x503   : > { %8881 = vmatpush.bf16.msk.msrb.mxu1 %vm8880_vm9, %v9814_v26  ;;  %vm8896_vm12 = vmpackc.low %vm3022_vm5, %vm3006_vm4  ;;  %vm2734_vm14 = vcmp.eq.s32.totalorder %v1694_v44, %v11181_v51  ;;  %v1950_v25 = vld [vmem:[#allocation3 + $0x1b20] sm:$0xff]  ;;  %vm2974_vm0 = vcmp.eq.s32.totalorder %v1934_v46, %v11181_v51  ;;  %v2190_v48 = vld [vmem:[#allocation3 + $0x1e08] sm:$0xff] }
 0x504   : > { %8897 = vmatpush.bf16.msk.msrb.mxu2 %vm8896_vm12, %v9814_v26  ;;  %vm8912_vm15 = vmpackc.low %vm3278_vm8, %vm3262_vm7  ;;  %vm2990_vm1 = vcmp.eq.s32.totalorder %v1950_v25, %v11181_v51  ;;  %v2206_v49 = vld [vmem:[#allocation3 + $0x1140] sm:$0xff]  ;;  %vm3230_vm3 = vcmp.eq.s32.totalorder %v2190_v48, %v11181_v51  ;;  %v1390_v50 = vld [vmem:[#allocation3 + $0x13e8] sm:$0xff]  ;;  %v6042_v40 = vadd.f32 %v11359_v45, %v6028_v23 }
 0x505   : > { %8913 = vmatpush.bf16.msk.msrb.mxu3 %vm8912_vm15, %v9814_v26  ;;  %vm8866_vm2 = vmpackc.low %vm2478_vm11, %vm2462_vm10  ;;  %vm3246_vm4 = vcmp.eq.s32.totalorder %v2206_v49, %v11181_v51  ;;  %v1406_v52 = vld [vmem:[#allocation3 + $0x10] sm:$0xff]  ;;  %v11382_v53 = vpop.f32.mrf.mxu3  ;;  %vm2430_vm6 = vcmp.eq.s32.totalorder %v1390_v50, %v11181_v51  ;;  %v1646_v54 = vld [vmem:[#allocation3 + $0xee0] sm:$0xff] }
 0x506   : > { %8867 = vmatpush.bf16.msk.msrb.mxu0 %vm8866_vm2, %v9814_v26  ;;  %vm8882_vm5 = vmpackc.low %vm2734_vm14, %vm2718_vm13  ;;  %vm2446_vm7 = vcmp.eq.s32.totalorder %v1406_v52, %v11181_v51  ;;  %v1662_v55 = vld [vmem:[#allocation3 + $0x1358] sm:$0xff]  ;;  %vm2686_vm9 = vcmp.eq.s32.totalorder %v1646_v54, %v11181_v51  ;;  %v1918_v56 = vld [vmem:[#allocation3 + $0xcd0] sm:$0xff] }
 0x507   : > { %8883 = vmatpush.bf16.msk.msrb.mxu1 %vm8882_vm5, %v9814_v26  ;;  %vm8898_vm8 = vmpackc.low %vm2990_vm1, %vm2974_vm0  ;;  %vm2702_vm10 = vcmp.eq.s32.totalorder %v1662_v55, %v11181_v51  ;;  %v1902_v34 = vld [vmem:[#allocation3 + $0xaf8] sm:$0xff]  ;;  %vm2958_vm13 = vcmp.eq.s32.totalorder %v1918_v56, %v11181_v51  ;;  %v1358_v62 = vld [vmem:[#allocation3 + $0xc68] sm:$0xff]  ;;  %v11555_v56 = vadd.f32 %v11382_v53, %v6042_v40 }
 0x508   : > { %8899 = vmatpush.bf16.msk.msrb.mxu2 %vm8898_vm8, %v9814_v26  ;;  %vm8914_vm11 = vmpackc.low %vm3246_vm4, %vm3230_vm3  ;;  %vm2942_vm12 = vcmp.eq.s32.totalorder %v1902_v34, %v11181_v51  ;;  %v2158_v57 = vld [vmem:[#allocation3 + $0x1ab8] sm:$0xff]  ;;  %v11405_v60 = vpop.f32.mrf.mxu0  ;;  %v1374_v63 = vld [vmem:[#allocation3 + $0x1e68] sm:$0xff]  ;;  %vm2398_vm2 = vcmp.eq.s32.totalorder %v1358_v62, %v11181_v51  ;;  %v11440_v10 = vpop.f32.mrf.mxu2 }
 0x509   : > { %v2174_v59 = vld [vmem:[#allocation3 + $0x1a18] sm:$0xff]  ;;  %8915 = vmatpush.bf16.msk.msrb.mxu3 %vm8914_vm11, %v9814_v26  ;;  %vm8868_vm14 = vmpackc.low %vm2446_vm7, %vm2430_vm6  ;;  %vm3198_vm15 = vcmp.eq.s32.totalorder %v2158_v57, %v11181_v51  ;;  %v11414_v1 = vpop.f32.mrf.mxu1  ;;  %vm2414_vm3 = vcmp.eq.s32.totalorder %v1374_v63, %v11181_v51  ;;  %v1870_v4 = vld [vmem:[#allocation3 + $0x1e50] sm:$0xff] }
 0x50a   : > { %vm3214_vm0 = vcmp.eq.s32.totalorder %v2174_v59, %v11181_v51  ;;  %8869 = vmatpush.bf16.msk.msrb.mxu0 %vm8868_vm14, %v9814_v26  ;;  %vm8884_vm1 = vmpackc.low %vm2702_vm10, %vm2686_vm9  ;;  %v1614_v2 = vld [vmem:[#allocation3 + $0x1178] sm:$0xff]  ;;  %vm2910_vm8 = vcmp.eq.s32.totalorder %v1870_v4, %v11181_v51  ;;  %v2126_v8 = vld [vmem:[#allocation3 + $0x1310] sm:$0xff]  ;;  %v6030_v30 = vadd.f32 %v11414_v1, %v11405_v60 }
 0x50b   : > { %v1630_v42 = vld [vmem:[#allocation3 + $0x9b8] sm:$0xff]  ;;  %8885 = vmatpush.bf16.msk.msrb.mxu1 %vm8884_vm1, %v9814_v26  ;;  %vm8900_vm4 = vmpackc.low %vm2958_vm13, %vm2942_vm12  ;;  %vm2654_vm5 = vcmp.eq.s32.totalorder %v1614_v2, %v11181_v51  ;;  %v2142_v9 = vld [vmem:[#allocation3 + $0x1c40] sm:$0xff]  ;;  %vm3166_vm11 = vcmp.eq.s32.totalorder %v2126_v8, %v11181_v51 }
 0x50c   : > { %vm2670_vm6 = vcmp.eq.s32.totalorder %v1630_v42, %v11181_v51  ;;  %v1886_v6 = vld [vmem:[#allocation3 + $0x1758] sm:$0xff]  ;;  %8901 = vmatpush.bf16.msk.msrb.mxu2 %vm8900_vm4, %v9814_v26  ;;  %vm8916_vm7 = vmpackc.low %vm3214_vm0, %vm3198_vm15  ;;  %vm3182_vm12 = vcmp.eq.s32.totalorder %v2142_v9, %v11181_v51  ;;  %v1583_v11 = vld [vmem:[#allocation3 + $0x1be8] sm:$0xff]  ;;  %v6044_v48 = vadd.f32 %v11440_v10, %v6030_v30  ;;  %v6924_v10 = vrot.slane %v11555_v56, 3 }
 0x50d   : > { %vm2926_vm9 = vcmp.eq.s32.totalorder %v1886_v6, %v11181_v51  ;;  %8917 = vmatpush.bf16.msk.msrb.mxu3 %vm8916_vm7, %v9814_v26  ;;  %vm8870_vm10 = vmpackc.low %vm2414_vm3, %vm2398_vm2  ;;  %v1599_v12 = vld [vmem:[#allocation3 + $0x1720] sm:$0xff]  ;;  %v11449_v15 = vpop.f32.mrf.mxu3  ;;  %vm2623_vm14 = vcmp.eq.s32.totalorder %v1583_v11, %v11424_v3  ;;  %v1855_v17 = vld [vmem:[#allocation3 + $0xd68] sm:$0xff] }
 0x50e   : > { %8871 = vmatpush.bf16.msk.msrb.mxu0 %vm8870_vm10, %v9814_v26  ;;  %vm8886_vm13 = vmpackc.low %vm2670_vm6, %vm2654_vm5  ;;  %vm2639_vm15 = vcmp.eq.s32.totalorder %v1599_v12, %v11424_v3  ;;  %v1839_v16 = vld [vmem:[#allocation3 + $0xcc0] sm:$0xff]  ;;  %vm2895_vm2 = vcmp.eq.s32.totalorder %v1855_v17, %v11424_v3  ;;  %v2095_v18 = vld [vmem:[#allocation3 + $0x11e8] sm:$0xff]  ;;  %v11570_v53 = vadd.f32 %v11449_v15, %v6044_v48  ;;  %v6989_v17 = vrot.slane %v11555_v56, 6 }
 0x50f   : > { %8887 = vmatpush.bf16.msk.msrb.mxu1 %vm8886_vm13, %v9814_v26  ;;  %vm8902_vm0 = vmpackc.low %vm2926_vm9, %vm2910_vm8  ;;  %vm2879_vm1 = vcmp.eq.s32.totalorder %v1839_v16, %v11424_v3  ;;  %v2111_v19 = vld [vmem:[#allocation3 + $0xd8] sm:$0xff]  ;;  %vm3135_vm4 = vcmp.eq.s32.totalorder %v2095_v18, %v11424_v3  ;;  %v2367_v21 = vld [vmem:[#allocation3 + $0x1aa0] sm:$0xff] }
 0x510   : > { %8903 = vmatpush.bf16.msk.msrb.mxu2 %vm8902_vm0, %v9814_v26  ;;  %vm8918_vm3 = vmpackc.low %vm3182_vm12, %vm3166_vm11  ;;  %vm3151_vm5 = vcmp.eq.s32.totalorder %v2111_v19, %v11424_v3  ;;  %v2351_v20 = vld [vmem:[#allocation3 + $0x16f8] sm:$0xff]  ;;  %vm3407_vm8 = vcmp.eq.s32.totalorder %v2367_v21, %v11424_v3  ;;  %v1551_v22 = vld [vmem:[#allocation3 + $0x1f40] sm:$0xff]  ;;  %v6990_v18 = vrot.slane %v11570_v53, 6 }
 0x511   : > { %8919 = vmatpush.bf16.msk.msrb.mxu3 %vm8918_vm3, %v9814_v26  ;;  %vm8920_vm6 = vmpackc.low %vm2639_vm15, %vm2623_vm14  ;;  %vm3391_vm7 = vcmp.eq.s32.totalorder %v2351_v20, %v11424_v3  ;;  %v1567_v51 = vld [vmem:[#allocation3 + $0x10b0] sm:$0xff]  ;;  %6292 = vmatmul.bf16.vlgmr.msrb.gmra.mxu0 %v10408_v61  ;;  %vm2591_vm10 = vcmp.eq.s32.totalorder %v1551_v22, %v11424_v3  ;;  %v1807_v24 = vld [vmem:[#allocation3 + $0x180] sm:$0xff] }
 0x512   : > { %8921 = vmatpush.bf16.msk.msra.mxu0 %vm8920_vm6, %v9814_v26  ;;  %vm8936_vm9 = vmpackc.low %vm2895_vm2, %vm2879_vm1  ;;  %vm2607_vm11 = vcmp.eq.s32.totalorder %v1567_v51, %v11424_v3  ;;  %v1823_v27 = vld [vmem:[#allocation3 + $0xd48] sm:$0xff]  ;;  %6306 = vmatmul.bf16.vlgmr.msrb.gmra.mxu1 %v10419_v0  ;;  %v6069_v28 = vpop.f32.mrf.mxu0  ;;  %vm2847_vm13 = vcmp.eq.s32.totalorder %v1807_v24, %v11424_v3  ;;  %v2063_v29 = vld [vmem:[#allocation3 + $0x1620] sm:$0xff] }
 0x513   : > { %8937 = vmatpush.bf16.msk.msra.mxu1 %vm8936_vm9, %v9814_v26  ;;  %vm8952_vm12 = vmpackc.low %vm3151_vm5, %vm3135_vm4  ;;  %6320 = vmatmul.bf16.vlgmr.msrb.gmra.mxu2 %v10357_v47  ;;  %vm2863_vm14 = vcmp.eq.s32.totalorder %v1823_v27, %v11424_v3  ;;  %v2079_v14 = vld [vmem:[#allocation3 + $0x1c78] sm:$0xff]  ;;  %v6083_v31 = vpop.f32.mrf.mxu1  ;;  %vm3103_vm0 = vcmp.eq.s32.totalorder %v2063_v29, %v11424_v3  ;;  %v2319_v32 = vld [vmem:[#allocation3 + $0x1a8] sm:$0xff] }
 0x514   : > { %8953 = vmatpush.bf16.msk.msra.mxu2 %vm8952_vm12, %v9814_v26  ;;  %vm8968_vm15 = vmpackc.low %vm3407_vm8, %vm3391_vm7  ;;  %6334 = vmatmul.bf16.vlgmr.msrb.gmra.mxu3 %v10397_v58  ;;  %vm3119_vm1 = vcmp.eq.s32.totalorder %v2079_v14, %v11424_v3  ;;  %v2335_v33 = vld [vmem:[#allocation3 + $0x378] sm:$0xff]  ;;  %v6084_v35 = vadd.f32 %v6083_v31, %v6069_v28  ;;  %vm3359_vm3 = vcmp.eq.s32.totalorder %v2319_v32, %v11424_v3  ;;  %v1519_v36 = vld [vmem:[#allocation3 + $0x1bf0] sm:$0xff] }
 0x515   : > { %8969 = vmatpush.bf16.msk.msra.mxu3 %vm8968_vm15, %v9814_v26  ;;  %vm8922_vm2 = vmpackc.low %vm2607_vm11, %vm2591_vm10  ;;  %vm3375_vm4 = vcmp.eq.s32.totalorder %v2335_v33, %v11424_v3  ;;  %v1535_v37 = vld [vmem:[#allocation3 + $0x490] sm:$0xff]  ;;  %vm2559_vm6 = vcmp.eq.s32.totalorder %v1519_v36, %v11424_v3  ;;  %v1791_v13 = vld [vmem:[#allocation3 + $0x388] sm:$0xff]  ;;  %v6956_v31 = vadd.f32 %v6924_v10, %v11555_v56 }
 0x516   : > { %8923 = vmatpush.bf16.msk.msra.mxu0 %vm8922_vm2, %v9814_v26  ;;  %vm8938_vm5 = vmpackc.low %vm2863_vm14, %vm2847_vm13  ;;  %vm2575_vm7 = vcmp.eq.s32.totalorder %v1535_v37, %v11424_v3  ;;  %v1775_v38 = vld [vmem:[#allocation3 + $0x670] sm:$0xff]  ;;  %v6097_v39 = vpop.f32.mrf.mxu2  ;;  %vm2831_vm10 = vcmp.eq.s32.totalorder %v1791_v13, %v11424_v3  ;;  %v2031_v41 = vld [vmem:[#allocation3 + $0xec8] sm:$0xff] }
 0x517   : > { %8939 = vmatpush.bf16.msk.msra.mxu1 %vm8938_vm5, %v9814_v26  ;;  %vm8954_vm8 = vmpackc.low %vm3119_vm1, %vm3103_vm0  ;;  %vm2815_vm9 = vcmp.eq.s32.totalorder %v1775_v38, %v11424_v3  ;;  %v2047_v43 = vld [vmem:[#allocation3 + $0xd98] sm:$0xff]  ;;  %v6098_v44 = vadd.f32 %v6097_v39, %v6084_v35  ;;  %v6111_v46 = vpop.f32.mrf.mxu3  ;;  %vm3071_vm12 = vcmp.eq.s32.totalorder %v2031_v41, %v11424_v3  ;;  %v2303_v25 = vld [vmem:[#allocation3 + $0x9c0] sm:$0xff] }
 0x518   : > { %8955 = vmatpush.bf16.msk.msra.mxu2 %vm8954_vm8, %v9814_v26  ;;  %vm8970_vm11 = vmpackc.low %vm3375_vm4, %vm3359_vm3  ;;  %vm3087_vm13 = vcmp.eq.s32.totalorder %v2047_v43, %v11424_v3  ;;  %v2287_v45 = vld [vmem:[#allocation3 + $0x14b8] sm:$0xff]  ;;  %vm3343_vm0 = vcmp.eq.s32.totalorder %v2303_v25, %v11424_v3  ;;  %v1503_v50 = vld [vmem:[#allocation3 + $0x11c0] sm:$0xff] }
 0x519   : > { %8971 = vmatpush.bf16.msk.msra.mxu3 %vm8970_vm11, %v9814_v26  ;;  %vm8924_vm14 = vmpackc.low %vm2575_vm7, %vm2559_vm6  ;;  %vm3327_vm15 = vcmp.eq.s32.totalorder %v2287_v45, %v11424_v3  ;;  %v1487_v49 = vld [vmem:[#allocation3 + $0x2f8] sm:$0xff]  ;;  %vm2543_vm3 = vcmp.eq.s32.totalorder %v1503_v50, %v11424_v3  ;;  %v1743_v52 = vld [vmem:[#allocation3 + $0x12a0] sm:$0xff]  ;;  %v11552_v55 = vadd.f32 %v6111_v46, %v6098_v44 }
 0x51a   : > { %8925 = vmatpush.bf16.msk.msra.mxu0 %vm8924_vm14, %v9814_v26  ;;  %vm8940_vm1 = vmpackc.low %vm2831_vm10, %vm2815_vm9  ;;  %vm2527_vm2 = vcmp.eq.s32.totalorder %v1487_v49, %v11424_v3  ;;  %v1759_v54 = vld [vmem:[#allocation3 + $0x1da0] sm:$0xff]  ;;  %v6071_v34 = vpop.f32.mrf.mxu0  ;;  %vm2783_vm5 = vcmp.eq.s32.totalorder %v1743_v52, %v11424_v3  ;;  %v1999_v57 = vld [vmem:[#allocation3 + $0x1868] sm:$0xff] }
 0x51b   : > { %8941 = vmatpush.bf16.msk.msra.mxu1 %vm8940_vm1, %v9814_v26  ;;  %vm8956_vm4 = vmpackc.low %vm3087_vm13, %vm3071_vm12  ;;  %vm2799_vm6 = vcmp.eq.s32.totalorder %v1759_v54, %v11424_v3  ;;  %v2015_v59 = vld [vmem:[#allocation3 + $0x10e0] sm:$0xff]  ;;  %v6085_v60 = vpop.f32.mrf.mxu1  ;;  %vm3039_vm8 = vcmp.eq.s32.totalorder %v1999_v57, %v11424_v3  ;;  %v2255_v62 = vld [vmem:[#allocation3 + $0xfd0] sm:$0xff]  ;;  %v6925_v8 = vrot.slane %v11552_v55, 3  ;;  %v6992_v21 = vrot.slane %v11552_v55, 6 }
 0x51c   : > { %8957 = vmatpush.bf16.msk.msra.mxu2 %vm8956_vm4, %v9814_v26  ;;  %vm8972_vm7 = vmpackc.low %vm3343_vm0, %vm3327_vm15  ;;  %vm3055_vm9 = vcmp.eq.s32.totalorder %v2015_v59, %v11424_v3  ;;  %v2271_v63 = vld [vmem:[#allocation3 + $0x15c0] sm:$0xff]  ;;  %v6086_v1 = vadd.f32 %v6085_v60, %v6071_v34  ;;  %vm3295_vm11 = vcmp.eq.s32.totalorder %v2255_v62, %v11424_v3  ;;  %v1471_v42 = vld [vmem:[#allocation3 + $0xbb0] sm:$0xff] }
 0x51d   : > { %8973 = vmatpush.bf16.msk.msra.mxu3 %vm8972_vm7, %v9814_v26  ;;  %vm8926_vm10 = vmpackc.low %vm2543_vm3, %vm2527_vm2  ;;  %vm3311_vm12 = vcmp.eq.s32.totalorder %v2271_v63, %v11424_v3  ;;  %v1455_v2 = vld [vmem:[#allocation3 + $0x1c0] sm:$0xff]  ;;  %vm2511_vm15 = vcmp.eq.s32.totalorder %v1471_v42, %v11424_v3  ;;  %v1711_v4 = vld [vmem:[#allocation3 + $0x1450] sm:$0xff]  ;;  %v6957_v24 = vadd.f32 %v6925_v8, %v11552_v55  ;;  %v11682_v55 = vperm.slane %v10054_v7, 7 }
 0x51e   : > { %8927 = vmatpush.bf16.msk.msra.mxu0 %vm8926_vm10, %v9814_v26  ;;  %vm8942_vm13 = vmpackc.low %vm2799_vm6, %vm2783_vm5  ;;  %vm2495_vm14 = vcmp.eq.s32.totalorder %v1455_v2, %v11424_v3  ;;  %v1727_v6 = vld [vmem:[#allocation3 + $0x1c68] sm:$0xff]  ;;  %v6099_v9 = vpop.f32.mrf.mxu2  ;;  %vm2751_vm1 = vcmp.eq.s32.totalorder %v1711_v4, %v11424_v3  ;;  %v1967_v11 = vld [vmem:[#allocation3 + $0x1ea0] sm:$0xff] }
 0x51f   : > { %8943 = vmatpush.bf16.msk.msra.mxu1 %vm8942_vm13, %v9814_v26  ;;  %vm8958_vm0 = vmpackc.low %vm3055_vm9, %vm3039_vm8  ;;  %vm2767_vm2 = vcmp.eq.s32.totalorder %v1727_v6, %v11424_v3  ;;  %v1983_v12 = vld [vmem:[#allocation3 + $0x1978] sm:$0xff]  ;;  %v6100_v15 = vadd.f32 %v6099_v9, %v6086_v1  ;;  %v6113_v16 = vpop.f32.mrf.mxu3  ;;  %vm3007_vm4 = vcmp.eq.s32.totalorder %v1967_v11, %v11424_v3  ;;  %v2223_v19 = vld [vmem:[#allocation3 + $0x1e8] sm:$0xff]  ;;  %vm6988_vm9 = vcmask 1041408  }
 0x520   : > { %8959 = vmatpush.bf16.msk.msra.mxu2 %vm8958_vm0, %v9814_v26  ;;  %vm8974_vm3 = vmpackc.low %vm3311_vm12, %vm3295_vm11  ;;  %vm3023_vm5 = vcmp.eq.s32.totalorder %v1983_v12, %v11424_v3  ;;  %v2239_v20 = vld [vmem:[#allocation3 + $0xa60] sm:$0xff]  ;;  %vm3263_vm7 = vcmp.eq.s32.totalorder %v2223_v19, %v11424_v3  ;;  %v1423_v22 = vld [vmem:[#allocation3 + $0xe98] sm:$0xff]  ;;  %v6991_v35 = vsel %vm6988_vm9, %v6989_v17, %v6990_v18 }
 0x521   : > { %8975 = vmatpush.bf16.msk.msra.mxu3 %vm8974_vm3, %v9814_v26  ;;  %vm8928_vm6 = vmpackc.low %vm2511_vm15, %vm2495_vm14  ;;  %vm3279_vm8 = vcmp.eq.s32.totalorder %v2239_v20, %v11424_v3  ;;  %v1439_v51 = vld [vmem:[#allocation3 + $0x1018] sm:$0xff]  ;;  %v6114_v23 = vadd.f32 %v6113_v16, %v6100_v15  ;;  %vm2463_vm11 = vcmp.eq.s32.totalorder %v1423_v22, %v11424_v3  ;;  %v1695_v28 = vld [vmem:[#allocation3 + $0x1208] sm:$0xff]  ;;  %v7053_v44 = vadd.f32 %v6991_v35, %v6956_v31 }
 0x522   : > { %8929 = vmatpush.bf16.msk.msra.mxu0 %vm8928_vm6, %v9814_v26  ;;  %vm8944_vm10 = vmpackc.low %vm2767_vm2, %vm2751_vm1  ;;  %vm2479_vm12 = vcmp.eq.s32.totalorder %v1439_v51, %v11424_v3  ;;  %v1679_v27 = vld [vmem:[#allocation3 + $0x13b8] sm:$0xff]  ;;  %vm2735_vm15 = vcmp.eq.s32.totalorder %v1695_v28, %v11424_v3  ;;  %v1935_v29 = vld [vmem:[#allocation3 + $0x1d90] sm:$0xff] }
 0x523   : > { %8945 = vmatpush.bf16.msk.msra.mxu1 %vm8944_vm10, %v9814_v26  ;;  %vm8960_vm13 = vmpackc.low %vm3023_vm5, %vm3007_vm4  ;;  %vm2719_vm14 = vcmp.eq.s32.totalorder %v1679_v27, %v11424_v3  ;;  %v1951_v14 = vld [vmem:[#allocation3 + $0x1478] sm:$0xff]  ;;  %v6993_v30 = vrot.slane %v6114_v23, 6  ;;  %vm2975_vm1 = vcmp.eq.s32.totalorder %v1935_v29, %v11424_v3  ;;  %v2191_v32 = vld [vmem:[#allocation3 + $0xbd0] sm:$0xff] }
 0x524   : > { %8961 = vmatpush.bf16.msk.msra.mxu2 %vm8960_vm13, %v9814_v26  ;;  %vm8976_vm0 = vmpackc.low %vm3279_vm8, %vm3263_vm7  ;;  %vm2991_vm2 = vcmp.eq.s32.totalorder %v1951_v14, %v11424_v3  ;;  %v2207_v33 = vld [vmem:[#allocation3 + $0x8e8] sm:$0xff]  ;;  %vm3231_vm4 = vcmp.eq.s32.totalorder %v2191_v32, %v11424_v3  ;;  %v1647_v13 = vld [vmem:[#allocation3 + $0x1cd0] sm:$0xff]  ;;  %vm7093_vm13 = vcmask 1043456  }
 0x525   : > { %8977 = vmatpush.bf16.msk.msra.mxu3 %vm8976_vm0, %v9814_v26  ;;  %vm8930_vm3 = vmpackc.low %vm2479_vm12, %vm2463_vm11  ;;  %vm3247_vm5 = vcmp.eq.s32.totalorder %v2207_v33, %v11424_v3  ;;  %v1391_v36 = vld [vmem:[#allocation3 + $0x1908] sm:$0xff]  ;;  %v6994_v38 = vsel %vm6988_vm9, %v6992_v21, %v6993_v30  ;;  %v1663_v39 = vld [vmem:[#allocation3 + $0x1c20] sm:$0xff]  ;;  %vm2687_vm11 = vcmp.eq.s32.totalorder %v1647_v13, %v11424_v3 }
 0x526   : > { %v1407_v37 = vld [vmem:[#allocation3 + $0xc28] sm:$0xff]  ;;  %8931 = vmatpush.bf16.msk.msra.mxu0 %vm8930_vm3, %v9814_v26  ;;  %vm8946_vm6 = vmpackc.low %vm2735_vm15, %vm2719_vm14  ;;  %vm2431_vm7 = vcmp.eq.s32.totalorder %v1391_v36, %v11424_v3  ;;  %v7054_v40 = vadd.f32 %v6994_v38, %v6957_v24  ;;  %vm2703_vm12 = vcmp.eq.s32.totalorder %v1663_v39, %v11424_v3  ;;  %v1903_v41 = vld [vmem:[#allocation3 + $0x16e0] sm:$0xff] }
 0x527   : > { %vm2447_vm8 = vcmp.eq.s32.totalorder %v1407_v37, %v11424_v3  ;;  %8947 = vmatpush.bf16.msk.msra.mxu1 %vm8946_vm6, %v9814_v26  ;;  %vm8962_vm10 = vmpackc.low %vm2991_vm2, %vm2975_vm1  ;;  %v1919_v43 = vld [vmem:[#allocation3 + $0x290] sm:$0xff]  ;;  %vm2943_vm15 = vcmp.eq.s32.totalorder %v1903_v41, %v11424_v3  ;;  %v2159_v46 = vld [vmem:[#allocation3 + $0x1a0] sm:$0xff] }
 0x528   : > { %8963 = vmatpush.bf16.msk.msra.mxu2 %vm8962_vm10, %v9814_v26  ;;  %vm8978_vm14 = vmpackc.low %vm3247_vm5, %vm3231_vm4  ;;  %vm2959_vm0 = vcmp.eq.s32.totalorder %v1919_v43, %v11424_v3  ;;  %v2175_v45 = vld [vmem:[#allocation3 + $0x350] sm:$0xff]  ;;  %v7085_v25 = vrot.slane %v7054_v40, 4  ;;  %vm3199_vm2 = vcmp.eq.s32.totalorder %v2159_v46, %v11424_v3  ;;  %v1375_v52 = vld [vmem:[#allocation3 + $0x1b40] sm:$0xff] }
 0x529   : > { %8979 = vmatpush.bf16.msk.msra.mxu3 %vm8978_vm14, %v9814_v26  ;;  %vm8932_vm1 = vmpackc.low %vm2447_vm8, %vm2431_vm7  ;;  %vm3215_vm3 = vcmp.eq.s32.totalorder %v2175_v45, %v11424_v3  ;;  %v6900_v48 = vld [vmem:[#allocation2 + $0x30] sm:$0x77]  ;;  %v1615_v54 = vld [vmem:[#allocation3 + $0x838] sm:$0xff]  ;;  %vm2415_vm7 = vcmp.eq.s32.totalorder %v1375_v52, %v11424_v3 }
 0x52a   : > { %v1359_v49 = vld [vmem:[#allocation3 + $0xaf0] sm:$0xff]  ;;  %8933 = vmatpush.bf16.msk.msra.mxu0 %vm8932_vm1, %v9814_v26  ;;  %vm8948_vm4 = vmpackc.low %vm2703_vm12, %vm2687_vm11  ;;  %v7094_v50 = vsel %vm7093_vm13, %v7053_v44, %v7085_v25  ;;  %vm2655_vm8 = vcmp.eq.s32.totalorder %v1615_v54, %v11424_v3  ;;  %v1887_v7 = vld [vmem:[#allocation3 + $0x1168] sm:$0xff] }
 0x52b   : > { %vm2399_vm5 = vcmp.eq.s32.totalorder %v1359_v49, %v11424_v3  ;;  %8949 = vmatpush.bf16.msk.msra.mxu1 %vm8948_vm4, %v9814_v26  ;;  %vm8964_vm6 = vmpackc.low %vm2959_vm0, %vm2943_vm15  ;;  %v7110_v34 = vadd.f32 %v7094_v50, %v6900_v48  ;;  %v1631_v56 = vld [vmem:[#allocation3 + $0x3f0] sm:$0xff]  ;;  %vm2927_vm15 = vcmp.eq.s32.totalorder %v1887_v7, %v11424_v3  ;;  %v2143_v60 = vld [vmem:[#allocation3 + $0x7c8] sm:$0xff] }
 0x52c   : > { %v1871_v57 = vld [vmem:[#allocation3 + $0x1ad0] sm:$0xff]  ;;  %8965 = vmatpush.bf16.msk.msra.mxu2 %vm8964_vm6, %v9814_v26  ;;  %vm8980_vm10 = vmpackc.low %vm3215_vm3, %vm3199_vm2  ;;  %vm2671_vm11 = vcmp.eq.s32.totalorder %v1631_v56, %v11424_v3  ;;  %v1584_v53 = vld [vmem:[#allocation3 + $0x258] sm:$0xff]  ;;  %vm3183_vm2 = vcmp.eq.s32.totalorder %v2143_v60, %v11424_v3 }
 0x52d   : > { %vm2911_vm12 = vcmp.eq.s32.totalorder %v1871_v57, %v11424_v3  ;;  %v2127_v59 = vld [vmem:[#allocation3 + $0x90] sm:$0xff]  ;;  %8981 = vmatpush.bf16.msk.msra.mxu3 %vm8980_vm10, %v9814_v26  ;;  %7118 = vst [vmem:[#allocation2 + $0x30] sm:$0x77] %v7110_v34  ;;  %vm8934_vm14 = vmpackc.low %vm2415_vm7, %vm2399_vm5  ;;  %v1600_v62 = vld [vmem:[#allocation3 + $0x1c80] sm:$0xff]  ;;  %vm2624_vm3 = vcmp.eq.s32.totalorder %v1584_v53, %v11682_v55 }
 0x52e   : > { %vm3167_vm0 = vcmp.eq.s32.totalorder %v2127_v59, %v11424_v3  ;;  %8935 = vmatpush.bf16.msk.msra.mxu0 %vm8934_vm14, %v9814_v26  ;;  %vm8950_vm1 = vmpackc.low %vm2671_vm11, %vm2655_vm8  ;;  %v1840_v63 = vld [vmem:[#allocation3 + $0x1368] sm:$0xff]  ;;  %vm2640_vm5 = vcmp.eq.s32.totalorder %v1600_v62, %v11682_v55  ;;  %v1856_v1 = vld [vmem:[#allocation3 + $0x1120] sm:$0xff]  ;;  %v11772_v29 = vpop.f32.mrf.mxu0 }
 0x52f   : > { %8951 = vmatpush.bf16.msk.msra.mxu1 %vm8950_vm1, %v9814_v26  ;;  %vm8966_vm4 = vmpackc.low %vm2927_vm15, %vm2911_vm12  ;;  %vm2880_vm6 = vcmp.eq.s32.totalorder %v1840_v63, %v11682_v55  ;;  %v2096_v2 = vld [vmem:[#allocation3 + $0x628] sm:$0xff]  ;;  %vm2896_vm8 = vcmp.eq.s32.totalorder %v1856_v1, %v11682_v55  ;;  %v2368_v6 = vld [vmem:[#allocation3 + $0x1b58] sm:$0xff]  ;;  %v11779_v31 = vpop.f32.mrf.mxu1 }
 0x530   : > { %8967 = vmatpush.bf16.msk.msra.mxu2 %vm8966_vm4, %v9814_v26  ;;  %vm8982_vm7 = vmpackc.low %vm3183_vm2, %vm3167_vm0  ;;  %v2112_v42 = vld [vmem:[#allocation3 + $0xb08] sm:$0xff]  ;;  %vm3136_vm10 = vcmp.eq.s32.totalorder %v2096_v2, %v11682_v55  ;;  %v1552_v8 = vld [vmem:[#allocation3 + $0x390] sm:$0xff]  ;;  %vm3408_vm0 = vcmp.eq.s32.totalorder %v2368_v6, %v11682_v55 }
 0x531   : > { %v2352_v4 = vld [vmem:[#allocation3 + $0x10e8] sm:$0xff]  ;;  %8983 = vmatpush.bf16.msk.msra.mxu3 %vm8982_vm7, %v9814_v26  ;;  %vm8984_vm11 = vmpackc.low %vm2640_vm5, %vm2624_vm3  ;;  %vm3152_vm12 = vcmp.eq.s32.totalorder %v2112_v42, %v11682_v55  ;;  %6348 = vmatmul.bf16.vlgmr.msra.gmra.mxu0 %v10408_v61  ;;  %vm2592_vm1 = vcmp.eq.s32.totalorder %v1552_v8, %v11682_v55  ;;  %v1808_v9 = vld [vmem:[#allocation3 + $0xb30] sm:$0xff] }
 0x532   : > { %vm3392_vm14 = vcmp.eq.s32.totalorder %v2352_v4, %v11682_v55  ;;  %8985 = vmatpush.bf16.msk.msrb.mxu0 %vm8984_vm11, %v9814_v26  ;;  %vm9000_vm15 = vmpackc.low %vm2896_vm8, %vm2880_vm6  ;;  %v1568_v3 = vld [vmem:[#allocation3 + $0x1a08] sm:$0xff]  ;;  %6362 = vmatmul.bf16.vlgmr.msra.gmra.mxu1 %v10419_v0  ;;  %vm2848_vm4 = vcmp.eq.s32.totalorder %v1808_v9, %v11682_v55  ;;  %v2064_v11 = vld [vmem:[#allocation3 + $0xdf0] sm:$0xff] }
 0x533   : > { %9001 = vmatpush.bf16.msk.msrb.mxu1 %vm9000_vm15, %v9814_v26  ;;  %vm9016_vm2 = vmpackc.low %vm3152_vm12, %vm3136_vm10  ;;  %vm2608_vm3 = vcmp.eq.s32.totalorder %v1568_v3, %v11682_v55  ;;  %v1824_v10 = vld [vmem:[#allocation3 + $0x1388] sm:$0xff]  ;;  %6376 = vmatmul.bf16.vlgmr.msra.gmra.mxu2 %v10357_v47  ;;  %v2080_v12 = vld [vmem:[#allocation3 + $0x470] sm:$0xff]  ;;  %vm3104_vm7 = vcmp.eq.s32.totalorder %v2064_v11, %v11682_v55 }
 0x534   : > { %9017 = vmatpush.bf16.msk.msrb.mxu2 %vm9016_vm2, %v9814_v26  ;;  %vm9032_vm5 = vmpackc.low %vm3408_vm0, %vm3392_vm14  ;;  %vm2864_vm6 = vcmp.eq.s32.totalorder %v1824_v10, %v11682_v55  ;;  %v2320_v15 = vld [vmem:[#allocation3 + $0x17c0] sm:$0xff]  ;;  %6390 = vmatmul.bf16.vlgmr.msra.gmra.mxu3 %v10397_v58  ;;  %vm3120_vm10 = vcmp.eq.s32.totalorder %v2080_v12, %v11682_v55  ;;  %v2336_v16 = vld [vmem:[#allocation3 + $0x11c8] sm:$0xff] }
 0x535   : > { %9033 = vmatpush.bf16.msk.msrb.mxu3 %vm9032_vm5, %v9814_v26  ;;  %vm8986_vm8 = vmpackc.low %vm2608_vm3, %vm2592_vm1  ;;  %vm3360_vm11 = vcmp.eq.s32.totalorder %v2320_v15, %v11682_v55  ;;  %v1520_v17 = vld [vmem:[#allocation3 + $0x7b8] sm:$0xff]  ;;  %vm3376_vm14 = vcmp.eq.s32.totalorder %v2336_v16, %v11682_v55  ;;  %v1536_v18 = vld [vmem:[#allocation3 + $0xb60] sm:$0xff] }
 0x536   : > { %8987 = vmatpush.bf16.msk.msrb.mxu0 %vm8986_vm8, %v9814_v26  ;;  %vm9002_vm12 = vmpackc.low %vm2864_vm6, %vm2848_vm4  ;;  %vm2560_vm15 = vcmp.eq.s32.totalorder %v1520_v17, %v11682_v55  ;;  %v1776_v19 = vld [vmem:[#allocation3 + $0xa78] sm:$0xff]  ;;  %vm2576_vm1 = vcmp.eq.s32.totalorder %v1536_v18, %v11682_v55  ;;  %v1792_v20 = vld [vmem:[#allocation3 + $0xd0] sm:$0xff]  ;;  %v11817_v48 = vpop.f32.mrf.mxu2  ;;  %v11831_v56 = vpop.f32.mrf.mxu0 }
 0x537   : > { %9003 = vmatpush.bf16.msk.msrb.mxu1 %vm9002_vm12, %v9814_v26  ;;  %vm9018_vm0 = vmpackc.low %vm3120_vm10, %vm3104_vm7  ;;  %vm2816_vm2 = vcmp.eq.s32.totalorder %v1776_v19, %v11682_v55  ;;  %v2032_v21 = vld [vmem:[#allocation3 + $0xb20] sm:$0xff]  ;;  %vm2832_vm4 = vcmp.eq.s32.totalorder %v1792_v20, %v11682_v55  ;;  %v2048_v22 = vld [vmem:[#allocation3 + $0x4b0] sm:$0xff]  ;;  %v11824_v52 = vpop.f32.mrf.mxu3  ;;  %v11838_v59 = vpop.f32.mrf.mxu1 }
 0x538   : > { %9019 = vmatpush.bf16.msk.msrb.mxu2 %vm9018_vm0, %v9814_v26  ;;  %vm9034_vm3 = vmpackc.low %vm3376_vm14, %vm3360_vm11  ;;  %vm3072_vm5 = vcmp.eq.s32.totalorder %v2032_v21, %v11682_v55  ;;  %v2288_v51 = vld [vmem:[#allocation3 + $0xc0] sm:$0xff]  ;;  %vm3088_vm7 = vcmp.eq.s32.totalorder %v2048_v22, %v11682_v55  ;;  %v1488_v24 = vld [vmem:[#allocation3 + $0xb70] sm:$0xff] }
 0x539   : > { %9035 = vmatpush.bf16.msk.msrb.mxu3 %vm9034_vm3, %v9814_v26  ;;  %vm8988_vm6 = vmpackc.low %vm2576_vm1, %vm2560_vm15  ;;  %v2304_v23 = vld [vmem:[#allocation3 + $0xa80] sm:$0xff]  ;;  %vm3328_vm8 = vcmp.eq.s32.totalorder %v2288_v51, %v11682_v55  ;;  %vm2528_vm12 = vcmp.eq.s32.totalorder %v1488_v24, %v11682_v55  ;;  %v1744_v28 = vld [vmem:[#allocation3 + $0x398] sm:$0xff] }
 0x53a   : > { %8989 = vmatpush.bf16.msk.msrb.mxu0 %vm8988_vm6, %v9814_v26  ;;  %vm9004_vm10 = vmpackc.low %vm2832_vm4, %vm2816_vm2  ;;  %vm3344_vm11 = vcmp.eq.s32.totalorder %v2304_v23, %v11682_v55  ;;  %v1504_v27 = vld [vmem:[#allocation3 + $0x17e0] sm:$0xff]  ;;  %vm2784_vm0 = vcmp.eq.s32.totalorder %v1744_v28, %v11682_v55  ;;  %v2000_v30 = vld [vmem:[#allocation3 + $0x198] sm:$0xff] }
 0x53b   : > { %9005 = vmatpush.bf16.msk.msrb.mxu1 %vm9004_vm10, %v9814_v26  ;;  %vm9020_vm14 = vmpackc.low %vm3088_vm7, %vm3072_vm5  ;;  %vm2544_vm15 = vcmp.eq.s32.totalorder %v1504_v27, %v11682_v55  ;;  %v1760_v14 = vld [vmem:[#allocation3 + $0x14a0] sm:$0xff]  ;;  %vm3040_vm3 = vcmp.eq.s32.totalorder %v2000_v30, %v11682_v55  ;;  %v2256_v33 = vld [vmem:[#allocation3 + $0x730] sm:$0xff] }
 0x53c   : > { %9021 = vmatpush.bf16.msk.msrb.mxu2 %vm9020_vm14, %v9814_v26  ;;  %vm9036_vm1 = vmpackc.low %vm3344_vm11, %vm3328_vm8  ;;  %vm2800_vm2 = vcmp.eq.s32.totalorder %v1760_v14, %v11682_v55  ;;  %v2016_v32 = vld [vmem:[#allocation3 + $0x560] sm:$0xff]  ;;  %v2272_v35 = vld [vmem:[#allocation3 + $0x370] sm:$0xff]  ;;  %vm3296_vm6 = vcmp.eq.s32.totalorder %v2256_v33, %v11682_v55 }
 0x53d   : > { %9037 = vmatpush.bf16.msk.msrb.mxu3 %vm9036_vm1, %v9814_v26  ;;  %vm8990_vm4 = vmpackc.low %vm2544_vm15, %vm2528_vm12  ;;  %vm3056_vm5 = vcmp.eq.s32.totalorder %v2016_v32, %v11682_v55  ;;  %v1456_v36 = vld [vmem:[#allocation3 + $0x400] sm:$0xff]  ;;  %vm3312_vm8 = vcmp.eq.s32.totalorder %v2272_v35, %v11682_v55  ;;  %v1472_v37 = vld [vmem:[#allocation3 + $0x3d0] sm:$0xff] }
 0x53e   : > { %8991 = vmatpush.bf16.msk.msrb.mxu0 %vm8990_vm4, %v9814_v26  ;;  %vm9006_vm7 = vmpackc.low %vm2800_vm2, %vm2784_vm0  ;;  %vm2496_vm10 = vcmp.eq.s32.totalorder %v1456_v36, %v11682_v55  ;;  %v1712_v38 = vld [vmem:[#allocation3 + $0x1e80] sm:$0xff]  ;;  %vm2512_vm12 = vcmp.eq.s32.totalorder %v1472_v37, %v11682_v55  ;;  %v1728_v13 = vld [vmem:[#allocation3 + $0xa90] sm:$0xff]  ;;  %v11882_v15 = vpop.f32.mrf.mxu2  ;;  %v6142_v37 = vadd.f32 %v11838_v59, %v11831_v56 }
 0x53f   : > { %9007 = vmatpush.bf16.msk.msrb.mxu1 %vm9006_vm7, %v9814_v26  ;;  %vm9022_vm11 = vmpackc.low %vm3056_vm5, %vm3040_vm3  ;;  %vm2752_vm14 = vcmp.eq.s32.totalorder %v1712_v38, %v11682_v55  ;;  %v1968_v39 = vld [vmem:[#allocation3 + $0xe18] sm:$0xff]  ;;  %vm2768_vm0 = vcmp.eq.s32.totalorder %v1728_v13, %v11682_v55  ;;  %v1984_v40 = vld [vmem:[#allocation3 + $0x940] sm:$0xff]  ;;  %v11889_v18 = vpop.f32.mrf.mxu3 }
 0x540   : > { %9023 = vmatpush.bf16.msk.msrb.mxu2 %vm9022_vm11, %v9814_v26  ;;  %vm9038_vm15 = vmpackc.low %vm3312_vm8, %vm3296_vm6  ;;  %vm3008_vm1 = vcmp.eq.s32.totalorder %v1968_v39, %v11682_v55  ;;  %v2224_v41 = vld [vmem:[#allocation3 + $0x15a8] sm:$0xff]  ;;  %v1349_v43 = vld [vmem:[%s9957_s24 + $0x8] sm:$0xff]  ;;  %vm3024_vm3 = vcmp.eq.s32.totalorder %v1984_v40, %v11682_v55 }
 0x541   : > { %9039 = vmatpush.bf16.msk.msrb.mxu3 %vm9038_vm15, %v9814_v26  ;;  %vm8992_vm2 = vmpackc.low %vm2512_vm12, %vm2496_vm10  ;;  %v2240_v44 = vld [vmem:[#allocation3 + $0x1a20] sm:$0xff]  ;;  %vm3264_vm4 = vcmp.eq.s32.totalorder %v2224_v41, %v11682_v55  ;;  %v1440_v45 = vld [vmem:[#allocation3 + $0x1f18] sm:$0xff]  ;;  %v11842_v60 = vsub.s32 %v1349_v43, %v1350_v5 }
 0x542   : > { %v1424_v46 = vld [vmem:[#allocation3 + $0x1d80] sm:$0xff]  ;;  %8993 = vmatpush.bf16.msk.msrb.mxu0 %vm8992_vm2, %v9814_v26  ;;  %vm9008_vm5 = vmpackc.low %vm2768_vm0, %vm2752_vm14  ;;  %vm3280_vm6 = vcmp.eq.s32.totalorder %v2240_v44, %v11682_v55  ;;  %v1680_v25 = vld [vmem:[#allocation3 + $0xe08] sm:$0xff]  ;;  %vm2480_vm10 = vcmp.eq.s32.totalorder %v1440_v45, %v11682_v55 }
 0x543   : > { %vm2464_vm7 = vcmp.eq.s32.totalorder %v1424_v46, %v11682_v55  ;;  %9009 = vmatpush.bf16.msk.msrb.mxu1 %vm9008_vm5, %v9814_v26  ;;  %vm9024_vm8 = vmpackc.low %vm3024_vm3, %vm3008_vm1  ;;  %v1696_v49 = vld [vmem:[#allocation3 + $0xde0] sm:$0xff]  ;;  %vm2720_vm11 = vcmp.eq.s32.totalorder %v1680_v25, %v11682_v55  ;;  %v1936_v50 = vld [vmem:[#allocation3 + $0x1b10] sm:$0xff]  ;;  %v11870_v3 = vperm.slane %v11842_v60, 0 }
 0x544   : > { %9025 = vmatpush.bf16.msk.msrb.mxu2 %vm9024_vm8, %v9814_v26  ;;  %vm9040_vm12 = vmpackc.low %vm3280_vm6, %vm3264_vm4  ;;  %vm2736_vm14 = vcmp.eq.s32.totalorder %v1696_v49, %v11682_v55  ;;  %v1952_v54 = vld [vmem:[#allocation3 + $0x1518] sm:$0xff]  ;;  %vm2976_vm15 = vcmp.eq.s32.totalorder %v1936_v50, %v11682_v55  ;;  %v2192_v34 = vld [vmem:[#allocation3 + $0x1500] sm:$0xff]  ;;  %v6156_v50 = vadd.f32 %v11882_v15, %v6142_v37 }
 0x545   : > { %9041 = vmatpush.bf16.msk.msrb.mxu3 %vm9040_vm12, %v9814_v26  ;;  %vm8994_vm0 = vmpackc.low %vm2480_vm10, %vm2464_vm7  ;;  %vm2992_vm1 = vcmp.eq.s32.totalorder %v1952_v54, %v11682_v55  ;;  %v2208_v57 = vld [vmem:[#allocation3 + $0xb28] sm:$0xff]  ;;  %vm3232_vm2 = vcmp.eq.s32.totalorder %v2192_v34, %v11682_v55  ;;  %v1392_v7 = vld [vmem:[#allocation3 + $0x1e98] sm:$0xff] }
 0x546   : > { %8995 = vmatpush.bf16.msk.msrb.mxu0 %vm8994_vm0, %v9814_v26  ;;  %vm9010_vm3 = vmpackc.low %vm2736_vm14, %vm2720_vm11  ;;  %vm3248_vm4 = vcmp.eq.s32.totalorder %v2208_v57, %v11682_v55  ;;  %v1408_v53 = vld [vmem:[#allocation3 + $0x18a8] sm:$0xff]  ;;  %vm2432_vm5 = vcmp.eq.s32.totalorder %v1392_v7, %v11682_v55  ;;  %v1648_v62 = vld [vmem:[#allocation3 + $0x1fa0] sm:$0xff] }
 0x547   : > { %9011 = vmatpush.bf16.msk.msrb.mxu1 %vm9010_vm3, %v9814_v26  ;;  %vm9026_vm6 = vmpackc.low %vm2992_vm1, %vm2976_vm15  ;;  %vm2448_vm7 = vcmp.eq.s32.totalorder %v1408_v53, %v11682_v55  ;;  %v1664_v5 = vld [vmem:[#allocation3 + $0x1078] sm:$0xff]  ;;  %vm2688_vm8 = vcmp.eq.s32.totalorder %v1648_v62, %v11682_v55  ;;  %v1920_v1 = vld [vmem:[#allocation3 + $0x908] sm:$0xff] }
 0x548   : > { %v1904_v63 = vld [vmem:[#allocation3 + $0x1cd8] sm:$0xff]  ;;  %9027 = vmatpush.bf16.msk.msrb.mxu2 %vm9026_vm6, %v9814_v26  ;;  %vm9042_vm10 = vmpackc.low %vm3248_vm4, %vm3232_vm2  ;;  %vm2704_vm11 = vcmp.eq.s32.totalorder %v1664_v5, %v11682_v55  ;;  %v2160_v2 = vld [vmem:[#allocation3 + $0xd10] sm:$0xff]  ;;  %vm2960_vm15 = vcmp.eq.s32.totalorder %v1920_v1, %v11682_v55 }
 0x549   : > { %vm2944_vm12 = vcmp.eq.s32.totalorder %v1904_v63, %v11682_v55  ;;  %9043 = vmatpush.bf16.msk.msrb.mxu3 %vm9042_vm10, %v9814_v26  ;;  %vm8996_vm14 = vmpackc.low %vm2448_vm7, %vm2432_vm5  ;;  %v2176_v42 = vld [vmem:[#allocation3 + $0x1198] sm:$0xff]  ;;  %vm3200_vm0 = vcmp.eq.s32.totalorder %v2160_v2, %v11682_v55  ;;  %v1360_v4 = vld [vmem:[#allocation3 + $0xd20] sm:$0xff] }
 0x54a   : > { %8997 = vmatpush.bf16.msk.msrb.mxu0 %vm8996_vm14, %v9814_v26  ;;  %vm9012_vm1 = vmpackc.low %vm2704_vm11, %vm2688_vm8  ;;  %vm3216_vm2 = vcmp.eq.s32.totalorder %v2176_v42, %v11682_v55  ;;  %v1376_v6 = vld [vmem:[#allocation3 + $0x910] sm:$0xff]  ;;  %vm2400_vm3 = vcmp.eq.s32.totalorder %v1360_v4, %v11682_v55  ;;  %v1872_v10 = vld [vmem:[#allocation3 + $0x1180] sm:$0xff] }
 0x54b   : > { %v1616_v8 = vld [vmem:[#allocation3 + $0x5b0] sm:$0xff]  ;;  %9013 = vmatpush.bf16.msk.msrb.mxu1 %vm9012_vm1, %v9814_v26  ;;  %vm9028_vm4 = vmpackc.low %vm2960_vm15, %vm2944_vm12  ;;  %vm2416_vm5 = vcmp.eq.s32.totalorder %v1376_v6, %v11682_v55  ;;  %v1888_v11 = vld [vmem:[#allocation3 + $0x16e8] sm:$0xff]  ;;  %vm2912_vm10 = vcmp.eq.s32.totalorder %v1872_v10, %v11682_v55 }
 0x54c   : > { %v1632_v9 = vld [vmem:[#allocation3 + $0x1c50] sm:$0xff]  ;;  %vm2656_vm6 = vcmp.eq.s32.totalorder %v1616_v8, %v11682_v55  ;;  %9029 = vmatpush.bf16.msk.msrb.mxu2 %vm9028_vm4, %v9814_v26  ;;  %vm9044_vm7 = vmpackc.low %vm3216_vm2, %vm3200_vm0  ;;  %v2128_v12 = vld [vmem:[#allocation3 + $0xc48] sm:$0xff]  ;;  %vm2928_vm12 = vcmp.eq.s32.totalorder %v1888_v11, %v11682_v55 }
 0x54d   : > { %vm2672_vm8 = vcmp.eq.s32.totalorder %v1632_v9, %v11682_v55  ;;  %9045 = vmatpush.bf16.msk.msrb.mxu3 %vm9044_vm7, %v9814_v26  ;;  %vm8998_vm11 = vmpackc.low %vm2416_vm5, %vm2400_vm3  ;;  %v2144_v16 = vld [vmem:[#allocation3 + $0x1a30] sm:$0xff]  ;;  %vm3168_vm14 = vcmp.eq.s32.totalorder %v2128_v12, %v11682_v55  ;;  %v1585_v17 = vld [vmem:[#allocation3 + $0xa0] sm:$0xff] }
 0x54e   : > { %8999 = vmatpush.bf16.msk.msrb.mxu0 %vm8998_vm11, %v9814_v26  ;;  %vm9014_vm15 = vmpackc.low %vm2672_vm8, %vm2656_vm6  ;;  %vm3184_vm0 = vcmp.eq.s32.totalorder %v2144_v16, %v11682_v55  ;;  %v1601_v19 = vld [vmem:[#allocation3 + $0xa30] sm:$0xff]  ;;  %vm2625_vm1 = vcmp.eq.s32.totalorder %v1585_v17, %v11870_v3  ;;  %v1841_v20 = vld [vmem:[#allocation3 + $0x798] sm:$0xff]  ;;  %v6181_v21 = vpop.f32.mrf.mxu0  ;;  %v6140_v55 = vadd.f32 %v11779_v31, %v11772_v29 }
 0x54f   : > { %9015 = vmatpush.bf16.msk.msrb.mxu1 %vm9014_vm15, %v9814_v26  ;;  %vm9030_vm2 = vmpackc.low %vm2928_vm12, %vm2912_vm10  ;;  %vm2641_vm3 = vcmp.eq.s32.totalorder %v1601_v19, %v11870_v3  ;;  %v1857_v22 = vld [vmem:[#allocation3 + $0x1b48] sm:$0xff]  ;;  %vm2881_vm4 = vcmp.eq.s32.totalorder %v1841_v20, %v11870_v3  ;;  %v2097_v51 = vld [vmem:[#allocation3 + $0xc18] sm:$0xff]  ;;  %v6195_v23 = vpop.f32.mrf.mxu1 }
 0x550   : > { %9031 = vmatpush.bf16.msk.msrb.mxu2 %vm9030_vm2, %v9814_v26  ;;  %vm9046_vm5 = vmpackc.low %vm3184_vm0, %vm3168_vm14  ;;  %vm2897_vm6 = vcmp.eq.s32.totalorder %v1857_v22, %v11870_v3  ;;  %v2113_v24 = vld [vmem:[#allocation3 + $0x1280] sm:$0xff]  ;;  %vm3137_vm7 = vcmp.eq.s32.totalorder %v2097_v51, %v11870_v3  ;;  %v2353_v27 = vld [vmem:[#allocation3 + $0xb8] sm:$0xff]  ;;  %v6196_v33 = vadd.f32 %v6195_v23, %v6181_v21  ;;  %v6154_v43 = vadd.f32 %v11817_v48, %v6140_v55 }
 0x551   : > { %9047 = vmatpush.bf16.msk.msrb.mxu3 %vm9046_vm5, %v9814_v26  ;;  %vm9048_vm8 = vmpackc.low %vm2641_vm3, %vm2625_vm1  ;;  %vm3153_vm10 = vcmp.eq.s32.totalorder %v2113_v24, %v11870_v3  ;;  %v2369_v28 = vld [vmem:[#allocation3 + $0x9d0] sm:$0xff]  ;;  %vm3393_vm11 = vcmp.eq.s32.totalorder %v2353_v27, %v11870_v3  ;;  %v1553_v14 = vld [vmem:[#allocation3 + $0x1c48] sm:$0xff]  ;;  %6404 = vmatmul.bf16.vlgmr.msrb.gmra.mxu0 %v10408_v61 }
 0x552   : > { %9049 = vmatpush.bf16.msk.msra.mxu0 %vm9048_vm8, %v9814_v26  ;;  %vm9064_vm12 = vmpackc.low %vm2897_vm6, %vm2881_vm4  ;;  %vm3409_vm14 = vcmp.eq.s32.totalorder %v2369_v28, %v11870_v3  ;;  %v1569_v30 = vld [vmem:[#allocation3 + $0xef8] sm:$0xff]  ;;  %vm2593_vm15 = vcmp.eq.s32.totalorder %v1553_v14, %v11870_v3  ;;  %v1809_v32 = vld [vmem:[#allocation3 + $0x5e0] sm:$0xff]  ;;  %6418 = vmatmul.bf16.vlgmr.msrb.gmra.mxu1 %v10419_v0  ;;  %v11973_v62 = vadd.f32 %v11824_v52, %v6154_v43 }
 0x553   : > { %9065 = vmatpush.bf16.msk.msra.mxu1 %vm9064_vm12, %v9814_v26  ;;  %vm9080_vm0 = vmpackc.low %vm3153_vm10, %vm3137_vm7  ;;  %6432 = vmatmul.bf16.vlgmr.msrb.gmra.mxu2 %v10357_v47  ;;  %vm2609_vm1 = vcmp.eq.s32.totalorder %v1569_v30, %v11870_v3  ;;  %v1825_v29 = vld [vmem:[#allocation3 + $0x1670] sm:$0xff]  ;;  %vm2849_vm2 = vcmp.eq.s32.totalorder %v1809_v32, %v11870_v3  ;;  %v2065_v31 = vld [vmem:[#allocation3 + $0x320] sm:$0xff]  ;;  %v11984_v52 = vadd.f32 %v11889_v18, %v6156_v50 }
 0x554   : > { %9081 = vmatpush.bf16.msk.msra.mxu2 %vm9080_vm0, %v9814_v26  ;;  %vm9096_vm3 = vmpackc.low %vm3409_vm14, %vm3393_vm11  ;;  %6446 = vmatmul.bf16.vlgmr.msrb.gmra.mxu3 %v10397_v58  ;;  %vm2865_vm4 = vcmp.eq.s32.totalorder %v1825_v29, %v11870_v3  ;;  %v2081_v35 = vld [vmem:[#allocation3 + $0x1270] sm:$0xff]  ;;  %vm3105_vm5 = vcmp.eq.s32.totalorder %v2065_v31, %v11870_v3  ;;  %v2321_v36 = vld [vmem:[#allocation3 + $0x1d18] sm:$0xff]  ;;  %v6926_v12 = vrot.slane %v11973_v62, 3  ;;  %v6995_v19 = vrot.slane %v11973_v62, 6 }
 0x555   : > { %9097 = vmatpush.bf16.msk.msra.mxu3 %vm9096_vm3, %v9814_v26  ;;  %vm9050_vm6 = vmpackc.low %vm2609_vm1, %vm2593_vm15  ;;  %vm3121_vm7 = vcmp.eq.s32.totalorder %v2081_v35, %v11870_v3  ;;  %v2337_v38 = vld [vmem:[#allocation3 + $0x8a0] sm:$0xff]  ;;  %vm3361_vm8 = vcmp.eq.s32.totalorder %v2321_v36, %v11870_v3  ;;  %v1537_v39 = vld [vmem:[#allocation3 + $0xa28] sm:$0xff]  ;;  %v6996_v20 = vrot.slane %v11984_v52, 6 }
 0x556   : > { %v1521_v13 = vld [vmem:[#allocation3 + $0x6e0] sm:$0xff]  ;;  %9051 = vmatpush.bf16.msk.msra.mxu0 %vm9050_vm6, %v9814_v26  ;;  %vm9066_vm10 = vmpackc.low %vm2865_vm4, %vm2849_vm2  ;;  %vm3377_vm11 = vcmp.eq.s32.totalorder %v2337_v38, %v11870_v3  ;;  %v1777_v40 = vld [vmem:[#allocation3 + $0xcb0] sm:$0xff]  ;;  %v6209_v41 = vpop.f32.mrf.mxu2  ;;  %vm2577_vm15 = vcmp.eq.s32.totalorder %v1537_v39, %v11870_v3  ;;  %v6183_v54 = vpop.f32.mrf.mxu0  ;;  %v6958_v31 = vadd.f32 %v6926_v12, %v11973_v62 }
 0x557   : > { %vm2561_vm12 = vcmp.eq.s32.totalorder %v1521_v13, %v11870_v3  ;;  %9067 = vmatpush.bf16.msk.msra.mxu1 %vm9066_vm10, %v9814_v26  ;;  %vm9082_vm14 = vmpackc.low %vm3121_vm7, %vm3105_vm5  ;;  %v1793_v44 = vld [vmem:[#allocation3 + $0x1248] sm:$0xff]  ;;  %vm2817_vm0 = vcmp.eq.s32.totalorder %v1777_v40, %v11870_v3  ;;  %v2033_v46 = vld [vmem:[#allocation3 + $0x19f8] sm:$0xff]  ;;  %v6210_v45 = vadd.f32 %v6209_v41, %v6196_v33  ;;  %v6223_v25 = vpop.f32.mrf.mxu3  ;;  %v6197_v34 = vpop.f32.mrf.mxu1  ;;  %v6997_v36 = vsel %vm6988_vm9, %v6995_v19, %v6996_v20 }
 0x558   : > { %9083 = vmatpush.bf16.msk.msra.mxu2 %vm9082_vm14, %v9814_v26  ;;  %vm9098_vm1 = vmpackc.low %vm3377_vm11, %vm3361_vm8  ;;  %vm2833_vm2 = vcmp.eq.s32.totalorder %v1793_v44, %v11870_v3  ;;  %v2049_v48 = vld [vmem:[#allocation3 + $0x270] sm:$0xff]  ;;  %vm3073_vm3 = vcmp.eq.s32.totalorder %v2033_v46, %v11870_v3  ;;  %v2289_v49 = vld [vmem:[#allocation3 + $0x1068] sm:$0xff]  ;;  %v6198_v1 = vadd.f32 %v6197_v34, %v6183_v54  ;;  %v7055_v46 = vadd.f32 %v6997_v36, %v6958_v31 }
 0x559   : > { %9099 = vmatpush.bf16.msk.msra.mxu3 %vm9098_vm1, %v9814_v26  ;;  %vm9052_vm4 = vmpackc.low %vm2577_vm15, %vm2561_vm12  ;;  %vm3089_vm5 = vcmp.eq.s32.totalorder %v2049_v48, %v11870_v3  ;;  %v2305_v56 = vld [vmem:[#allocation3 + $0xdf8] sm:$0xff]  ;;  %vm3329_vm6 = vcmp.eq.s32.totalorder %v2289_v49, %v11870_v3  ;;  %v1489_v57 = vld [vmem:[#allocation3 + $0xee8] sm:$0xff]  ;;  %v11970_v53 = vadd.f32 %v6223_v25, %v6210_v45 }
 0x55a   : > { %9053 = vmatpush.bf16.msk.msra.mxu0 %vm9052_vm4, %v9814_v26  ;;  %vm9068_vm7 = vmpackc.low %vm2833_vm2, %vm2817_vm0  ;;  %vm3345_vm8 = vcmp.eq.s32.totalorder %v2305_v56, %v11870_v3  ;;  %v1505_v7 = vld [vmem:[#allocation3 + $0x60] sm:$0xff]  ;;  %vm2529_vm10 = vcmp.eq.s32.totalorder %v1489_v57, %v11870_v3  ;;  %v1745_v59 = vld [vmem:[#allocation3 + $0x1ea8] sm:$0xff] }
 0x55b   : > { %9069 = vmatpush.bf16.msk.msra.mxu1 %vm9068_vm7, %v9814_v26  ;;  %vm9084_vm11 = vmpackc.low %vm3089_vm5, %vm3073_vm3  ;;  %vm2545_vm12 = vcmp.eq.s32.totalorder %v1505_v7, %v11870_v3  ;;  %v1761_v5 = vld [vmem:[#allocation3 + $0x2f0] sm:$0xff]  ;;  %vm2785_vm14 = vcmp.eq.s32.totalorder %v1745_v59, %v11870_v3  ;;  %v2001_v63 = vld [vmem:[#allocation3 + $0x6c0] sm:$0xff]  ;;  %v6927_v10 = vrot.slane %v11970_v53, 3  ;;  %v6998_v23 = vrot.slane %v11970_v53, 6 }
 0x55c   : > { %9085 = vmatpush.bf16.msk.msra.mxu2 %vm9084_vm11, %v9814_v26  ;;  %vm9100_vm15 = vmpackc.low %vm3345_vm8, %vm3329_vm6  ;;  %vm2801_vm0 = vcmp.eq.s32.totalorder %v1761_v5, %v11870_v3  ;;  %v2017_v2 = vld [vmem:[#allocation3 + $0x1638] sm:$0xff]  ;;  %vm3041_vm1 = vcmp.eq.s32.totalorder %v2001_v63, %v11870_v3  ;;  %v2257_v42 = vld [vmem:[#allocation3 + $0x4a0] sm:$0xff] }
 0x55d   : > { %9101 = vmatpush.bf16.msk.msra.mxu3 %vm9100_vm15, %v9814_v26  ;;  %vm9054_vm2 = vmpackc.low %vm2545_vm12, %vm2529_vm10  ;;  %vm3057_vm3 = vcmp.eq.s32.totalorder %v2017_v2, %v11870_v3  ;;  %v2273_v4 = vld [vmem:[#allocation3 + $0x1838] sm:$0xff]  ;;  %vm3297_vm4 = vcmp.eq.s32.totalorder %v2257_v42, %v11870_v3  ;;  %v1729_v15 = vld [vmem:[#allocation3 + $0x17f0] sm:$0xff]  ;;  %v6959_v28 = vadd.f32 %v6927_v10, %v11970_v53  ;;  %v12077_v53 = vperm.slane %v11842_v60, 1 }
 0x55e   : > { %v1457_v6 = vld [vmem:[#allocation3 + $0x3f8] sm:$0xff]  ;;  %9055 = vmatpush.bf16.msk.msra.mxu0 %vm9054_vm2, %v9814_v26  ;;  %vm9070_vm5 = vmpackc.low %vm2801_vm0, %vm2785_vm14  ;;  %vm3313_vm6 = vcmp.eq.s32.totalorder %v2273_v4, %v11870_v3  ;;  %v6211_v11 = vpop.f32.mrf.mxu2  ;;  %v1969_v16 = vld [vmem:[#allocation3 + $0x1770] sm:$0xff]  ;;  %vm2769_vm14 = vcmp.eq.s32.totalorder %v1729_v15, %v11870_v3 }
 0x55f   : > { %v1473_v8 = vld [vmem:[#allocation3 + $0x15d8] sm:$0xff]  ;;  %vm2497_vm7 = vcmp.eq.s32.totalorder %v1457_v6, %v11870_v3  ;;  %9071 = vmatpush.bf16.msk.msra.mxu1 %vm9070_vm5, %v9814_v26  ;;  %vm9086_vm8 = vmpackc.low %vm3057_vm3, %vm3041_vm1  ;;  %v6212_v17 = vadd.f32 %v6211_v11, %v6198_v1  ;;  %v6225_v18 = vpop.f32.mrf.mxu3  ;;  %v1985_v21 = vld [vmem:[#allocation3 + $0x1070] sm:$0xff]  ;;  %vm3009_vm15 = vcmp.eq.s32.totalorder %v1969_v16, %v11870_v3 }
 0x560   : > { %v1713_v9 = vld [vmem:[#allocation3 + $0xd18] sm:$0xff]  ;;  %vm2513_vm10 = vcmp.eq.s32.totalorder %v1473_v8, %v11870_v3  ;;  %9087 = vmatpush.bf16.msk.msra.mxu2 %vm9086_vm8, %v9814_v26  ;;  %vm9102_vm12 = vmpackc.low %vm3313_vm6, %vm3297_vm4  ;;  %v2225_v22 = vld [vmem:[#allocation3 + $0x1488] sm:$0xff]  ;;  %vm3025_vm1 = vcmp.eq.s32.totalorder %v1985_v21, %v11870_v3 }
 0x561   : > { %vm2753_vm11 = vcmp.eq.s32.totalorder %v1713_v9, %v11870_v3  ;;  %9103 = vmatpush.bf16.msk.msra.mxu3 %vm9102_vm12, %v9814_v26  ;;  %vm9056_vm0 = vmpackc.low %vm2513_vm10, %vm2497_vm7  ;;  %v2241_v51 = vld [vmem:[#allocation3 + $0x2e8] sm:$0xff]  ;;  %vm3265_vm2 = vcmp.eq.s32.totalorder %v2225_v22, %v11870_v3  ;;  %v1425_v24 = vld [vmem:[#allocation3 + $0x630] sm:$0xff]  ;;  %v6226_v27 = vadd.f32 %v6225_v18, %v6212_v17 }
 0x562   : > { %9057 = vmatpush.bf16.msk.msra.mxu0 %vm9056_vm0, %v9814_v26  ;;  %vm9072_vm3 = vmpackc.low %vm2769_vm14, %vm2753_vm11  ;;  %vm3281_vm4 = vcmp.eq.s32.totalorder %v2241_v51, %v11870_v3  ;;  %v1441_v14 = vld [vmem:[#allocation3 + $0x8c0] sm:$0xff]  ;;  %vm2465_vm5 = vcmp.eq.s32.totalorder %v1425_v24, %v11870_v3  ;;  %v1681_v55 = vld [vmem:[#allocation3 + $0x5e8] sm:$0xff] }
 0x563   : > { %9073 = vmatpush.bf16.msk.msra.mxu1 %vm9072_vm3, %v9814_v26  ;;  %vm9088_vm6 = vmpackc.low %vm3025_vm1, %vm3009_vm15  ;;  %vm2481_vm7 = vcmp.eq.s32.totalorder %v1441_v14, %v11870_v3  ;;  %v1697_v30 = vld [vmem:[#allocation3 + $0x9e0] sm:$0xff]  ;;  %vm2721_vm8 = vcmp.eq.s32.totalorder %v1681_v55, %v11870_v3  ;;  %v1937_v32 = vld [vmem:[#allocation3 + $0x13d0] sm:$0xff]  ;;  %v6999_v29 = vrot.slane %v6226_v27, 6 }
 0x564   : > { %9089 = vmatpush.bf16.msk.msra.mxu2 %vm9088_vm6, %v9814_v26  ;;  %vm9104_vm10 = vmpackc.low %vm3281_vm4, %vm3265_vm2  ;;  %vm2737_vm11 = vcmp.eq.s32.totalorder %v1697_v30, %v11870_v3  ;;  %v1953_v33 = vld [vmem:[#allocation3 + $0x740] sm:$0xff]  ;;  %vm2977_vm12 = vcmp.eq.s32.totalorder %v1937_v32, %v11870_v3  ;;  %v2193_v35 = vld [vmem:[#allocation3 + $0x278] sm:$0xff] }
 0x565   : > { %9105 = vmatpush.bf16.msk.msra.mxu3 %vm9104_vm10, %v9814_v26  ;;  %vm9058_vm14 = vmpackc.low %vm2481_vm7, %vm2465_vm5  ;;  %vm2993_vm15 = vcmp.eq.s32.totalorder %v1953_v33, %v11870_v3  ;;  %v2209_v37 = vld [vmem:[#allocation3 + $0x13f8] sm:$0xff]  ;;  %vm3233_vm0 = vcmp.eq.s32.totalorder %v2193_v35, %v11870_v3  ;;  %v1393_v38 = vld [vmem:[#allocation3 + $0x128] sm:$0xff]  ;;  %v7000_v13 = vsel %vm6988_vm9, %v6998_v23, %v6999_v29 }
 0x566   : > { %9059 = vmatpush.bf16.msk.msra.mxu0 %vm9058_vm14, %v9814_v26  ;;  %vm9074_vm1 = vmpackc.low %vm2737_vm11, %vm2721_vm8  ;;  %vm3249_vm2 = vcmp.eq.s32.totalorder %v2209_v37, %v11870_v3  ;;  %v1409_v39 = vld [vmem:[#allocation3 + $0x19a8] sm:$0xff]  ;;  %vm2433_vm3 = vcmp.eq.s32.totalorder %v1393_v38, %v11870_v3  ;;  %v1649_v40 = vld [vmem:[#allocation3 + $0x1db0] sm:$0xff]  ;;  %v7056_v41 = vadd.f32 %v7000_v13, %v6959_v28 }
 0x567   : > { %9075 = vmatpush.bf16.msk.msra.mxu1 %vm9074_vm1, %v9814_v26  ;;  %vm9090_vm4 = vmpackc.low %vm2993_vm15, %vm2977_vm12  ;;  %vm2449_vm5 = vcmp.eq.s32.totalorder %v1409_v39, %v11870_v3  ;;  %v1665_v43 = vld [vmem:[#allocation3 + $0x3c8] sm:$0xff]  ;;  %vm2689_vm6 = vcmp.eq.s32.totalorder %v1649_v40, %v11870_v3  ;;  %v1905_v44 = vld [vmem:[#allocation3 + $0x1650] sm:$0xff] }
 0x568   : > { %9091 = vmatpush.bf16.msk.msra.mxu2 %vm9090_vm4, %v9814_v26  ;;  %vm9106_vm7 = vmpackc.low %vm3249_vm2, %vm3233_vm0  ;;  %vm2705_vm8 = vcmp.eq.s32.totalorder %v1665_v43, %v11870_v3  ;;  %v1921_v45 = vld [vmem:[#allocation3 + $0x15a0] sm:$0xff]  ;;  %vm2945_vm10 = vcmp.eq.s32.totalorder %v1905_v44, %v11870_v3  ;;  %v7086_v48 = vrot.slane %v7056_v41, 4  ;;  %v2177_v49 = vld [vmem:[#allocation3 + $0x1878] sm:$0xff] }
 0x569   : > { %v2161_v25 = vld [vmem:[#allocation3 + $0x1780] sm:$0xff]  ;;  %9107 = vmatpush.bf16.msk.msra.mxu3 %vm9106_vm7, %v9814_v26  ;;  %vm9060_vm11 = vmpackc.low %vm2449_vm5, %vm2433_vm3  ;;  %vm2961_vm12 = vcmp.eq.s32.totalorder %v1921_v45, %v11870_v3  ;;  %vm3217_vm0 = vcmp.eq.s32.totalorder %v2177_v49, %v11870_v3  ;;  %v1361_v34 = vld [vmem:[#allocation3 + $0x4d8] sm:$0xff] }
 0x56a   : > { %vm3201_vm14 = vcmp.eq.s32.totalorder %v2161_v25, %v11870_v3  ;;  %v6901_v50 = vld [vmem:[#allocation2] sm:$0x77]  ;;  %9061 = vmatpush.bf16.msk.msra.mxu0 %vm9060_vm11, %v9814_v26  ;;  %vm9076_vm15 = vmpackc.low %vm2705_vm8, %vm2689_vm6  ;;  %v7095_v54 = vsel %vm7093_vm13, %v7055_v46, %v7086_v48  ;;  %vm2401_vm2 = vcmp.eq.s32.totalorder %v1361_v34, %v11870_v3  ;;  %v1617_v7 = vld [vmem:[#allocation3 + $0x15b8] sm:$0xff] }
 0x56b   : > { %v1377_v56 = vld [vmem:[#allocation3 + $0xbc0] sm:$0xff]  ;;  %9077 = vmatpush.bf16.msk.msra.mxu1 %vm9076_vm15, %v9814_v26  ;;  %vm9092_vm1 = vmpackc.low %vm2961_vm12, %vm2945_vm10  ;;  %v7111_v57 = vadd.f32 %v7095_v54, %v6901_v50  ;;  %vm2657_vm5 = vcmp.eq.s32.totalorder %v1617_v7, %v11870_v3  ;;  %v1873_v62 = vld [vmem:[#allocation3 + $0x14f8] sm:$0xff] }
 0x56c   : > { %vm2417_vm3 = vcmp.eq.s32.totalorder %v1377_v56, %v11870_v3  ;;  %v1633_v59 = vld [vmem:[#allocation3 + $0x3a0] sm:$0xff]  ;;  %9093 = vmatpush.bf16.msk.msra.mxu2 %vm9092_vm1, %v9814_v26  ;;  %vm9108_vm4 = vmpackc.low %vm3217_vm0, %vm3201_vm14  ;;  %vm2913_vm8 = vcmp.eq.s32.totalorder %v1873_v62, %v11870_v3  ;;  %v2129_v63 = vld [vmem:[#allocation3 + $0x890] sm:$0xff] }
 0x56d   : > { %vm2673_vm6 = vcmp.eq.s32.totalorder %v1633_v59, %v11870_v3  ;;  %v1889_v5 = vld [vmem:[#allocation3 + $0x5a0] sm:$0xff]  ;;  %9109 = vmatpush.bf16.msk.msra.mxu3 %vm9108_vm4, %v9814_v26  ;;  %7119 = vst [vmem:[#allocation2] sm:$0x77] %v7111_v57  ;;  %vm9062_vm7 = vmpackc.low %vm2417_vm3, %vm2401_vm2  ;;  %v2145_v1 = vld [vmem:[#allocation3 + $0x1f38] sm:$0xff]  ;;  %vm3169_vm12 = vcmp.eq.s32.totalorder %v2129_v63, %v11870_v3 }
 0x56e   : > { %vm2929_vm10 = vcmp.eq.s32.totalorder %v1889_v5, %v11870_v3  ;;  %9063 = vmatpush.bf16.msk.msra.mxu0 %vm9062_vm7, %v9814_v26  ;;  %vm9078_vm11 = vmpackc.low %vm2673_vm6, %vm2657_vm5  ;;  %vm3185_vm14 = vcmp.eq.s32.totalorder %v2145_v1, %v11870_v3  ;;  %v1586_v52 = vld [vmem:[#allocation3 + $0x13a8] sm:$0xff]  ;;  %v1602_v2 = vld [vmem:[#allocation3 + $0x1d20] sm:$0xff]  ;;  %v12130_v30 = vpop.f32.mrf.mxu0 }
 0x56f   : > { %9079 = vmatpush.bf16.msk.msra.mxu1 %vm9078_vm11, %v9814_v26  ;;  %vm9094_vm15 = vmpackc.low %vm2929_vm10, %vm2913_vm8  ;;  %vm2626_vm0 = vcmp.eq.s32.totalorder %v1586_v52, %v12077_v53  ;;  %vm2642_vm1 = vcmp.eq.s32.totalorder %v1602_v2, %v12077_v53  ;;  %v1842_v42 = vld [vmem:[#allocation3 + $0xa20] sm:$0xff]  ;;  %v1858_v4 = vld [vmem:[#allocation3 + $0x1f88] sm:$0xff]  ;;  %v12135_v31 = vpop.f32.mrf.mxu1 }
 0x570   : > { %9095 = vmatpush.bf16.msk.msra.mxu2 %vm9094_vm15, %v9814_v26  ;;  %vm9110_vm2 = vmpackc.low %vm3185_vm14, %vm3169_vm12  ;;  %vm2882_vm3 = vcmp.eq.s32.totalorder %v1842_v42, %v12077_v53  ;;  %vm2898_vm4 = vcmp.eq.s32.totalorder %v1858_v4, %v12077_v53  ;;  %v2098_v6 = vld [vmem:[#allocation3 + $0x1230] sm:$0xff]  ;;  %v2354_v8 = vld [vmem:[#allocation3 + $0x1f78] sm:$0xff] }
 0x571   : > { %v2114_v3 = vld [vmem:[#allocation3 + $0x1dd0] sm:$0xff]  ;;  %9111 = vmatpush.bf16.msk.msra.mxu3 %vm9110_vm2, %v9814_v26  ;;  %vm9112_vm5 = vmpackc.low %vm2642_vm1, %vm2626_vm0  ;;  %vm3138_vm6 = vcmp.eq.s32.totalorder %v2098_v6, %v12077_v53  ;;  %v2370_v9 = vld [vmem:[#allocation3 + $0x1398] sm:$0xff]  ;;  %6460 = vmatmul.bf16.vlgmr.msra.gmra.mxu0 %v10408_v61  ;;  %vm3394_vm10 = vcmp.eq.s32.totalorder %v2354_v8, %v12077_v53 }
 0x572   : > { %vm3154_vm7 = vcmp.eq.s32.totalorder %v2114_v3, %v12077_v53  ;;  %9113 = vmatpush.bf16.msk.msrb.mxu0 %vm9112_vm5, %v9814_v26  ;;  %vm9128_vm8 = vmpackc.low %vm2898_vm4, %vm2882_vm3  ;;  %vm3410_vm11 = vcmp.eq.s32.totalorder %v2370_v9, %v12077_v53  ;;  %v1554_v10 = vld [vmem:[#allocation3 + $0xb40] sm:$0xff]  ;;  %6474 = vmatmul.bf16.vlgmr.msra.gmra.mxu1 %v10419_v0  ;;  %v1810_v12 = vld [vmem:[#allocation3 + $0x1b38] sm:$0xff] }
 0x573   : > { %v1570_v11 = vld [vmem:[#allocation3 + $0x14c0] sm:$0xff]  ;;  %9129 = vmatpush.bf16.msk.msrb.mxu1 %vm9128_vm8, %v9814_v26  ;;  %vm9144_vm12 = vmpackc.low %vm3154_vm7, %vm3138_vm6  ;;  %vm2594_vm14 = vcmp.eq.s32.totalorder %v1554_v10, %v12077_v53  ;;  %v1826_v15 = vld [vmem:[#allocation3 + $0x98] sm:$0xff]  ;;  %6488 = vmatmul.bf16.vlgmr.msra.gmra.mxu2 %v10357_v47  ;;  %vm2850_vm1 = vcmp.eq.s32.totalorder %v1810_v12, %v12077_v53 }
 0x574   : > { %vm2610_vm15 = vcmp.eq.s32.totalorder %v1570_v11, %v12077_v53  ;;  %9145 = vmatpush.bf16.msk.msrb.mxu2 %vm9144_vm12, %v9814_v26  ;;  %vm9160_vm0 = vmpackc.low %vm3410_vm11, %vm3394_vm10  ;;  %vm2866_vm2 = vcmp.eq.s32.totalorder %v1826_v15, %v12077_v53  ;;  %v2066_v16 = vld [vmem:[#allocation3 + $0x1340] sm:$0xff]  ;;  %6502 = vmatmul.bf16.vlgmr.msra.gmra.mxu3 %v10397_v58  ;;  %v2322_v18 = vld [vmem:[#allocation3 + $0x3d8] sm:$0xff]  ;;  %v12194_v11 = vperm.slane %v11842_v60, 2 }
 0x575   : > { %v2082_v17 = vld [vmem:[#allocation3 + $0xc00] sm:$0xff]  ;;  %9161 = vmatpush.bf16.msk.msrb.mxu3 %vm9160_vm0, %v9814_v26  ;;  %vm9114_vm3 = vmpackc.low %vm2610_vm15, %vm2594_vm14  ;;  %vm3106_vm4 = vcmp.eq.s32.totalorder %v2066_v16, %v12077_v53  ;;  %v2338_v19 = vld [vmem:[#allocation3 + $0x1bb0] sm:$0xff]  ;;  %vm3362_vm7 = vcmp.eq.s32.totalorder %v2322_v18, %v12077_v53 }
 0x576   : > { %vm3122_vm5 = vcmp.eq.s32.totalorder %v2082_v17, %v12077_v53  ;;  %9115 = vmatpush.bf16.msk.msrb.mxu0 %vm9114_vm3, %v9814_v26  ;;  %vm9130_vm6 = vmpackc.low %vm2866_vm2, %vm2850_vm1  ;;  %vm3378_vm8 = vcmp.eq.s32.totalorder %v2338_v19, %v12077_v53  ;;  %v1522_v20 = vld [vmem:[#allocation3 + $0x5f0] sm:$0xff]  ;;  %v1538_v21 = vld [vmem:[#allocation3 + $0xe60] sm:$0xff]  ;;  %v12158_v48 = vpop.f32.mrf.mxu2  ;;  %v12168_v57 = vpop.f32.mrf.mxu0 }
 0x577   : > { %9131 = vmatpush.bf16.msk.msrb.mxu1 %vm9130_vm6, %v9814_v26  ;;  %vm9146_vm10 = vmpackc.low %vm3122_vm5, %vm3106_vm4  ;;  %vm2562_vm11 = vcmp.eq.s32.totalorder %v1522_v20, %v12077_v53  ;;  %vm2578_vm12 = vcmp.eq.s32.totalorder %v1538_v21, %v12077_v53  ;;  %v1778_v22 = vld [vmem:[#allocation3 + $0x728] sm:$0xff]  ;;  %v1490_v14 = vld [vmem:[#allocation3 + $0xc90] sm:$0xff]  ;;  %v12163_v54 = vpop.f32.mrf.mxu3  ;;  %v12173_v62 = vpop.f32.mrf.mxu1 }
 0x578   : > { %v1794_v51 = vld [vmem:[#allocation3 + $0x508] sm:$0xff]  ;;  %9147 = vmatpush.bf16.msk.msrb.mxu2 %vm9146_vm10, %v9814_v26  ;;  %vm9162_vm14 = vmpackc.low %vm3378_vm8, %vm3362_vm7  ;;  %vm2818_vm15 = vcmp.eq.s32.totalorder %v1778_v22, %v12077_v53  ;;  %vm2530_vm8 = vcmp.eq.s32.totalorder %v1490_v14, %v12077_v53  ;;  %v1746_v32 = vld [vmem:[#allocation3 + $0x1e78] sm:$0xff] }
 0x579   : > { %vm2834_vm0 = vcmp.eq.s32.totalorder %v1794_v51, %v12077_v53  ;;  %v2034_v23 = vld [vmem:[#allocation3 + $0x1fe8] sm:$0xff]  ;;  %9163 = vmatpush.bf16.msk.msrb.mxu3 %vm9162_vm14, %v9814_v26  ;;  %vm9116_vm1 = vmpackc.low %vm2578_vm12, %vm2562_vm11  ;;  %vm2786_vm12 = vcmp.eq.s32.totalorder %v1746_v32, %v12077_v53  ;;  %v2002_v33 = vld [vmem:[#allocation3 + $0x460] sm:$0xff] }
 0x57a   : > { %v2050_v24 = vld [vmem:[#allocation3 + $0x428] sm:$0xff]  ;;  %vm3074_vm2 = vcmp.eq.s32.totalorder %v2034_v23, %v12077_v53  ;;  %9117 = vmatpush.bf16.msk.msrb.mxu0 %vm9116_vm1, %v9814_v26  ;;  %vm9132_vm4 = vmpackc.low %vm2834_vm0, %vm2818_vm15  ;;  %v2018_v35 = vld [vmem:[#allocation3 + $0x1630] sm:$0xff]  ;;  %vm3042_vm0 = vcmp.eq.s32.totalorder %v2002_v33, %v12077_v53 }
 0x57b   : > { %vm3090_vm3 = vcmp.eq.s32.totalorder %v2050_v24, %v12077_v53  ;;  %v2290_v27 = vld [vmem:[#allocation3 + $0x1768] sm:$0xff]  ;;  %9133 = vmatpush.bf16.msk.msrb.mxu1 %vm9132_vm4, %v9814_v26  ;;  %vm3058_vm1 = vcmp.eq.s32.totalorder %v2018_v35, %v12077_v53  ;;  %v2258_v36 = vld [vmem:[#allocation3 + $0x220] sm:$0xff]  ;;  %v2274_v37 = vld [vmem:[#allocation3 + $0x1690] sm:$0xff] }
 0x57c   : > { %v2306_v28 = vld [vmem:[#allocation3 + $0x688] sm:$0xff]  ;;  %vm3330_vm5 = vcmp.eq.s32.totalorder %v2290_v27, %v12077_v53  ;;  %vm9148_vm7 = vmpackc.low %vm3090_vm3, %vm3074_vm2  ;;  %vm3298_vm3 = vcmp.eq.s32.totalorder %v2258_v36, %v12077_v53  ;;  %vm3314_vm4 = vcmp.eq.s32.totalorder %v2274_v37, %v12077_v53  ;;  %v1474_v13 = vld [vmem:[#allocation3 + $0x978] sm:$0xff]  ;;  %v6254_v37 = vadd.f32 %v12173_v62, %v12168_v57 }
 0x57d   : > { %vm3346_vm6 = vcmp.eq.s32.totalorder %v2306_v28, %v12077_v53  ;;  %v1506_v55 = vld [vmem:[#allocation3 + $0x9a8] sm:$0xff]  ;;  %9149 = vmatpush.bf16.msk.msrb.mxu2 %vm9148_vm7, %v9814_v26  ;;  %vm2514_vm7 = vcmp.eq.s32.totalorder %v1474_v13, %v12077_v53  ;;  %v1714_v39 = vld [vmem:[#allocation3 + $0xf70] sm:$0xff]  ;;  %v1970_v41 = vld [vmem:[#allocation3 + $0x1ee0] sm:$0xff] }
 0x57e   : > { %vm2546_vm10 = vcmp.eq.s32.totalorder %v1506_v55, %v12077_v53  ;;  %v1762_v29 = vld [vmem:[#allocation3 + $0x868] sm:$0xff]  ;;  %vm9164_vm11 = vmpackc.low %vm3346_vm6, %vm3330_vm5  ;;  %v1986_v43 = vld [vmem:[#allocation3 + $0x1360] sm:$0xff]  ;;  %v12199_v16 = vpop.f32.mrf.mxu2  ;;  %v6252_v55 = vadd.f32 %v12135_v31, %v12130_v30 }
 0x57f   : > { %vm2802_vm14 = vcmp.eq.s32.totalorder %v1762_v29, %v12077_v53  ;;  %9165 = vmatpush.bf16.msk.msrb.mxu3 %vm9164_vm11, %v9814_v26  ;;  %vm9118_vm15 = vmpackc.low %vm2546_vm10, %vm2530_vm8  ;;  %v1458_v38 = vld [vmem:[#allocation3 + $0x748] sm:$0xff]  ;;  %vm2754_vm10 = vcmp.eq.s32.totalorder %v1714_v39, %v12077_v53  ;;  %v2226_v44 = vld [vmem:[#allocation3 + $0x13d8] sm:$0xff]  ;;  %v12204_v19 = vpop.f32.mrf.mxu3 }
 0x580   : > { %9119 = vmatpush.bf16.msk.msrb.mxu0 %vm9118_vm15, %v9814_v26  ;;  %vm9134_vm2 = vmpackc.low %vm2802_vm14, %vm2786_vm12  ;;  %vm2498_vm6 = vcmp.eq.s32.totalorder %v1458_v38, %v12077_v53  ;;  %v1730_v40 = vld [vmem:[#allocation3 + $0x14a8] sm:$0xff]  ;;  %vm3010_vm14 = vcmp.eq.s32.totalorder %v1970_v41, %v12077_v53  ;;  %vm3026_vm15 = vcmp.eq.s32.totalorder %v1986_v43, %v12077_v53  ;;  %v2242_v46 = vld [vmem:[#allocation3 + $0xd58] sm:$0xff]  ;;  %v6266_v43 = vadd.f32 %v12158_v48, %v6252_v55 }
 0x581   : > { %9135 = vmatpush.bf16.msk.msrb.mxu1 %vm9134_vm2, %v9814_v26  ;;  %vm9150_vm5 = vmpackc.low %vm3058_vm1, %vm3042_vm0  ;;  %vm2770_vm11 = vcmp.eq.s32.totalorder %v1730_v40, %v12077_v53  ;;  %vm3266_vm1 = vcmp.eq.s32.totalorder %v2226_v44, %v12077_v53  ;;  %vm3282_vm2 = vcmp.eq.s32.totalorder %v2242_v46, %v12077_v53  ;;  %v1426_v45 = vld [vmem:[#allocation3 + $0x16a8] sm:$0xff]  ;;  %v1442_v25 = vld [vmem:[#allocation3 + $0xbe0] sm:$0xff] }
 0x582   : > { %9151 = vmatpush.bf16.msk.msrb.mxu2 %vm9150_vm5, %v9814_v26  ;;  %vm9166_vm8 = vmpackc.low %vm3314_vm4, %vm3298_vm3  ;;  %vm2466_vm4 = vcmp.eq.s32.totalorder %v1426_v45, %v12077_v53  ;;  %vm2482_vm5 = vcmp.eq.s32.totalorder %v1442_v25, %v12077_v53  ;;  %v1682_v49 = vld [vmem:[#allocation3 + $0x340] sm:$0xff]  ;;  %v1938_v34 = vld [vmem:[#allocation3 + $0x990] sm:$0xff] }
 0x583   : > { %9167 = vmatpush.bf16.msk.msrb.mxu3 %vm9166_vm8, %v9814_v26  ;;  %vm9120_vm12 = vmpackc.low %vm2514_vm7, %vm2498_vm6  ;;  %v1698_v50 = vld [vmem:[#allocation3 + $0x160] sm:$0xff]  ;;  %vm2722_vm7 = vcmp.eq.s32.totalorder %v1682_v49, %v12077_v53  ;;  %v1954_v56 = vld [vmem:[#allocation3 + $0x11f8] sm:$0xff] }
 0x584   : > { %9121 = vmatpush.bf16.msk.msrb.mxu0 %vm9120_vm12, %v9814_v26  ;;  %vm9136_vm0 = vmpackc.low %vm2770_vm11, %vm2754_vm10  ;;  %vm2738_vm8 = vcmp.eq.s32.totalorder %v1698_v50, %v12077_v53  ;;  %vm2978_vm11 = vcmp.eq.s32.totalorder %v1938_v34, %v12077_v53  ;;  %vm2994_vm12 = vcmp.eq.s32.totalorder %v1954_v56, %v12077_v53  ;;  %v2194_v7 = vld [vmem:[#allocation3 + $0x7e8] sm:$0xff]  ;;  %v2210_v59 = vld [vmem:[#allocation3 + $0x1060] sm:$0xff]  ;;  %v6268_v50 = vadd.f32 %v12199_v16, %v6254_v37 }
 0x585   : > { %9137 = vmatpush.bf16.msk.msrb.mxu1 %vm9136_vm0, %v9814_v26  ;;  %vm9152_vm3 = vmpackc.low %vm3026_vm15, %vm3010_vm14  ;;  %vm3234_vm15 = vcmp.eq.s32.totalorder %v2194_v7, %v12077_v53  ;;  %vm3250_vm0 = vcmp.eq.s32.totalorder %v2210_v59, %v12077_v53  ;;  %v1394_v5 = vld [vmem:[#allocation3 + $0x8b0] sm:$0xff]  ;;  %v1650_v1 = vld [vmem:[#allocation3 + $0x18e0] sm:$0xff] }
 0x586   : > { %9153 = vmatpush.bf16.msk.msrb.mxu2 %vm9152_vm3, %v9814_v26  ;;  %vm9168_vm6 = vmpackc.low %vm3282_vm2, %vm3266_vm1  ;;  %v1410_v63 = vld [vmem:[#allocation3 + $0x7d0] sm:$0xff]  ;;  %vm2434_vm2 = vcmp.eq.s32.totalorder %v1394_v5, %v12077_v53  ;;  %v1666_v52 = vld [vmem:[#allocation3 + $0x1b80] sm:$0xff] }
 0x587   : > { %9169 = vmatpush.bf16.msk.msrb.mxu3 %vm9168_vm6, %v9814_v26  ;;  %vm9122_vm10 = vmpackc.low %vm2482_vm5, %vm2466_vm4  ;;  %vm2450_vm3 = vcmp.eq.s32.totalorder %v1410_v63, %v12077_v53  ;;  %vm2690_vm5 = vcmp.eq.s32.totalorder %v1650_v1, %v12077_v53  ;;  %vm2706_vm6 = vcmp.eq.s32.totalorder %v1666_v52, %v12077_v53  ;;  %v1906_v2 = vld [vmem:[#allocation3 + $0x19b0] sm:$0xff]  ;;  %v1922_v42 = vld [vmem:[#allocation3 + $0xfc0] sm:$0xff]  ;;  %v12264_v63 = vadd.f32 %v12163_v54, %v6266_v43 }
 0x588   : > { %9123 = vmatpush.bf16.msk.msrb.mxu0 %vm9122_vm10, %v9814_v26  ;;  %vm9138_vm14 = vmpackc.low %vm2738_vm8, %vm2722_vm7  ;;  %vm2946_vm8 = vcmp.eq.s32.totalorder %v1906_v2, %v12077_v53  ;;  %vm2962_vm10 = vcmp.eq.s32.totalorder %v1922_v42, %v12077_v53  ;;  %v2162_v4 = vld [vmem:[#allocation3 + $0xf48] sm:$0xff]  ;;  %v2178_v6 = vld [vmem:[#allocation3 + $0x1710] sm:$0xff]  ;;  %v12271_v42 = vadd.f32 %v12204_v19, %v6268_v50 }
 0x589   : > { %9139 = vmatpush.bf16.msk.msrb.mxu1 %vm9138_vm14, %v9814_v26  ;;  %vm9154_vm1 = vmpackc.low %vm2994_vm12, %vm2978_vm11  ;;  %vm3202_vm12 = vcmp.eq.s32.totalorder %v2162_v4, %v12077_v53  ;;  %vm3218_vm14 = vcmp.eq.s32.totalorder %v2178_v6, %v12077_v53  ;;  %v1362_v3 = vld [vmem:[#allocation3 + $0x6f0] sm:$0xff]  ;;  %v1378_v8 = vld [vmem:[#allocation3 + $0x1998] sm:$0xff] }
 0x58a   : > { %9155 = vmatpush.bf16.msk.msrb.mxu2 %vm9154_vm1, %v9814_v26  ;;  %vm9170_vm4 = vmpackc.low %vm3250_vm0, %vm3234_vm15  ;;  %vm2402_vm0 = vcmp.eq.s32.totalorder %v1362_v3, %v12077_v53  ;;  %vm2418_vm1 = vcmp.eq.s32.totalorder %v1378_v8, %v12077_v53  ;;  %v1618_v9 = vld [vmem:[#allocation3 + $0x718] sm:$0xff]  ;;  %v1634_v10 = vld [vmem:[#allocation3 + $0x840] sm:$0xff] }
 0x58b   : > { %9171 = vmatpush.bf16.msk.msrb.mxu3 %vm9170_vm4, %v9814_v26  ;;  %vm9124_vm7 = vmpackc.low %vm2450_vm3, %vm2434_vm2  ;;  %vm2658_vm3 = vcmp.eq.s32.totalorder %v1618_v9, %v12077_v53  ;;  %vm2674_vm4 = vcmp.eq.s32.totalorder %v1634_v10, %v12077_v53  ;;  %v1874_v12 = vld [vmem:[#allocation3 + $0x30] sm:$0xff]  ;;  %v2130_v17 = vld [vmem:[#allocation3 + $0x2d8] sm:$0xff] }
 0x58c   : > { %9125 = vmatpush.bf16.msk.msrb.mxu0 %vm9124_vm7, %v9814_v26  ;;  %vm9140_vm11 = vmpackc.low %vm2706_vm6, %vm2690_vm5  ;;  %v1890_v15 = vld [vmem:[#allocation3 + $0x18b0] sm:$0xff]  ;;  %vm2914_vm6 = vcmp.eq.s32.totalorder %v1874_v12, %v12077_v53  ;;  %v2146_v18 = vld [vmem:[#allocation3 + $0xf40] sm:$0xff] }
 0x58d   : > { %9141 = vmatpush.bf16.msk.msrb.mxu1 %vm9140_vm11, %v9814_v26  ;;  %vm9156_vm15 = vmpackc.low %vm2962_vm10, %vm2946_vm8  ;;  %vm2930_vm7 = vcmp.eq.s32.totalorder %v1890_v15, %v12077_v53  ;;  %vm3170_vm10 = vcmp.eq.s32.totalorder %v2130_v17, %v12077_v53  ;;  %vm3186_vm11 = vcmp.eq.s32.totalorder %v2146_v18, %v12077_v53  ;;  %v1587_v20 = vld [vmem:[#allocation3 + $0x178] sm:$0xff]  ;;  %v1603_v21 = vld [vmem:[#allocation3 + $0xb50] sm:$0xff]  ;;  %v6928_v15 = vrot.slane %v12264_v63, 3 }
 0x58e   : > { %9157 = vmatpush.bf16.msk.msrb.mxu2 %vm9156_vm15, %v9814_v26  ;;  %vm9172_vm2 = vmpackc.low %vm3218_vm14, %vm3202_vm12  ;;  %v6293_v22 = vpop.f32.mrf.mxu0  ;;  %vm2627_vm14 = vcmp.eq.s32.totalorder %v1587_v20, %v12194_v11  ;;  %vm2643_vm15 = vcmp.eq.s32.totalorder %v1603_v21, %v12194_v11  ;;  %v1843_v51 = vld [vmem:[#allocation3 + $0x1680] sm:$0xff]  ;;  %v1859_v23 = vld [vmem:[#allocation3 + $0xff8] sm:$0xff]  ;;  %v7001_v20 = vrot.slane %v12264_v63, 6  ;;  %v7002_v21 = vrot.slane %v12271_v42, 6 }
 0x58f   : > { %9173 = vmatpush.bf16.msk.msrb.mxu3 %vm9172_vm2, %v9814_v26  ;;  %vm9126_vm5 = vmpackc.low %vm2418_vm1, %vm2402_vm0  ;;  %v6307_v24 = vpop.f32.mrf.mxu1  ;;  %vm2883_vm1 = vcmp.eq.s32.totalorder %v1843_v51, %v12194_v11  ;;  %vm2899_vm2 = vcmp.eq.s32.totalorder %v1859_v23, %v12194_v11  ;;  %v2099_v53 = vld [vmem:[#allocation3 + $0x1938] sm:$0xff]  ;;  %v2115_v27 = vld [vmem:[#allocation3 + $0x820] sm:$0xff] }
 0x590   : > { %9127 = vmatpush.bf16.msk.msrb.mxu0 %vm9126_vm5, %v9814_v26  ;;  %vm9142_vm8 = vmpackc.low %vm2674_vm4, %vm2658_vm3  ;;  %vm3139_vm4 = vcmp.eq.s32.totalorder %v2099_v53, %v12194_v11  ;;  %vm3155_vm5 = vcmp.eq.s32.totalorder %v2115_v27, %v12194_v11  ;;  %v2355_v28 = vld [vmem:[#allocation3 + $0x1ff8] sm:$0xff]  ;;  %v2371_v14 = vld [vmem:[#allocation3 + $0xe68] sm:$0xff]  ;;  %v6308_v33 = vadd.f32 %v6307_v24, %v6293_v22 }
 0x591   : > { %9143 = vmatpush.bf16.msk.msrb.mxu1 %vm9142_vm8, %v9814_v26  ;;  %vm9158_vm12 = vmpackc.low %vm2930_vm7, %vm2914_vm6  ;;  %vm3395_vm7 = vcmp.eq.s32.totalorder %v2355_v28, %v12194_v11  ;;  %vm3411_vm8 = vcmp.eq.s32.totalorder %v2371_v14, %v12194_v11  ;;  %v1555_v32 = vld [vmem:[#allocation3 + $0x1ee8] sm:$0xff]  ;;  %v1571_v29 = vld [vmem:[#allocation3 + $0x1e18] sm:$0xff] }
 0x592   : > { %9159 = vmatpush.bf16.msk.msrb.mxu2 %vm9158_vm12, %v9814_v26  ;;  %vm9174_vm0 = vmpackc.low %vm3186_vm11, %vm3170_vm10  ;;  %vm2595_vm11 = vcmp.eq.s32.totalorder %v1555_v32, %v12194_v11  ;;  %vm2611_vm12 = vcmp.eq.s32.totalorder %v1571_v29, %v12194_v11  ;;  %v1811_v30 = vld [vmem:[#allocation3 + $0x8c8] sm:$0xff]  ;;  %v1827_v31 = vld [vmem:[#allocation3 + $0x1960] sm:$0xff] }
 0x593   : > { %9175 = vmatpush.bf16.msk.msrb.mxu3 %vm9174_vm0, %v9814_v26  ;;  %vm9176_vm3 = vmpackc.low %vm2643_vm15, %vm2627_vm14  ;;  %6516 = vmatmul.bf16.vlgmr.msrb.gmra.mxu0 %v10408_v61  ;;  %vm2851_vm15 = vcmp.eq.s32.totalorder %v1811_v30, %v12194_v11  ;;  %vm2867_vm0 = vcmp.eq.s32.totalorder %v1827_v31, %v12194_v11  ;;  %v2067_v35 = vld [vmem:[#allocation3 + $0x8d0] sm:$0xff]  ;;  %v2083_v36 = vld [vmem:[#allocation3 + $0x11b8] sm:$0xff]  ;;  %v6960_v31 = vadd.f32 %v6928_v15, %v12264_v63 }
 0x594   : > { %9177 = vmatpush.bf16.msk.msra.mxu0 %vm9176_vm3, %v9814_v26  ;;  %vm9192_vm6 = vmpackc.low %vm2899_vm2, %vm2883_vm1  ;;  %6530 = vmatmul.bf16.vlgmr.msrb.gmra.mxu1 %v10419_v0  ;;  %vm3107_vm2 = vcmp.eq.s32.totalorder %v2067_v35, %v12194_v11  ;;  %vm3123_vm3 = vcmp.eq.s32.totalorder %v2083_v36, %v12194_v11  ;;  %v2323_v38 = vld [vmem:[#allocation3 + $0x1b70] sm:$0xff]  ;;  %v2339_v13 = vld [vmem:[#allocation3 + $0x1220] sm:$0xff]  ;;  %v7003_v36 = vsel %vm6988_vm9, %v7001_v20, %v7002_v21 }
 0x595   : > { %9193 = vmatpush.bf16.msk.msra.mxu1 %vm9192_vm6, %v9814_v26  ;;  %vm9208_vm10 = vmpackc.low %vm3155_vm5, %vm3139_vm4  ;;  %6544 = vmatmul.bf16.vlgmr.msrb.gmra.mxu2 %v10357_v47  ;;  %vm3363_vm5 = vcmp.eq.s32.totalorder %v2323_v38, %v12194_v11  ;;  %vm3379_vm6 = vcmp.eq.s32.totalorder %v2339_v13, %v12194_v11  ;;  %v1523_v39 = vld [vmem:[#allocation3 + $0xb10] sm:$0xff]  ;;  %v2035_v48 = vld [vmem:[#allocation3 + $0x218] sm:$0xff] }
 0x596   : > { %9209 = vmatpush.bf16.msk.msra.mxu2 %vm9208_vm10, %v9814_v26  ;;  %vm9224_vm14 = vmpackc.low %vm3411_vm8, %vm3395_vm7  ;;  %6558 = vmatmul.bf16.vlgmr.msrb.gmra.mxu3 %v10397_v58  ;;  %v1539_v40 = vld [vmem:[#allocation3 + $0xf30] sm:$0xff]  ;;  %v6321_v41 = vpop.f32.mrf.mxu2  ;;  %vm2563_vm8 = vcmp.eq.s32.totalorder %v1523_v39, %v12194_v11  ;;  %v2051_v49 = vld [vmem:[#allocation3 + $0x18e8] sm:$0xff]  ;;  %v6295_v34 = vpop.f32.mrf.mxu0 }
 0x597   : > { %9225 = vmatpush.bf16.msk.msra.mxu3 %vm9224_vm14, %v9814_v26  ;;  %vm9178_vm1 = vmpackc.low %vm2611_vm12, %vm2595_vm11  ;;  %vm2579_vm10 = vcmp.eq.s32.totalorder %v1539_v40, %v12194_v11  ;;  %v1779_v44 = vld [vmem:[#allocation3 + $0x1f10] sm:$0xff]  ;;  %v6322_v45 = vadd.f32 %v6321_v41, %v6308_v33  ;;  %v6335_v25 = vpop.f32.mrf.mxu3  ;;  %v6309_v56 = vpop.f32.mrf.mxu1  ;;  %v2307_v7 = vld [vmem:[#allocation3 + $0xbe8] sm:$0xff] }
 0x598   : > { %9179 = vmatpush.bf16.msk.msra.mxu0 %vm9178_vm1, %v9814_v26  ;;  %vm9194_vm4 = vmpackc.low %vm2867_vm0, %vm2851_vm15  ;;  %v1795_v46 = vld [vmem:[#allocation3 + $0x1b30] sm:$0xff]  ;;  %vm2819_vm12 = vcmp.eq.s32.totalorder %v1779_v44, %v12194_v11  ;;  %vm3075_vm0 = vcmp.eq.s32.totalorder %v2035_v48, %v12194_v11  ;;  %vm3091_vm1 = vcmp.eq.s32.totalorder %v2051_v49, %v12194_v11  ;;  %v1491_v59 = vld [vmem:[#allocation3 + $0x960] sm:$0xff]  ;;  %v6310_v2 = vadd.f32 %v6309_v56, %v6295_v34 }
 0x599   : > { %9195 = vmatpush.bf16.msk.msra.mxu1 %vm9194_vm4, %v9814_v26  ;;  %vm9210_vm7 = vmpackc.low %vm3123_vm3, %vm3107_vm2  ;;  %vm2835_vm14 = vcmp.eq.s32.totalorder %v1795_v46, %v12194_v11  ;;  %v2291_v57 = vld [vmem:[#allocation3 + $0x530] sm:$0xff]  ;;  %vm3347_vm4 = vcmp.eq.s32.totalorder %v2307_v7, %v12194_v11  ;;  %v12261_v5 = vadd.f32 %v6335_v25, %v6322_v45  ;;  %v1747_v1 = vld [vmem:[#allocation3 + $0xb80] sm:$0xff]  ;;  %v7057_v46 = vadd.f32 %v7003_v36, %v6960_v31 }
 0x59a   : > { %9211 = vmatpush.bf16.msk.msra.mxu2 %vm9210_vm7, %v9814_v26  ;;  %vm9226_vm11 = vmpackc.low %vm3379_vm6, %vm3363_vm5  ;;  %vm3331_vm3 = vcmp.eq.s32.totalorder %v2291_v57, %v12194_v11  ;;  %v1507_v62 = vld [vmem:[#allocation3 + $0x110] sm:$0xff]  ;;  %vm2531_vm6 = vcmp.eq.s32.totalorder %v1491_v59, %v12194_v11  ;;  %v1763_v52 = vld [vmem:[#allocation3 + $0x8] sm:$0xff] }
 0x59b   : > { %9227 = vmatpush.bf16.msk.msra.mxu3 %vm9226_vm11, %v9814_v26  ;;  %vm9180_vm15 = vmpackc.low %vm2579_vm10, %vm2563_vm8  ;;  %vm2547_vm7 = vcmp.eq.s32.totalorder %v1507_v62, %v12194_v11  ;;  %vm2787_vm10 = vcmp.eq.s32.totalorder %v1747_v1, %v12194_v11  ;;  %vm2803_vm11 = vcmp.eq.s32.totalorder %v1763_v52, %v12194_v11  ;;  %v2003_v54 = vld [vmem:[#allocation3 + $0xc8] sm:$0xff]  ;;  %v2019_v4 = vld [vmem:[#allocation3 + $0x6a0] sm:$0xff]  ;;  %v6929_v10 = vrot.slane %v12261_v5, 3 }
 0x59c   : > { %9181 = vmatpush.bf16.msk.msra.mxu0 %vm9180_vm15, %v9814_v26  ;;  %vm9196_vm2 = vmpackc.low %vm2835_vm14, %vm2819_vm12  ;;  %vm3043_vm14 = vcmp.eq.s32.totalorder %v2003_v54, %v12194_v11  ;;  %vm3059_vm15 = vcmp.eq.s32.totalorder %v2019_v4, %v12194_v11  ;;  %v2259_v6 = vld [vmem:[#allocation3 + $0x408] sm:$0xff]  ;;  %v2275_v3 = vld [vmem:[#allocation3 + $0x760] sm:$0xff]  ;;  %v7004_v53 = vrot.slane %v12261_v5, 6 }
 0x59d   : > { %9197 = vmatpush.bf16.msk.msra.mxu1 %vm9196_vm2, %v9814_v26  ;;  %vm9212_vm5 = vmpackc.low %vm3091_vm1, %vm3075_vm0  ;;  %vm3299_vm1 = vcmp.eq.s32.totalorder %v2259_v6, %v12194_v11  ;;  %vm3315_vm2 = vcmp.eq.s32.totalorder %v2275_v3, %v12194_v11  ;;  %v1459_v8 = vld [vmem:[#allocation3 + $0x19c8] sm:$0xff]  ;;  %v1475_v9 = vld [vmem:[#allocation3 + $0x2a0] sm:$0xff]  ;;  %v6961_v28 = vadd.f32 %v6929_v10, %v12261_v5  ;;  %v12336_v5 = vperm.slane %v11842_v60, 3 }
 0x59e   : > { %9213 = vmatpush.bf16.msk.msra.mxu2 %vm9212_vm5, %v9814_v26  ;;  %vm9228_vm8 = vmpackc.low %vm3347_vm4, %vm3331_vm3  ;;  %v6323_v12 = vpop.f32.mrf.mxu2  ;;  %vm2499_vm4 = vcmp.eq.s32.totalorder %v1459_v8, %v12194_v11  ;;  %vm2515_vm5 = vcmp.eq.s32.totalorder %v1475_v9, %v12194_v11  ;;  %v1715_v16 = vld [vmem:[#allocation3 + $0x1950] sm:$0xff]  ;;  %v1731_v17 = vld [vmem:[#allocation3 + $0x1308] sm:$0xff] }
 0x59f   : > { %9229 = vmatpush.bf16.msk.msra.mxu3 %vm9228_vm8, %v9814_v26  ;;  %vm9182_vm12 = vmpackc.low %vm2547_vm7, %vm2531_vm6  ;;  %v6324_v18 = vadd.f32 %v6323_v12, %v6310_v2  ;;  %v6337_v19 = vpop.f32.mrf.mxu3  ;;  %vm2755_vm7 = vcmp.eq.s32.totalorder %v1715_v16, %v12194_v11  ;;  %vm2771_vm8 = vcmp.eq.s32.totalorder %v1731_v17, %v12194_v11  ;;  %v1971_v22 = vld [vmem:[#allocation3 + $0xd70] sm:$0xff]  ;;  %v2227_v23 = vld [vmem:[#allocation3 + $0x9d8] sm:$0xff] }
 0x5a0   : > { %9183 = vmatpush.bf16.msk.msra.mxu0 %vm9182_vm12, %v9814_v26  ;;  %vm9198_vm0 = vmpackc.low %vm2803_vm11, %vm2787_vm10  ;;  %v1987_v51 = vld [vmem:[#allocation3 + $0x770] sm:$0xff]  ;;  %vm3011_vm11 = vcmp.eq.s32.totalorder %v1971_v22, %v12194_v11  ;;  %v2243_v24 = vld [vmem:[#allocation3 + $0x1100] sm:$0xff] }
 0x5a1   : > { %9199 = vmatpush.bf16.msk.msra.mxu1 %vm9198_vm0, %v9814_v26  ;;  %vm9214_vm3 = vmpackc.low %vm3059_vm15, %vm3043_vm14  ;;  %vm3027_vm12 = vcmp.eq.s32.totalorder %v1987_v51, %v12194_v11  ;;  %v6338_v27 = vadd.f32 %v6337_v19, %v6324_v18  ;;  %vm3267_vm15 = vcmp.eq.s32.totalorder %v2227_v23, %v12194_v11  ;;  %vm3283_vm0 = vcmp.eq.s32.totalorder %v2243_v24, %v12194_v11  ;;  %v1427_v14 = vld [vmem:[#allocation3 + $0x1b98] sm:$0xff]  ;;  %v1443_v55 = vld [vmem:[#allocation3 + $0x468] sm:$0xff] }
 0x5a2   : > { %9215 = vmatpush.bf16.msk.msra.mxu2 %vm9214_vm3, %v9814_v26  ;;  %vm9230_vm6 = vmpackc.low %vm3315_vm2, %vm3299_vm1  ;;  %vm2467_vm2 = vcmp.eq.s32.totalorder %v1427_v14, %v12194_v11  ;;  %vm2483_vm3 = vcmp.eq.s32.totalorder %v1443_v55, %v12194_v11  ;;  %v1683_v32 = vld [vmem:[#allocation3 + $0x1038] sm:$0xff]  ;;  %v1699_v29 = vld [vmem:[#allocation3 + $0xfb0] sm:$0xff] }
 0x5a3   : > { %9231 = vmatpush.bf16.msk.msra.mxu3 %vm9230_vm6, %v9814_v26  ;;  %vm9184_vm10 = vmpackc.low %vm2515_vm5, %vm2499_vm4  ;;  %v7005_v30 = vrot.slane %v6338_v27, 6  ;;  %vm2723_vm5 = vcmp.eq.s32.totalorder %v1683_v32, %v12194_v11  ;;  %vm2739_vm6 = vcmp.eq.s32.totalorder %v1699_v29, %v12194_v11  ;;  %v1939_v33 = vld [vmem:[#allocation3 + $0xce0] sm:$0xff]  ;;  %v1955_v35 = vld [vmem:[#allocation3 + $0x1eb8] sm:$0xff] }
 0x5a4   : > { %9185 = vmatpush.bf16.msk.msra.mxu0 %vm9184_vm10, %v9814_v26  ;;  %vm9200_vm14 = vmpackc.low %vm2771_vm8, %vm2755_vm7  ;;  %vm2979_vm8 = vcmp.eq.s32.totalorder %v1939_v33, %v12194_v11  ;;  %vm2995_vm10 = vcmp.eq.s32.totalorder %v1955_v35, %v12194_v11  ;;  %v2195_v37 = vld [vmem:[#allocation3 + $0x1848] sm:$0xff]  ;;  %v1395_v39 = vld [vmem:[#allocation3 + $0x878] sm:$0xff] }
 0x5a5   : > { %9201 = vmatpush.bf16.msk.msra.mxu1 %vm9200_vm14, %v9814_v26  ;;  %vm9216_vm1 = vmpackc.low %vm3027_vm12, %vm3011_vm11  ;;  %v2211_v38 = vld [vmem:[#allocation3 + $0x708] sm:$0xff]  ;;  %v7006_v13 = vsel %vm6988_vm9, %v7004_v53, %v7005_v30  ;;  %vm3235_vm12 = vcmp.eq.s32.totalorder %v2195_v37, %v12194_v11  ;;  %v1411_v40 = vld [vmem:[#allocation3 + $0x1e38] sm:$0xff] }
 0x5a6   : > { %9217 = vmatpush.bf16.msk.msra.mxu2 %vm9216_vm1, %v9814_v26  ;;  %vm9232_vm4 = vmpackc.low %vm3283_vm0, %vm3267_vm15  ;;  %vm3251_vm14 = vcmp.eq.s32.totalorder %v2211_v38, %v12194_v11  ;;  %v7058_v41 = vadd.f32 %v7006_v13, %v6961_v28  ;;  %vm2435_vm0 = vcmp.eq.s32.totalorder %v1395_v39, %v12194_v11  ;;  %vm2451_vm1 = vcmp.eq.s32.totalorder %v1411_v40, %v12194_v11  ;;  %v1651_v43 = vld [vmem:[#allocation3 + $0x1ad8] sm:$0xff]  ;;  %v1907_v45 = vld [vmem:[#allocation3 + $0x6d0] sm:$0xff] }
 0x5a7   : > { %9233 = vmatpush.bf16.msk.msra.mxu3 %vm9232_vm4, %v9814_v26  ;;  %vm9186_vm7 = vmpackc.low %vm2483_vm3, %vm2467_vm2  ;;  %v1667_v44 = vld [vmem:[#allocation3 + $0xa38] sm:$0xff]  ;;  %vm2691_vm3 = vcmp.eq.s32.totalorder %v1651_v43, %v12194_v11  ;;  %v1923_v25 = vld [vmem:[#allocation3 + $0x1640] sm:$0xff] }
 0x5a8   : > { %9187 = vmatpush.bf16.msk.msra.mxu0 %vm9186_vm7, %v9814_v26  ;;  %vm9202_vm11 = vmpackc.low %vm2739_vm6, %vm2723_vm5  ;;  %vm2707_vm4 = vcmp.eq.s32.totalorder %v1667_v44, %v12194_v11  ;;  %v7087_v48 = vrot.slane %v7058_v41, 4  ;;  %vm2947_vm6 = vcmp.eq.s32.totalorder %v1907_v45, %v12194_v11  ;;  %vm2963_vm7 = vcmp.eq.s32.totalorder %v1923_v25, %v12194_v11  ;;  %v2163_v49 = vld [vmem:[#allocation3 + $0x11d8] sm:$0xff]  ;;  %v2179_v50 = vld [vmem:[#allocation3 + $0x1da8] sm:$0xff] }
 0x5a9   : > { %9203 = vmatpush.bf16.msk.msra.mxu1 %vm9202_vm11, %v9814_v26  ;;  %vm9218_vm15 = vmpackc.low %vm2995_vm10, %vm2979_vm8  ;;  %vm3203_vm10 = vcmp.eq.s32.totalorder %v2163_v49, %v12194_v11  ;;  %vm3219_vm11 = vcmp.eq.s32.totalorder %v2179_v50, %v12194_v11  ;;  %v6902_v34 = vld [vmem:[#allocation2 + $0x18] sm:$0x77]  ;;  %v1363_v57 = vld [vmem:[#allocation3 + $0x6b0] sm:$0xff] }
 0x5aa   : > { %9219 = vmatpush.bf16.msk.msra.mxu2 %vm9218_vm15, %v9814_v26  ;;  %vm9234_vm2 = vmpackc.low %vm3251_vm14, %vm3235_vm12  ;;  %v7096_v56 = vsel %vm7093_vm13, %v7057_v46, %v7087_v48  ;;  %v1379_v59 = vld [vmem:[#allocation3 + $0xa58] sm:$0xff]  ;;  %vm2403_vm14 = vcmp.eq.s32.totalorder %v1363_v57, %v12194_v11  ;;  %v1635_v63 = vld [vmem:[#allocation3 + $0x1f68] sm:$0xff] }
 0x5ab   : > { %9235 = vmatpush.bf16.msk.msra.mxu3 %vm9234_vm2, %v9814_v26  ;;  %vm9188_vm5 = vmpackc.low %vm2451_vm1, %vm2435_vm0  ;;  %v7112_v7 = vadd.f32 %v7096_v56, %v6902_v34  ;;  %v1619_v62 = vld [vmem:[#allocation3 + $0x1c18] sm:$0xff]  ;;  %vm2419_vm0 = vcmp.eq.s32.totalorder %v1379_v59, %v12194_v11  ;;  %v1891_v52 = vld [vmem:[#allocation3 + $0x18f0] sm:$0xff] }
 0x5ac   : > { %9189 = vmatpush.bf16.msk.msra.mxu0 %vm9188_vm5, %v9814_v26  ;;  %vm9204_vm8 = vmpackc.low %vm2707_vm4, %vm2691_vm3  ;;  %vm2659_vm1 = vcmp.eq.s32.totalorder %v1619_v62, %v12194_v11  ;;  %v1875_v1 = vld [vmem:[#allocation3 + $0x1c98] sm:$0xff]  ;;  %vm2675_vm3 = vcmp.eq.s32.totalorder %v1635_v63, %v12194_v11  ;;  %v2131_v2 = vld [vmem:[#allocation3 + $0x968] sm:$0xff] }
 0x5ad   : > { %9205 = vmatpush.bf16.msk.msra.mxu1 %vm9204_vm8, %v9814_v26  ;;  %vm9220_vm12 = vmpackc.low %vm2963_vm7, %vm2947_vm6  ;;  %7120 = vst [vmem:[#allocation2 + $0x18] sm:$0x77] %v7112_v7  ;;  %vm2915_vm4 = vcmp.eq.s32.totalorder %v1875_v1, %v12194_v11  ;;  %vm2931_vm6 = vcmp.eq.s32.totalorder %v1891_v52, %v12194_v11  ;;  %v2147_v42 = vld [vmem:[#allocation3 + $0x78] sm:$0xff]  ;;  %vm3171_vm7 = vcmp.eq.s32.totalorder %v2131_v2, %v12194_v11  ;;  %v1588_v54 = vld [vmem:[#allocation3 + $0x850] sm:$0xff] }
 0x5ae   : > { %9221 = vmatpush.bf16.msk.msra.mxu2 %vm9220_vm12, %v9814_v26  ;;  %vm9236_vm15 = vmpackc.low %vm3219_vm11, %vm3203_vm10  ;;  %vm3187_vm10 = vcmp.eq.s32.totalorder %v2147_v42, %v12194_v11  ;;  %v1604_v4 = vld [vmem:[#allocation3 + $0x1440] sm:$0xff]  ;;  %vm2628_vm11 = vcmp.eq.s32.totalorder %v1588_v54, %v12336_v5  ;;  %v1844_v6 = vld [vmem:[#allocation3 + $0x13c8] sm:$0xff]  ;;  %v12387_v32 = vpop.f32.mrf.mxu0 }
 0x5af   : > { %9237 = vmatpush.bf16.msk.msra.mxu3 %vm9236_vm15, %v9814_v26  ;;  %vm9190_vm2 = vmpackc.low %vm2419_vm0, %vm2403_vm14  ;;  %vm2644_vm14 = vcmp.eq.s32.totalorder %v1604_v4, %v12336_v5  ;;  %v1860_v3 = vld [vmem:[#allocation3 + $0x1750] sm:$0xff]  ;;  %vm2884_vm15 = vcmp.eq.s32.totalorder %v1844_v6, %v12336_v5  ;;  %v2100_v8 = vld [vmem:[#allocation3 + $0x1668] sm:$0xff]  ;;  %v12392_v31 = vpop.f32.mrf.mxu1 }
 0x5b0   : > { %9191 = vmatpush.bf16.msk.msra.mxu0 %vm9190_vm2, %v9814_v26  ;;  %vm9206_vm5 = vmpackc.low %vm2675_vm3, %vm2659_vm1  ;;  %vm2900_vm1 = vcmp.eq.s32.totalorder %v1860_v3, %v12336_v5  ;;  %v2116_v9 = vld [vmem:[#allocation3 + $0x298] sm:$0xff]  ;;  %vm3140_vm2 = vcmp.eq.s32.totalorder %v2100_v8, %v12336_v5  ;;  %v2356_v11 = vld [vmem:[#allocation3 + $0x130] sm:$0xff] }
 0x5b1   : > { %9207 = vmatpush.bf16.msk.msra.mxu1 %vm9206_vm5, %v9814_v26  ;;  %vm9222_vm8 = vmpackc.low %vm2931_vm6, %vm2915_vm4  ;;  %vm3156_vm4 = vcmp.eq.s32.totalorder %v2116_v9, %v12336_v5  ;;  %v2372_v10 = vld [vmem:[#allocation3 + $0xd08] sm:$0xff]  ;;  %vm3396_vm5 = vcmp.eq.s32.totalorder %v2356_v11, %v12336_v5  ;;  %v1556_v12 = vld [vmem:[#allocation3 + $0x1250] sm:$0xff] }
 0x5b2   : > { %9223 = vmatpush.bf16.msk.msra.mxu2 %vm9222_vm8, %v9814_v26  ;;  %vm9238_vm12 = vmpackc.low %vm3187_vm10, %vm3171_vm7  ;;  %vm3412_vm7 = vcmp.eq.s32.totalorder %v2372_v10, %v12336_v5  ;;  %v1572_v15 = vld [vmem:[#allocation3 + $0x1cc0] sm:$0xff]  ;;  %vm2596_vm8 = vcmp.eq.s32.totalorder %v1556_v12, %v12336_v5  ;;  %v1812_v16 = vld [vmem:[#allocation3 + $0x1a50] sm:$0xff]  ;;  %v12451_v12 = vperm.slane %v11842_v60, 4 }
 0x5b3   : > { %9239 = vmatpush.bf16.msk.msra.mxu3 %vm9238_vm12, %v9814_v26  ;;  %vm9240_vm0 = vmpackc.low %vm2644_vm14, %vm2628_vm11  ;;  %6572 = vmatmul.bf16.vlgmr.msra.gmra.mxu0 %v10408_v61  ;;  %vm2612_vm11 = vcmp.eq.s32.totalorder %v1572_v15, %v12336_v5  ;;  %v1828_v17 = vld [vmem:[#allocation3 + $0x1590] sm:$0xff]  ;;  %vm2852_vm12 = vcmp.eq.s32.totalorder %v1812_v16, %v12336_v5  ;;  %v2068_v18 = vld [vmem:[#allocation3 + $0x640] sm:$0xff] }
 0x5b4   : > { %9241 = vmatpush.bf16.msk.msrb.mxu0 %vm9240_vm0, %v9814_v26  ;;  %vm9256_vm3 = vmpackc.low %vm2900_vm1, %vm2884_vm15  ;;  %6586 = vmatmul.bf16.vlgmr.msra.gmra.mxu1 %v10419_v0  ;;  %vm2868_vm15 = vcmp.eq.s32.totalorder %v1828_v17, %v12336_v5  ;;  %v2084_v19 = vld [vmem:[#allocation3 + $0x1090] sm:$0xff]  ;;  %vm3108_vm0 = vcmp.eq.s32.totalorder %v2068_v18, %v12336_v5  ;;  %v2324_v20 = vld [vmem:[#allocation3 + $0xe38] sm:$0xff] }
 0x5b5   : > { %9257 = vmatpush.bf16.msk.msrb.mxu1 %vm9256_vm3, %v9814_v26  ;;  %vm9272_vm6 = vmpackc.low %vm3156_vm4, %vm3140_vm2  ;;  %6600 = vmatmul.bf16.vlgmr.msra.gmra.mxu2 %v10357_v47  ;;  %vm3124_vm2 = vcmp.eq.s32.totalorder %v2084_v19, %v12336_v5  ;;  %v2340_v21 = vld [vmem:[#allocation3 + $0x778] sm:$0xff]  ;;  %vm3364_vm3 = vcmp.eq.s32.totalorder %v2324_v20, %v12336_v5  ;;  %v1796_v24 = vld [vmem:[#allocation3 + $0x1e90] sm:$0xff] }
 0x5b6   : > { %9273 = vmatpush.bf16.msk.msrb.mxu2 %vm9272_vm6, %v9814_v26  ;;  %vm9288_vm10 = vmpackc.low %vm3412_vm7, %vm3396_vm5  ;;  %6614 = vmatmul.bf16.vlgmr.msra.gmra.mxu3 %v10397_v58  ;;  %v1524_v22 = vld [vmem:[#allocation3 + $0x238] sm:$0xff]  ;;  %vm3380_vm5 = vcmp.eq.s32.totalorder %v2340_v21, %v12336_v5  ;;  %v2052_v27 = vld [vmem:[#allocation3 + $0x1370] sm:$0xff]  ;;  %v12415_v48 = vpop.f32.mrf.mxu2  ;;  %v12425_v7 = vpop.f32.mrf.mxu0 }
 0x5b7   : > { %9289 = vmatpush.bf16.msk.msrb.mxu3 %vm9288_vm10, %v9814_v26  ;;  %vm9242_vm14 = vmpackc.low %vm2612_vm11, %vm2596_vm8  ;;  %v1540_v51 = vld [vmem:[#allocation3 + $0x1d38] sm:$0xff]  ;;  %vm2564_vm6 = vcmp.eq.s32.totalorder %v1524_v22, %v12336_v5  ;;  %v2292_v28 = vld [vmem:[#allocation3 + $0x8f0] sm:$0xff]  ;;  %v12420_v34 = vpop.f32.mrf.mxu3  ;;  %v12430_v63 = vpop.f32.mrf.mxu1 }
 0x5b8   : > { %9243 = vmatpush.bf16.msk.msrb.mxu0 %vm9242_vm14, %v9814_v26  ;;  %vm9258_vm1 = vmpackc.low %vm2868_vm15, %vm2852_vm12  ;;  %v1780_v23 = vld [vmem:[#allocation3 + $0x18f8] sm:$0xff]  ;;  %vm2580_vm8 = vcmp.eq.s32.totalorder %v1540_v51, %v12336_v5  ;;  %vm2836_vm12 = vcmp.eq.s32.totalorder %v1796_v24, %v12336_v5  ;;  %v2308_v14 = vld [vmem:[#allocation3 + $0x1290] sm:$0xff] }
 0x5b9   : > { %9259 = vmatpush.bf16.msk.msrb.mxu1 %vm9258_vm1, %v9814_v26  ;;  %vm9274_vm4 = vmpackc.low %vm3124_vm2, %vm3108_vm0  ;;  %vm2820_vm10 = vcmp.eq.s32.totalorder %v1780_v23, %v12336_v5  ;;  %v2036_v53 = vld [vmem:[#allocation3 + $0xb38] sm:$0xff]  ;;  %vm3092_vm0 = vcmp.eq.s32.totalorder %v2052_v27, %v12336_v5  ;;  %vm3332_vm1 = vcmp.eq.s32.totalorder %v2292_v28, %v12336_v5  ;;  %v1492_v55 = vld [vmem:[#allocation3 + $0x248] sm:$0xff] }
 0x5ba   : > { %9275 = vmatpush.bf16.msk.msrb.mxu2 %vm9274_vm4, %v9814_v26  ;;  %vm9290_vm7 = vmpackc.low %vm3380_vm5, %vm3364_vm3  ;;  %vm3076_vm14 = vcmp.eq.s32.totalorder %v2036_v53, %v12336_v5  ;;  %vm3348_vm3 = vcmp.eq.s32.totalorder %v2308_v14, %v12336_v5  ;;  %v1508_v29 = vld [vmem:[#allocation3 + $0x190] sm:$0xff]  ;;  %vm2532_vm4 = vcmp.eq.s32.totalorder %v1492_v55, %v12336_v5  ;;  %v1748_v30 = vld [vmem:[#allocation3 + $0x8a8] sm:$0xff]  ;;  %v6364_v55 = vadd.f32 %v12392_v31, %v12387_v32 }
 0x5bb   : > { %9291 = vmatpush.bf16.msk.msrb.mxu3 %vm9290_vm7, %v9814_v26  ;;  %vm9244_vm11 = vmpackc.low %vm2580_vm8, %vm2564_vm6  ;;  %vm2548_vm6 = vcmp.eq.s32.totalorder %v1508_v29, %v12336_v5  ;;  %v1764_v33 = vld [vmem:[#allocation3 + $0x1328] sm:$0xff]  ;;  %vm2788_vm7 = vcmp.eq.s32.totalorder %v1748_v30, %v12336_v5  ;;  %v2004_v35 = vld [vmem:[#allocation3 + $0xe20] sm:$0xff] }
 0x5bc   : > { %9245 = vmatpush.bf16.msk.msrb.mxu0 %vm9244_vm11, %v9814_v26  ;;  %vm9260_vm15 = vmpackc.low %vm2836_vm12, %vm2820_vm10  ;;  %vm2804_vm10 = vcmp.eq.s32.totalorder %v1764_v33, %v12336_v5  ;;  %v2020_v36 = vld [vmem:[#allocation3 + $0x500] sm:$0xff]  ;;  %vm3044_vm11 = vcmp.eq.s32.totalorder %v2004_v35, %v12336_v5  ;;  %v2260_v37 = vld [vmem:[#allocation3 + $0x15d0] sm:$0xff] }
 0x5bd   : > { %9261 = vmatpush.bf16.msk.msrb.mxu1 %vm9260_vm15, %v9814_v26  ;;  %vm9276_vm2 = vmpackc.low %vm3092_vm0, %vm3076_vm14  ;;  %vm3060_vm14 = vcmp.eq.s32.totalorder %v2020_v36, %v12336_v5  ;;  %v2276_v38 = vld [vmem:[#allocation3 + $0x1ab0] sm:$0xff]  ;;  %vm3300_vm15 = vcmp.eq.s32.totalorder %v2260_v37, %v12336_v5  ;;  %v1460_v13 = vld [vmem:[#allocation3 + $0x19b8] sm:$0xff]  ;;  %v6366_v37 = vadd.f32 %v12430_v63, %v12425_v7 }
 0x5be   : > { %9277 = vmatpush.bf16.msk.msrb.mxu2 %vm9276_vm2, %v9814_v26  ;;  %vm9292_vm5 = vmpackc.low %vm3348_vm3, %vm3332_vm1  ;;  %vm3316_vm1 = vcmp.eq.s32.totalorder %v2276_v38, %v12336_v5  ;;  %v1476_v39 = vld [vmem:[#allocation3 + $0x1b08] sm:$0xff]  ;;  %vm2500_vm2 = vcmp.eq.s32.totalorder %v1460_v13, %v12336_v5  ;;  %v1716_v40 = vld [vmem:[#allocation3 + $0x810] sm:$0xff]  ;;  %v12456_v17 = vpop.f32.mrf.mxu2 }
 0x5bf   : > { %9293 = vmatpush.bf16.msk.msrb.mxu3 %vm9292_vm5, %v9814_v26  ;;  %vm9246_vm8 = vmpackc.low %vm2548_vm6, %vm2532_vm4  ;;  %vm2516_vm4 = vcmp.eq.s32.totalorder %v1476_v39, %v12336_v5  ;;  %v1732_v41 = vld [vmem:[#allocation3 + $0x1558] sm:$0xff]  ;;  %vm2756_vm5 = vcmp.eq.s32.totalorder %v1716_v40, %v12336_v5  ;;  %v1972_v43 = vld [vmem:[#allocation3 + $0x2b0] sm:$0xff]  ;;  %v12461_v20 = vpop.f32.mrf.mxu3 }
 0x5c0   : > { %9247 = vmatpush.bf16.msk.msrb.mxu0 %vm9246_vm8, %v9814_v26  ;;  %vm9262_vm12 = vmpackc.low %vm2804_vm10, %vm2788_vm7  ;;  %vm2772_vm7 = vcmp.eq.s32.totalorder %v1732_v41, %v12336_v5  ;;  %v1988_v44 = vld [vmem:[#allocation3 + $0x518] sm:$0xff]  ;;  %vm3012_vm8 = vcmp.eq.s32.totalorder %v1972_v43, %v12336_v5  ;;  %v2228_v46 = vld [vmem:[#allocation3 + $0x1240] sm:$0xff]  ;;  %v6378_v43 = vadd.f32 %v12415_v48, %v6364_v55 }
 0x5c1   : > { %9263 = vmatpush.bf16.msk.msrb.mxu1 %vm9262_vm12, %v9814_v26  ;;  %vm9278_vm0 = vmpackc.low %vm3060_vm14, %vm3044_vm11  ;;  %vm3028_vm11 = vcmp.eq.s32.totalorder %v1988_v44, %v12336_v5  ;;  %v2244_v45 = vld [vmem:[#allocation3 + $0x998] sm:$0xff]  ;;  %vm3268_vm12 = vcmp.eq.s32.totalorder %v2228_v46, %v12336_v5  ;;  %v1428_v25 = vld [vmem:[#allocation3 + $0xf08] sm:$0xff] }
 0x5c2   : > { %9279 = vmatpush.bf16.msk.msrb.mxu2 %vm9278_vm0, %v9814_v26  ;;  %vm9294_vm3 = vmpackc.low %vm3316_vm1, %vm3300_vm15  ;;  %vm3284_vm15 = vcmp.eq.s32.totalorder %v2244_v45, %v12336_v5  ;;  %v1444_v49 = vld [vmem:[#allocation3 + $0x1048] sm:$0xff]  ;;  %vm2468_vm0 = vcmp.eq.s32.totalorder %v1428_v25, %v12336_v5  ;;  %v1684_v50 = vld [vmem:[#allocation3 + $0xfb8] sm:$0xff] }
 0x5c3   : > { %9295 = vmatpush.bf16.msk.msrb.mxu3 %vm9294_vm3, %v9814_v26  ;;  %vm9248_vm6 = vmpackc.low %vm2516_vm4, %vm2500_vm2  ;;  %vm2484_vm2 = vcmp.eq.s32.totalorder %v1444_v49, %v12336_v5  ;;  %v1700_v56 = vld [vmem:[#allocation3 + $0x2a8] sm:$0xff]  ;;  %vm2724_vm3 = vcmp.eq.s32.totalorder %v1684_v50, %v12336_v5  ;;  %v1956_v59 = vld [vmem:[#allocation3 + $0x450] sm:$0xff]  ;;  %v6380_v50 = vadd.f32 %v12456_v17, %v6366_v37 }
 0x5c4   : > { %9249 = vmatpush.bf16.msk.msrb.mxu0 %vm9248_vm6, %v9814_v26  ;;  %vm9264_vm10 = vmpackc.low %vm2772_vm7, %vm2756_vm5  ;;  %v1940_v57 = vld [vmem:[#allocation3 + $0x9c8] sm:$0xff]  ;;  %vm2740_vm5 = vcmp.eq.s32.totalorder %v1700_v56, %v12336_v5  ;;  %v1412_v2 = vld [vmem:[#allocation3 + $0x16c0] sm:$0xff] }
 0x5c5   : > { %9265 = vmatpush.bf16.msk.msrb.mxu1 %vm9264_vm10, %v9814_v26  ;;  %vm9280_vm14 = vmpackc.low %vm3028_vm11, %vm3012_vm8  ;;  %vm2980_vm6 = vcmp.eq.s32.totalorder %v1940_v57, %v12336_v5  ;;  %v2196_v62 = vld [vmem:[#allocation3 + $0x208] sm:$0xff]  ;;  %vm2996_vm8 = vcmp.eq.s32.totalorder %v1956_v59, %v12336_v5  ;;  %v1652_v42 = vld [vmem:[#allocation3 + $0x578] sm:$0xff] }
 0x5c6   : > { %9281 = vmatpush.bf16.msk.msrb.mxu2 %vm9280_vm14, %v9814_v26  ;;  %vm9296_vm1 = vmpackc.low %vm3284_vm15, %vm3268_vm12  ;;  %v2212_v1 = vld [vmem:[#allocation3 + $0x12e8] sm:$0xff]  ;;  %vm3236_vm10 = vcmp.eq.s32.totalorder %v2196_v62, %v12336_v5  ;;  %v1908_v4 = vld [vmem:[#allocation3 + $0x1338] sm:$0xff] }
 0x5c7   : > { %9297 = vmatpush.bf16.msk.msrb.mxu3 %vm9296_vm1, %v9814_v26  ;;  %vm9250_vm4 = vmpackc.low %vm2484_vm2, %vm2468_vm0  ;;  %v1396_v52 = vld [vmem:[#allocation3 + $0x10c8] sm:$0xff]  ;;  %vm3252_vm12 = vcmp.eq.s32.totalorder %v2212_v1, %v12336_v5  ;;  %vm2452_vm0 = vcmp.eq.s32.totalorder %v1412_v2, %v12336_v5  ;;  %vm2692_vm1 = vcmp.eq.s32.totalorder %v1652_v42, %v12336_v5  ;;  %v1924_v6 = vld [vmem:[#allocation3 + $0xc30] sm:$0xff] }
 0x5c8   : > { %9251 = vmatpush.bf16.msk.msrb.mxu0 %vm9250_vm4, %v9814_v26  ;;  %vm9266_vm7 = vmpackc.low %vm2740_vm5, %vm2724_vm3  ;;  %vm2436_vm14 = vcmp.eq.s32.totalorder %v1396_v52, %v12336_v5  ;;  %v1668_v54 = vld [vmem:[#allocation3 + $0xe48] sm:$0xff]  ;;  %vm2948_vm4 = vcmp.eq.s32.totalorder %v1908_v4, %v12336_v5  ;;  %v2164_v3 = vld [vmem:[#allocation3 + $0x1930] sm:$0xff]  ;;  %v12515_v52 = vadd.f32 %v12420_v34, %v6378_v43  ;;  %v12522_v4 = vadd.f32 %v12461_v20, %v6380_v50 }
 0x5c9   : > { %9267 = vmatpush.bf16.msk.msrb.mxu1 %vm9266_vm7, %v9814_v26  ;;  %vm9282_vm11 = vmpackc.low %vm2996_vm8, %vm2980_vm6  ;;  %vm2708_vm3 = vcmp.eq.s32.totalorder %v1668_v54, %v12336_v5  ;;  %vm2964_vm6 = vcmp.eq.s32.totalorder %v1924_v6, %v12336_v5  ;;  %v2180_v8 = vld [vmem:[#allocation3 + $0x1c30] sm:$0xff]  ;;  %vm3204_vm7 = vcmp.eq.s32.totalorder %v2164_v3, %v12336_v5  ;;  %v1364_v9 = vld [vmem:[#allocation3 + $0x758] sm:$0xff] }
 0x5ca   : > { %9283 = vmatpush.bf16.msk.msrb.mxu2 %vm9282_vm11, %v9814_v26  ;;  %vm9298_vm15 = vmpackc.low %vm3252_vm12, %vm3236_vm10  ;;  %vm3220_vm10 = vcmp.eq.s32.totalorder %v2180_v8, %v12336_v5  ;;  %v1380_v11 = vld [vmem:[#allocation3 + $0x18d8] sm:$0xff]  ;;  %vm2404_vm11 = vcmp.eq.s32.totalorder %v1364_v9, %v12336_v5  ;;  %v1620_v10 = vld [vmem:[#allocation3 + $0x228] sm:$0xff] }
 0x5cb   : > { %9299 = vmatpush.bf16.msk.msrb.mxu3 %vm9298_vm15, %v9814_v26  ;;  %vm9252_vm2 = vmpackc.low %vm2452_vm0, %vm2436_vm14  ;;  %vm2420_vm14 = vcmp.eq.s32.totalorder %v1380_v11, %v12336_v5  ;;  %v1636_v15 = vld [vmem:[#allocation3 + $0x148] sm:$0xff]  ;;  %vm2660_vm15 = vcmp.eq.s32.totalorder %v1620_v10, %v12336_v5  ;;  %v1876_v16 = vld [vmem:[#allocation3 + $0x700] sm:$0xff] }
 0x5cc   : > { %9253 = vmatpush.bf16.msk.msrb.mxu0 %vm9252_vm2, %v9814_v26  ;;  %vm9268_vm5 = vmpackc.low %vm2708_vm3, %vm2692_vm1  ;;  %vm2676_vm1 = vcmp.eq.s32.totalorder %v1636_v15, %v12336_v5  ;;  %v1892_v18 = vld [vmem:[#allocation3 + $0xf58] sm:$0xff]  ;;  %vm2916_vm2 = vcmp.eq.s32.totalorder %v1876_v16, %v12336_v5  ;;  %v2132_v19 = vld [vmem:[#allocation3 + $0x1b28] sm:$0xff]  ;;  %v6930_v16 = vrot.slane %v12515_v52, 3 }
 0x5cd   : > { %9269 = vmatpush.bf16.msk.msrb.mxu1 %vm9268_vm5, %v9814_v26  ;;  %vm9284_vm8 = vmpackc.low %vm2964_vm6, %vm2948_vm4  ;;  %vm2932_vm4 = vcmp.eq.s32.totalorder %v1892_v18, %v12336_v5  ;;  %v2148_v21 = vld [vmem:[#allocation3 + $0x12b0] sm:$0xff]  ;;  %vm3172_vm5 = vcmp.eq.s32.totalorder %v2132_v19, %v12336_v5  ;;  %v1589_v22 = vld [vmem:[#allocation3 + $0xf20] sm:$0xff] }
 0x5ce   : > { %9285 = vmatpush.bf16.msk.msrb.mxu2 %vm9284_vm8, %v9814_v26  ;;  %vm9300_vm12 = vmpackc.low %vm3220_vm10, %vm3204_vm7  ;;  %v6405_v51 = vpop.f32.mrf.mxu0  ;;  %vm3188_vm7 = vcmp.eq.s32.totalorder %v2148_v21, %v12336_v5  ;;  %v1605_v23 = vld [vmem:[#allocation3 + $0x1160] sm:$0xff]  ;;  %vm2629_vm8 = vcmp.eq.s32.totalorder %v1589_v22, %v12451_v12  ;;  %v1861_v27 = vld [vmem:[#allocation3 + $0x1188] sm:$0xff]  ;;  %v7007_v21 = vrot.slane %v12515_v52, 6  ;;  %v7008_v22 = vrot.slane %v12522_v4, 6 }
 0x5cf   : > { %9301 = vmatpush.bf16.msk.msrb.mxu3 %vm9300_vm12, %v9814_v26  ;;  %vm9254_vm0 = vmpackc.low %vm2420_vm14, %vm2404_vm11  ;;  %v1845_v24 = vld [vmem:[#allocation3 + $0x1a80] sm:$0xff]  ;;  %v6419_v53 = vpop.f32.mrf.mxu1  ;;  %vm2645_vm11 = vcmp.eq.s32.totalorder %v1605_v23, %v12451_v12  ;;  %v2101_v28 = vld [vmem:[#allocation3 + $0x250] sm:$0xff] }
 0x5d0   : > { %9255 = vmatpush.bf16.msk.msrb.mxu0 %vm9254_vm0, %v9814_v26  ;;  %vm9270_vm3 = vmpackc.low %vm2676_vm1, %vm2660_vm15  ;;  %vm2885_vm12 = vcmp.eq.s32.totalorder %v1845_v24, %v12451_v12  ;;  %vm2901_vm15 = vcmp.eq.s32.totalorder %v1861_v27, %v12451_v12  ;;  %v2117_v5 = vld [vmem:[#allocation3 + $0x1128] sm:$0xff]  ;;  %vm3141_vm0 = vcmp.eq.s32.totalorder %v2101_v28, %v12451_v12  ;;  %v2357_v14 = vld [vmem:[#allocation3 + $0x1dc0] sm:$0xff]  ;;  %v6420_v31 = vadd.f32 %v6419_v53, %v6405_v51 }
 0x5d1   : > { %9271 = vmatpush.bf16.msk.msrb.mxu1 %vm9270_vm3, %v9814_v26  ;;  %vm9286_vm6 = vmpackc.low %vm2932_vm4, %vm2916_vm2  ;;  %vm3157_vm2 = vcmp.eq.s32.totalorder %v2117_v5, %v12451_v12  ;;  %v2373_v29 = vld [vmem:[#allocation3 + $0x1818] sm:$0xff]  ;;  %vm3397_vm3 = vcmp.eq.s32.totalorder %v2357_v14, %v12451_v12  ;;  %v1557_v30 = vld [vmem:[#allocation3 + $0x1ca8] sm:$0xff] }
 0x5d2   : > { %9287 = vmatpush.bf16.msk.msrb.mxu2 %vm9286_vm6, %v9814_v26  ;;  %vm9302_vm10 = vmpackc.low %vm3188_vm7, %vm3172_vm5  ;;  %vm3413_vm5 = vcmp.eq.s32.totalorder %v2373_v29, %v12451_v12  ;;  %v1573_v33 = vld [vmem:[#allocation3 + $0x1980] sm:$0xff]  ;;  %vm2597_vm6 = vcmp.eq.s32.totalorder %v1557_v30, %v12451_v12  ;;  %v1813_v32 = vld [vmem:[#allocation3 + $0x1a38] sm:$0xff] }
 0x5d3   : > { %9303 = vmatpush.bf16.msk.msrb.mxu3 %vm9302_vm10, %v9814_v26  ;;  %vm9304_vm14 = vmpackc.low %vm2645_vm11, %vm2629_vm8  ;;  %6628 = vmatmul.bf16.vlgmr.msrb.gmra.mxu0 %v10408_v61  ;;  %vm2613_vm8 = vcmp.eq.s32.totalorder %v1573_v33, %v12451_v12  ;;  %v1829_v35 = vld [vmem:[#allocation3 + $0x1260] sm:$0xff]  ;;  %vm2853_vm10 = vcmp.eq.s32.totalorder %v1813_v32, %v12451_v12  ;;  %v2069_v36 = vld [vmem:[#allocation3 + $0x938] sm:$0xff]  ;;  %v6962_v32 = vadd.f32 %v6930_v16, %v12515_v52 }
 0x5d4   : > { %9305 = vmatpush.bf16.msk.msra.mxu0 %vm9304_vm14, %v9814_v26  ;;  %vm9320_vm1 = vmpackc.low %vm2901_vm15, %vm2885_vm12  ;;  %6642 = vmatmul.bf16.vlgmr.msrb.gmra.mxu1 %v10419_v0  ;;  %vm2869_vm12 = vcmp.eq.s32.totalorder %v1829_v35, %v12451_v12  ;;  %v2085_v38 = vld [vmem:[#allocation3 + $0x1df0] sm:$0xff]  ;;  %vm3109_vm14 = vcmp.eq.s32.totalorder %v2069_v36, %v12451_v12  ;;  %v2325_v13 = vld [vmem:[#allocation3 + $0x480] sm:$0xff]  ;;  %v7009_v36 = vsel %vm6988_vm9, %v7007_v21, %v7008_v22 }
 0x5d5   : > { %9321 = vmatpush.bf16.msk.msra.mxu1 %vm9320_vm1, %v9814_v26  ;;  %vm9336_vm4 = vmpackc.low %vm3157_vm2, %vm3141_vm0  ;;  %6656 = vmatmul.bf16.vlgmr.msrb.gmra.mxu2 %v10357_v47  ;;  %vm3125_vm0 = vcmp.eq.s32.totalorder %v2085_v38, %v12451_v12  ;;  %v2341_v39 = vld [vmem:[#allocation3 + $0x240] sm:$0xff]  ;;  %vm3365_vm1 = vcmp.eq.s32.totalorder %v2325_v13, %v12451_v12  ;;  %v1525_v40 = vld [vmem:[#allocation3 + $0x1298] sm:$0xff] }
 0x5d6   : > { %9337 = vmatpush.bf16.msk.msra.mxu2 %vm9336_vm4, %v9814_v26  ;;  %vm9352_vm7 = vmpackc.low %vm3413_vm5, %vm3397_vm3  ;;  %6670 = vmatmul.bf16.vlgmr.msrb.gmra.mxu3 %v10397_v58  ;;  %v6433_v41 = vpop.f32.mrf.mxu2  ;;  %vm3381_vm3 = vcmp.eq.s32.totalorder %v2341_v39, %v12451_v12  ;;  %v1541_v44 = vld [vmem:[#allocation3 + $0x1210] sm:$0xff]  ;;  %vm2565_vm4 = vcmp.eq.s32.totalorder %v1525_v40, %v12451_v12  ;;  %v1781_v46 = vld [vmem:[#allocation3 + $0x1aa8] sm:$0xff]  ;;  %v6407_v56 = vpop.f32.mrf.mxu0 }
 0x5d7   : > { %9353 = vmatpush.bf16.msk.msra.mxu3 %vm9352_vm7, %v9814_v26  ;;  %vm9306_vm11 = vmpackc.low %vm2613_vm8, %vm2597_vm6  ;;  %v6434_v45 = vadd.f32 %v6433_v41, %v6420_v31  ;;  %v6447_v25 = vpop.f32.mrf.mxu3  ;;  %vm2581_vm6 = vcmp.eq.s32.totalorder %v1541_v44, %v12451_v12  ;;  %v1797_v49 = vld [vmem:[#allocation3 + $0x1880] sm:$0xff]  ;;  %vm2821_vm7 = vcmp.eq.s32.totalorder %v1781_v46, %v12451_v12  ;;  %v2037_v48 = vld [vmem:[#allocation3 + $0x9e8] sm:$0xff]  ;;  %v6421_v57 = vpop.f32.mrf.mxu1  ;;  %v7059_v46 = vadd.f32 %v7009_v36, %v6962_v32 }
 0x5d8   : > { %9307 = vmatpush.bf16.msk.msra.mxu0 %vm9306_vm11, %v9814_v26  ;;  %vm9322_vm15 = vmpackc.low %vm2869_vm12, %vm2853_vm10  ;;  %vm2837_vm10 = vcmp.eq.s32.totalorder %v1797_v49, %v12451_v12  ;;  %v2053_v7 = vld [vmem:[#allocation3 + $0x1318] sm:$0xff]  ;;  %vm3077_vm11 = vcmp.eq.s32.totalorder %v2037_v48, %v12451_v12  ;;  %v2293_v59 = vld [vmem:[#allocation3 + $0x1e28] sm:$0xff]  ;;  %v6422_v54 = vadd.f32 %v6421_v57, %v6407_v56 }
 0x5d9   : > { %9323 = vmatpush.bf16.msk.msra.mxu1 %vm9322_vm15, %v9814_v26  ;;  %vm9338_vm2 = vmpackc.low %vm3125_vm0, %vm3109_vm14  ;;  %vm3093_vm14 = vcmp.eq.s32.totalorder %v2053_v7, %v12451_v12  ;;  %v2309_v62 = vld [vmem:[#allocation3 + $0x17b8] sm:$0xff]  ;;  %vm3333_vm15 = vcmp.eq.s32.totalorder %v2293_v59, %v12451_v12  ;;  %v12512_v1 = vadd.f32 %v6447_v25, %v6434_v45  ;;  %v1749_v42 = vld [vmem:[#allocation3 + $0x1970] sm:$0xff] }
 0x5da   : > { %9339 = vmatpush.bf16.msk.msra.mxu2 %vm9338_vm2, %v9814_v26  ;;  %vm9354_vm5 = vmpackc.low %vm3381_vm3, %vm3365_vm1  ;;  %v1493_v63 = vld [vmem:[#allocation3 + $0x8f8] sm:$0xff]  ;;  %vm3349_vm1 = vcmp.eq.s32.totalorder %v2309_v62, %v12451_v12  ;;  %v1765_v34 = vld [vmem:[#allocation3 + $0x1c10] sm:$0xff] }
 0x5db   : > { %9355 = vmatpush.bf16.msk.msra.mxu3 %vm9354_vm5, %v9814_v26  ;;  %vm9308_vm8 = vmpackc.low %vm2581_vm6, %vm2565_vm4  ;;  %v1509_v2 = vld [vmem:[#allocation3 + $0x6d8] sm:$0xff]  ;;  %vm2533_vm2 = vcmp.eq.s32.totalorder %v1493_v63, %v12451_v12  ;;  %vm2789_vm5 = vcmp.eq.s32.totalorder %v1749_v42, %v12451_v12  ;;  %v2005_v6 = vld [vmem:[#allocation3 + $0x10d0] sm:$0xff]  ;;  %v6931_v10 = vrot.slane %v12512_v1, 3  ;;  %v7010_v27 = vrot.slane %v12512_v1, 6 }
 0x5dc   : > { %9309 = vmatpush.bf16.msk.msra.mxu0 %vm9308_vm8, %v9814_v26  ;;  %vm9324_vm12 = vmpackc.low %vm2837_vm10, %vm2821_vm7  ;;  %vm2549_vm4 = vcmp.eq.s32.totalorder %v1509_v2, %v12451_v12  ;;  %vm2805_vm7 = vcmp.eq.s32.totalorder %v1765_v34, %v12451_v12  ;;  %v2021_v3 = vld [vmem:[#allocation3 + $0x488] sm:$0xff]  ;;  %vm3045_vm8 = vcmp.eq.s32.totalorder %v2005_v6, %v12451_v12  ;;  %v2261_v8 = vld [vmem:[#allocation3 + $0x1f8] sm:$0xff]  ;;  %v12586_v2 = vperm.slane %v11842_v60, 5 }
 0x5dd   : > { %9325 = vmatpush.bf16.msk.msra.mxu1 %vm9324_vm12, %v9814_v26  ;;  %vm9340_vm0 = vmpackc.low %vm3093_vm14, %vm3077_vm11  ;;  %vm3061_vm11 = vcmp.eq.s32.totalorder %v2021_v3, %v12451_v12  ;;  %v2277_v9 = vld [vmem:[#allocation3 + $0x1300] sm:$0xff]  ;;  %vm3301_vm12 = vcmp.eq.s32.totalorder %v2261_v8, %v12451_v12  ;;  %v1461_v11 = vld [vmem:[#allocation3 + $0x4f8] sm:$0xff]  ;;  %v6963_v14 = vadd.f32 %v6931_v10, %v12512_v1 }
 0x5de   : > { %9341 = vmatpush.bf16.msk.msra.mxu2 %vm9340_vm0, %v9814_v26  ;;  %vm9356_vm3 = vmpackc.low %vm3349_vm1, %vm3333_vm15  ;;  %v6435_v15 = vpop.f32.mrf.mxu2  ;;  %vm3317_vm15 = vcmp.eq.s32.totalorder %v2277_v9, %v12451_v12  ;;  %v1477_v17 = vld [vmem:[#allocation3 + $0x1958] sm:$0xff]  ;;  %vm2501_vm0 = vcmp.eq.s32.totalorder %v1461_v11, %v12451_v12  ;;  %v1733_v51 = vld [vmem:[#allocation3 + $0x13f0] sm:$0xff] }
 0x5df   : > { %9357 = vmatpush.bf16.msk.msra.mxu3 %vm9356_vm3, %v9814_v26  ;;  %vm9310_vm6 = vmpackc.low %vm2549_vm4, %vm2533_vm2  ;;  %v1717_v18 = vld [vmem:[#allocation3 + $0x1b18] sm:$0xff]  ;;  %v6436_v19 = vadd.f32 %v6435_v15, %v6422_v54  ;;  %v6449_v20 = vpop.f32.mrf.mxu3  ;;  %vm2517_vm2 = vcmp.eq.s32.totalorder %v1477_v17, %v12451_v12  ;;  %v2229_v53 = vld [vmem:[#allocation3 + $0x1788] sm:$0xff] }
 0x5e0   : > { %9311 = vmatpush.bf16.msk.msra.mxu0 %vm9310_vm6, %v9814_v26  ;;  %vm9326_vm10 = vmpackc.low %vm2805_vm7, %vm2789_vm5  ;;  %vm2757_vm3 = vcmp.eq.s32.totalorder %v1717_v18, %v12451_v12  ;;  %v1973_v23 = vld [vmem:[#allocation3 + $0xc78] sm:$0xff]  ;;  %vm2773_vm5 = vcmp.eq.s32.totalorder %v1733_v51, %v12451_v12  ;;  %v2245_v5 = vld [vmem:[#allocation3 + $0x1ce0] sm:$0xff] }
 0x5e1   : > { %9327 = vmatpush.bf16.msk.msra.mxu1 %vm9326_vm10, %v9814_v26  ;;  %vm9342_vm14 = vmpackc.low %vm3061_vm11, %vm3045_vm8  ;;  %v1989_v24 = vld [vmem:[#allocation3 + $0x4b8] sm:$0xff]  ;;  %vm3013_vm6 = vcmp.eq.s32.totalorder %v1973_v23, %v12451_v12  ;;  %v6450_v28 = vadd.f32 %v6449_v20, %v6436_v19  ;;  %vm3269_vm10 = vcmp.eq.s32.totalorder %v2229_v53, %v12451_v12  ;;  %v1429_v55 = vld [vmem:[#allocation3 + $0x310] sm:$0xff] }
 0x5e2   : > { %9343 = vmatpush.bf16.msk.msra.mxu2 %vm9342_vm14, %v9814_v26  ;;  %vm9358_vm1 = vmpackc.low %vm3317_vm15, %vm3301_vm12  ;;  %vm3029_vm8 = vcmp.eq.s32.totalorder %v1989_v24, %v12451_v12  ;;  %vm3285_vm12 = vcmp.eq.s32.totalorder %v2245_v5, %v12451_v12  ;;  %v1445_v29 = vld [vmem:[#allocation3 + $0x18c8] sm:$0xff]  ;;  %vm2469_vm14 = vcmp.eq.s32.totalorder %v1429_v55, %v12451_v12  ;;  %v1685_v30 = vld [vmem:[#allocation3 + $0xe50] sm:$0xff] }
 0x5e3   : > { %9359 = vmatpush.bf16.msk.msra.mxu3 %vm9358_vm1, %v9814_v26  ;;  %vm9312_vm4 = vmpackc.low %vm2517_vm2, %vm2501_vm0  ;;  %v7011_v33 = vrot.slane %v6450_v28, 6  ;;  %vm2485_vm0 = vcmp.eq.s32.totalorder %v1445_v29, %v12451_v12  ;;  %v1701_v31 = vld [vmem:[#allocation3 + $0x1480] sm:$0xff]  ;;  %vm2725_vm1 = vcmp.eq.s32.totalorder %v1685_v30, %v12451_v12  ;;  %v1941_v35 = vld [vmem:[#allocation3 + $0x1ef8] sm:$0xff] }
 0x5e4   : > { %9313 = vmatpush.bf16.msk.msra.mxu0 %vm9312_vm4, %v9814_v26  ;;  %vm9328_vm7 = vmpackc.low %vm2773_vm5, %vm2757_vm3  ;;  %vm2741_vm3 = vcmp.eq.s32.totalorder %v1701_v31, %v12451_v12  ;;  %v1957_v37 = vld [vmem:[#allocation3 + $0xef0] sm:$0xff]  ;;  %vm2981_vm4 = vcmp.eq.s32.totalorder %v1941_v35, %v12451_v12  ;;  %v2197_v38 = vld [vmem:[#allocation3 + $0x1928] sm:$0xff] }
 0x5e5   : > { %9329 = vmatpush.bf16.msk.msra.mxu1 %vm9328_vm7, %v9814_v26  ;;  %vm9344_vm11 = vmpackc.low %vm3029_vm8, %vm3013_vm6  ;;  %v7012_v13 = vsel %vm6988_vm9, %v7010_v27, %v7011_v33  ;;  %vm2997_vm6 = vcmp.eq.s32.totalorder %v1957_v37, %v12451_v12  ;;  %v2213_v39 = vld [vmem:[#allocation3 + $0xb0] sm:$0xff]  ;;  %vm3237_vm7 = vcmp.eq.s32.totalorder %v2197_v38, %v12451_v12  ;;  %v1653_v44 = vld [vmem:[#allocation3 + $0x1f80] sm:$0xff] }
 0x5e6   : > { %9345 = vmatpush.bf16.msk.msra.mxu2 %vm9344_vm11, %v9814_v26  ;;  %vm9360_vm15 = vmpackc.low %vm3285_vm12, %vm3269_vm10  ;;  %v1397_v40 = vld [vmem:[#allocation3 + $0x12f0] sm:$0xff]  ;;  %v7060_v41 = vadd.f32 %v7012_v13, %v6963_v14  ;;  %vm3253_vm10 = vcmp.eq.s32.totalorder %v2213_v39, %v12451_v12  ;;  %v1669_v45 = vld [vmem:[#allocation3 + $0xcf8] sm:$0xff] }
 0x5e7   : > { %9361 = vmatpush.bf16.msk.msra.mxu3 %vm9360_vm15, %v9814_v26  ;;  %vm9314_vm2 = vmpackc.low %vm2485_vm0, %vm2469_vm14  ;;  %v1413_v43 = vld [vmem:[#allocation3 + $0xf0] sm:$0xff]  ;;  %vm2437_vm11 = vcmp.eq.s32.totalorder %v1397_v40, %v12451_v12  ;;  %vm2693_vm15 = vcmp.eq.s32.totalorder %v1653_v44, %v12451_v12  ;;  %v1909_v25 = vld [vmem:[#allocation3 + $0x720] sm:$0xff] }
 0x5e8   : > { %9315 = vmatpush.bf16.msk.msra.mxu0 %vm9314_vm2, %v9814_v26  ;;  %vm9330_vm5 = vmpackc.low %vm2741_vm3, %vm2725_vm1  ;;  %vm2453_vm14 = vcmp.eq.s32.totalorder %v1413_v43, %v12451_v12  ;;  %v7088_v49 = vrot.slane %v7060_v41, 4  ;;  %vm2709_vm1 = vcmp.eq.s32.totalorder %v1669_v45, %v12451_v12  ;;  %v1925_v48 = vld [vmem:[#allocation3 + $0x7c0] sm:$0xff]  ;;  %vm2949_vm2 = vcmp.eq.s32.totalorder %v1909_v25, %v12451_v12  ;;  %v2165_v50 = vld [vmem:[#allocation3 + $0x1738] sm:$0xff] }
 0x5e9   : > { %9331 = vmatpush.bf16.msk.msra.mxu1 %vm9330_vm5, %v9814_v26  ;;  %vm9346_vm8 = vmpackc.low %vm2997_vm6, %vm2981_vm4  ;;  %vm2965_vm4 = vcmp.eq.s32.totalorder %v1925_v48, %v12451_v12  ;;  %v2181_v56 = vld [vmem:[#allocation3 + $0x1c60] sm:$0xff]  ;;  %vm3205_vm5 = vcmp.eq.s32.totalorder %v2165_v50, %v12451_v12  ;;  %v6903_v57 = vld [vmem:[#allocation2 + $0x10] sm:$0x77] }
 0x5ea   : > { %9347 = vmatpush.bf16.msk.msra.mxu2 %vm9346_vm8, %v9814_v26  ;;  %vm9362_vm12 = vmpackc.low %vm3253_vm10, %vm3237_vm7  ;;  %v7097_v7 = vsel %vm7093_vm13, %v7059_v46, %v7088_v49  ;;  %vm3221_vm7 = vcmp.eq.s32.totalorder %v2181_v56, %v12451_v12  ;;  %v1365_v62 = vld [vmem:[#allocation3 + $0x308] sm:$0xff]  ;;  %v1381_v63 = vld [vmem:[#allocation3 + $0xb98] sm:$0xff] }
 0x5eb   : > { %9363 = vmatpush.bf16.msk.msra.mxu3 %vm9362_vm12, %v9814_v26  ;;  %vm9316_vm0 = vmpackc.low %vm2453_vm14, %vm2437_vm11  ;;  %v7113_v59 = vadd.f32 %v7097_v7, %v6903_v57  ;;  %vm2405_vm10 = vcmp.eq.s32.totalorder %v1365_v62, %v12451_v12  ;;  %vm2421_vm11 = vcmp.eq.s32.totalorder %v1381_v63, %v12451_v12  ;;  %v1621_v1 = vld [vmem:[#allocation3 + $0x1910] sm:$0xff]  ;;  %v1637_v52 = vld [vmem:[#allocation3 + $0xdd8] sm:$0xff] }
 0x5ec   : > { %9317 = vmatpush.bf16.msk.msra.mxu0 %vm9316_vm0, %v9814_v26  ;;  %vm9332_vm3 = vmpackc.low %vm2709_vm1, %vm2693_vm15  ;;  %vm2661_vm14 = vcmp.eq.s32.totalorder %v1621_v1, %v12451_v12  ;;  %vm2677_vm15 = vcmp.eq.s32.totalorder %v1637_v52, %v12451_v12  ;;  %v1877_v42 = vld [vmem:[#allocation3 + $0x678] sm:$0xff]  ;;  %v1893_v54 = vld [vmem:[#allocation3 + $0x13e0] sm:$0xff] }
 0x5ed   : > { %9333 = vmatpush.bf16.msk.msra.mxu1 %vm9332_vm3, %v9814_v26  ;;  %vm9348_vm6 = vmpackc.low %vm2965_vm4, %vm2949_vm2  ;;  %7121 = vst [vmem:[#allocation2 + $0x10] sm:$0x77] %v7113_v59  ;;  %vm2917_vm1 = vcmp.eq.s32.totalorder %v1877_v42, %v12451_v12  ;;  %vm2933_vm2 = vcmp.eq.s32.totalorder %v1893_v54, %v12451_v12  ;;  %v2133_v4 = vld [vmem:[#allocation3 + $0xed8] sm:$0xff]  ;;  %v1590_v6 = vld [vmem:[#allocation3 + $0x1cc8] sm:$0xff] }
 0x5ee   : > { %9349 = vmatpush.bf16.msk.msra.mxu2 %vm9348_vm6, %v9814_v26  ;;  %vm9364_vm8 = vmpackc.low %vm3221_vm7, %vm3205_vm5  ;;  %v2149_v34 = vld [vmem:[#allocation3 + $0x15f8] sm:$0xff]  ;;  %vm3173_vm4 = vcmp.eq.s32.totalorder %v2133_v4, %v12451_v12  ;;  %v1606_v3 = vld [vmem:[#allocation3 + $0x17a8] sm:$0xff]  ;;  %vm2630_vm7 = vcmp.eq.s32.totalorder %v1590_v6, %v12586_v2  ;;  %v12634_v29 = vpop.f32.mrf.mxu0 }
 0x5ef   : > { %9365 = vmatpush.bf16.msk.msra.mxu3 %vm9364_vm8, %v9814_v26  ;;  %vm9318_vm12 = vmpackc.low %vm2421_vm11, %vm2405_vm10  ;;  %vm3189_vm5 = vcmp.eq.s32.totalorder %v2149_v34, %v12451_v12  ;;  %vm2646_vm8 = vcmp.eq.s32.totalorder %v1606_v3, %v12586_v2  ;;  %v1846_v8 = vld [vmem:[#allocation3 + $0x1c08] sm:$0xff]  ;;  %v1862_v9 = vld [vmem:[#allocation3 + $0x1560] sm:$0xff]  ;;  %v12639_v32 = vpop.f32.mrf.mxu1 }
 0x5f0   : > { %9319 = vmatpush.bf16.msk.msra.mxu0 %vm9318_vm12, %v9814_v26  ;;  %vm9334_vm0 = vmpackc.low %vm2677_vm15, %vm2661_vm14  ;;  %vm2886_vm11 = vcmp.eq.s32.totalorder %v1846_v8, %v12586_v2  ;;  %vm2902_vm12 = vcmp.eq.s32.totalorder %v1862_v9, %v12586_v2  ;;  %v2102_v11 = vld [vmem:[#allocation3 + $0xcf0] sm:$0xff]  ;;  %v2118_v12 = vld [vmem:[#allocation3 + $0x338] sm:$0xff] }
 0x5f1   : > { %9335 = vmatpush.bf16.msk.msra.mxu1 %vm9334_vm0, %v9814_v26  ;;  %vm9350_vm3 = vmpackc.low %vm2933_vm2, %vm2917_vm1  ;;  %vm3142_vm15 = vcmp.eq.s32.totalorder %v2102_v11, %v12586_v2  ;;  %vm3158_vm0 = vcmp.eq.s32.totalorder %v2118_v12, %v12586_v2  ;;  %v2358_v10 = vld [vmem:[#allocation3 + $0x920] sm:$0xff]  ;;  %v2374_v15 = vld [vmem:[#allocation3 + $0xc58] sm:$0xff] }
 0x5f2   : > { %9351 = vmatpush.bf16.msk.msra.mxu2 %vm9350_vm3, %v9814_v26  ;;  %vm9366_vm6 = vmpackc.low %vm3189_vm5, %vm3173_vm4  ;;  %vm3398_vm2 = vcmp.eq.s32.totalorder %v2358_v10, %v12586_v2  ;;  %vm3414_vm3 = vcmp.eq.s32.totalorder %v2374_v15, %v12586_v2  ;;  %v1558_v16 = vld [vmem:[#allocation3 + $0x1fe0] sm:$0xff]  ;;  %v1574_v17 = vld [vmem:[#allocation3 + $0x1258] sm:$0xff] }
 0x5f3   : > { %9367 = vmatpush.bf16.msk.msra.mxu3 %vm9366_vm6, %v9814_v26  ;;  %vm9368_vm10 = vmpackc.low %vm2646_vm8, %vm2630_vm7  ;;  %6684 = vmatmul.bf16.vlgmr.msra.gmra.mxu0 %v10408_v61  ;;  %vm2598_vm5 = vcmp.eq.s32.totalorder %v1558_v16, %v12586_v2  ;;  %vm2614_vm6 = vcmp.eq.s32.totalorder %v1574_v17, %v12586_v2  ;;  %v1814_v18 = vld [vmem:[#allocation3 + $0x1ae8] sm:$0xff]  ;;  %v1830_v19 = vld [vmem:[#allocation3 + $0x330] sm:$0xff]  ;;  %v12701_v17 = vperm.slane %v11842_v60, 6 }
 0x5f4   : > { %9369 = vmatpush.bf16.msk.msrb.mxu0 %vm9368_vm10, %v9814_v26  ;;  %vm9384_vm14 = vmpackc.low %vm2902_vm12, %vm2886_vm11  ;;  %6698 = vmatmul.bf16.vlgmr.msra.gmra.mxu1 %v10419_v0  ;;  %vm2854_vm8 = vcmp.eq.s32.totalorder %v1814_v18, %v12586_v2  ;;  %vm2870_vm10 = vcmp.eq.s32.totalorder %v1830_v19, %v12586_v2  ;;  %v2070_v20 = vld [vmem:[#allocation3 + $0x88] sm:$0xff]  ;;  %v2086_v21 = vld [vmem:[#allocation3 + $0x1030] sm:$0xff] }
 0x5f5   : > { %9385 = vmatpush.bf16.msk.msrb.mxu1 %vm9384_vm14, %v9814_v26  ;;  %vm9400_vm1 = vmpackc.low %vm3158_vm0, %vm3142_vm15  ;;  %6712 = vmatmul.bf16.vlgmr.msra.gmra.mxu2 %v10357_v47  ;;  %vm3110_vm12 = vcmp.eq.s32.totalorder %v2070_v20, %v12586_v2  ;;  %vm3126_vm14 = vcmp.eq.s32.totalorder %v2086_v21, %v12586_v2  ;;  %v2326_v22 = vld [vmem:[#allocation3 + $0xb18] sm:$0xff]  ;;  %v2342_v51 = vld [vmem:[#allocation3 + $0xe88] sm:$0xff] }
 0x5f6   : > { %9401 = vmatpush.bf16.msk.msrb.mxu2 %vm9400_vm1, %v9814_v26  ;;  %vm9416_vm4 = vmpackc.low %vm3414_vm3, %vm3398_vm2  ;;  %6726 = vmatmul.bf16.vlgmr.msra.gmra.mxu3 %v10397_v58  ;;  %vm3366_vm0 = vcmp.eq.s32.totalorder %v2326_v22, %v12586_v2  ;;  %vm3382_vm1 = vcmp.eq.s32.totalorder %v2342_v51, %v12586_v2  ;;  %v1526_v23 = vld [vmem:[#allocation3 + $0x800] sm:$0xff]  ;;  %v1542_v24 = vld [vmem:[#allocation3 + $0x1d0] sm:$0xff]  ;;  %v12662_v49 = vpop.f32.mrf.mxu2  ;;  %v12672_v59 = vpop.f32.mrf.mxu0 }
 0x5f7   : > { %9417 = vmatpush.bf16.msk.msrb.mxu3 %vm9416_vm4, %v9814_v26  ;;  %vm9370_vm7 = vmpackc.low %vm2614_vm6, %vm2598_vm5  ;;  %vm2566_vm3 = vcmp.eq.s32.totalorder %v1526_v23, %v12586_v2  ;;  %vm2582_vm4 = vcmp.eq.s32.totalorder %v1542_v24, %v12586_v2  ;;  %v1782_v53 = vld [vmem:[#allocation3 + $0x1fb0] sm:$0xff]  ;;  %v1798_v27 = vld [vmem:[#allocation3 + $0x58] sm:$0xff]  ;;  %v12667_v56 = vpop.f32.mrf.mxu3  ;;  %v12677_v1 = vpop.f32.mrf.mxu1 }
 0x5f8   : > { %9371 = vmatpush.bf16.msk.msrb.mxu0 %vm9370_vm7, %v9814_v26  ;;  %vm9386_vm11 = vmpackc.low %vm2870_vm10, %vm2854_vm8  ;;  %vm2822_vm6 = vcmp.eq.s32.totalorder %v1782_v53, %v12586_v2  ;;  %vm2838_vm7 = vcmp.eq.s32.totalorder %v1798_v27, %v12586_v2  ;;  %v2038_v28 = vld [vmem:[#allocation3 + $0x1d08] sm:$0xff]  ;;  %v2054_v5 = vld [vmem:[#allocation3 + $0x1d58] sm:$0xff] }
 0x5f9   : > { %9387 = vmatpush.bf16.msk.msrb.mxu1 %vm9386_vm11, %v9814_v26  ;;  %vm9402_vm15 = vmpackc.low %vm3126_vm14, %vm3110_vm12  ;;  %vm3078_vm10 = vcmp.eq.s32.totalorder %v2038_v28, %v12586_v2  ;;  %vm3094_vm11 = vcmp.eq.s32.totalorder %v2054_v5, %v12586_v2  ;;  %v2294_v14 = vld [vmem:[#allocation3 + $0x548] sm:$0xff]  ;;  %v2310_v55 = vld [vmem:[#allocation3 + $0x1678] sm:$0xff] }
 0x5fa   : > { %9403 = vmatpush.bf16.msk.msrb.mxu2 %vm9402_vm15, %v9814_v26  ;;  %vm9418_vm2 = vmpackc.low %vm3382_vm1, %vm3366_vm0  ;;  %vm3334_vm14 = vcmp.eq.s32.totalorder %v2294_v14, %v12586_v2  ;;  %vm3350_vm15 = vcmp.eq.s32.totalorder %v2310_v55, %v12586_v2  ;;  %v1494_v30 = vld [vmem:[#allocation3 + $0xf28] sm:$0xff]  ;;  %v1510_v33 = vld [vmem:[#allocation3 + $0x50] sm:$0xff]  ;;  %v6476_v55 = vadd.f32 %v12639_v32, %v12634_v29 }
 0x5fb   : > { %9419 = vmatpush.bf16.msk.msrb.mxu3 %vm9418_vm2, %v9814_v26  ;;  %vm9372_vm5 = vmpackc.low %vm2582_vm4, %vm2566_vm3  ;;  %vm2534_vm1 = vcmp.eq.s32.totalorder %v1494_v30, %v12586_v2  ;;  %vm2550_vm2 = vcmp.eq.s32.totalorder %v1510_v33, %v12586_v2  ;;  %v1750_v31 = vld [vmem:[#allocation3 + $0x6c8] sm:$0xff]  ;;  %v1766_v35 = vld [vmem:[#allocation3 + $0x19f0] sm:$0xff] }
 0x5fc   : > { %9373 = vmatpush.bf16.msk.msrb.mxu0 %vm9372_vm5, %v9814_v26  ;;  %vm9388_vm8 = vmpackc.low %vm2838_vm7, %vm2822_vm6  ;;  %vm2790_vm4 = vcmp.eq.s32.totalorder %v1750_v31, %v12586_v2  ;;  %vm2806_vm5 = vcmp.eq.s32.totalorder %v1766_v35, %v12586_v2  ;;  %v2006_v36 = vld [vmem:[#allocation3 + $0x288] sm:$0xff]  ;;  %v2022_v37 = vld [vmem:[#allocation3 + $0x1f58] sm:$0xff] }
 0x5fd   : > { %9389 = vmatpush.bf16.msk.msrb.mxu1 %vm9388_vm8, %v9814_v26  ;;  %vm9404_vm12 = vmpackc.low %vm3094_vm11, %vm3078_vm10  ;;  %vm3046_vm7 = vcmp.eq.s32.totalorder %v2006_v36, %v12586_v2  ;;  %vm3062_vm8 = vcmp.eq.s32.totalorder %v2022_v37, %v12586_v2  ;;  %v2262_v38 = vld [vmem:[#allocation3 + $0x19a0] sm:$0xff]  ;;  %v2278_v13 = vld [vmem:[#allocation3 + $0x1cf8] sm:$0xff]  ;;  %v6478_v37 = vadd.f32 %v12677_v1, %v12672_v59 }
 0x5fe   : > { %9405 = vmatpush.bf16.msk.msrb.mxu2 %vm9404_vm12, %v9814_v26  ;;  %vm9420_vm0 = vmpackc.low %vm3350_vm15, %vm3334_vm14  ;;  %vm3302_vm11 = vcmp.eq.s32.totalorder %v2262_v38, %v12586_v2  ;;  %vm3318_vm12 = vcmp.eq.s32.totalorder %v2278_v13, %v12586_v2  ;;  %v1462_v39 = vld [vmem:[#allocation3 + $0xea8] sm:$0xff]  ;;  %v1478_v40 = vld [vmem:[#allocation3 + $0x1e40] sm:$0xff]  ;;  %v12703_v18 = vpop.f32.mrf.mxu2 }
 0x5ff   : > { %9421 = vmatpush.bf16.msk.msrb.mxu3 %vm9420_vm0, %v9814_v26  ;;  %vm9374_vm3 = vmpackc.low %vm2550_vm2, %vm2534_vm1  ;;  %vm2502_vm15 = vcmp.eq.s32.totalorder %v1462_v39, %v12586_v2  ;;  %vm2518_vm0 = vcmp.eq.s32.totalorder %v1478_v40, %v12586_v2  ;;  %v1718_v41 = vld [vmem:[#allocation3 + $0xeb8] sm:$0xff]  ;;  %v1734_v43 = vld [vmem:[#allocation3 + $0x1708] sm:$0xff]  ;;  %v12708_v21 = vpop.f32.mrf.mxu3 }
 0x600   : > { %9375 = vmatpush.bf16.msk.msrb.mxu0 %vm9374_vm3, %v9814_v26  ;;  %vm9390_vm6 = vmpackc.low %vm2806_vm5, %vm2790_vm4  ;;  %vm2758_vm2 = vcmp.eq.s32.totalorder %v1718_v41, %v12586_v2  ;;  %vm2774_vm3 = vcmp.eq.s32.totalorder %v1734_v43, %v12586_v2  ;;  %v1974_v44 = vld [vmem:[#allocation3 + $0x1138] sm:$0xff]  ;;  %v1990_v46 = vld [vmem:[#allocation3 + $0xc80] sm:$0xff]  ;;  %v6490_v43 = vadd.f32 %v12662_v49, %v6476_v55 }
 0x601   : > { %9391 = vmatpush.bf16.msk.msrb.mxu1 %vm9390_vm6, %v9814_v26  ;;  %vm9406_vm10 = vmpackc.low %vm3062_vm8, %vm3046_vm7  ;;  %vm3014_vm5 = vcmp.eq.s32.totalorder %v1974_v44, %v12586_v2  ;;  %vm3030_vm6 = vcmp.eq.s32.totalorder %v1990_v46, %v12586_v2  ;;  %v2230_v45 = vld [vmem:[#allocation3 + $0x1658] sm:$0xff]  ;;  %v2246_v25 = vld [vmem:[#allocation3 + $0x1900] sm:$0xff] }
 0x602   : > { %9407 = vmatpush.bf16.msk.msrb.mxu2 %vm9406_vm10, %v9814_v26  ;;  %vm9422_vm14 = vmpackc.low %vm3318_vm12, %vm3302_vm11  ;;  %vm3270_vm8 = vcmp.eq.s32.totalorder %v2230_v45, %v12586_v2  ;;  %vm3286_vm10 = vcmp.eq.s32.totalorder %v2246_v25, %v12586_v2  ;;  %v1430_v48 = vld [vmem:[#allocation3 + $0xa18] sm:$0xff]  ;;  %v1446_v50 = vld [vmem:[#allocation3 + $0x48] sm:$0xff] }
 0x603   : > { %9423 = vmatpush.bf16.msk.msrb.mxu3 %vm9422_vm14, %v9814_v26  ;;  %vm9376_vm1 = vmpackc.low %vm2518_vm0, %vm2502_vm15  ;;  %vm2470_vm12 = vcmp.eq.s32.totalorder %v1430_v48, %v12586_v2  ;;  %vm2486_vm14 = vcmp.eq.s32.totalorder %v1446_v50, %v12586_v2  ;;  %v1686_v57 = vld [vmem:[#allocation3 + $0x16b0] sm:$0xff]  ;;  %v1942_v62 = vld [vmem:[#allocation3 + $0x1108] sm:$0xff]  ;;  %v6492_v50 = vadd.f32 %v12703_v18, %v6478_v37 }
 0x604   : > { %9377 = vmatpush.bf16.msk.msrb.mxu0 %vm9376_vm1, %v9814_v26  ;;  %vm9392_vm4 = vmpackc.low %vm2774_vm3, %vm2758_vm2  ;;  %v1702_v7 = vld [vmem:[#allocation3 + $0x1c70] sm:$0xff]  ;;  %vm2726_vm0 = vcmp.eq.s32.totalorder %v1686_v57, %v12586_v2  ;;  %v1958_v63 = vld [vmem:[#allocation3 + $0x1e60] sm:$0xff]  ;;  %vm2982_vm3 = vcmp.eq.s32.totalorder %v1942_v62, %v12586_v2 }
 0x605   : > { %9393 = vmatpush.bf16.msk.msrb.mxu1 %vm9392_vm4, %v9814_v26  ;;  %vm9408_vm7 = vmpackc.low %vm3030_vm6, %vm3014_vm5  ;;  %vm2742_vm1 = vcmp.eq.s32.totalorder %v1702_v7, %v12586_v2  ;;  %vm2998_vm4 = vcmp.eq.s32.totalorder %v1958_v63, %v12586_v2  ;;  %v2198_v52 = vld [vmem:[#allocation3 + $0x1bc0] sm:$0xff]  ;;  %v2214_v42 = vld [vmem:[#allocation3 + $0x1330] sm:$0xff] }
 0x606   : > { %9409 = vmatpush.bf16.msk.msrb.mxu2 %vm9408_vm7, %v9814_v26  ;;  %vm9424_vm11 = vmpackc.low %vm3286_vm10, %vm3270_vm8  ;;  %vm3238_vm6 = vcmp.eq.s32.totalorder %v2198_v52, %v12586_v2  ;;  %vm3254_vm7 = vcmp.eq.s32.totalorder %v2214_v42, %v12586_v2  ;;  %v1398_v54 = vld [vmem:[#allocation3 + $0x16d0] sm:$0xff]  ;;  %v1414_v4 = vld [vmem:[#allocation3 + $0xd00] sm:$0xff]  ;;  %v12762_v42 = vadd.f32 %v12667_v56, %v6490_v43 }
 0x607   : > { %9425 = vmatpush.bf16.msk.msrb.mxu3 %vm9424_vm11, %v9814_v26  ;;  %vm9378_vm15 = vmpackc.low %vm2486_vm14, %vm2470_vm12  ;;  %vm2438_vm10 = vcmp.eq.s32.totalorder %v1398_v54, %v12586_v2  ;;  %vm2454_vm11 = vcmp.eq.s32.totalorder %v1414_v4, %v12586_v2  ;;  %v1654_v34 = vld [vmem:[#allocation3 + $0x1bd0] sm:$0xff]  ;;  %v1670_v6 = vld [vmem:[#allocation3 + $0x1828] sm:$0xff] }
 0x608   : > { %9379 = vmatpush.bf16.msk.msrb.mxu0 %vm9378_vm15, %v9814_v26  ;;  %vm9394_vm2 = vmpackc.low %vm2742_vm1, %vm2726_vm0  ;;  %vm2694_vm14 = vcmp.eq.s32.totalorder %v1654_v34, %v12586_v2  ;;  %vm2710_vm15 = vcmp.eq.s32.totalorder %v1670_v6, %v12586_v2  ;;  %v1910_v3 = vld [vmem:[#allocation3 + $0x10c0] sm:$0xff]  ;;  %v1926_v8 = vld [vmem:[#allocation3 + $0x11f0] sm:$0xff]  ;;  %v12769_v6 = vadd.f32 %v12708_v21, %v6492_v50 }
 0x609   : > { %9395 = vmatpush.bf16.msk.msrb.mxu1 %vm9394_vm2, %v9814_v26  ;;  %vm9410_vm5 = vmpackc.low %vm2998_vm4, %vm2982_vm3  ;;  %vm2950_vm1 = vcmp.eq.s32.totalorder %v1910_v3, %v12586_v2  ;;  %vm2966_vm2 = vcmp.eq.s32.totalorder %v1926_v8, %v12586_v2  ;;  %v2166_v9 = vld [vmem:[#allocation3 + $0xf78] sm:$0xff]  ;;  %v1366_v12 = vld [vmem:[#allocation3 + $0x710] sm:$0xff] }
 0x60a   : > { %9411 = vmatpush.bf16.msk.msrb.mxu2 %vm9410_vm5, %v9814_v26  ;;  %vm9426_vm8 = vmpackc.low %vm3254_vm7, %vm3238_vm6  ;;  %v2182_v11 = vld [vmem:[#allocation3 + $0x1a98] sm:$0xff]  ;;  %vm3206_vm4 = vcmp.eq.s32.totalorder %v2166_v9, %v12586_v2  ;;  %v1382_v10 = vld [vmem:[#allocation3 + $0xd30] sm:$0xff]  ;;  %vm2406_vm7 = vcmp.eq.s32.totalorder %v1366_v12, %v12586_v2 }
 0x60b   : > { %9427 = vmatpush.bf16.msk.msrb.mxu3 %vm9426_vm8, %v9814_v26  ;;  %vm9380_vm12 = vmpackc.low %vm2454_vm11, %vm2438_vm10  ;;  %vm3222_vm5 = vcmp.eq.s32.totalorder %v2182_v11, %v12586_v2  ;;  %vm2422_vm8 = vcmp.eq.s32.totalorder %v1382_v10, %v12586_v2  ;;  %v1622_v15 = vld [vmem:[#allocation3 + $0x1498] sm:$0xff]  ;;  %v1638_v16 = vld [vmem:[#allocation3 + $0xa70] sm:$0xff] }
 0x60c   : > { %9381 = vmatpush.bf16.msk.msrb.mxu0 %vm9380_vm12, %v9814_v26  ;;  %vm9396_vm0 = vmpackc.low %vm2710_vm15, %vm2694_vm14  ;;  %vm2662_vm11 = vcmp.eq.s32.totalorder %v1622_v15, %v12586_v2  ;;  %vm2678_vm12 = vcmp.eq.s32.totalorder %v1638_v16, %v12586_v2  ;;  %v1878_v19 = vld [vmem:[#allocation3 + $0x3a8] sm:$0xff]  ;;  %v1894_v20 = vld [vmem:[#allocation3 + $0xaa0] sm:$0xff]  ;;  %v6932_v16 = vrot.slane %v12762_v42, 3 }
 0x60d   : > { %9397 = vmatpush.bf16.msk.msrb.mxu1 %vm9396_vm0, %v9814_v26  ;;  %vm9412_vm3 = vmpackc.low %vm2966_vm2, %vm2950_vm1  ;;  %vm2918_vm15 = vcmp.eq.s32.totalorder %v1878_v19, %v12586_v2  ;;  %vm2934_vm0 = vcmp.eq.s32.totalorder %v1894_v20, %v12586_v2  ;;  %v2134_v22 = vld [vmem:[#allocation3 + $0xae0] sm:$0xff]  ;;  %v2150_v51 = vld [vmem:[#allocation3 + $0x1348] sm:$0xff] }
 0x60e   : > { %9413 = vmatpush.bf16.msk.msrb.mxu2 %vm9412_vm3, %v9814_v26  ;;  %vm9428_vm6 = vmpackc.low %vm3222_vm5, %vm3206_vm4  ;;  %vm3174_vm2 = vcmp.eq.s32.totalorder %v2134_v22, %v12586_v2  ;;  %vm3190_vm3 = vcmp.eq.s32.totalorder %v2150_v51, %v12586_v2  ;;  %v1591_v24 = vld [vmem:[#allocation3 + $0xcb8] sm:$0xff]  ;;  %v1607_v53 = vld [vmem:[#allocation3 + $0x11a0] sm:$0xff]  ;;  %v7013_v22 = vrot.slane %v12762_v42, 6  ;;  %v7014_v51 = vrot.slane %v12769_v6, 6 }
 0x60f   : > { %9429 = vmatpush.bf16.msk.msrb.mxu3 %vm9428_vm6, %v9814_v26  ;;  %vm9382_vm10 = vmpackc.low %vm2422_vm8, %vm2406_vm7  ;;  %vm2631_vm5 = vcmp.eq.s32.totalorder %v1591_v24, %v12701_v17  ;;  %vm2647_vm6 = vcmp.eq.s32.totalorder %v1607_v53, %v12701_v17  ;;  %v1847_v28 = vld [vmem:[#allocation3 + $0x16b8] sm:$0xff]  ;;  %v2103_v2 = vld [vmem:[#allocation3 + $0x1170] sm:$0xff] }
 0x610   : > { %9383 = vmatpush.bf16.msk.msrb.mxu0 %vm9382_vm10, %v9814_v26  ;;  %vm9398_vm14 = vmpackc.low %vm2678_vm12, %vm2662_vm11  ;;  %v6517_v23 = vpop.f32.mrf.mxu0  ;;  %v1863_v5 = vld [vmem:[#allocation3 + $0x1098] sm:$0xff]  ;;  %vm2887_vm8 = vcmp.eq.s32.totalorder %v1847_v28, %v12701_v17  ;;  %v2119_v14 = vld [vmem:[#allocation3 + $0x1e0] sm:$0xff]  ;;  %vm3143_vm12 = vcmp.eq.s32.totalorder %v2103_v2, %v12701_v17 }
 0x611   : > { %9399 = vmatpush.bf16.msk.msrb.mxu1 %vm9398_vm14, %v9814_v26  ;;  %vm9414_vm1 = vmpackc.low %vm2934_vm0, %vm2918_vm15  ;;  %v6531_v27 = vpop.f32.mrf.mxu1  ;;  %vm2903_vm10 = vcmp.eq.s32.totalorder %v1863_v5, %v12701_v17  ;;  %vm3159_vm14 = vcmp.eq.s32.totalorder %v2119_v14, %v12701_v17  ;;  %v2359_v30 = vld [vmem:[#allocation3 + $0xd90] sm:$0xff]  ;;  %v2375_v33 = vld [vmem:[#allocation3 + $0x1db8] sm:$0xff] }
 0x612   : > { %9415 = vmatpush.bf16.msk.msrb.mxu2 %vm9414_vm1, %v9814_v26  ;;  %vm9430_vm4 = vmpackc.low %vm3190_vm3, %vm3174_vm2  ;;  %vm3399_vm0 = vcmp.eq.s32.totalorder %v2359_v30, %v12701_v17  ;;  %vm3415_vm1 = vcmp.eq.s32.totalorder %v2375_v33, %v12701_v17  ;;  %v1559_v29 = vld [vmem:[#allocation3 + $0x4e8] sm:$0xff]  ;;  %v1575_v32 = vld [vmem:[#allocation3 + $0x1740] sm:$0xff]  ;;  %v6532_v31 = vadd.f32 %v6531_v27, %v6517_v23 }
 0x613   : > { %9431 = vmatpush.bf16.msk.msrb.mxu3 %vm9430_vm4, %v9814_v26  ;;  %vm9432_vm7 = vmpackc.low %vm2647_vm6, %vm2631_vm5  ;;  %6740 = vmatmul.bf16.vlgmr.msrb.gmra.mxu0 %v10408_v61  ;;  %vm2599_vm3 = vcmp.eq.s32.totalorder %v1559_v29, %v12701_v17  ;;  %vm2615_vm4 = vcmp.eq.s32.totalorder %v1575_v32, %v12701_v17  ;;  %v1815_v35 = vld [vmem:[#allocation3 + $0x1cb8] sm:$0xff]  ;;  %v2071_v38 = vld [vmem:[#allocation3 + $0x1600] sm:$0xff]  ;;  %v6964_v32 = vadd.f32 %v6932_v16, %v12762_v42 }
 0x614   : > { %9433 = vmatpush.bf16.msk.msra.mxu0 %vm9432_vm7, %v9814_v26  ;;  %vm9448_vm11 = vmpackc.low %vm2903_vm10, %vm2887_vm8  ;;  %6754 = vmatmul.bf16.vlgmr.msrb.gmra.mxu1 %v10419_v0  ;;  %v1831_v36 = vld [vmem:[#allocation3 + $0x5b8] sm:$0xff]  ;;  %vm2855_vm6 = vcmp.eq.s32.totalorder %v1815_v35, %v12701_v17  ;;  %v2087_v13 = vld [vmem:[#allocation3 + $0x1748] sm:$0xff]  ;;  %vm3111_vm10 = vcmp.eq.s32.totalorder %v2071_v38, %v12701_v17 }
 0x615   : > { %9449 = vmatpush.bf16.msk.msra.mxu1 %vm9448_vm11, %v9814_v26  ;;  %vm9464_vm15 = vmpackc.low %vm3159_vm14, %vm3143_vm12  ;;  %6768 = vmatmul.bf16.vlgmr.msrb.gmra.mxu2 %v10357_v47  ;;  %vm2871_vm7 = vcmp.eq.s32.totalorder %v1831_v36, %v12701_v17  ;;  %vm3127_vm11 = vcmp.eq.s32.totalorder %v2087_v13, %v12701_v17  ;;  %v2327_v39 = vld [vmem:[#allocation3 + $0x1288] sm:$0xff]  ;;  %v1543_v46 = vld [vmem:[#allocation3 + $0xc60] sm:$0xff]  ;;  %v7015_v36 = vsel %vm6988_vm9, %v7013_v22, %v7014_v51 }
 0x616   : > { %9465 = vmatpush.bf16.msk.msra.mxu2 %vm9464_vm15, %v9814_v26  ;;  %vm9480_vm2 = vmpackc.low %vm3415_vm1, %vm3399_vm0  ;;  %6782 = vmatmul.bf16.vlgmr.msrb.gmra.mxu3 %v10397_v58  ;;  %v2343_v40 = vld [vmem:[#allocation3 + $0xa48] sm:$0xff]  ;;  %vm3367_vm14 = vcmp.eq.s32.totalorder %v2327_v39, %v12701_v17  ;;  %v1799_v49 = vld [vmem:[#allocation3 + $0x4d0] sm:$0xff] }
 0x617   : > { %9481 = vmatpush.bf16.msk.msra.mxu3 %vm9480_vm2, %v9814_v26  ;;  %vm9434_vm5 = vmpackc.low %vm2615_vm4, %vm2599_vm3  ;;  %vm3383_vm15 = vcmp.eq.s32.totalorder %v2343_v40, %v12701_v17  ;;  %v1527_v44 = vld [vmem:[#allocation3 + $0x1dc8] sm:$0xff]  ;;  %vm2583_vm2 = vcmp.eq.s32.totalorder %v1543_v46, %v12701_v17  ;;  %v2039_v59 = vld [vmem:[#allocation3 + $0x6b8] sm:$0xff]  ;;  %v7061_v46 = vadd.f32 %v7015_v36, %v6964_v32 }
 0x618   : > { %9435 = vmatpush.bf16.msk.msra.mxu0 %vm9434_vm5, %v9814_v26  ;;  %vm9450_vm8 = vmpackc.low %vm2871_vm7, %vm2855_vm6  ;;  %v6545_v41 = vpop.f32.mrf.mxu2  ;;  %vm2567_vm1 = vcmp.eq.s32.totalorder %v1527_v44, %v12701_v17  ;;  %v1783_v48 = vld [vmem:[#allocation3 + $0x1688] sm:$0xff]  ;;  %v6519_v57 = vpop.f32.mrf.mxu0  ;;  %vm2839_vm5 = vcmp.eq.s32.totalorder %v1799_v49, %v12701_v17  ;;  %v2055_v62 = vld [vmem:[#allocation3 + $0x1550] sm:$0xff]  ;;  %vm3079_vm7 = vcmp.eq.s32.totalorder %v2039_v59, %v12701_v17 }
 0x619   : > { %9451 = vmatpush.bf16.msk.msra.mxu1 %vm9450_vm8, %v9814_v26  ;;  %vm9466_vm12 = vmpackc.low %vm3127_vm11, %vm3111_vm10  ;;  %v6546_v45 = vadd.f32 %v6545_v41, %v6532_v31  ;;  %v6559_v25 = vpop.f32.mrf.mxu3  ;;  %v6533_v7 = vpop.f32.mrf.mxu1  ;;  %vm2823_vm4 = vcmp.eq.s32.totalorder %v1783_v48, %v12701_v17  ;;  %vm3095_vm8 = vcmp.eq.s32.totalorder %v2055_v62, %v12701_v17  ;;  %v2295_v63 = vld [vmem:[#allocation3 + $0x950] sm:$0xff]  ;;  %v1495_v54 = vld [vmem:[#allocation3 + $0xba0] sm:$0xff] }
 0x61a   : > { %9467 = vmatpush.bf16.msk.msra.mxu2 %vm9466_vm12, %v9814_v26  ;;  %vm9482_vm0 = vmpackc.low %vm3383_vm15, %vm3367_vm14  ;;  %v2311_v1 = vld [vmem:[#allocation3 + $0x7f0] sm:$0xff]  ;;  %vm3335_vm11 = vcmp.eq.s32.totalorder %v2295_v63, %v12701_v17  ;;  %v1511_v4 = vld [vmem:[#allocation3 + $0x15e8] sm:$0xff]  ;;  %v6534_v34 = vadd.f32 %v6533_v7, %v6519_v57  ;;  %vm2535_vm15 = vcmp.eq.s32.totalorder %v1495_v54, %v12701_v17  ;;  %v12831_v54 = vperm.slane %v11842_v60, 7 }
 0x61b   : > { %9483 = vmatpush.bf16.msk.msra.mxu3 %vm9482_vm0, %v9814_v26  ;;  %vm9436_vm3 = vmpackc.low %vm2583_vm2, %vm2567_vm1  ;;  %v12759_v52 = vadd.f32 %v6559_v25, %v6546_v45  ;;  %vm3351_vm12 = vcmp.eq.s32.totalorder %v2311_v1, %v12701_v17  ;;  %vm2551_vm0 = vcmp.eq.s32.totalorder %v1511_v4, %v12701_v17  ;;  %v1751_v56 = vld [vmem:[#allocation3 + $0xdd0] sm:$0xff]  ;;  %v1767_v3 = vld [vmem:[#allocation3 + $0x19d8] sm:$0xff] }
 0x61c   : > { %9437 = vmatpush.bf16.msk.msra.mxu0 %vm9436_vm3, %v9814_v26  ;;  %vm9452_vm6 = vmpackc.low %vm2839_vm5, %vm2823_vm4  ;;  %vm2791_vm2 = vcmp.eq.s32.totalorder %v1751_v56, %v12701_v17  ;;  %vm2807_vm3 = vcmp.eq.s32.totalorder %v1767_v3, %v12701_v17  ;;  %v2007_v8 = vld [vmem:[#allocation3 + $0xd50] sm:$0xff]  ;;  %v2023_v9 = vld [vmem:[#allocation3 + $0xfe8] sm:$0xff] }
 0x61d   : > { %9453 = vmatpush.bf16.msk.msra.mxu1 %vm9452_vm6, %v9814_v26  ;;  %vm9468_vm10 = vmpackc.low %vm3095_vm8, %vm3079_vm7  ;;  %vm3047_vm5 = vcmp.eq.s32.totalorder %v2007_v8, %v12701_v17  ;;  %vm3063_vm6 = vcmp.eq.s32.totalorder %v2023_v9, %v12701_v17  ;;  %v2263_v11 = vld [vmem:[#allocation3 + $0x108] sm:$0xff]  ;;  %v6933_v10 = vrot.slane %v12759_v52, 3  ;;  %v1463_v18 = vld [vmem:[#allocation3 + $0x420] sm:$0xff]  ;;  %v7016_v28 = vrot.slane %v12759_v52, 6 }
 0x61e   : > { %9469 = vmatpush.bf16.msk.msra.mxu2 %vm9468_vm10, %v9814_v26  ;;  %vm9484_vm14 = vmpackc.low %vm3351_vm12, %vm3335_vm11  ;;  %v2279_v12 = vld [vmem:[#allocation3 + $0x168] sm:$0xff]  ;;  %vm3303_vm8 = vcmp.eq.s32.totalorder %v2263_v11, %v12701_v17  ;;  %v1479_v19 = vld [vmem:[#allocation3 + $0xf00] sm:$0xff]  ;;  %vm2503_vm12 = vcmp.eq.s32.totalorder %v1463_v18, %v12701_v17 }
 0x61f   : > { %9485 = vmatpush.bf16.msk.msra.mxu3 %vm9484_vm14, %v9814_v26  ;;  %vm9438_vm1 = vmpackc.low %vm2551_vm0, %vm2535_vm15  ;;  %vm3319_vm10 = vcmp.eq.s32.totalorder %v2279_v12, %v12701_v17  ;;  %vm2519_vm14 = vcmp.eq.s32.totalorder %v1479_v19, %v12701_v17  ;;  %v1719_v23 = vld [vmem:[#allocation3 + $0x1378] sm:$0xff]  ;;  %v1735_v24 = vld [vmem:[#allocation3 + $0x1fc0] sm:$0xff]  ;;  %v6965_v55 = vadd.f32 %v6933_v10, %v12759_v52 }
 0x620   : > { %9439 = vmatpush.bf16.msk.msra.mxu0 %vm9438_vm1, %v9814_v26  ;;  %vm9454_vm4 = vmpackc.low %vm2807_vm3, %vm2791_vm2  ;;  %v6547_v15 = vpop.f32.mrf.mxu2  ;;  %vm2759_vm0 = vcmp.eq.s32.totalorder %v1719_v23, %v12701_v17  ;;  %vm2775_vm1 = vcmp.eq.s32.totalorder %v1735_v24, %v12701_v17  ;;  %v1975_v53 = vld [vmem:[#allocation3 + $0x1578] sm:$0xff]  ;;  %v1991_v27 = vld [vmem:[#allocation3 + $0x1430] sm:$0xff] }
 0x621   : > { %9455 = vmatpush.bf16.msk.msra.mxu1 %vm9454_vm4, %v9814_v26  ;;  %vm9470_vm7 = vmpackc.low %vm3063_vm6, %vm3047_vm5  ;;  %v6548_v20 = vadd.f32 %v6547_v15, %v6534_v34  ;;  %v6561_v21 = vpop.f32.mrf.mxu3  ;;  %vm3015_vm3 = vcmp.eq.s32.totalorder %v1975_v53, %v12701_v17  ;;  %vm3031_vm4 = vcmp.eq.s32.totalorder %v1991_v27, %v12701_v17  ;;  %v2231_v2 = vld [vmem:[#allocation3 + $0x1f00] sm:$0xff]  ;;  %v2247_v14 = vld [vmem:[#allocation3 + $0x1ac8] sm:$0xff] }
 0x622   : > { %9471 = vmatpush.bf16.msk.msra.mxu2 %vm9470_vm7, %v9814_v26  ;;  %vm9486_vm11 = vmpackc.low %vm3319_vm10, %vm3303_vm8  ;;  %vm3271_vm6 = vcmp.eq.s32.totalorder %v2231_v2, %v12701_v17  ;;  %vm3287_vm7 = vcmp.eq.s32.totalorder %v2247_v14, %v12701_v17  ;;  %v1431_v30 = vld [vmem:[#allocation3 + $0x188] sm:$0xff]  ;;  %v1447_v33 = vld [vmem:[#allocation3 + $0x1410] sm:$0xff] }
 0x623   : > { %9487 = vmatpush.bf16.msk.msra.mxu3 %vm9486_vm11, %v9814_v26  ;;  %vm9440_vm15 = vmpackc.low %vm2519_vm14, %vm2503_vm12  ;;  %v6562_v5 = vadd.f32 %v6561_v21, %v6548_v20  ;;  %vm2471_vm10 = vcmp.eq.s32.totalorder %v1431_v30, %v12701_v17  ;;  %vm2487_vm11 = vcmp.eq.s32.totalorder %v1447_v33, %v12701_v17  ;;  %v1687_v31 = vld [vmem:[#allocation3 + $0x16f0] sm:$0xff]  ;;  %v1703_v35 = vld [vmem:[#allocation3 + $0xd38] sm:$0xff] }
 0x624   : > { %9441 = vmatpush.bf16.msk.msra.mxu0 %vm9440_vm15, %v9814_v26  ;;  %vm9456_vm2 = vmpackc.low %vm2775_vm1, %vm2759_vm0  ;;  %vm2727_vm14 = vcmp.eq.s32.totalorder %v1687_v31, %v12701_v17  ;;  %vm2743_vm15 = vcmp.eq.s32.totalorder %v1703_v35, %v12701_v17  ;;  %v1943_v37 = vld [vmem:[#allocation3 + $0xa98] sm:$0xff]  ;;  %v1959_v38 = vld [vmem:[#allocation3 + $0xc88] sm:$0xff] }
 0x625   : > { %9457 = vmatpush.bf16.msk.msra.mxu1 %vm9456_vm2, %v9814_v26  ;;  %vm9472_vm5 = vmpackc.low %vm3031_vm4, %vm3015_vm3  ;;  %v7017_v29 = vrot.slane %v6562_v5, 6  ;;  %vm2983_vm1 = vcmp.eq.s32.totalorder %v1943_v37, %v12701_v17  ;;  %vm2999_vm2 = vcmp.eq.s32.totalorder %v1959_v38, %v12701_v17  ;;  %v2199_v39 = vld [vmem:[#allocation3 + $0x11a8] sm:$0xff]  ;;  %v2215_v40 = vld [vmem:[#allocation3 + $0x360] sm:$0xff] }
 0x626   : > { %9473 = vmatpush.bf16.msk.msra.mxu2 %vm9472_vm5, %v9814_v26  ;;  %vm9488_vm8 = vmpackc.low %vm3287_vm7, %vm3271_vm6  ;;  %vm3239_vm4 = vcmp.eq.s32.totalorder %v2199_v39, %v12701_v17  ;;  %vm3255_vm5 = vcmp.eq.s32.totalorder %v2215_v40, %v12701_v17  ;;  %v1399_v43 = vld [vmem:[#allocation3 + $0x5c8] sm:$0xff]  ;;  %v1655_v45 = vld [vmem:[#allocation3 + $0x1af8] sm:$0xff] }
 0x627   : > { %9489 = vmatpush.bf16.msk.msra.mxu3 %vm9488_vm8, %v9814_v26  ;;  %vm9442_vm12 = vmpackc.low %vm2487_vm11, %vm2471_vm10  ;;  %v7018_v13 = vsel %vm6988_vm9, %v7016_v28, %v7017_v29  ;;  %v1415_v44 = vld [vmem:[#allocation3 + $0x328] sm:$0xff]  ;;  %vm2439_vm7 = vcmp.eq.s32.totalorder %v1399_v43, %v12701_v17  ;;  %v1671_v25 = vld [vmem:[#allocation3 + $0x1000] sm:$0xff]  ;;  %vm2695_vm11 = vcmp.eq.s32.totalorder %v1655_v45, %v12701_v17 }
 0x628   : > { %9443 = vmatpush.bf16.msk.msra.mxu0 %vm9442_vm12, %v9814_v26  ;;  %vm9458_vm0 = vmpackc.low %vm2743_vm15, %vm2727_vm14  ;;  %v7062_v41 = vadd.f32 %v7018_v13, %v6965_v55  ;;  %vm2455_vm8 = vcmp.eq.s32.totalorder %v1415_v44, %v12701_v17  ;;  %vm2711_vm12 = vcmp.eq.s32.totalorder %v1671_v25, %v12701_v17  ;;  %v1911_v49 = vld [vmem:[#allocation3 + $0xb68] sm:$0xff]  ;;  %v1927_v50 = vld [vmem:[#allocation3 + $0x17d8] sm:$0xff] }
 0x629   : > { %9459 = vmatpush.bf16.msk.msra.mxu1 %vm9458_vm0, %v9814_v26  ;;  %vm9474_vm3 = vmpackc.low %vm2999_vm2, %vm2983_vm1  ;;  %vm2951_vm15 = vcmp.eq.s32.totalorder %v1911_v49, %v12701_v17  ;;  %vm2967_vm0 = vcmp.eq.s32.totalorder %v1927_v50, %v12701_v17  ;;  %v2167_v57 = vld [vmem:[#allocation3 + $0x1ec0] sm:$0xff]  ;;  %v2183_v7 = vld [vmem:[#allocation3 + $0x17e8] sm:$0xff] }
 0x62a   : > { %9475 = vmatpush.bf16.msk.msra.mxu2 %vm9474_vm3, %v9814_v26  ;;  %vm9490_vm6 = vmpackc.low %vm3255_vm5, %vm3239_vm4  ;;  %v7089_v48 = vrot.slane %v7062_v41, 4  ;;  %vm3207_vm2 = vcmp.eq.s32.totalorder %v2167_v57, %v12701_v17  ;;  %vm3223_vm3 = vcmp.eq.s32.totalorder %v2183_v7, %v12701_v17  ;;  %v6904_v62 = vld [vmem:[#allocation2 + $0x8] sm:$0x77]  ;;  %v1367_v63 = vld [vmem:[#allocation3 + $0x17f8] sm:$0xff] }
 0x62b   : > { %9491 = vmatpush.bf16.msk.msra.mxu3 %vm9490_vm6, %v9814_v26  ;;  %vm9444_vm10 = vmpackc.low %vm2455_vm8, %vm2439_vm7  ;;  %v1383_v52 = vld [vmem:[#allocation3 + $0xbb8] sm:$0xff]  ;;  %vm2407_vm5 = vcmp.eq.s32.totalorder %v1367_v63, %v12701_v17  ;;  %v1639_v4 = vld [vmem:[#allocation3 + $0x1530] sm:$0xff] }
 0x62c   : > { %9445 = vmatpush.bf16.msk.msra.mxu0 %vm9444_vm10, %v9814_v26  ;;  %vm9460_vm14 = vmpackc.low %vm2711_vm12, %vm2695_vm11  ;;  %v7098_v59 = vsel %vm7093_vm13, %v7061_v46, %v7089_v48  ;;  %v1623_v42 = vld [vmem:[#allocation3 + $0x1d98] sm:$0xff]  ;;  %vm2423_vm6 = vcmp.eq.s32.totalorder %v1383_v52, %v12701_v17  ;;  %v1879_v34 = vld [vmem:[#allocation3 + $0x510] sm:$0xff]  ;;  %vm2679_vm10 = vcmp.eq.s32.totalorder %v1639_v4, %v12701_v17 }
 0x62d   : > { %9461 = vmatpush.bf16.msk.msra.mxu1 %vm9460_vm14, %v9814_v26  ;;  %vm9476_vm1 = vmpackc.low %vm2967_vm0, %vm2951_vm15  ;;  %v7114_v1 = vadd.f32 %v7098_v59, %v6904_v62  ;;  %vm2663_vm7 = vcmp.eq.s32.totalorder %v1623_v42, %v12701_v17  ;;  %v1895_v6 = vld [vmem:[#allocation3 + $0x68] sm:$0xff]  ;;  %vm2919_vm11 = vcmp.eq.s32.totalorder %v1879_v34, %v12701_v17  ;;  %v2135_v56 = vld [vmem:[#allocation3 + $0x598] sm:$0xff] }
 0x62e   : > { %9477 = vmatpush.bf16.msk.msra.mxu2 %vm9476_vm1, %v9814_v26  ;;  %vm9492_vm4 = vmpackc.low %vm3223_vm3, %vm3207_vm2  ;;  %vm2935_vm12 = vcmp.eq.s32.totalorder %v1895_v6, %v12701_v17  ;;  %v2151_v60 = vld [vmem:[#allocation3 + $0x1ec8] sm:$0xff]  ;;  %vm3175_vm15 = vcmp.eq.s32.totalorder %v2135_v56, %v12701_v17  ;;  %v1592_v3 = vld [vmem:[#allocation3 + $0xcd8] sm:$0xff] }
 0x62f   : > { %9493 = vmatpush.bf16.msk.msra.mxu3 %vm9492_vm4, %v9814_v26  ;;  %7122 = vst [vmem:[#allocation2 + $0x8] sm:$0x77] %v7114_v1  ;;  %vm9446_vm8 = vmpackc.low %vm2423_vm6, %vm2407_vm5  ;;  %vm3191_vm0 = vcmp.eq.s32.totalorder %v2151_v60, %v12701_v17  ;;  %v1608_v8 = vld [vmem:[#allocation3 + $0xdc0] sm:$0xff]  ;;  %vm2632_vm2 = vcmp.eq.s32.totalorder %v1592_v3, %v12831_v54  ;;  %v1848_v9 = vld [vmem:[#allocation3 + $0x1fd0] sm:$0xff] }
 0x630   : > { %9447 = vmatpush.bf16.msk.msra.mxu0 %vm9446_vm8, %v9814_v26  ;;  %vm9462_vm14 = vmpackc.low %vm2679_vm10, %vm2663_vm7  ;;  %vm2648_vm3 = vcmp.eq.s32.totalorder %v1608_v8, %v12831_v54  ;;  %v1864_v11 = vld [vmem:[#allocation3 + $0x1eb0] sm:$0xff]  ;;  %vm2888_vm5 = vcmp.eq.s32.totalorder %v1848_v9, %v12831_v54  ;;  %v2104_v12 = vld [vmem:[#allocation3 + $0x1588] sm:$0xff]  ;;  %v12879_v30 = vpop.f32.mrf.mxu0 }
 0x631   : > { %9463 = vmatpush.bf16.msk.msra.mxu1 %vm9462_vm14, %v9814_v26  ;;  %vm9478_vm1 = vmpackc.low %vm2935_vm12, %vm2919_vm11  ;;  %vm2904_vm6 = vcmp.eq.s32.totalorder %v1864_v11, %v12831_v54  ;;  %v2120_v17 = vld [vmem:[#allocation3 + $0x738] sm:$0xff]  ;;  %vm3144_vm8 = vcmp.eq.s32.totalorder %v2104_v12, %v12831_v54  ;;  %v2376_v15 = vld [vmem:[#allocation3 + $0x18a0] sm:$0xff]  ;;  %v12884_v32 = vpop.f32.mrf.mxu1 }
 0x632   : > { %9479 = vmatpush.bf16.msk.msra.mxu2 %vm9478_vm1, %v9814_v26  ;;  %vm9494_vm4 = vmpackc.low %vm3191_vm0, %vm3175_vm15  ;;  %vm3160_vm10 = vcmp.eq.s32.totalorder %v2120_v17, %v12831_v54  ;;  %v2360_v10 = vld [vmem:[#allocation3 + $0x1118] sm:$0xff]  ;;  %vm3416_vm14 = vcmp.eq.s32.totalorder %v2376_v15, %v12831_v54  ;;  %v1560_v16 = vld [vmem:[#allocation3 + $0x1948] sm:$0xff] }
 0x633   : > { %9495 = vmatpush.bf16.msk.msra.mxu3 %vm9494_vm4, %v9814_v26  ;;  %vm9496_vm7 = vmpackc.low %vm2648_vm3, %vm2632_vm2  ;;  %6796 = vmatmul.bf16.vlgmr.msra.gmra.mxu0 %v10408_v61  ;;  %vm3400_vm12 = vcmp.eq.s32.totalorder %v2360_v10, %v12831_v54  ;;  %v1576_v18 = vld [vmem:[#allocation3 + $0x410] sm:$0xff]  ;;  %vm2600_vm0 = vcmp.eq.s32.totalorder %v1560_v16, %v12831_v54  ;;  %v1816_v19 = vld [vmem:[#allocation3 + $0x1200] sm:$0xff] }
 0x634   : > { %9497 = vmatpush.bf16.msk.msrb.mxu0 %vm9496_vm7, %v9814_v26  ;;  %vm9512_vm11 = vmpackc.low %vm2904_vm6, %vm2888_vm5  ;;  %6810 = vmatmul.bf16.vlgmr.msra.gmra.mxu1 %v10419_v0  ;;  %vm2616_vm1 = vcmp.eq.s32.totalorder %v1576_v18, %v12831_v54  ;;  %v1832_v20 = vld [vmem:[#allocation3 + $0x1890] sm:$0xff]  ;;  %vm2856_vm3 = vcmp.eq.s32.totalorder %v1816_v19, %v12831_v54  ;;  %v2328_v51 = vld [vmem:[#allocation3 + $0x1c28] sm:$0xff] }
 0x635   : > { %9513 = vmatpush.bf16.msk.msrb.mxu1 %vm9512_vm11, %v9814_v26  ;;  %vm9528_vm15 = vmpackc.low %vm3160_vm10, %vm3144_vm8  ;;  %6824 = vmatmul.bf16.vlgmr.msra.gmra.mxu2 %v10357_v47  ;;  %vm2872_vm4 = vcmp.eq.s32.totalorder %v1832_v20, %v12831_v54  ;;  %v2072_v21 = vld [vmem:[#allocation3 + $0xff0] sm:$0xff]  ;;  %v2344_v23 = vld [vmem:[#allocation3 + $0x1a00] sm:$0xff]  ;;  %vm3368_vm10 = vcmp.eq.s32.totalorder %v2328_v51, %v12831_v54 }
 0x636   : > { %9529 = vmatpush.bf16.msk.msrb.mxu2 %vm9528_vm15, %v9814_v26  ;;  %vm9544_vm2 = vmpackc.low %vm3416_vm14, %vm3400_vm12  ;;  %v2088_v22 = vld [vmem:[#allocation3 + $0x1d10] sm:$0xff]  ;;  %6838 = vmatmul.bf16.vlgmr.msra.gmra.mxu3 %v10397_v58  ;;  %vm3112_vm6 = vcmp.eq.s32.totalorder %v2072_v21, %v12831_v54  ;;  %vm3384_vm11 = vcmp.eq.s32.totalorder %v2344_v23, %v12831_v54  ;;  %v1528_v24 = vld [vmem:[#allocation3 + $0x2c8] sm:$0xff] }
 0x637   : > { %9545 = vmatpush.bf16.msk.msrb.mxu3 %vm9544_vm2, %v9814_v26  ;;  %vm9498_vm5 = vmpackc.low %vm2616_vm1, %vm2600_vm0  ;;  %vm3128_vm7 = vcmp.eq.s32.totalorder %v2088_v22, %v12831_v54  ;;  %v1544_v53 = vld [vmem:[#allocation3 + $0x1718] sm:$0xff]  ;;  %vm2568_vm14 = vcmp.eq.s32.totalorder %v1528_v24, %v12831_v54  ;;  %v1784_v27 = vld [vmem:[#allocation3 + $0x1228] sm:$0xff] }
 0x638   : > { %9499 = vmatpush.bf16.msk.msrb.mxu0 %vm9498_vm5, %v9814_v26  ;;  %vm9514_vm8 = vmpackc.low %vm2872_vm4, %vm2856_vm3  ;;  %vm2584_vm15 = vcmp.eq.s32.totalorder %v1544_v53, %v12831_v54  ;;  %v1800_v28 = vld [vmem:[#allocation3 + $0x19d0] sm:$0xff]  ;;  %vm2824_vm1 = vcmp.eq.s32.totalorder %v1784_v27, %v12831_v54  ;;  %v2040_v5 = vld [vmem:[#allocation3 + $0x440] sm:$0xff]  ;;  %v12907_v48 = vpop.f32.mrf.mxu2  ;;  %v12917_v62 = vpop.f32.mrf.mxu0  ;;  %v6588_v53 = vadd.f32 %v12884_v32, %v12879_v30 }
 0x639   : > { %9515 = vmatpush.bf16.msk.msrb.mxu1 %vm9514_vm8, %v9814_v26  ;;  %vm9530_vm12 = vmpackc.low %vm3128_vm7, %vm3112_vm6  ;;  %vm2840_vm2 = vcmp.eq.s32.totalorder %v1800_v28, %v12831_v54  ;;  %v2056_v2 = vld [vmem:[#allocation3 + $0x120] sm:$0xff]  ;;  %vm3080_vm4 = vcmp.eq.s32.totalorder %v2040_v5, %v12831_v54  ;;  %v2296_v14 = vld [vmem:[#allocation3 + $0x790] sm:$0xff]  ;;  %v12912_v57 = vpop.f32.mrf.mxu3  ;;  %v12922_v52 = vpop.f32.mrf.mxu1 }
 0x63a   : > { %9531 = vmatpush.bf16.msk.msrb.mxu2 %vm9530_vm12, %v9814_v26  ;;  %vm9546_vm0 = vmpackc.low %vm3384_vm11, %vm3368_vm10  ;;  %vm3096_vm5 = vcmp.eq.s32.totalorder %v2056_v2, %v12831_v54  ;;  %v2312_v55 = vld [vmem:[#allocation3 + $0xda0] sm:$0xff]  ;;  %vm3336_vm7 = vcmp.eq.s32.totalorder %v2296_v14, %v12831_v54  ;;  %v1496_v33 = vld [vmem:[#allocation3 + $0x2d0] sm:$0xff] }
 0x63b   : > { %9547 = vmatpush.bf16.msk.msrb.mxu3 %vm9546_vm0, %v9814_v26  ;;  %vm9500_vm3 = vmpackc.low %vm2584_vm15, %vm2568_vm14  ;;  %vm3352_vm8 = vcmp.eq.s32.totalorder %v2312_v55, %v12831_v54  ;;  %v1512_v29 = vld [vmem:[#allocation3 + $0x13b0] sm:$0xff]  ;;  %vm2536_vm11 = vcmp.eq.s32.totalorder %v1496_v33, %v12831_v54  ;;  %v1752_v31 = vld [vmem:[#allocation3 + $0x1c00] sm:$0xff] }
 0x63c   : > { %9501 = vmatpush.bf16.msk.msrb.mxu0 %vm9500_vm3, %v9814_v26  ;;  %vm9516_vm6 = vmpackc.low %vm2840_vm2, %vm2824_vm1  ;;  %vm2552_vm12 = vcmp.eq.s32.totalorder %v1512_v29, %v12831_v54  ;;  %v1768_v35 = vld [vmem:[#allocation3 + $0x930] sm:$0xff]  ;;  %vm2792_vm15 = vcmp.eq.s32.totalorder %v1752_v31, %v12831_v54  ;;  %v2008_v36 = vld [vmem:[#allocation3 + $0x1320] sm:$0xff] }
 0x63d   : > { %9517 = vmatpush.bf16.msk.msrb.mxu1 %vm9516_vm6, %v9814_v26  ;;  %vm9532_vm10 = vmpackc.low %vm3096_vm5, %vm3080_vm4  ;;  %vm2808_vm0 = vcmp.eq.s32.totalorder %v1768_v35, %v12831_v54  ;;  %v2024_v37 = vld [vmem:[#allocation3 + $0x1008] sm:$0xff]  ;;  %vm3048_vm2 = vcmp.eq.s32.totalorder %v2008_v36, %v12831_v54  ;;  %v2264_v38 = vld [vmem:[#allocation3 + $0x9f0] sm:$0xff] }
 0x63e   : > { %9533 = vmatpush.bf16.msk.msrb.mxu2 %vm9532_vm10, %v9814_v26  ;;  %vm9548_vm14 = vmpackc.low %vm3352_vm8, %vm3336_vm7  ;;  %vm3064_vm3 = vcmp.eq.s32.totalorder %v2024_v37, %v12831_v54  ;;  %v2280_v13 = vld [vmem:[#allocation3 + $0x4e0] sm:$0xff]  ;;  %vm3304_vm5 = vcmp.eq.s32.totalorder %v2264_v38, %v12831_v54  ;;  %v1480_v40 = vld [vmem:[#allocation3 + $0x1d50] sm:$0xff] }
 0x63f   : > { %9549 = vmatpush.bf16.msk.msrb.mxu3 %vm9548_vm14, %v9814_v26  ;;  %vm9502_vm1 = vmpackc.low %vm2552_vm12, %vm2536_vm11  ;;  %vm3320_vm6 = vcmp.eq.s32.totalorder %v2280_v13, %v12831_v54  ;;  %v1464_v39 = vld [vmem:[#allocation3 + $0x1040] sm:$0xff]  ;;  %vm2520_vm10 = vcmp.eq.s32.totalorder %v1480_v40, %v12831_v54  ;;  %v1720_v41 = vld [vmem:[#allocation3 + $0x9f8] sm:$0xff] }
 0x640   : > { %9503 = vmatpush.bf16.msk.msrb.mxu0 %vm9502_vm1, %v9814_v26  ;;  %vm9518_vm4 = vmpackc.low %vm2808_vm0, %vm2792_vm15  ;;  %vm2504_vm8 = vcmp.eq.s32.totalorder %v1464_v39, %v12831_v54  ;;  %v1736_v43 = vld [vmem:[#allocation3 + $0x170] sm:$0xff]  ;;  %vm2760_vm12 = vcmp.eq.s32.totalorder %v1720_v41, %v12831_v54  ;;  %v1976_v44 = vld [vmem:[#allocation3 + $0x1a40] sm:$0xff]  ;;  %v6603_v16 = vpop.f32.mrf.mxu2 }
 0x641   : > { %9519 = vmatpush.bf16.msk.msrb.mxu1 %vm9518_vm4, %v9814_v26  ;;  %vm9534_vm7 = vmpackc.low %vm3064_vm3, %vm3048_vm2  ;;  %vm2776_vm14 = vcmp.eq.s32.totalorder %v1736_v43, %v12831_v54  ;;  %v1992_v46 = vld [vmem:[#allocation3 + $0xb58] sm:$0xff]  ;;  %vm3016_vm0 = vcmp.eq.s32.totalorder %v1976_v44, %v12831_v54  ;;  %v2232_v45 = vld [vmem:[#allocation3 + $0xe10] sm:$0xff]  ;;  %v6617_v20 = vpop.f32.mrf.mxu3 }
 0x642   : > { %9535 = vmatpush.bf16.msk.msrb.mxu2 %vm9534_vm7, %v9814_v26  ;;  %vm9550_vm11 = vmpackc.low %vm3320_vm6, %vm3304_vm5  ;;  %vm3032_vm1 = vcmp.eq.s32.totalorder %v1992_v46, %v12831_v54  ;;  %v2248_v25 = vld [vmem:[#allocation3 + $0x8b8] sm:$0xff]  ;;  %vm3272_vm3 = vcmp.eq.s32.totalorder %v2232_v45, %v12831_v54  ;;  %v1432_v49 = vld [vmem:[#allocation3 + $0x880] sm:$0xff] }
 0x643   : > { %9551 = vmatpush.bf16.msk.msrb.mxu3 %vm9550_vm11, %v9814_v26  ;;  %vm9504_vm15 = vmpackc.low %vm2520_vm10, %vm2504_vm8  ;;  %vm3288_vm4 = vcmp.eq.s32.totalorder %v2248_v25, %v12831_v54  ;;  %v1448_v50 = vld [vmem:[#allocation3 + $0x1e30] sm:$0xff]  ;;  %vm2472_vm6 = vcmp.eq.s32.totalorder %v1432_v49, %v12831_v54  ;;  %v1688_v7 = vld [vmem:[#allocation3 + $0x860] sm:$0xff] }
 0x644   : > { %9505 = vmatpush.bf16.msk.msrb.mxu0 %vm9504_vm15, %v9814_v26  ;;  %vm9520_vm2 = vmpackc.low %vm2776_vm14, %vm2760_vm12  ;;  %vm2488_vm7 = vcmp.eq.s32.totalorder %v1448_v50, %v12831_v54  ;;  %v1704_v59 = vld [vmem:[#allocation3 + $0x900] sm:$0xff]  ;;  %vm2728_vm10 = vcmp.eq.s32.totalorder %v1688_v7, %v12831_v54  ;;  %v1944_v63 = vld [vmem:[#allocation3 + $0x1438] sm:$0xff] }
 0x645   : > { %9521 = vmatpush.bf16.msk.msrb.mxu1 %vm9520_vm2, %v9814_v26  ;;  %vm9536_vm5 = vmpackc.low %vm3032_vm1, %vm3016_vm0  ;;  %vm2744_vm11 = vcmp.eq.s32.totalorder %v1704_v59, %v12831_v54  ;;  %v1960_v1 = vld [vmem:[#allocation3 + $0x540] sm:$0xff]  ;;  %vm2984_vm14 = vcmp.eq.s32.totalorder %v1944_v63, %v12831_v54  ;;  %v2200_v42 = vld [vmem:[#allocation3 + $0x15b0] sm:$0xff] }
 0x646   : > { %9537 = vmatpush.bf16.msk.msrb.mxu2 %vm9536_vm5, %v9814_v26  ;;  %vm9552_vm8 = vmpackc.low %vm3288_vm4, %vm3272_vm3  ;;  %vm3000_vm15 = vcmp.eq.s32.totalorder %v1960_v1, %v12831_v54  ;;  %v2216_v4 = vld [vmem:[#allocation3 + $0x1ba0] sm:$0xff]  ;;  %vm3240_vm1 = vcmp.eq.s32.totalorder %v2200_v42, %v12831_v54  ;;  %v1400_v34 = vld [vmem:[#allocation3 + $0x15f0] sm:$0xff] }
 0x647   : > { %9553 = vmatpush.bf16.msk.msrb.mxu3 %vm9552_vm8, %v9814_v26  ;;  %vm9506_vm12 = vmpackc.low %vm2488_vm7, %vm2472_vm6  ;;  %vm3256_vm2 = vcmp.eq.s32.totalorder %v2216_v4, %v12831_v54  ;;  %v1416_v6 = vld [vmem:[#allocation3 + $0x1460] sm:$0xff]  ;;  %vm2440_vm4 = vcmp.eq.s32.totalorder %v1400_v34, %v12831_v54  ;;  %v1656_v56 = vld [vmem:[#allocation3 + $0x10a8] sm:$0xff] }
 0x648   : > { %9507 = vmatpush.bf16.msk.msrb.mxu0 %vm9506_vm12, %v9814_v26  ;;  %vm9522_vm0 = vmpackc.low %vm2744_vm11, %vm2728_vm10  ;;  %vm2456_vm5 = vcmp.eq.s32.totalorder %v1416_v6, %v12831_v54  ;;  %v1672_v60 = vld [vmem:[#allocation3 + $0x10a0] sm:$0xff]  ;;  %vm2696_vm7 = vcmp.eq.s32.totalorder %v1656_v56, %v12831_v54  ;;  %v1928_v8 = vld [vmem:[#allocation3 + $0x5d8] sm:$0xff] }
 0x649   : > { %9523 = vmatpush.bf16.msk.msrb.mxu1 %vm9522_vm0, %v9814_v26  ;;  %vm9538_vm3 = vmpackc.low %vm3000_vm15, %vm2984_vm14  ;;  %vm2712_vm8 = vcmp.eq.s32.totalorder %v1672_v60, %v12831_v54  ;;  %v1912_v3 = vld [vmem:[#allocation3 + $0xec0] sm:$0xff]  ;;  %vm2968_vm12 = vcmp.eq.s32.totalorder %v1928_v8, %v12831_v54  ;;  %v2168_v9 = vld [vmem:[#allocation3 + $0x1b90] sm:$0xff] }
 0x64a   : > { %9539 = vmatpush.bf16.msk.msrb.mxu2 %vm9538_vm3, %v9814_v26  ;;  %vm9554_vm6 = vmpackc.low %vm3256_vm2, %vm3240_vm1  ;;  %vm2952_vm11 = vcmp.eq.s32.totalorder %v1912_v3, %v12831_v54  ;;  %v2184_v11 = vld [vmem:[#allocation3 + $0x1fc8] sm:$0xff]  ;;  %vm3208_vm15 = vcmp.eq.s32.totalorder %v2168_v9, %v12831_v54  ;;  %v1368_v12 = vld [vmem:[#allocation3 + $0xab8] sm:$0xff] }
 0x64b   : > { %9555 = vmatpush.bf16.msk.msrb.mxu3 %vm9554_vm6, %v9814_v26  ;;  %vm9508_vm10 = vmpackc.low %vm2456_vm5, %vm2440_vm4  ;;  %vm3224_vm0 = vcmp.eq.s32.totalorder %v2184_v11, %v12831_v54  ;;  %v1384_v17 = vld [vmem:[#allocation3 + $0x1830] sm:$0xff]  ;;  %vm2408_vm2 = vcmp.eq.s32.totalorder %v1368_v12, %v12831_v54  ;;  %v1640_v15 = vld [vmem:[#allocation3 + $0xca8] sm:$0xff] }
 0x64c   : > { %9509 = vmatpush.bf16.msk.msrb.mxu0 %vm9508_vm10, %v9814_v26  ;;  %vm9524_vm14 = vmpackc.low %vm2712_vm8, %vm2696_vm7  ;;  %vm2424_vm3 = vcmp.eq.s32.totalorder %v1384_v17, %v12831_v54  ;;  %v1624_v10 = vld [vmem:[#allocation3 + $0x1790] sm:$0xff]  ;;  %vm2680_vm6 = vcmp.eq.s32.totalorder %v1640_v15, %v12831_v54  ;;  %v1896_v19 = vld [vmem:[#allocation3 + $0x1a48] sm:$0xff] }
 0x64d   : > { %9525 = vmatpush.bf16.msk.msrb.mxu1 %vm9524_vm14, %v9814_v26  ;;  %vm9540_vm1 = vmpackc.low %vm2968_vm12, %vm2952_vm11  ;;  %vm2664_vm5 = vcmp.eq.s32.totalorder %v1624_v10, %v12831_v54  ;;  %v1880_v18 = vld [vmem:[#allocation3 + $0x1d70] sm:$0xff]  ;;  %vm2936_vm10 = vcmp.eq.s32.totalorder %v1896_v19, %v12831_v54  ;;  %v2136_v21 = vld [vmem:[#allocation3 + $0x4c8] sm:$0xff] }
 0x64e   : > { %9541 = vmatpush.bf16.msk.msrb.mxu2 %vm9540_vm1, %v9814_v26  ;;  %vm9556_vm4 = vmpackc.low %vm3224_vm0, %vm3208_vm15  ;;  %vm2920_vm8 = vcmp.eq.s32.totalorder %v1880_v18, %v12831_v54  ;;  %v2152_v22 = vld [vmem:[#allocation3 + $0x658] sm:$0xff]  ;;  %vm3176_vm12 = vcmp.eq.s32.totalorder %v2136_v21, %v12831_v54  ;;  %v6905_v45 = vld [vmem:[#allocation2 + $0x20] sm:$0x77] }
 0x64f   : > { %9557 = vmatpush.bf16.msk.msrb.mxu3 %vm9556_vm4, %v9814_v26  ;;  %vm9510_vm7 = vmpackc.low %vm2424_vm3, %vm2408_vm2  ;;  %vm3192_vm14 = vcmp.eq.s32.totalorder %v2152_v22, %v12831_v54  ;;  %v6590_v54 = vadd.f32 %v12922_v52, %v12917_v62 }
 0x650   : > { %v6629_v51 = vpop.f32.mrf.mxu0  ;;  %9511 = vmatpush.bf16.msk.msrb.mxu0 %vm9510_vm7, %v9814_v26  ;;  %vm9526_vm11 = vmpackc.low %vm2680_vm6, %vm2664_vm5 }
 0x651   : > { %v6643_v23 = vpop.f32.mrf.mxu1  ;;  %9527 = vmatpush.bf16.msk.msrb.mxu1 %vm9526_vm11, %v9814_v26  ;;  %vm9542_vm15 = vmpackc.low %vm2936_vm10, %vm2920_vm8  ;;  %v6604_v14 = vadd.f32 %v6603_v16, %v6590_v54 }
 0x652   : > { %9543 = vmatpush.bf16.msk.msrb.mxu2 %vm9542_vm15, %v9814_v26  ;;  %vm9558_vm0 = vmpackc.low %vm3192_vm14, %vm3176_vm12  ;;  %v6644_v24 = vadd.f32 %v6643_v23, %v6629_v51 }
 0x653   : > { %9559 = vmatpush.bf16.msk.msrb.mxu3 %vm9558_vm0, %v9814_v26  ;;  %6852 = vmatmul.bf16.vlgmr.msrb.gmra.mxu0 %v10408_v61  ;;  %v6602_v26 = vadd.f32 %v12907_v48, %v6588_v53  ;;  %v6618_v30 = vadd.f32 %v6617_v20, %v6604_v14 }
 0x654   : > { %6866 = vmatmul.bf16.vlgmr.msrb.gmra.mxu1 %v10419_v0 }
 0x655   : > { %6880 = vmatmul.bf16.vlgmr.msrb.gmra.mxu2 %v10357_v47  ;;  %v6616_v33 = vadd.f32 %v12912_v57, %v6602_v26  ;;  %v7020_v36 = vrot.slane %v6618_v30, 6 }
 0x656   : > { %6894 = vmatmul.bf16.vlgmr.msrb.gmra.mxu3 %v10397_v58 }
 0x657   : > { %v6934_v31 = vrot.slane %v6616_v33, 3  ;;  %v7019_v35 = vrot.slane %v6616_v33, 6 }
 0x658   : > { %v6657_v27 = vpop.f32.mrf.mxu2  ;;  %v6631_v2 = vpop.f32.mrf.mxu0 }
 0x659   : > { %v6658_v28 = vadd.f32 %v6657_v27, %v6644_v24  ;;  %v6671_v5 = vpop.f32.mrf.mxu3  ;;  %v6645_v61 = vpop.f32.mrf.mxu1  ;;  %v6966_v40 = vadd.f32 %v6934_v31, %v6616_v33  ;;  %v7021_v41 = vsel %vm6988_vm9, %v7019_v35, %v7020_v36 }
 0x65a   : > { %v6646_v55 = vadd.f32 %v6645_v61, %v6631_v2 }
 0x65b   : > { %v6672_v0 = vadd.f32 %v6671_v5, %v6658_v28  ;;  %v7063_v46 = vadd.f32 %v7021_v41, %v6966_v40 }
 0x65d   : > { %v6935_v29 = vrot.slane %v6672_v0, 3  ;;  %v7022_v37 = vrot.slane %v6672_v0, 6 }
 0x65f   : > { %v6967_v13 = vadd.f32 %v6935_v29, %v6672_v0  ;;  %v6906_v0 = vld [vmem:[#allocation2 + $0x28] sm:$0x77] }
 0x660   : > { %v6659_v47 = vpop.f32.mrf.mxu2 }
 0x661   : > { %v6660_v32 = vadd.f32 %v6659_v47, %v6646_v55  ;;  %v6673_v58 = vpop.f32.mrf.mxu3 }
 0x663   : > { %v6674_v38 = vadd.f32 %v6673_v58, %v6660_v32 }
 0x665   : > { %v7023_v39 = vrot.slane %v6674_v38, 6 }
 0x667   : > { %v7024_v43 = vsel %vm6988_vm9, %v7022_v37, %v7023_v39 }
 0x668   : > { %v7064_v44 = vadd.f32 %v7024_v43, %v6967_v13 }
 0x66a   : > { %v7090_v25 = vrot.slane %v7064_v44, 4 }
 0x66c   : > { %v7099_v48 = vsel %vm7093_vm13, %v7063_v46, %v7090_v25 }
 0x66d   : > { %v7115_v49 = vadd.f32 %v7099_v48, %v6905_v45 }
 0x66f   : > { %7123 = vst [vmem:[#allocation2 + $0x20] sm:$0x77] %v7115_v49 }
 0x670   : > { %v6685_v50 = vpop.f32.mrf.mxu0 }
 0x671   : > { %v6699_v57 = vpop.f32.mrf.mxu1 }
 0x672   : > { %v6700_v6 = vadd.f32 %v6699_v57, %v6685_v50 }
 0x678   : > { %v6713_v7 = vpop.f32.mrf.mxu2  ;;  %v6687_v62 = vpop.f32.mrf.mxu0 }
 0x679   : > { %v6727_v59 = vpop.f32.mrf.mxu3  ;;  %v6701_v63 = vpop.f32.mrf.mxu1  ;;  %v6714_v9 = vadd.f32 %v6713_v7, %v6700_v6 }
 0x67a   : > { %v6702_v56 = vadd.f32 %v6701_v63, %v6687_v62 }
 0x67b   : > { %v6728_v16 = vadd.f32 %v6727_v59, %v6714_v9 }
 0x67d   : > { %v6936_v51 = vrot.slane %v6728_v16, 3  ;;  %v7025_v23 = vrot.slane %v6728_v16, 6 }
 0x67f   : > { %v6968_v5 = vadd.f32 %v6936_v51, %v6728_v16 }
 0x680   : > { %v6715_v1 = vpop.f32.mrf.mxu2 }
 0x681   : > { %v6729_v52 = vpop.f32.mrf.mxu3  ;;  %v6716_v17 = vadd.f32 %v6715_v1, %v6702_v56 }
 0x683   : > { %v6730_v18 = vadd.f32 %v6729_v52, %v6716_v17 }
 0x685   : > { %v7026_v24 = vrot.slane %v6730_v18, 6 }
 0x687   : > { %v7027_v26 = vsel %vm6988_vm9, %v7025_v23, %v7026_v24 }
 0x688   : > { %v7065_v14 = vadd.f32 %v7027_v26, %v6968_v5 }
 0x690   : > { %v6741_v42 = vpop.f32.mrf.mxu0 }
 0x691   : > { %v6755_v4 = vpop.f32.mrf.mxu1 }
 0x692   : > { %v6756_v34 = vadd.f32 %v6755_v4, %v6741_v42 }
 0x698   : > { %v6769_v60 = vpop.f32.mrf.mxu2  ;;  %v6743_v11 = vpop.f32.mrf.mxu0 }
 0x699   : > { %v6770_v3 = vadd.f32 %v6769_v60, %v6756_v34  ;;  %v6783_v8 = vpop.f32.mrf.mxu3  ;;  %v6757_v12 = vpop.f32.mrf.mxu1 }
 0x69a   : > { %v6758_v15 = vadd.f32 %v6757_v12, %v6743_v11 }
 0x69b   : > { %v6784_v10 = vadd.f32 %v6783_v8, %v6770_v3 }
 0x69d   : > { %v6937_v19 = vrot.slane %v6784_v10, 3  ;;  %v7028_v53 = vrot.slane %v6784_v10, 6 }
 0x69f   : > { %v6969_v27 = vadd.f32 %v6937_v19, %v6784_v10  ;;  %v6907_v10 = vld [vmem:[#allocation2 + $0x38] sm:$0x77] }
 0x6a0   : > { %v6771_v20 = vpop.f32.mrf.mxu2 }
 0x6a1   : > { %v6772_v21 = vadd.f32 %v6771_v20, %v6758_v15  ;;  %v6785_v22 = vpop.f32.mrf.mxu3 }
 0x6a3   : > { %v6786_v54 = vadd.f32 %v6785_v22, %v6772_v21 }
 0x6a5   : > { %v7029_v28 = vrot.slane %v6786_v54, 6 }
 0x6a7   : > { %v7030_v2 = vsel %vm6988_vm9, %v7028_v53, %v7029_v28 }
 0x6a8   : > { %v7066_v61 = vadd.f32 %v7030_v2, %v6969_v27 }
 0x6aa   : > { %v7091_v55 = vrot.slane %v7066_v61, 4 }
 0x6ac   : > { %v7100_v33 = vsel %vm7093_vm13, %v7065_v14, %v7091_v55 }
 0x6ad   : > { %v7116_v30 = vadd.f32 %v7100_v33, %v6906_v0 }
 0x6af   : > { %7124 = vst [vmem:[#allocation2 + $0x28] sm:$0x77] %v7116_v30 }
 0x6b0   : > { %v6797_v29 = vpop.f32.mrf.mxu0 }
 0x6b1   : > { %v6811_v47 = vpop.f32.mrf.mxu1 }
 0x6b2   : > { %v6812_v39 = vadd.f32 %v6811_v47, %v6797_v29 }
 0x6b8   : > { %v6825_v32 = vpop.f32.mrf.mxu2  ;;  %v6799_v31 = vpop.f32.mrf.mxu0 }
 0x6b9   : > { %v6839_v58 = vpop.f32.mrf.mxu3  ;;  %v6813_v35 = vpop.f32.mrf.mxu1  ;;  %v6826_v46 = vadd.f32 %v6825_v32, %v6812_v39 }
 0x6ba   : > { %v6814_v41 = vadd.f32 %v6813_v35, %v6799_v31 }
 0x6bb   : > { %v6840_v50 = vadd.f32 %v6839_v58, %v6826_v46 }
 0x6bd   : > { %v6938_v1 = vrot.slane %v6840_v50, 3  ;;  %v7031_v4 = vrot.slane %v6840_v50, 6 }
 0x6bf   : > { %v6970_v3 = vadd.f32 %v6938_v1, %v6840_v50 }
 0x6c0   : > { %v6827_v36 = vpop.f32.mrf.mxu2 }
 0x6c1   : > { %v6841_v37 = vpop.f32.mrf.mxu3  ;;  %v6828_v25 = vadd.f32 %v6827_v36, %v6814_v41 }
 0x6c3   : > { %v6842_v7 = vadd.f32 %v6841_v37, %v6828_v25 }
 0x6c5   : > { %v7032_v34 = vrot.slane %v6842_v7, 6 }
 0x6c7   : > { %v7033_v9 = vsel %vm6988_vm9, %v7031_v4, %v7032_v34 }
 0x6c8   : > { %v7067_v17 = vadd.f32 %v7033_v9, %v6970_v3 }
 0x6d0   : > { %v6853_v38 = vpop.f32.mrf.mxu0 }
 0x6d1   : > { %v6867_v13 = vpop.f32.mrf.mxu1 }
 0x6d2   : > { %v6868_v40 = vadd.f32 %v6867_v13, %v6853_v38 }
 0x6d8   : > { %v6881_v43 = vpop.f32.mrf.mxu2  ;;  %v6855_v48 = vpop.f32.mrf.mxu0 }
 0x6d9   : > { %v6895_v44 = vpop.f32.mrf.mxu3  ;;  %v6882_v45 = vadd.f32 %v6881_v43, %v6868_v40  ;;  %v6869_v49 = vpop.f32.mrf.mxu1 }
 0x6da   : > { %v6870_v59 = vadd.f32 %v6869_v49, %v6855_v48 }
 0x6db   : > { %v6896_v57 = vadd.f32 %v6895_v44, %v6882_v45 }
 0x6dd   : > { %v6939_v52 = vrot.slane %v6896_v57, 3  ;;  %v7034_v56 = vrot.slane %v6896_v57, 6 }
 0x6df   : > { %v6971_v8 = vadd.f32 %v6939_v52, %v6896_v57 }
 0x6e0   : > { %v6883_v62 = vpop.f32.mrf.mxu2 }
 0x6e1   : > { %v6884_v63 = vadd.f32 %v6883_v62, %v6870_v59  ;;  %v6897_v42 = vpop.f32.mrf.mxu3 }
 0x6e3   : > { %v6898_v6 = vadd.f32 %v6897_v42, %v6884_v63 }
 0x6e5   : > { %v7035_v60 = vrot.slane %v6898_v6, 6 }
 0x6e7   : > { %v7036_v11 = vsel %vm6988_vm9, %v7034_v56, %v7035_v60 }
 0x6e8   : > { %v7068_v12 = vadd.f32 %v7036_v11, %v6971_v8 }
 0x6ea   : > { %v7092_v15 = vrot.slane %v7068_v12, 4 }
 0x6ec   : > { %v7101_v16 = vsel %vm7093_vm13, %v7067_v17, %v7092_v15 }
 0x6ed   : > { %v7117_v18 = vadd.f32 %v7101_v16, %v6907_v10 }
 0x6ef   : > { %7125 = vst [vmem:[#allocation2 + $0x38] sm:$0x77] %v7117_v18 }
 0x6f0 PF: > { %p9560_p9 = scmp.ne.s32.totalorder %s9793_s1, 1 }
 0x6f2   : > { %7129 = sbr.rel (%p9560_p9) target bundleno = 1841 (0x731), region = 48 }
 0x6f7   : > { %v7130_v19 = vld [vmem:[%s9942_s20] sm:$0x77]  ;;  %v7138_v20 = vld [vmem:[#allocation2 + $0x30] sm:$0x77]  ;;  %v7131_v21 = vld [vmem:[%s9942_s20 + $0x8] sm:$0x77] }
 0x6f8   : > { %v7146_v22 = vmul.f32 %v7138_v20, %v7130_v19  ;;  %v7139_v51 = vld [vmem:[#allocation2] sm:$0x77]  ;;  %v7132_v23 = vld [vmem:[%s9942_s20 + $0x10] sm:$0x77]  ;;  %v7140_v24 = vld [vmem:[#allocation2 + $0x18] sm:$0x77] }
 0x6f9   : > { %v7147_v53 = vmul.f32 %v7139_v51, %v7131_v21  ;;  %v7148_v54 = vmul.f32 %v7140_v24, %v7132_v23  ;;  %v7133_v27 = vld [vmem:[%s9942_s20 + $0x18] sm:$0x77]  ;;  %v7141_v28 = vld [vmem:[#allocation2 + $0x10] sm:$0x77]  ;;  %v7134_v26 = vld [vmem:[%s9942_s20 + $0x20] sm:$0x77] }
 0x6fa   : > { %7162 = vst [vmem:[#allocation1] ss:$2 sm:$0xff] %v7146_v22  ;;  %v7149_v5 = vmul.f32 %v7141_v28, %v7133_v27  ;;  %v7142_v2 = vld [vmem:[#allocation2 + $0x8] sm:$0x77]  ;;  %v7143_v0 = vld [vmem:[#allocation2 + $0x20] sm:$0x77] }
 0x6fb   : > { %7164 = vst [vmem:[#allocation1 + $0x10] ss:$2 sm:$0xff] %v7147_v53  ;;  %v7150_v61 = vmul.f32 %v7142_v2, %v7134_v26  ;;  %v7135_v14 = vld [vmem:[%s9942_s20 + $0x28] sm:$0x77]  ;;  %vm7205_vm9 = vcmask 1042432   ;;  %vm7348_vm13 = vcmask 1040384  }
 0x6fc   : > { %7166 = vst [vmem:[#allocation1 + $0x20] ss:$2 sm:$0xff] %v7148_v54  ;;  %v7136_v55 = vld [vmem:[%s9942_s20 + $0x30] sm:$0x77]  ;;  %v7144_v33 = vld [vmem:[#allocation2 + $0x28] sm:$0x77]  ;;  %v7151_v47 = vmul.f32 %v7143_v0, %v7135_v14 }
 0x6fd   : > { %7168 = vst [vmem:[#allocation1 + $0x30] ss:$2 sm:$0xff] %v7149_v5  ;;  %v7137_v32 = vld [vmem:[%s9942_s20 + $0x38] sm:$0x77]  ;;  %v7152_v40 = vmul.f32 %v7144_v33, %v7136_v55  ;;  %vm7350_vm1 = vcmask 1042434   ;;  %vm7352_vm2 = vcmask 1041408  }
 0x6fe   : > { %v7145_v35 = vld [vmem:[#allocation2 + $0x38] sm:$0x77]  ;;  %vm7354_vm3 = vcmask 1044484   ;;  %vm7356_vm4 = vcmask 1046534   ;;  %vm7358_vm5 = vcmask 1045508   ;;  %vm7360_vm6 = vcmask 1043456  }
 0x6ff   : > { %v7153_v48 = vmul.f32 %v7145_v35, %v7137_v32 }
 0x701   : > { %v7169_v30 = vld.sshfl [vmem:[#allocation1] sm:$0xff pattern:$0x75316420]  ;;  %v7170_v29 = vld.sshfl [vmem:[#allocation1 + $0x8] sm:$0xff pattern:$0x75316420] }
 0x702   : > { %7177 = vst [vmem:[#allocation1] ss:$2 sm:$0xff] %v7150_v61  ;;  %v7206_v58 = vsel %vm7205_vm9, %v7169_v30, 0.0  ;;  %v7213_v31 = vsel %vm7205_vm9, %v7170_v29, 0.0 }
 0x703   : > { %v7207_v36 = vrot.slane %v7206_v58, 4  ;;  %v7214_v37 = vrot.slane %v7213_v31, 4  ;;  %v7171_v38 = vld.sshfl [vmem:[#allocation1 + $0x10] sm:$0xff pattern:$0x75316420] }
 0x704   : > { %v7172_v13 = vld.sshfl [vmem:[#allocation1 + $0x18] sm:$0xff pattern:$0x75316420]  ;;  %v7220_v39 = vsel %vm7205_vm9, %v7171_v38, 0.0 }
 0x705   : > { %v7208_v41 = vadd.f32 %v7207_v36, %v7206_v58  ;;  %v7215_v43 = vadd.f32 %v7214_v37, %v7213_v31  ;;  %7178 = vst [vmem:[#allocation1 + $0x10] ss:$2 sm:$0xff] %v7151_v47  ;;  %v7221_v44 = vrot.slane %v7220_v39, 4  ;;  %v7227_v46 = vsel %vm7205_vm9, %v7172_v13, 0.0 }
 0x706   : > { %v7228_v45 = vrot.slane %v7227_v46, 4  ;;  %v7173_v25 = vld.sshfl [vmem:[#allocation1 + $0x20] sm:$0xff pattern:$0x75316420] }
 0x707   : > { %v7209_v49 = vrot.slane %v7208_v41, 2  ;;  %v7216_v50 = vrot.slane %v7215_v43, 2  ;;  %v7222_v57 = vadd.f32 %v7221_v44, %v7220_v39  ;;  %v7174_v7 = vld.sshfl [vmem:[#allocation1 + $0x28] sm:$0xff pattern:$0x75316420]  ;;  %v7234_v59 = vsel %vm7205_vm9, %v7173_v25, 0.0 }
 0x708   : > { %v7229_v62 = vadd.f32 %v7228_v45, %v7227_v46  ;;  %7179 = vst [vmem:[#allocation1 + $0x20] ss:$2 sm:$0xff] %v7152_v40  ;;  %v7235_v63 = vrot.slane %v7234_v59, 4  ;;  %v7241_v1 = vsel %vm7205_vm9, %v7174_v7, 0.0 }
 0x709   : > { %v7210_v52 = vadd.f32 %v7209_v49, %v7208_v41  ;;  %v7217_v42 = vadd.f32 %v7216_v50, %v7215_v43  ;;  %v7223_v4 = vrot.slane %v7222_v57, 2  ;;  %v7242_v34 = vrot.slane %v7241_v1, 4  ;;  %v7175_v6 = vld.sshfl [vmem:[#allocation1 + $0x30] sm:$0xff pattern:$0x75316420] }
 0x70a   : > { %v7230_v56 = vrot.slane %v7229_v62, 2  ;;  %v7236_v60 = vadd.f32 %v7235_v63, %v7234_v59  ;;  %v7176_v3 = vld.sshfl [vmem:[#allocation1 + $0x38] sm:$0xff pattern:$0x75316420]  ;;  %v7248_v8 = vsel %vm7205_vm9, %v7175_v6, 0.0 }
 0x70b   : > { %v7218_v9 = vrot.slane %v7217_v42, 1  ;;  %v7224_v11 = vadd.f32 %v7223_v4, %v7222_v57  ;;  %v7243_v12 = vadd.f32 %v7242_v34, %v7241_v1  ;;  %7180 = vst [vmem:[#allocation1 + $0x30] ss:$2 sm:$0xff] %v7153_v48  ;;  %v7249_v15 = vrot.slane %v7248_v8, 4 }
 0x70c   : > { %v7231_v17 = vadd.f32 %v7230_v56, %v7229_v62  ;;  %v7237_v10 = vrot.slane %v7236_v60, 2  ;;  %v7255_v16 = vsel %vm7205_vm9, %v7176_v3, 0.0  ;;  %v7211_v18 = vrot.slane %v7210_v52, 1  ;;  %v7181_v53 = vld.sshfl [vmem:[#allocation1] sm:$0xff pattern:$0x75316420] }
 0x70d   : > { %v7225_v19 = vrot.slane %v7224_v11, 1  ;;  %v7244_v20 = vrot.slane %v7243_v12, 2  ;;  %v7256_v21 = vrot.slane %v7255_v16, 4  ;;  %v7250_v23 = vadd.f32 %v7249_v15, %v7248_v8  ;;  %v7182_v14 = vld.sshfl [vmem:[#allocation1 + $0x8] sm:$0xff pattern:$0x75316420] }
 0x70e   : > { %v7232_v22 = vrot.slane %v7231_v17, 1  ;;  %v7238_v51 = vadd.f32 %v7237_v10, %v7236_v60  ;;  %v7219_v24 = vadd.f32 %v7218_v9, %v7217_v42  ;;  %v7262_v30 = vsel %vm7205_vm9, %v7181_v53, 0.0  ;;  %v7183_v31 = vld.sshfl [vmem:[#allocation1 + $0x10] sm:$0xff pattern:$0x75316420] }
 0x70f   : > { %v7245_v54 = vadd.f32 %v7244_v20, %v7243_v12  ;;  %v7257_v27 = vadd.f32 %v7256_v21, %v7255_v16  ;;  %v7226_v28 = vadd.f32 %v7225_v19, %v7224_v11  ;;  %v7251_v26 = vrot.slane %v7250_v23, 2  ;;  %v7184_v37 = vld.sshfl [vmem:[#allocation1 + $0x18] sm:$0xff pattern:$0x75316420] }
 0x710   : > { %v7239_v5 = vrot.slane %v7238_v51, 1  ;;  %v7233_v2 = vadd.f32 %v7232_v22, %v7231_v17  ;;  %v7334_v61 = vrot.slane %v7219_v24, 7  ;;  %v7212_v47 = vadd.f32 %v7211_v18, %v7210_v52  ;;  %v7185_v25 = vld.sshfl [vmem:[#allocation1 + $0x20] sm:$0xff pattern:$0x75316420] }
 0x711   : > { %v7246_v0 = vrot.slane %v7245_v54, 1  ;;  %v7258_v55 = vrot.slane %v7257_v27, 2  ;;  %v7335_v33 = vrot.slane %v7226_v28, 6  ;;  %v7252_v29 = vadd.f32 %v7251_v26, %v7250_v23  ;;  %v7186_v50 = vld.sshfl [vmem:[#allocation1 + $0x28] sm:$0xff pattern:$0x75316420] }
 0x712   : > { %v7240_v32 = vadd.f32 %v7239_v5, %v7238_v51  ;;  %v7336_v58 = vrot.slane %v7233_v2, 5  ;;  %v7263_v38 = vrot.slane %v7262_v30, 4  ;;  %v7269_v13 = vsel %vm7205_vm9, %v7182_v14, 0.0  ;;  %v7187_v1 = vld.sshfl [vmem:[#allocation1 + $0x30] sm:$0xff pattern:$0x75316420] }
 0x713   : > { %v7259_v35 = vadd.f32 %v7258_v55, %v7257_v27  ;;  %v7247_v36 = vadd.f32 %v7246_v0, %v7245_v54  ;;  %v7253_v39 = vrot.slane %v7252_v29, 1  ;;  %v7349_v40 = vsel %vm7348_vm13, %v7212_v47, %v7334_v61  ;;  %v7188_v20 = vld.sshfl [vmem:[#allocation1 + $0x38] sm:$0xff pattern:$0x75316420] }
 0x714   : > { %v7351_v41 = vsel %vm7350_vm1, %v7335_v33, %v7336_v58  ;;  %v7270_v43 = vrot.slane %v7269_v13, 4  ;;  %v7337_v46 = vrot.slane %v7240_v32, 4  ;;  %v7264_v48 = vadd.f32 %v7263_v38, %v7262_v30 }
 0x715   : > { %v7260_v44 = vrot.slane %v7259_v35, 1  ;;  %v7338_v45 = vrot.slane %v7247_v36, 3  ;;  %v7254_v49 = vadd.f32 %v7253_v39, %v7252_v29  ;;  %v7276_v7 = vsel %vm7205_vm9, %v7183_v31, 0.0 }
 0x716   : > { %v7271_v57 = vadd.f32 %v7270_v43, %v7269_v13  ;;  %v7283_v59 = vsel %vm7205_vm9, %v7184_v37, 0.0  ;;  %v7353_v63 = vsel %vm7352_vm2, %v7349_v40, %v7351_v41  ;;  %v7277_v52 = vrot.slane %v7276_v7, 4 }
 0x717   : > { %v7261_v62 = vadd.f32 %v7260_v44, %v7259_v35  ;;  %v7339_v42 = vrot.slane %v7254_v49, 2  ;;  %v7284_v34 = vrot.slane %v7283_v59, 4  ;;  %v7290_v6 = vsel %vm7205_vm9, %v7185_v25, 0.0 }
 0x718   : > { %v7272_v4 = vrot.slane %v7271_v57, 2  ;;  %v7355_v60 = vsel %vm7354_vm3, %v7337_v46, %v7338_v45  ;;  %v7278_v3 = vadd.f32 %v7277_v52, %v7276_v7  ;;  %v7291_v8 = vrot.slane %v7290_v6, 4 }
 0x719   : > { %v7340_v56 = vrot.slane %v7261_v62, 1  ;;  %v7265_v9 = vrot.slane %v7264_v48, 2  ;;  %v7285_v12 = vadd.f32 %v7284_v34, %v7283_v59  ;;  %v7297_v17 = vsel %vm7205_vm9, %v7186_v50, 0.0 }
 0x71a   : > { %v7273_v11 = vadd.f32 %v7272_v4, %v7271_v57  ;;  %v7279_v15 = vrot.slane %v7278_v3, 2  ;;  %v7292_v16 = vadd.f32 %v7291_v8, %v7290_v6  ;;  %v7304_v18 = vsel %vm7205_vm9, %v7187_v1, 0.0 }
 0x71b   : > { %v7357_v10 = vsel %vm7356_vm4, %v7339_v42, %v7340_v56  ;;  %v7286_v21 = vrot.slane %v7285_v12, 2  ;;  %v7298_v22 = vrot.slane %v7297_v17, 4  ;;  %v7305_v28 = vrot.slane %v7304_v18, 4 }
 0x71c   : > { %v7359_v19 = vsel %vm7358_vm5, %v7355_v60, %v7357_v10  ;;  %v7274_v23 = vrot.slane %v7273_v11, 1  ;;  %v7280_v24 = vadd.f32 %v7279_v15, %v7278_v3  ;;  %v7293_v53 = vrot.slane %v7292_v16, 2 }
 0x71d   : > { %v7361_v51 = vsel %vm7360_vm6, %v7353_v63, %v7359_v19  ;;  %v7287_v54 = vadd.f32 %v7286_v21, %v7285_v12  ;;  %v7299_v27 = vadd.f32 %v7298_v22, %v7297_v17  ;;  %v7266_v5 = vadd.f32 %v7265_v9, %v7264_v48 }
 0x71e   : > { %7371 = vst [vmem:[%s9959_s25] sm:$0xff] %v7361_v51  ;;  %v7281_v26 = vrot.slane %v7280_v24, 1  ;;  %v7294_v2 = vadd.f32 %v7293_v53, %v7292_v16  ;;  %v7311_v61 = vsel %vm7205_vm9, %v7188_v20, 0.0  ;;  %v7306_v55 = vadd.f32 %v7305_v28, %v7304_v18 }
 0x71f   : > { %v7288_v14 = vrot.slane %v7287_v54, 1  ;;  %v7300_v0 = vrot.slane %v7299_v27, 2  ;;  %v7312_v33 = vrot.slane %v7311_v61, 4  ;;  %v7275_v30 = vadd.f32 %v7274_v23, %v7273_v11 }
 0x720   : > { %v7282_v29 = vadd.f32 %v7281_v26, %v7280_v24  ;;  %v7295_v47 = vrot.slane %v7294_v2, 1  ;;  %v7307_v31 = vrot.slane %v7306_v55, 2  ;;  %v7267_v36 = vrot.slane %v7266_v5, 1 }
 0x721   : > { %v7289_v32 = vadd.f32 %v7288_v14, %v7287_v54  ;;  %v7301_v58 = vadd.f32 %v7300_v0, %v7299_v27  ;;  %v7313_v35 = vadd.f32 %v7312_v33, %v7311_v61  ;;  %v7341_v40 = vrot.slane %v7275_v30, 7 }
 0x722   : > { %v7296_v37 = vadd.f32 %v7295_v47, %v7294_v2  ;;  %v7308_v13 = vadd.f32 %v7307_v31, %v7306_v55  ;;  %v7342_v41 = vrot.slane %v7282_v29, 6  ;;  %v7268_v25 = vadd.f32 %v7267_v36, %v7266_v5 }
 0x723   : > { %v7302_v38 = vrot.slane %v7301_v58, 1  ;;  %v7314_v39 = vrot.slane %v7313_v35, 2  ;;  %v7343_v45 = vrot.slane %v7289_v32, 5 }
 0x724   : > { %v7309_v44 = vrot.slane %v7308_v13, 1  ;;  %v7344_v50 = vrot.slane %v7296_v37, 4  ;;  %v7362_v62 = vsel %vm7348_vm13, %v7268_v25, %v7341_v40 }
 0x725   : > { %v7303_v43 = vadd.f32 %v7302_v38, %v7301_v58  ;;  %v7315_v46 = vadd.f32 %v7314_v39, %v7313_v35  ;;  %v7363_v63 = vsel %vm7350_vm1, %v7342_v41, %v7343_v45 }
 0x726   : > { %v7310_v48 = vadd.f32 %v7309_v44, %v7308_v13  ;;  %v7364_v42 = vsel %vm7352_vm2, %v7362_v62, %v7363_v63 }
 0x727   : > { %v7316_v49 = vrot.slane %v7315_v46, 1  ;;  %v7345_v57 = vrot.slane %v7303_v43, 3 }
 0x728   : > { %v7346_v59 = vrot.slane %v7310_v48, 2 }
 0x729   : > { %v7317_v7 = vadd.f32 %v7316_v49, %v7315_v46  ;;  %v7365_v52 = vsel %vm7354_vm3, %v7344_v50, %v7345_v57 }
 0x72b   : > { %v7347_v1 = vrot.slane %v7317_v7, 1 }
 0x72d   : > { %v7366_v4 = vsel %vm7356_vm4, %v7346_v59, %v7347_v1 }
 0x72e   : > { %v7367_v34 = vsel %vm7358_vm5, %v7365_v52, %v7366_v4 }
 0x72f   : > { %v7368_v6 = vsel %vm7360_vm6, %v7364_v42, %v7367_v34 }
 0x730   : > { %7372 = vst [vmem:[%s9959_s25 + $0x8] sm:$0xff] %v7368_v6 }
 0x731 PF: > { %s7384_s22 = scalar_lea.hbm %s13065_s5, %s9950_s17  ;;  %s7386_s23 = sshll.u32 %s9959_s25, 4  ;;  %s7387_s23 = int_to_ptr.vmem [resolvable:$true] %s7386_s23 }
 0x732   : > { %s7388_s24 = sshll.u32 %s7384_s22, 4  ;;  %s7374_s13 = scalar_lea.sflag [#allocation9], %s9938_s11  ;;  %s7389_s24 = int_to_ptr.hbm [resolvable:$true] %s7388_s24 }
 0x733   : > { %s9723_s7 = sshra.s32 %s7389_s24, 4  ;;  %s9729_s19 = scalar_lea.hbm %s13065_s5, 32  ;;  %s9724_s7 = int_to_ptr.hbm [resolvable:$true] %s9723_s7 }
 0x734   : > { %s9725_s8 = scalar_lea.hbm %s9724_s7, 16  ;;  %p9730_p1 = scmp.lt.s32.totalorder %s9724_s7, %s13065_s5 }
 0x735   : > { %p9726_p12 = scmp.ne.s32.totalorder %s9724_s7, %s9725_s8  ;;  %p9731_p2 = scmp.lt.s32.totalorder %s9729_s19, %s9725_s8 }
 0x737   : > { %p9727_p13 = pnand %p9726_p12, %p9914_p10  ;;  %p9732_p4 = por %p9731_p2, %p9730_p1 }
 0x739   : > { %p9728_p0 = pneg %p9727_p13 }
 0x73b   : > { %p9733_p3 = pnand %p9732_p4, %p9728_p0 }
 0x73d   : > { %9736 = shalt.err (!%p9733_p3)
}
 0x73e   : > { %9573 = dma.vmem_to_hbm [thread:$0]  (%p9914_p10), %s7387_s23, 256, %s7389_s24, %s7374_s13  }
 0x73f PF: > { %p9584_p5 = scmp.ge.s32.totalorder %s9809_s6, 2  ;;  %s7400_s11 = sand.u32 1, %s9781_s26  }
 0x740   : > { %s7401_s17 = scalar_lea.sflag [#allocation9], %s7400_s11 }
 0x741   : > { %p9580_p6 = pnand %p9584_p5, %p9920_p11 }
 0x743   : > { %p9581_p7 = pneg %p9580_p6 }
 0x745   : > { %9776 = dma.done.wait (%p9581_p7), %s7401_s17, 256  }
 0x746   : > { %9778 = vsyncadd (%p9581_p7), %s7401_s17, 4294967040  ;;  %s34_s6 = sadd.s32 1, %s9809_s6   ;;  %s13071_s26 = smov %s9785_s0 }
 0x747   : > { %p31_p8 = scmp.ge.s32.totalorder %s34_s6, 6   ;;  %s13072_s0 = smov %s9789_s27 }
 0x748   : > { %s13073_s27 = smov %s9927_s18  ;;  %s13074_s1 = smov %s9801_s29 }
 0x749   : > { %s13075_s28 = smov %s9805_s30  ;;  %s13076_s29 = smov %s13079_s9 }
 0x74a   : > { %s13077_s30 = smov %s13083_s10  ;;  %33 = sbr.rel (!%p31_p8) target bundleno = 14 (0xe), region = 96 }
 0x74f   :  { %7407 = vsyncpa [#allocation8], 1 }
 0x750   :  { %7409 = vsyncpa [#allocation8 + $0x1], 1 }
 0x751   :  { %7410 = vsyncpa [#allocation9], 1 }
 0x752   :  { %7412 = vsyncpa [#allocation9 + $0x1], 1 }

</bundles_post_ra>
